<compile_context>
chip_gen: v7x
topology: tpu7x:2x2x1
jax: 0.10.0
libtpu: 0.0.40
codegen_flags: <defaults>
</compile_context>

<pallas_src>
import functools

import jax
import jax.numpy as jnp
from jax.experimental import pallas as pl
from jax.experimental.pallas import tpu as pltpu


# ----------------------------------------------------------------------------
# Fused kernel: per-sample (tn, Cin) @ (Cin, HW) conv -> BN (batch stats) -> ReLU
# ----------------------------------------------------------------------------
def fused_conv1x1_bn_relu_kernel(x_ref, w_ref, g_ref, beta_ref, o_ref, *, eps):
    n_batch = x_ref.shape[0]
    hw = x_ref.shape[2]
    tn = w_ref.shape[0]
    m = n_batch * hw

    w_blk = w_ref[...]                      # (tn, Cin), native (Cout, Cin) layout

    # ---- Pass 1: 1x1 conv per sample + per-channel sum / sum-of-squares. ----
    # Raw conv output is staged in the (VMEM-resident) output block; it is
    # overwritten with the final activation in pass 2 before HBM writeback.
    s = jnp.zeros((tn, 1), jnp.float32)
    ss = jnp.zeros((tn, 1), jnp.float32)
    for n in range(n_batch):                # static, small N -> visible to LLO
        y = jnp.dot(w_blk, x_ref[n], preferred_element_type=jnp.float32)  # (tn, HW)
        s = s + jnp.sum(y, axis=1, keepdims=True)
        ss = ss + jnp.sum(y * y, axis=1, keepdims=True)
        o_ref[n] = y

    # ---- BatchNorm2d (training-mode batch stats) folded into one affine. ----
    inv_m = 1.0 / m
    mean = s * inv_m
    var = jnp.maximum(ss * inv_m - mean * mean, 0.0)   # biased var, clamped >= 0
    scale = jax.lax.rsqrt(var + eps) * g_ref[...]      # (tn, 1)
    shift = beta_ref[...] - mean * scale               # (tn, 1)

    # ---- Pass 2: fused affine + ReLU; single HBM store per output block. ----
    for n in range(n_batch):
        o_ref[n] = jnp.maximum(o_ref[n] * scale + shift, 0.0)


def fused_conv1x1_bn_relu(x, w, gamma, beta, *, eps=1e-5, tn=512,
                          compute_dtype=jnp.float32):
    """x: (N, Cin, HW); w: (Cout, Cin); gamma/beta: (Cout, 1). Returns (N, Cout, HW) f32."""
    N, Cin, HW = x.shape
    Cout = w.shape[0]
    assert w.shape == (Cout, Cin)
    tn = min(tn, Cout)
    assert Cout % tn == 0 and tn % 8 == 0, (Cout, tn)

    # Optional bf16 MXU path (keep f32 accumulation inside the kernel).
    # In a real model x/w would already arrive in bf16; here we cast outside
    # the pallas_call so the kernel streams narrow data from HBM.
    if x.dtype != compute_dtype:
        x = x.astype(compute_dtype)
    if w.dtype != compute_dtype:
        w = w.astype(compute_dtype)
    itemsize = 2 if compute_dtype == jnp.bfloat16 else 4

    # Per-core VMEM plan: x resident once (double-buffered by default pipeline),
    # weight + output column blocks double-buffered, params negligible.
    x_bytes = N * Cin * HW * itemsize
    w_bytes = tn * Cin * itemsize
    o_bytes = N * tn * HW * 4
    footprint = 2 * x_bytes + 2 * w_bytes + 2 * o_bytes + 4 * 4 * tn
    vmem_budget = 60 * 1024 * 1024   # safe on v5e/v6e, under v7x's 64 MiB/TC
    assert footprint <= vmem_budget, (
        f"VMEM plan ({footprint / 2**20:.1f} MiB) exceeds "
        f"{vmem_budget / 2**20:.0f} MiB; tile the N*H*W dimension "
        "(see TODO at top of file).")

    kern = functools.partial(fused_conv1x1_bn_relu_kernel, eps=eps)
    flops = 2 * N * HW * Cin * Cout
    bytes_accessed = (x_bytes + Cout * Cin * itemsize + 2 * Cout * 4
                      + N * Cout * HW * 4)

    return pl.pallas_call(
        kern,
        out_shape=jax.ShapeDtypeStruct((N, Cout, HW), jnp.float32),
        grid=(Cout // tn,),
        in_specs=[
            # Full (N, Cin, HW) input; constant block index => DMA'd from HBM
            # once and kept VMEM-resident across all Cout column blocks.
            pl.BlockSpec((N, Cin, HW), lambda j: (0, 0, 0)),
            pl.BlockSpec((tn, Cin), lambda j: (j, 0)),   # weight row block
            pl.BlockSpec((tn, 1), lambda j: (j, 0)),     # BN gamma
            pl.BlockSpec((tn, 1), lambda j: (j, 0)),     # BN beta
        ],
        out_specs=pl.BlockSpec((N, tn, HW), lambda j: (0, j, 0)),
        compiler_params=pltpu.CompilerParams(
            dimension_semantics=("parallel",),           # megacore shard on v7x
            vmem_limit_bytes=min(vmem_budget,
                                 max(32 * 1024 * 1024, int(footprint * 1.25))),
        ),
        cost_estimate=pl.CostEstimate(
            flops=flops,
            transcendentals=Cout,                        # rsqrt per channel
            bytes_accessed=bytes_accessed,
        ),
    )(x, w, gamma, beta)


# ----------------------------------------------------------------------------
# Module forward (NCHW in / NCHW out, like the PyTorch module)
# ----------------------------------------------------------------------------
def fusion_detailed_information1(x_nchw, w, b, gamma, beta, *, eps=1e-5,
                                 compute_dtype=jnp.float32):
    N, Cin, H, W = x_nchw.shape
    Cout = w.shape[0]
    # Conv bias is exactly cancelled by the training-mode BN mean subtraction,
    # so it is not passed to the kernel (zero numerical effect on the output).
    del b
    # Only contiguous-trailing-dim reshapes (metadata-only, no HBM copies).
    x3 = x_nchw.reshape(N, Cin, H * W)
    y3 = fused_conv1x1_bn_relu(x3, w, gamma.reshape(Cout, 1),
                               beta.reshape(Cout, 1), eps=eps,
                               compute_dtype=compute_dtype)
    return y3.reshape(N, Cout, H, W)


# ----------------------------------------------------------------------------
# Pure-JAX reference (keeps the conv bias; proves the cancellation)
# ----------------------------------------------------------------------------
def _reference(x_nchw, w, b, gamma, beta, eps=1e-5):
    N, Cin, H, W = x_nchw.shape
    Cout = w.shape[0]
    x2 = jnp.transpose(x_nchw, (0, 2, 3, 1)).reshape(-1, Cin)
    y = jnp.dot(x2, w.T, precision=jax.lax.Precision.HIGHEST) + b
    mean = jnp.mean(y, axis=0, keepdims=True)
    var = jnp.mean((y - mean) ** 2, axis=0, keepdims=True)
    out = (y - mean) * jax.lax.rsqrt(var + eps) * gamma + beta
    out = jnp.maximum(out, 0.0)
    return out.reshape(N, H, W, Cout).transpose(0, 3, 1, 2)


if __name__ == "__main__":
    CIN, COUT = 512, 1024          # fixed by the module definition
    N, H, W = 2, 16, 16            # small example; HW = 256 -> lane-dense output

    key = jax.random.PRNGKey(0)
    kx, kw, kb, kg, kbeta = jax.random.split(key, 5)

    x = jax.random.normal(kx, (N, CIN, H, W), dtype=jnp.float32)
    # Conv2d(512, 1024, 1) weight in native PyTorch layout (Cout, Cin) [1x1 squeezed]
    w = jax.random.normal(kw, (COUT, CIN), dtype=jnp.float32) * (1.0 / jnp.sqrt(CIN))
    b = jax.random.normal(kb, (COUT,), dtype=jnp.float32) * 0.1
    gamma = 1.0 + 0.1 * jax.random.normal(kg, (COUT,), dtype=jnp.float32)
    beta = 0.1 * jax.random.normal(kbeta, (COUT,), dtype=jnp.float32)

    ref = jax.block_until_ready(_reference(x, w, b, gamma, beta))

    # f32 path: parity with the PyTorch float32 forward.
    out = jax.block_until_ready(fusion_detailed_information1(x, w, b, gamma, beta))
    assert out.shape == (N, COUT, H, W), out.shape
    assert bool(jnp.all(out >= 0.0))                 # ReLU
    assert bool(jnp.all(jnp.isfinite(out)))
    err = float(jnp.max(jnp.abs(out - ref)))
    assert err < 1e-3, err

    # bf16 MXU path (native matmul dtype on v5e/v6e/v7x; f32 accumulation).
    out_bf16 = jax.block_until_ready(
        fusion_detailed_information1(x, w, b, gamma, beta,
                                     compute_dtype=jnp.bfloat16))
    err_bf16 = float(jnp.max(jnp.abs(out_bf16 - ref)))
    assert err_bf16 < 5e-2, err_bf16

    print("KERNEL_OK")
</pallas_src>

<mosaic_0001>
module attributes {stable_mosaic.version = 11 : i64} {
  func.func @fused_conv1x1_bn_relu_kernel(%arg0: i32, %arg1: memref<2x512x256xf32, #tpu.memory_space<vmem>>, %arg2: memref<512x512xf32, #tpu.memory_space<vmem>>, %arg3: memref<512x1xf32, #tpu.memory_space<vmem>>, %arg4: memref<512x1xf32, #tpu.memory_space<vmem>>, %arg5: memref<2x512x256xf32, #tpu.memory_space<vmem>>) attributes {dimension_semantics = [#tpu.dimension_semantics<parallel>], iteration_bounds = array<i64: 2>, scalar_prefetch = 0 : i64, scratch_operands = 0 : i64, tpu.core_type = #tpu.core_type<tc>, window_params = [{pipeline_mode = #tpu.pipeline_mode<synchronous>, transform_indices = @transform_0, window_bounds = array<i64: 2, 512, 256>}, {transform_indices = @transform_1, window_bounds = array<i64: 512, 512>}, {transform_indices = @transform_2, window_bounds = array<i64: 512, 1>}, {transform_indices = @transform_3, window_bounds = array<i64: 512, 1>}, {transform_indices = @transform_4, window_bounds = array<i64: 2, 512, 256>}]} {
    %c0 = arith.constant 0 : index
    %c0_0 = arith.constant 0 : index
    %0 = vector.load %arg2[%c0, %c0_0] : memref<512x512xf32, #tpu.memory_space<vmem>>, vector<512x512xf32>
    %cst = arith.constant 0.000000e+00 : f32
    %1 = vector.broadcast %cst : f32 to vector<512x1xf32>
    %cst_1 = arith.constant 0.000000e+00 : f32
    %2 = vector.broadcast %cst_1 : f32 to vector<512x1xf32>
    %c0_2 = arith.constant 0 : index
    %c0_3 = arith.constant 0 : index
    %c0_4 = arith.constant 0 : index
    %3 = vector.load %arg1[%c0_2, %c0_3, %c0_4] : memref<2x512x256xf32, #tpu.memory_space<vmem>>, vector<1x512x256xf32>
    %4 = vector.shape_cast %3 : vector<1x512x256xf32> to vector<512x256xf32>
    %cst_5 = arith.constant dense<0.000000e+00> : vector<512x256xf32>
    %5 = tpu.matmul %0, %4, %cst_5 {dimension_numbers = #tpu.dot_dimension_numbers<[1], [0], [0], [1], [0, 0, 1, 1], [], []>} : vector<512x512xf32>, vector<512x256xf32>, vector<512x256xf32> -> vector<512x256xf32>
    %cst_6 = arith.constant dense<0.000000e+00> : vector<512xf32>
    %6 = vector.multi_reduction <add>, %5, %cst_6 [1] : vector<512x256xf32> to vector<512xf32>
    %7 = vector.shape_cast %6 : vector<512xf32> to vector<512x1xf32>
    %8 = arith.addf %1, %7 : vector<512x1xf32>
    %9 = arith.mulf %5, %5 : vector<512x256xf32>
    %cst_7 = arith.constant dense<0.000000e+00> : vector<512xf32>
    %10 = vector.multi_reduction <add>, %9, %cst_7 [1] : vector<512x256xf32> to vector<512xf32>
    %11 = vector.shape_cast %10 : vector<512xf32> to vector<512x1xf32>
    %12 = arith.addf %2, %11 : vector<512x1xf32>
    %c0_8 = arith.constant 0 : index
    %c0_9 = arith.constant 0 : index
    %c0_10 = arith.constant 0 : index
    %13 = vector.load %arg5[%c0_8, %c0_9, %c0_10] : memref<2x512x256xf32, #tpu.memory_space<vmem>>, vector<1x512x256xf32>
    %14 = vector.shape_cast %13 : vector<1x512x256xf32> to vector<512x256xf32>
    %15 = vector.shape_cast %5 : vector<512x256xf32> to vector<1x512x256xf32>
    tpu.vector_store %arg5[%c0_8, %c0_9, %c0_10], %15 {strides = array<i32>} : memref<2x512x256xf32, #tpu.memory_space<vmem>>, vector<1x512x256xf32>,
    %c1 = arith.constant 1 : index
    %c0_11 = arith.constant 0 : index
    %c0_12 = arith.constant 0 : index
    %16 = vector.load %arg1[%c1, %c0_11, %c0_12] : memref<2x512x256xf32, #tpu.memory_space<vmem>>, vector<1x512x256xf32>
    %17 = vector.shape_cast %16 : vector<1x512x256xf32> to vector<512x256xf32>
    %cst_13 = arith.constant dense<0.000000e+00> : vector<512x256xf32>
    %18 = tpu.matmul %0, %17, %cst_13 {dimension_numbers = #tpu.dot_dimension_numbers<[1], [0], [0], [1], [0, 0, 1, 1], [], []>} : vector<512x512xf32>, vector<512x256xf32>, vector<512x256xf32> -> vector<512x256xf32>
    %cst_14 = arith.constant dense<0.000000e+00> : vector<512xf32>
    %19 = vector.multi_reduction <add>, %18, %cst_14 [1] : vector<512x256xf32> to vector<512xf32>
    %20 = vector.shape_cast %19 : vector<512xf32> to vector<512x1xf32>
    %21 = arith.addf %8, %20 : vector<512x1xf32>
    %22 = arith.mulf %18, %18 : vector<512x256xf32>
    %cst_15 = arith.constant dense<0.000000e+00> : vector<512xf32>
    %23 = vector.multi_reduction <add>, %22, %cst_15 [1] : vector<512x256xf32> to vector<512xf32>
    %24 = vector.shape_cast %23 : vector<512xf32> to vector<512x1xf32>
    %25 = arith.addf %12, %24 : vector<512x1xf32>
    %c1_16 = arith.constant 1 : index
    %c0_17 = arith.constant 0 : index
    %c0_18 = arith.constant 0 : index
    %26 = vector.load %arg5[%c1_16, %c0_17, %c0_18] : memref<2x512x256xf32, #tpu.memory_space<vmem>>, vector<1x512x256xf32>
    %27 = vector.shape_cast %26 : vector<1x512x256xf32> to vector<512x256xf32>
    %28 = vector.shape_cast %18 : vector<512x256xf32> to vector<1x512x256xf32>
    tpu.vector_store %arg5[%c1_16, %c0_17, %c0_18], %28 {strides = array<i32>} : memref<2x512x256xf32, #tpu.memory_space<vmem>>, vector<1x512x256xf32>,
    %cst_19 = arith.constant 0.001953125 : f32
    %29 = vector.broadcast %cst_19 : f32 to vector<512x1xf32>
    %30 = arith.mulf %21, %29 : vector<512x1xf32>
    %cst_20 = arith.constant 0.001953125 : f32
    %31 = vector.broadcast %cst_20 : f32 to vector<512x1xf32>
    %32 = arith.mulf %25, %31 : vector<512x1xf32>
    %33 = arith.mulf %30, %30 : vector<512x1xf32>
    %34 = arith.subf %32, %33 : vector<512x1xf32>
    %cst_21 = arith.constant 0.000000e+00 : f32
    %35 = vector.broadcast %cst_21 : f32 to vector<512x1xf32>
    %36 = arith.maximumf %34, %35 : vector<512x1xf32>
    %cst_22 = arith.constant 9.99999974E-6 : f32
    %37 = vector.broadcast %cst_22 : f32 to vector<512x1xf32>
    %38 = arith.addf %36, %37 : vector<512x1xf32>
    %39 = math.rsqrt %38 : vector<512x1xf32>
    %c0_23 = arith.constant 0 : index
    %c0_24 = arith.constant 0 : index
    %40 = vector.load %arg3[%c0_23, %c0_24] : memref<512x1xf32, #tpu.memory_space<vmem>>, vector<512x1xf32>
    %41 = arith.mulf %39, %40 : vector<512x1xf32>
    %c0_25 = arith.constant 0 : index
    %c0_26 = arith.constant 0 : index
    %42 = vector.load %arg4[%c0_25, %c0_26] : memref<512x1xf32, #tpu.memory_space<vmem>>, vector<512x1xf32>
    %43 = arith.mulf %30, %41 : vector<512x1xf32>
    %44 = arith.subf %42, %43 : vector<512x1xf32>
    %c0_27 = arith.constant 0 : index
    %c0_28 = arith.constant 0 : index
    %c0_29 = arith.constant 0 : index
    %45 = vector.load %arg5[%c0_27, %c0_28, %c0_29] : memref<2x512x256xf32, #tpu.memory_space<vmem>>, vector<1x512x256xf32>
    %46 = vector.shape_cast %45 : vector<1x512x256xf32> to vector<512x256xf32>
    %47 = vector.broadcast %41 : vector<512x1xf32> to vector<512x256xf32>
    %48 = arith.mulf %46, %47 : vector<512x256xf32>
    %49 = vector.broadcast %44 : vector<512x1xf32> to vector<512x256xf32>
    %50 = arith.addf %48, %49 : vector<512x256xf32>
    %cst_30 = arith.constant 0.000000e+00 : f32
    %51 = vector.broadcast %cst_30 : f32 to vector<512x256xf32>
    %52 = arith.maximumf %50, %51 : vector<512x256xf32>
    %c0_31 = arith.constant 0 : index
    %c0_32 = arith.constant 0 : index
    %c0_33 = arith.constant 0 : index
    %53 = vector.load %arg5[%c0_31, %c0_32, %c0_33] : memref<2x512x256xf32, #tpu.memory_space<vmem>>, vector<1x512x256xf32>
    %54 = vector.shape_cast %53 : vector<1x512x256xf32> to vector<512x256xf32>
    %55 = vector.shape_cast %52 : vector<512x256xf32> to vector<1x512x256xf32>
    tpu.vector_store %arg5[%c0_31, %c0_32, %c0_33], %55 {strides = array<i32>} : memref<2x512x256xf32, #tpu.memory_space<vmem>>, vector<1x512x256xf32>,
    %c1_34 = arith.constant 1 : index
    %c0_35 = arith.constant 0 : index
    %c0_36 = arith.constant 0 : index
    %56 = vector.load %arg5[%c1_34, %c0_35, %c0_36] : memref<2x512x256xf32, #tpu.memory_space<vmem>>, vector<1x512x256xf32>
    %57 = vector.shape_cast %56 : vector<1x512x256xf32> to vector<512x256xf32>
    %58 = vector.broadcast %41 : vector<512x1xf32> to vector<512x256xf32>
    %59 = arith.mulf %57, %58 : vector<512x256xf32>
    %60 = vector.broadcast %44 : vector<512x1xf32> to vector<512x256xf32>
    %61 = arith.addf %59, %60 : vector<512x256xf32>
    %cst_37 = arith.constant 0.000000e+00 : f32
    %62 = vector.broadcast %cst_37 : f32 to vector<512x256xf32>
    %63 = arith.maximumf %61, %62 : vector<512x256xf32>
    %c1_38 = arith.constant 1 : index
    %c0_39 = arith.constant 0 : index
    %c0_40 = arith.constant 0 : index
    %64 = vector.load %arg5[%c1_38, %c0_39, %c0_40] : memref<2x512x256xf32, #tpu.memory_space<vmem>>, vector<1x512x256xf32>
    %65 = vector.shape_cast %64 : vector<1x512x256xf32> to vector<512x256xf32>
    %66 = vector.shape_cast %63 : vector<512x256xf32> to vector<1x512x256xf32>
    tpu.vector_store %arg5[%c1_38, %c0_39, %c0_40], %66 {strides = array<i32>} : memref<2x512x256xf32, #tpu.memory_space<vmem>>, vector<1x512x256xf32>,
    return
  }
  func.func @transform_0(%arg0: i32) -> (i32, i32, i32) {
    %c0_i32 = arith.constant 0 : i32
    %c0_i32_0 = arith.constant 0 : i32
    %c0_i32_1 = arith.constant 0 : i32
    %c0_i32_2 = arith.constant 0 : i32
    return %c0_i32, %c0_i32_0, %c0_i32_1 : i32, i32, i32
  }
  func.func @transform_1(%arg0: i32) -> (i32, i32) {
    %c0_i32 = arith.constant 0 : i32
    %c0_i32_0 = arith.constant 0 : i32
    return %arg0, %c0_i32 : i32, i32
  }
  func.func @transform_2(%arg0: i32) -> (i32, i32) {
    %c0_i32 = arith.constant 0 : i32
    %c0_i32_0 = arith.constant 0 : i32
    return %arg0, %c0_i32 : i32, i32
  }
  func.func @transform_3(%arg0: i32) -> (i32, i32) {
    %c0_i32 = arith.constant 0 : i32
    %c0_i32_0 = arith.constant 0 : i32
    return %arg0, %c0_i32 : i32, i32
  }
  func.func @transform_4(%arg0: i32) -> (i32, i32, i32) {
    %c0_i32 = arith.constant 0 : i32
    %c0_i32_0 = arith.constant 0 : i32
    %c0_i32_1 = arith.constant 0 : i32
    return %c0_i32, %arg0, %c0_i32_0 : i32, i32, i32
  }
}

</mosaic_0001>

<bundles_post_ra>
// kernel: tpu_custom_call.1
= control target key start
LH: loop header
LB: loop body
LE: loop exit
PB: predicated region body
PF: predicated region fallthrough
CT: control target
= control target key end

     0   :  { %9 = vsyncpa [#allocation3], 0  ;;  %s11409_s0 = inlined_call_operand.hbm [shape: f32[2,512,256], index: 0, kind: input, shape index: {}]   ;;  %s11410_s1 = inlined_call_operand.hbm [shape: f32[1024,512], index: 1, kind: input, shape index: {}]   ;;  %s11411_s2 = inlined_call_operand.vmem [shape: f32[1024,1], index: 2, kind: input, shape index: {}]   ;;  %s11412_s3 = inlined_call_operand.vmem [shape: f32[1024,1], index: 3, kind: input, shape index: {}]   ;;  %s11413_s4 = inlined_call_operand.hbm [shape: f32[2,1024,256], index: 4, kind: output, shape index: {}]  }
   0x1   :  { %10 = vsyncpa [#allocation6], 0 }
   0x2   :  { %12 = vsyncpa [#allocation6 + $0x1], 0 }
   0x3   :  { %13 = vsyncpa [#allocation4], 0 }
   0x4   :  { %15 = vsyncpa [#allocation4 + $0x1], 0  ;;  %s8233_s15 = smov 0   ;;  %s8235_s16 = smov 0  }
   0x5   :  { %s8237_s17 = smov 0   ;;  %s8239_s18 = smov 0  }
   0x6 LB: > { %s8254_s19 = sadd.s32 4294967295, %s8192_s18   ;;  %s6965_s20 = sadd.s32 4294967294, %s8192_s18   ;;  %s8192_s18 = sphi %s8239_s18, %s11956_s18   ;;  %s8188_s17 = sphi %s8237_s17, %s11955_s17   ;;  %s8184_s16 = sphi %s8235_s16, %s11954_s16   ;;  %s8180_s15 = sphi %s8233_s15, %s11953_s15  }
   0x7   : > { %p62_p0 = scmp.ne.s32.totalorder %s8184_s16, %s8180_s15  ;;  %p11414_p1 = scmp.eq.s32.totalorder %s8254_s19, 0 }
   0x8   : > { %p144_p3 = scmp.eq.s32.totalorder %s6965_s20, 1  ;;  %p6966_p5 = scmp.ge.s32.totalorder %s8192_s18, 1 }
   0x9   : > { %p8263_p4 = por %p11414_p1, %p62_p0  ;;  %p151_p7 = scmp.lt.s32.totalorder %s8192_s18, 3 }
   0xa   : > { %p8268_p6 = por %p144_p3, %p62_p0  ;;  %s8194_s24 = smov [#allocation2]  }
   0xb   : > { %s11417_s21 = scalar_select %p8263_p4, 1, 0 }
   0xc   : > { %s11418_s22 = scalar_select %p8268_p6, 1, 0 }
   0xd   : > { %p8273_p8 = pnand %p6966_p5, %p151_p7  ;;  %s163_s25 = sshll.u32 %s8194_s24, 4  ;;  %s8277_s25 = int_to_ptr.vmem [resolvable:$true] %s163_s25 }
   0xe   : > { %s8289_s27 = sadd.s32 1, %s8192_s18   ;;  %s49_s28 = sadd.s32 1, %s8188_s17 }
   0xf   : > { %s11419_s23 = scalar_select %p8273_p8, 1, 0 }
  0x10   : > { %p7901_p9 = pneg %p8273_p8  ;;  %s46_s29 = ssub.s32 %s8192_s18, %s8289_s27 }
  0x11   : > { %s8092_s6 = scalar_lea.hbm %s11409_s0, 32768 }
  0x12   : > { %p8284_p11 = pnand %p7901_p9, %p11414_p1  ;;  %p8093_p12 = scmp.ne.s32.totalorder %s11409_s0, %s8092_s6 }
  0x13   : > { %p8099_p5 = scmp.lt.u32.totalorder %s8092_s6, %s11409_s0 }
  0x14   : > { %p8094_p13 = pneg %p8284_p11 }
  0x16   : > { %p8095_p0 = pnand %p8094_p13, %p8093_p12 }
  0x18   : > { %p8096_p3 = pneg %p8095_p0 }
  0x1a   : > { %p8101_p7 = pnand %p8099_p5, %p8096_p3 }
  0x1c   : > { %8104 = shalt.err (!%p8101_p7)
}
  0x1d   : > { %s8105_s11 = scalar_lea.vmem %s8277_s25, 32768  ;;  %p8113_p2 = scmp.lt.s32.totalorder %s8277_s25, %s8277_s25 }
  0x1e   : > { %p8106_p9 = scmp.ne.s32.totalorder %s8277_s25, %s8105_s11  ;;  %p8114_p6 = scmp.lt.s32.totalorder %s8105_s11, %s8105_s11 }
  0x20   : > { %p8108_p10 = pnand %p8106_p9, %p8094_p13  ;;  %p8115_p4 = por %p8114_p6, %p8113_p2 }
  0x22   : > { %p8109_p1 = pneg %p8108_p10 }
  0x24   : > { %p8116_p8 = pnand %p8115_p4, %p8109_p1 }
  0x26   : > { %8119 = shalt.err (!%p8116_p8)
}
  0x27   : > { %s8195_s12 = smov 256   ;;  %s8196_s13 = smov 16  }
  0x28   : > { %7904 = dma.hbm_to_vmem [thread:$0]  (!%p8284_p11), %s11409_s0, 32768, %s8277_s25, [#allocation3], %s8195_s12, %s8195_s12, %s8196_s13  }
  0x29   : > { %p47_p2 = scmp.eq.s32.totalorder %s46_s29, 0  ;;  %p56_p1 = scmp.ne.s32.totalorder %s8188_s17, %s8184_s16 }
  0x2a   : > { %p57_p4 = scmp.eq.s32.totalorder %s8192_s18, 0  ;;  %p7914_p6 = scmp.lt.s32.totalorder %s8192_s18, 2 }
  0x2b   : > { %s8320_s24 = scalar_select %p47_p2, %s8188_s17, %s49_s28  }
  0x2c   : > { %p58_p8 = por %p57_p4, %p56_p1  ;;  %p11421_p10 = scmp.eq.s32.totalorder %s8254_s19, 1 }
  0x2d   : > { %s177_s5 = sand.u32 1, %s8188_s17   ;;  %s7372_s6 = sshll.u32 %s8192_s18, 15 }
  0x2e   : > { %p8324_p12 = por %p11421_p10, %p56_p1  ;;  %s6969_s7 = sshll.u32 %s177_s5, 11 }
  0x2f   : > { %s8333_s9 = scalar_lea.hbm %s11410_s1, %s7372_s6  ;;  %s181_s25 = scalar_lea.vmem [#allocation5], %s6969_s7 }
  0x30   : > { %s189_s28 = sshll.u32 %s181_s25, 4  ;;  %p8335_p11 = pnand %p7914_p6, %p58_p8  ;;  %s8339_s28 = int_to_ptr.vmem [resolvable:$true] %s189_s28 }
  0x31   : > { %s8341_s10 = scalar_lea.sflag [#allocation6], %s177_s5  ;;  %s8120_s11 = scalar_lea.hbm %s8333_s9, 32768 }
  0x32   : > { %p8121_p13 = scmp.ne.s32.totalorder %s8333_s9, %s8120_s11  ;;  %p8122_p0 = pneg %p8335_p11 }
  0x33   : > { %s8125_s14 = scalar_lea.hbm %s11410_s1, 65536  ;;  %p8126_p7 = scmp.lt.u32.totalorder %s8333_s9, %s11410_s1 }
  0x34   : > { %p8123_p3 = pnand %p8122_p0, %p8121_p13  ;;  %p8127_p9 = scmp.lt.u32.totalorder %s8125_s14, %s8120_s11 }
  0x35   : > { %p8129_p1 = scmp.lt.u32.totalorder %s8120_s11, %s8333_s9 }
  0x36   : > { %p8124_p5 = pneg %p8123_p3  ;;  %p8128_p2 = por %p8127_p9, %p8126_p7 }
  0x38   : > { %p8130_p4 = por %p8129_p1, %p8128_p2 }
  0x3a   : > { %p8131_p6 = pnand %p8130_p4, %p8124_p5 }
  0x3c   : > { %8134 = shalt.err (!%p8131_p6)
}
  0x3d   : > { %s8135_s5 = scalar_lea.vmem %s8339_s28, 32768  ;;  %s8197_s7 = smov [#allocation5]  }
  0x3e   : > { %p8136_p8 = scmp.ne.s32.totalorder %s8339_s28, %s8135_s5  ;;  %s8140_s26 = sshll.u32 %s8197_s7, 4  ;;  %s8141_s26 = int_to_ptr.vmem [resolvable:$false] %s8140_s26 }
  0x3f   : > { %s8142_s8 = scalar_lea.vmem %s8141_s26, 65536  ;;  %p8143_p3 = scmp.lt.s32.totalorder %s8339_s28, %s8141_s26 }
  0x40   : > { %p8138_p10 = pnand %p8136_p8, %p8122_p0  ;;  %p8144_p7 = scmp.lt.s32.totalorder %s8142_s8, %s8135_s5 }
  0x42   : > { %p8139_p13 = pneg %p8138_p10  ;;  %p8145_p9 = por %p8144_p7, %p8143_p3 }
  0x44   : > { %p8146_p2 = pnand %p8145_p9, %p8139_p13 }
  0x46   : > { %8149 = shalt.err (!%p8146_p2)
}
  0x47   : > { %s8198_s25 = smov 512   ;;  %s8199_s11 = smov 32  }
  0x48   : > { %7908 = dma.hbm_to_vmem [thread:$0]  (!%p8335_p11), %s8333_s9, 32768, %s8339_s28, %s8341_s10, %s8198_s25, %s8198_s25, %s8199_s11  }
  0x49   : > { %p11424_p0 = scmp.ne.s32.totalorder %s11419_s23, 0 }
  0x4b   : > { %219 = sbr.rel (%p11424_p0) target bundleno = 2063 (0x80f), region = 36 }
  0x52   : > { %p11425_p5 = scmp.eq.s32.totalorder %s8254_s19, 0 }
  0x54   : > { %8167 = dma.done.wait (%p11425_p5), [#allocation3], 32768   ;;  %p11426_p1 = pmov %p11425_p5 }
  0x55   : > { %s8376_s12 = sand.u32 1, %s8184_s16   ;;  %p11427_p11 = scmp.ne.s32.totalorder %s11417_s21, 0 }
  0x56   : > { %8169 = vsyncadd (%p11426_p1), [#allocation3], 4294934528  ;;  %s6975_s13 = sshll.u32 %s8376_s12, 11  ;;  %s226_s14 = scalar_lea.sflag [#allocation6], %s8376_s12 }
  0x57   : > { %s8382_s9 = scalar_lea.vmem [#allocation5], %s6975_s13 }
  0x58   : > { %8171 = dma.done.wait (%p11427_p11), %s226_s14, 32768  }
  0x59   : > { %8173 = vsyncadd (%p11427_p11), %s226_s14, 4294934528  ;;  %v535_v0 = vld [vmem:[#allocation2 + $0x8] sm:$0xff]  ;;  %v537_v1 = vld [vmem:[#allocation2 + $0x18] sm:$0xff]  ;;  %s8627_s21 = scalar_lea.vmem [#allocation7], %s6975_s13  ;;  %s6977_s23 = sshll.u32 %s8254_s19, 6 }
  0x5a   : > { %v2330_v2 = vld [vmem:[#allocation2 + $0x408] sm:$0xff]  ;;  %v7375_v3 = vpack.c.bf16 %v537_v1, %v535_v0  ;;  %v2332_v4 = vld [vmem:[#allocation2 + $0x418] sm:$0xff]  ;;  %v534_v5 = vld [vmem:[#allocation2] sm:$0xff]  ;;  %p9192_p4 = scmp.lt.s32.totalorder %s6977_s23, 127  ;;  %s6813_s8 = scalar_lea.sflag [#allocation4], %s8376_s12 }
  0x5b   : > { %v536_v6 = vld [vmem:[#allocation2 + $0x10] sm:$0xff]  ;;  %v7503_v7 = vpack.c.bf16 %v2332_v4, %v2330_v2  ;;  %v2329_v9 = vld [vmem:[#allocation2 + $0x400] sm:$0xff]  ;;  %v539_v11 = vld [vmem:[#allocation2 + $0x28] sm:$0xff] }
  0x5c   : > { %v7377_v8 = vpack.c.bf16 %v536_v6, %v534_v5  ;;  %v2331_v10 = vld [vmem:[#allocation2 + $0x410] sm:$0xff]  ;;  %7376 = vmatprep.subr.bf16.mxu0 %v7375_v3  ;;  %v541_v13 = vld [vmem:[#allocation2 + $0x38] sm:$0xff]  ;;  %v2334_v14 = vld [vmem:[#allocation2 + $0x428] sm:$0xff]  ;;  %s11958_s23 = smov (!%p9192_p4, %s6977_s23), 127 }
  0x5d   : > { %v7505_v12 = vpack.c.bf16 %v2331_v10, %v2329_v9  ;;  %v2336_v15 = vld [vmem:[#allocation2 + $0x438] sm:$0xff]  ;;  %7504 = vmatprep.subr.bf16.mxu1 %v7503_v7  ;;  %v7379_v16 = vpack.c.bf16 %v541_v13, %v539_v11  ;;  %v538_v18 = vld [vmem:[#allocation2 + $0x20] sm:$0xff]  ;;  %v540_v19 = vld [vmem:[#allocation2 + $0x30] sm:$0xff]  ;;  %s6978_s29 = sshll.u32 %s11958_s23, 3 }
  0x5e   : > { %7378 = vmatpush1.bf16.msra.mxu0 %v7377_v8  ;;  %v7507_v17 = vpack.c.bf16 %v2336_v15, %v2334_v14  ;;  %v2333_v20 = vld [vmem:[#allocation2 + $0x420] sm:$0xff]  ;;  %v7381_v21 = vpack.c.bf16 %v540_v19, %v538_v18  ;;  %v2335_v22 = vld [vmem:[#allocation2 + $0x430] sm:$0xff]  ;;  %v543_v23 = vld [vmem:[#allocation2 + $0x48] sm:$0xff]  ;;  %s9252_s6 = scalar_lea.vmem %s11411_s2, %s6978_s29  ;;  %s9841_s26 = scalar_lea.vmem %s11412_s3, %s6978_s29 }
  0x5f   : > { %7506 = vmatpush1.bf16.msra.mxu1 %v7505_v12  ;;  %v545_v24 = vld [vmem:[#allocation2 + $0x58] sm:$0xff]  ;;  %7380 = vmatprep.subr.bf16.mxu0 %v7379_v16  ;;  %v7509_v25 = vpack.c.bf16 %v2335_v22, %v2333_v20  ;;  %v2338_v27 = vld [vmem:[#allocation2 + $0x448] sm:$0xff]  ;;  %v542_v29 = vld [vmem:[#allocation2 + $0x40] sm:$0xff] }
  0x60   : > { %7508 = vmatprep.subr.bf16.mxu1 %v7507_v17  ;;  %v7383_v26 = vpack.c.bf16 %v545_v24, %v543_v23  ;;  %v2340_v28 = vld [vmem:[#allocation2 + $0x458] sm:$0xff]  ;;  %v544_v31 = vld [vmem:[#allocation2 + $0x50] sm:$0xff]  ;;  %v2337_v32 = vld [vmem:[#allocation2 + $0x440] sm:$0xff] }
  0x61   : > { %v7511_v30 = vpack.c.bf16 %v2340_v28, %v2338_v27  ;;  %v2339_v33 = vld [vmem:[#allocation2 + $0x450] sm:$0xff]  ;;  %v7385_v34 = vpack.c.bf16 %v544_v31, %v542_v29  ;;  %v547_v35 = vld [vmem:[#allocation2 + $0x68] sm:$0xff]  ;;  %v549_v36 = vld [vmem:[#allocation2 + $0x78] sm:$0xff] }
  0x62   : > { %7382 = vmatpush1.bf16.msra.mxu0 %v7381_v21  ;;  %v2342_v37 = vld [vmem:[#allocation2 + $0x468] sm:$0xff]  ;;  %v7513_v38 = vpack.c.bf16 %v2339_v33, %v2337_v32  ;;  %v7387_v39 = vpack.c.bf16 %v549_v36, %v547_v35  ;;  %v2344_v40 = vld [vmem:[#allocation2 + $0x478] sm:$0xff]  ;;  %v546_v41 = vld [vmem:[#allocation2 + $0x60] sm:$0xff] }
  0x63   : > { %7510 = vmatpush1.bf16.msra.mxu1 %v7509_v25  ;;  %7384 = vmatprep.subr.bf16.mxu0 %v7383_v26  ;;  %v548_v42 = vld [vmem:[#allocation2 + $0x70] sm:$0xff]  ;;  %v7515_v43 = vpack.c.bf16 %v2344_v40, %v2342_v37  ;;  %v2341_v44 = vld [vmem:[#allocation2 + $0x460] sm:$0xff]  ;;  %v551_v46 = vld [vmem:[#allocation2 + $0x88] sm:$0xff] }
  0x64   : > { %7512 = vmatprep.subr.bf16.mxu1 %v7511_v30  ;;  %v2343_v45 = vld [vmem:[#allocation2 + $0x470] sm:$0xff]  ;;  %v553_v47 = vld [vmem:[#allocation2 + $0x98] sm:$0xff]  ;;  %v2346_v48 = vld [vmem:[#allocation2 + $0x488] sm:$0xff]  ;;  %v7389_v50 = vpack.c.bf16 %v548_v42, %v546_v41 }
  0x65   : > { %v2348_v49 = vld [vmem:[#allocation2 + $0x498] sm:$0xff]  ;;  %v7517_v51 = vpack.c.bf16 %v2343_v45, %v2341_v44  ;;  %v7391_v52 = vpack.c.bf16 %v553_v47, %v551_v46  ;;  %v550_v53 = vld [vmem:[#allocation2 + $0x80] sm:$0xff]  ;;  %v552_v54 = vld [vmem:[#allocation2 + $0x90] sm:$0xff] }
  0x66   : > { %7386 = vmatpush1.bf16.msra.mxu0 %v7385_v34  ;;  %v2345_v55 = vld [vmem:[#allocation2 + $0x480] sm:$0xff]  ;;  %v7519_v56 = vpack.c.bf16 %v2348_v49, %v2346_v48  ;;  %v2347_v57 = vld [vmem:[#allocation2 + $0x490] sm:$0xff]  ;;  %v555_v58 = vld [vmem:[#allocation2 + $0xa8] sm:$0xff]  ;;  %v7393_v62 = vpack.c.bf16 %v552_v54, %v550_v53 }
  0x67   : > { %7514 = vmatpush1.bf16.msra.mxu1 %v7513_v38  ;;  %7388 = vmatprep.subr.bf16.mxu0 %v7387_v39  ;;  %v557_v59 = vld [vmem:[#allocation2 + $0xb8] sm:$0xff]  ;;  %v2350_v60 = vld [vmem:[#allocation2 + $0x4a8] sm:$0xff]  ;;  %v7521_v63 = vpack.c.bf16 %v2347_v57, %v2345_v55  ;;  %v554_v1 = vld [vmem:[#allocation2 + $0xa0] sm:$0xff] }
  0x68   : > { %7516 = vmatprep.subr.bf16.mxu1 %v7515_v43  ;;  %v2352_v61 = vld [vmem:[#allocation2 + $0x4b8] sm:$0xff]  ;;  %v7395_v0 = vpack.c.bf16 %v557_v59, %v555_v58  ;;  %v556_v2 = vld [vmem:[#allocation2 + $0xb0] sm:$0xff]  ;;  %v2349_v3 = vld [vmem:[#allocation2 + $0x4a0] sm:$0xff] }
  0x69   : > { %v7523_v4 = vpack.c.bf16 %v2352_v61, %v2350_v60  ;;  %v2351_v5 = vld [vmem:[#allocation2 + $0x4b0] sm:$0xff]  ;;  %v559_v6 = vld [vmem:[#allocation2 + $0xc8] sm:$0xff]  ;;  %v561_v7 = vld [vmem:[#allocation2 + $0xd8] sm:$0xff]  ;;  %v7397_v10 = vpack.c.bf16 %v556_v2, %v554_v1 }
  0x6a   : > { %7390 = vmatpush1.bf16.msra.mxu0 %v7389_v50  ;;  %v2354_v8 = vld [vmem:[#allocation2 + $0x4c8] sm:$0xff]  ;;  %v2356_v9 = vld [vmem:[#allocation2 + $0x4d8] sm:$0xff]  ;;  %v7525_v11 = vpack.c.bf16 %v2351_v5, %v2349_v3  ;;  %v7399_v12 = vpack.c.bf16 %v561_v7, %v559_v6  ;;  %v558_v13 = vld [vmem:[#allocation2 + $0xc0] sm:$0xff] }
  0x6b   : > { %7518 = vmatpush1.bf16.msra.mxu1 %v7517_v51  ;;  %7392 = vmatprep.subr.bf16.mxu0 %v7391_v52  ;;  %v560_v14 = vld [vmem:[#allocation2 + $0xd0] sm:$0xff]  ;;  %v2353_v15 = vld [vmem:[#allocation2 + $0x4c0] sm:$0xff]  ;;  %v7527_v16 = vpack.c.bf16 %v2356_v9, %v2354_v8  ;;  %v563_v18 = vld [vmem:[#allocation2 + $0xe8] sm:$0xff] }
  0x6c   : > { %7520 = vmatprep.subr.bf16.mxu1 %v7519_v56  ;;  %v2355_v17 = vld [vmem:[#allocation2 + $0x4d0] sm:$0xff]  ;;  %v565_v19 = vld [vmem:[#allocation2 + $0xf8] sm:$0xff]  ;;  %v2358_v20 = vld [vmem:[#allocation2 + $0x4e8] sm:$0xff]  ;;  %v7401_v22 = vpack.c.bf16 %v560_v14, %v558_v13 }
  0x6d   : > { %v2360_v21 = vld [vmem:[#allocation2 + $0x4f8] sm:$0xff]  ;;  %v7529_v23 = vpack.c.bf16 %v2355_v17, %v2353_v15  ;;  %v7403_v24 = vpack.c.bf16 %v565_v19, %v563_v18  ;;  %v562_v25 = vld [vmem:[#allocation2 + $0xe0] sm:$0xff]  ;;  %v564_v26 = vld [vmem:[#allocation2 + $0xf0] sm:$0xff] }
  0x6e   : > { %7394 = vmatpush1.bf16.msra.mxu0 %v7393_v62  ;;  %v2357_v27 = vld [vmem:[#allocation2 + $0x4e0] sm:$0xff]  ;;  %v7531_v28 = vpack.c.bf16 %v2360_v21, %v2358_v20  ;;  %v2359_v29 = vld [vmem:[#allocation2 + $0x4f0] sm:$0xff]  ;;  %v567_v30 = vld [vmem:[#allocation2 + $0x108] sm:$0xff]  ;;  %v7405_v34 = vpack.c.bf16 %v564_v26, %v562_v25 }
  0x6f   : > { %7522 = vmatpush1.bf16.msra.mxu1 %v7521_v63  ;;  %7396 = vmatprep.subr.bf16.mxu0 %v7395_v0  ;;  %v569_v31 = vld [vmem:[#allocation2 + $0x118] sm:$0xff]  ;;  %v2362_v32 = vld [vmem:[#allocation2 + $0x508] sm:$0xff]  ;;  %v7533_v35 = vpack.c.bf16 %v2359_v29, %v2357_v27  ;;  %v566_v37 = vld [vmem:[#allocation2 + $0x100] sm:$0xff] }
  0x70   : > { %7524 = vmatprep.subr.bf16.mxu1 %v7523_v4  ;;  %v2364_v33 = vld [vmem:[#allocation2 + $0x518] sm:$0xff]  ;;  %v7407_v36 = vpack.c.bf16 %v569_v31, %v567_v30  ;;  %v568_v38 = vld [vmem:[#allocation2 + $0x110] sm:$0xff]  ;;  %v2361_v39 = vld [vmem:[#allocation2 + $0x500] sm:$0xff] }
  0x71   : > { %v7535_v40 = vpack.c.bf16 %v2364_v33, %v2362_v32  ;;  %v2363_v41 = vld [vmem:[#allocation2 + $0x510] sm:$0xff]  ;;  %v571_v42 = vld [vmem:[#allocation2 + $0x128] sm:$0xff]  ;;  %v573_v43 = vld [vmem:[#allocation2 + $0x138] sm:$0xff]  ;;  %v7409_v46 = vpack.c.bf16 %v568_v38, %v566_v37 }
  0x72   : > { %7398 = vmatpush1.bf16.msra.mxu0 %v7397_v10  ;;  %v2366_v44 = vld [vmem:[#allocation2 + $0x528] sm:$0xff]  ;;  %v2368_v45 = vld [vmem:[#allocation2 + $0x538] sm:$0xff]  ;;  %v7537_v47 = vpack.c.bf16 %v2363_v41, %v2361_v39  ;;  %v7411_v48 = vpack.c.bf16 %v573_v43, %v571_v42  ;;  %v570_v49 = vld [vmem:[#allocation2 + $0x120] sm:$0xff] }
  0x73   : > { %7526 = vmatpush1.bf16.msra.mxu1 %v7525_v11  ;;  %7400 = vmatprep.subr.bf16.mxu0 %v7399_v12  ;;  %v572_v50 = vld [vmem:[#allocation2 + $0x130] sm:$0xff]  ;;  %v2365_v51 = vld [vmem:[#allocation2 + $0x520] sm:$0xff]  ;;  %v7539_v52 = vpack.c.bf16 %v2368_v45, %v2366_v44  ;;  %v575_v54 = vld [vmem:[#allocation2 + $0x148] sm:$0xff] }
  0x74   : > { %7528 = vmatprep.subr.bf16.mxu1 %v7527_v16  ;;  %v2367_v53 = vld [vmem:[#allocation2 + $0x530] sm:$0xff]  ;;  %v577_v55 = vld [vmem:[#allocation2 + $0x158] sm:$0xff]  ;;  %v2370_v56 = vld [vmem:[#allocation2 + $0x548] sm:$0xff]  ;;  %v7413_v58 = vpack.c.bf16 %v572_v50, %v570_v49 }
  0x75   : > { %v2372_v57 = vld [vmem:[#allocation2 + $0x558] sm:$0xff]  ;;  %v7541_v59 = vpack.c.bf16 %v2367_v53, %v2365_v51  ;;  %v7415_v60 = vpack.c.bf16 %v577_v55, %v575_v54  ;;  %v574_v61 = vld [vmem:[#allocation2 + $0x140] sm:$0xff]  ;;  %v576_v62 = vld [vmem:[#allocation2 + $0x150] sm:$0xff] }
  0x76   : > { %7402 = vmatpush1.bf16.msra.mxu0 %v7401_v22  ;;  %v2369_v63 = vld [vmem:[#allocation2 + $0x540] sm:$0xff]  ;;  %v7543_v0 = vpack.c.bf16 %v2372_v57, %v2370_v56  ;;  %v2371_v1 = vld [vmem:[#allocation2 + $0x550] sm:$0xff]  ;;  %v579_v2 = vld [vmem:[#allocation2 + $0x168] sm:$0xff]  ;;  %v7417_v6 = vpack.c.bf16 %v576_v62, %v574_v61 }
  0x77   : > { %7530 = vmatpush1.bf16.msra.mxu1 %v7529_v23  ;;  %7404 = vmatprep.subr.bf16.mxu0 %v7403_v24  ;;  %v581_v3 = vld [vmem:[#allocation2 + $0x178] sm:$0xff]  ;;  %v2374_v4 = vld [vmem:[#allocation2 + $0x568] sm:$0xff]  ;;  %v578_v7 = vld [vmem:[#allocation2 + $0x160] sm:$0xff]  ;;  %v7545_v8 = vpack.c.bf16 %v2371_v1, %v2369_v63 }
  0x78   : > { %7532 = vmatprep.subr.bf16.mxu1 %v7531_v28  ;;  %v2376_v5 = vld [vmem:[#allocation2 + $0x578] sm:$0xff]  ;;  %v7419_v9 = vpack.c.bf16 %v581_v3, %v579_v2  ;;  %v580_v10 = vld [vmem:[#allocation2 + $0x170] sm:$0xff]  ;;  %v2373_v11 = vld [vmem:[#allocation2 + $0x560] sm:$0xff] }
  0x79   : > { %v2375_v12 = vld [vmem:[#allocation2 + $0x570] sm:$0xff]  ;;  %v7547_v13 = vpack.c.bf16 %v2376_v5, %v2374_v4  ;;  %v583_v14 = vld [vmem:[#allocation2 + $0x188] sm:$0xff]  ;;  %v585_v15 = vld [vmem:[#allocation2 + $0x198] sm:$0xff]  ;;  %v7421_v19 = vpack.c.bf16 %v580_v10, %v578_v7 }
  0x7a   : > { %7406 = vmatpush1.bf16.msra.mxu0 %v7405_v34  ;;  %v279_v16 = vld [vmem:[%s8382_s9 + $0x8] sm:$0xff]  ;;  %v2380_v18 = vld [vmem:[#allocation2 + $0x598] sm:$0xff]  ;;  %v7549_v20 = vpack.c.bf16 %v2375_v12, %v2373_v11  ;;  %v7423_v21 = vpack.c.bf16 %v585_v15, %v583_v14  ;;  %v582_v22 = vld [vmem:[#allocation2 + $0x180] sm:$0xff] }
  0x7b   : > { %7534 = vmatpush1.bf16.msra.mxu1 %v7533_v35  ;;  %7408 = vmatprep.subr.bf16.mxu0 %v7407_v36  ;;  %v2378_v17 = vld [vmem:[#allocation2 + $0x588] sm:$0xff]  ;;  %v584_v23 = vld [vmem:[#allocation2 + $0x190] sm:$0xff]  ;;  %v2377_v24 = vld [vmem:[#allocation2 + $0x580] sm:$0xff] }
  0x7c   : > { %7536 = vmatprep.subr.bf16.mxu1 %v7535_v40  ;;  %726 = vmatprep.mubr.f32.mxu0 %v279_v16  ;;  %v7551_v25 = vpack.c.bf16 %v2380_v18, %v2378_v17  ;;  %v2379_v26 = vld [vmem:[#allocation2 + $0x590] sm:$0xff]  ;;  %v587_v27 = vld [vmem:[#allocation2 + $0x1a8] sm:$0xff]  ;;  %v589_v28 = vld [vmem:[#allocation2 + $0x1b8] sm:$0xff]  ;;  %v7425_v31 = vpack.c.bf16 %v584_v23, %v582_v22 }
  0x7d   : > { %2521 = vmatprep.mubr.f32.mxu1 %v279_v16  ;;  %v2382_v29 = vld [vmem:[#allocation2 + $0x5a8] sm:$0xff]  ;;  %v2384_v30 = vld [vmem:[#allocation2 + $0x5b8] sm:$0xff]  ;;  %v7553_v32 = vpack.c.bf16 %v2379_v26, %v2377_v24  ;;  %v7427_v33 = vpack.c.bf16 %v589_v28, %v587_v27  ;;  %v586_v34 = vld [vmem:[#allocation2 + $0x1a0] sm:$0xff] }
  0x7e   : > { %7410 = vmatpush1.bf16.msra.mxu0 %v7409_v46  ;;  %v588_v35 = vld [vmem:[#allocation2 + $0x1b0] sm:$0xff]  ;;  %v2381_v36 = vld [vmem:[#allocation2 + $0x5a0] sm:$0xff]  ;;  %v7555_v37 = vpack.c.bf16 %v2384_v30, %v2382_v29  ;;  %v591_v39 = vld [vmem:[#allocation2 + $0x1c8] sm:$0xff] }
  0x7f   : > { %7538 = vmatpush1.bf16.msra.mxu1 %v7537_v47  ;;  %7412 = vmatprep.subr.bf16.mxu0 %v7411_v48  ;;  %v2383_v38 = vld [vmem:[#allocation2 + $0x5b0] sm:$0xff]  ;;  %v593_v40 = vld [vmem:[#allocation2 + $0x1d8] sm:$0xff]  ;;  %v2386_v41 = vld [vmem:[#allocation2 + $0x5c8] sm:$0xff]  ;;  %v7429_v43 = vpack.c.bf16 %v588_v35, %v586_v34 }
  0x80   : > { %7540 = vmatprep.subr.bf16.mxu1 %v7539_v52  ;;  %v2388_v42 = vld [vmem:[#allocation2 + $0x5d8] sm:$0xff]  ;;  %v7557_v44 = vpack.c.bf16 %v2383_v38, %v2381_v36  ;;  %v7431_v45 = vpack.c.bf16 %v593_v40, %v591_v39  ;;  %v590_v46 = vld [vmem:[#allocation2 + $0x1c0] sm:$0xff]  ;;  %v592_v47 = vld [vmem:[#allocation2 + $0x1d0] sm:$0xff] }
  0x81   : > { %v2385_v48 = vld [vmem:[#allocation2 + $0x5c0] sm:$0xff]  ;;  %v7559_v49 = vpack.c.bf16 %v2388_v42, %v2386_v41  ;;  %v2387_v50 = vld [vmem:[#allocation2 + $0x5d0] sm:$0xff]  ;;  %v595_v51 = vld [vmem:[#allocation2 + $0x1e8] sm:$0xff]  ;;  %v7433_v55 = vpack.c.bf16 %v592_v47, %v590_v46 }
  0x82   : > { %7414 = vmatpush1.bf16.msra.mxu0 %v7413_v58  ;;  %v597_v52 = vld [vmem:[#allocation2 + $0x1f8] sm:$0xff]  ;;  %v2390_v53 = vld [vmem:[#allocation2 + $0x5e8] sm:$0xff]  ;;  %v7561_v56 = vpack.c.bf16 %v2387_v50, %v2385_v48  ;;  %v594_v58 = vld [vmem:[#allocation2 + $0x1e0] sm:$0xff] }
  0x83   : > { %7542 = vmatpush1.bf16.msra.mxu1 %v7541_v59  ;;  %7416 = vmatprep.subr.bf16.mxu0 %v7415_v60  ;;  %v2392_v54 = vld [vmem:[#allocation2 + $0x5f8] sm:$0xff]  ;;  %v7435_v57 = vpack.c.bf16 %v597_v52, %v595_v51  ;;  %v596_v59 = vld [vmem:[#allocation2 + $0x1f0] sm:$0xff]  ;;  %v2389_v60 = vld [vmem:[#allocation2 + $0x5e0] sm:$0xff] }
  0x84   : > { %7544 = vmatprep.subr.bf16.mxu1 %v7543_v0  ;;  %v7563_v61 = vpack.c.bf16 %v2392_v54, %v2390_v53  ;;  %v2391_v62 = vld [vmem:[#allocation2 + $0x5f0] sm:$0xff]  ;;  %v599_v63 = vld [vmem:[#allocation2 + $0x208] sm:$0xff]  ;;  %v601_v0 = vld [vmem:[#allocation2 + $0x218] sm:$0xff]  ;;  %v7437_v3 = vpack.c.bf16 %v596_v59, %v594_v58 }
  0x85   : > { %v2394_v1 = vld [vmem:[#allocation2 + $0x608] sm:$0xff]  ;;  %v2396_v2 = vld [vmem:[#allocation2 + $0x618] sm:$0xff]  ;;  %v7565_v4 = vpack.c.bf16 %v2391_v62, %v2389_v60  ;;  %v2393_v5 = vld [vmem:[#allocation2 + $0x600] sm:$0xff] }
  0x86   : > { %7418 = vmatpush1.bf16.msra.mxu0 %v7417_v6  ;;  %v7439_v6 = vpack.c.bf16 %v601_v0, %v599_v63  ;;  %v7567_v7 = vpack.c.bf16 %v2396_v2, %v2394_v1  ;;  %v600_v10 = vld [vmem:[#allocation2 + $0x210] sm:$0xff]  ;;  %v2398_v11 = vld [vmem:[#allocation2 + $0x628] sm:$0xff]  ;;  %v2400_v12 = vld [vmem:[#allocation2 + $0x638] sm:$0xff] }
  0x87   : > { %7546 = vmatpush1.bf16.msra.mxu1 %v7545_v8  ;;  %7420 = vmatprep.subr.bf16.mxu0 %v7419_v9  ;;  %v2395_v8 = vld [vmem:[#allocation2 + $0x610] sm:$0xff]  ;;  %v598_v9 = vld [vmem:[#allocation2 + $0x200] sm:$0xff]  ;;  %v603_v14 = vld [vmem:[#allocation2 + $0x228] sm:$0xff] }
  0x88   : > { %7548 = vmatprep.subr.bf16.mxu1 %v7547_v13  ;;  %v278_v13 = vld [vmem:[%s8382_s9] sm:$0xff]  ;;  %v605_v15 = vld [vmem:[#allocation2 + $0x238] sm:$0xff]  ;;  %v7569_v16 = vpack.c.bf16 %v2395_v8, %v2393_v5  ;;  %v283_v17 = vld [vmem:[%s8382_s9 + $0x28] sm:$0xff]  ;;  %v7441_v18 = vpack.c.bf16 %v600_v10, %v598_v9 }
  0x89   : > { %v602_v22 = vld [vmem:[#allocation2 + $0x220] sm:$0xff]  ;;  %v7443_v23 = vpack.c.bf16 %v605_v15, %v603_v14  ;;  %v604_v24 = vld [vmem:[#allocation2 + $0x230] sm:$0xff]  ;;  %v2404_v26 = vld [vmem:[#allocation2 + $0x658] sm:$0xff] }
  0x8a   : > { %7422 = vmatpush1.bf16.msra.mxu0 %v7421_v19  ;;  %v7571_v19 = vpack.c.bf16 %v2400_v12, %v2398_v11  ;;  %v282_v27 = vld [vmem:[%s8382_s9 + $0x20] sm:$0xff]  ;;  %v607_v28 = vld [vmem:[#allocation2 + $0x248] sm:$0xff]  ;;  %v609_v29 = vld [vmem:[#allocation2 + $0x258] sm:$0xff] }
  0x8b   : > { %7550 = vmatpush1.bf16.msra.mxu1 %v7549_v20  ;;  %7424 = vmatprep.subr.bf16.mxu0 %v7423_v21  ;;  %v2397_v20 = vld [vmem:[#allocation2 + $0x620] sm:$0xff]  ;;  %v2399_v21 = vld [vmem:[#allocation2 + $0x630] sm:$0xff]  ;;  %v287_v30 = vld [vmem:[%s8382_s9 + $0x48] sm:$0xff] }
  0x8c   : > { %7552 = vmatprep.subr.bf16.mxu1 %v7551_v25  ;;  %v2402_v25 = vld [vmem:[#allocation2 + $0x648] sm:$0xff]  ;;  %v2401_v34 = vld [vmem:[#allocation2 + $0x640] sm:$0xff]  ;;  %v2403_v35 = vld [vmem:[#allocation2 + $0x650] sm:$0xff] }
  0x8d   : > { %v606_v36 = vld [vmem:[#allocation2 + $0x240] sm:$0xff]  ;;  %v608_v38 = vld [vmem:[#allocation2 + $0x250] sm:$0xff]  ;;  %v2406_v39 = vld [vmem:[#allocation2 + $0x668] sm:$0xff] }
  0x8e   : > { %7426 = vmatpush1.bf16.msra.mxu0 %v7425_v31  ;;  %v7573_v31 = vpack.c.bf16 %v2399_v21, %v2397_v20  ;;  %v2408_v40 = vld [vmem:[#allocation2 + $0x678] sm:$0xff]  ;;  %v286_v41 = vld [vmem:[%s8382_s9 + $0x40] sm:$0xff]  ;;  %v611_v42 = vld [vmem:[#allocation2 + $0x268] sm:$0xff]  ;;  %v7449_v46 = vpack.c.bf16 %v608_v38, %v606_v36 }
  0x8f   : > { %7554 = vmatpush1.bf16.msra.mxu1 %v7553_v32  ;;  %7428 = vmatprep.subr.bf16.mxu0 %v7427_v33  ;;  %v7445_v32 = vpack.c.bf16 %v604_v24, %v602_v22  ;;  %v7575_v33 = vpack.c.bf16 %v2404_v26, %v2402_v25  ;;  %v7579_v47 = vpack.c.bf16 %v2408_v40, %v2406_v39  ;;  %v2405_v48 = vld [vmem:[#allocation2 + $0x660] sm:$0xff]  ;;  %v612_v52 = vld [vmem:[#allocation2 + $0x270] sm:$0xff]  ;;  %v2410_v53 = vld [vmem:[#allocation2 + $0x688] sm:$0xff] }
  0x90   : > { %7556 = vmatprep.subr.bf16.mxu1 %v7555_v37  ;;  %v7447_v37 = vpack.c.bf16 %v609_v29, %v607_v28  ;;  %v610_v50 = vld [vmem:[#allocation2 + $0x260] sm:$0xff]  ;;  %v2412_v54 = vld [vmem:[#allocation2 + $0x698] sm:$0xff]  ;;  %v295_v58 = vld [vmem:[%s8382_s9 + $0x88] sm:$0xff] }
  0x91   : > { %v7453_v60 = vpack.c.bf16 %v612_v52, %v610_v50  ;;  %v2409_v62 = vld [vmem:[#allocation2 + $0x680] sm:$0xff]  ;;  %v2411_v63 = vld [vmem:[#allocation2 + $0x690] sm:$0xff]  ;;  %v299_v8 = vld [vmem:[%s8382_s9 + $0xa8] sm:$0xff] }
  0x92   : > { %7430 = vmatpush1.bf16.msra.mxu0 %v7429_v43  ;;  %v613_v43 = vld [vmem:[#allocation2 + $0x278] sm:$0xff]  ;;  %v614_v0 = vld [vmem:[#allocation2 + $0x280] sm:$0xff]  ;;  %v616_v2 = vld [vmem:[#allocation2 + $0x290] sm:$0xff]  ;;  %v7585_v9 = vpack.c.bf16 %v2411_v63, %v2409_v62 }
  0x93   : > { %7558 = vmatpush1.bf16.msra.mxu1 %v7557_v44  ;;  %7432 = vmatprep.subr.bf16.mxu0 %v7431_v45  ;;  %v291_v44 = vld [vmem:[%s8382_s9 + $0x68] sm:$0xff]  ;;  %v7577_v45 = vpack.c.bf16 %v2403_v35, %v2401_v34  ;;  %v7451_v51 = vpack.c.bf16 %v613_v43, %v611_v42  ;;  %v294_v5 = vld [vmem:[%s8382_s9 + $0x80] sm:$0xff]  ;;  %v7457_v10 = vpack.c.bf16 %v616_v2, %v614_v0  ;;  %v625_v21 = vld [vmem:[#allocation2 + $0x2d8] sm:$0xff] }
  0x94   : > { %7560 = vmatprep.subr.bf16.mxu1 %v7559_v49  ;;  %v2407_v49 = vld [vmem:[#allocation2 + $0x670] sm:$0xff]  ;;  %v2413_v12 = vld [vmem:[#allocation2 + $0x6a0] sm:$0xff]  ;;  %v623_v20 = vld [vmem:[#allocation2 + $0x2c8] sm:$0xff] }
  0x95   : > { %v7581_v59 = vpack.c.bf16 %v2407_v49, %v2405_v48  ;;  %v618_v14 = vld [vmem:[#allocation2 + $0x2a0] sm:$0xff]  ;;  %v303_v22 = vld [vmem:[%s8382_s9 + $0xc8] sm:$0xff]  ;;  %v7463_v29 = vpack.c.bf16 %v625_v21, %v623_v20  ;;  %v629_v35 = vld [vmem:[#allocation2 + $0x2f8] sm:$0xff] }
  0x96   : > { %7434 = vmatpush1.bf16.msra.mxu0 %v7433_v55  ;;  %v290_v55 = vld [vmem:[%s8382_s9 + $0x60] sm:$0xff]  ;;  %v627_v34 = vld [vmem:[#allocation2 + $0x2e8] sm:$0xff]  ;;  %v633_v49 = vld [vmem:[#allocation2 + $0x318] sm:$0xff] }
  0x97   : > { %7562 = vmatpush1.bf16.msra.mxu1 %v7561_v56  ;;  %7436 = vmatprep.subr.bf16.mxu0 %v7435_v57  ;;  %v615_v56 = vld [vmem:[#allocation2 + $0x288] sm:$0xff]  ;;  %v617_v57 = vld [vmem:[#allocation2 + $0x298] sm:$0xff]  ;;  %v2417_v26 = vld [vmem:[#allocation2 + $0x6c0] sm:$0xff]  ;;  %v7467_v43 = vpack.c.bf16 %v629_v35, %v627_v34 }
  0x98   : > { %7564 = vmatprep.subr.bf16.mxu1 %v7563_v61  ;;  %v7583_v61 = vpack.c.bf16 %v2412_v54, %v2410_v53  ;;  %v7455_v1 = vpack.c.bf16 %v617_v57, %v615_v56  ;;  %v622_v28 = vld [vmem:[#allocation2 + $0x2c0] sm:$0xff]  ;;  %v307_v36 = vld [vmem:[%s8382_s9 + $0xe8] sm:$0xff]  ;;  %v637_v63 = vld [vmem:[#allocation2 + $0x338] sm:$0xff] }
  0x99   : > { %v2421_v40 = vld [vmem:[#allocation2 + $0x6e0] sm:$0xff]  ;;  %v631_v48 = vld [vmem:[#allocation2 + $0x308] sm:$0xff]  ;;  %v2440_v34 = vld [vmem:[#allocation2 + $0x778] sm:$0xff] }
  0x9a   : > { %7438 = vmatpush1.bf16.msra.mxu0 %v7437_v3  ;;  %v2414_v3 = vld [vmem:[#allocation2 + $0x6a8] sm:$0xff]  ;;  %v626_v42 = vld [vmem:[#allocation2 + $0x2e0] sm:$0xff]  ;;  %v7471_v57 = vpack.c.bf16 %v633_v49, %v631_v48 }
  0x9b   : > { %7566 = vmatpush1.bf16.msra.mxu1 %v7565_v4  ;;  %7440 = vmatprep.subr.bf16.mxu0 %v7439_v6  ;;  %v2416_v4 = vld [vmem:[#allocation2 + $0x6b8] sm:$0xff]  ;;  %v619_v6 = vld [vmem:[#allocation2 + $0x2a8] sm:$0xff]  ;;  %v2425_v54 = vld [vmem:[#allocation2 + $0x700] sm:$0xff] }
  0x9c   : > { %7568 = vmatprep.subr.bf16.mxu1 %v7567_v7  ;;  %v621_v7 = vld [vmem:[#allocation2 + $0x2b8] sm:$0xff]  ;;  %v7587_v11 = vpack.c.bf16 %v2416_v4, %v2414_v3  ;;  %v311_v50 = vld [vmem:[%s8382_s9 + $0x108] sm:$0xff]  ;;  %v630_v56 = vld [vmem:[#allocation2 + $0x300] sm:$0xff] }
  0x9d   : > { %727 = vmatmul.mubr.f32.vlgmr.msra.gmra.mrb[0].mxu0 %v278_v13  ;;  %v7459_v15 = vpack.c.bf16 %v621_v7, %v619_v6  ;;  %v635_v62 = vld [vmem:[#allocation2 + $0x328] sm:$0xff]  ;;  %v2429_v4 = vld [vmem:[#allocation2 + $0x720] sm:$0xff] }
  0x9e   : > { %2522 = vmatmul.mubr.f32.vlgmr.msra.gmra.mrb[0].mxu1 %v278_v13  ;;  %732 = vmatprep.mubr.f32.mxu0 %v283_v17  ;;  %v2415_v13 = vld [vmem:[#allocation2 + $0x6b0] sm:$0xff]  ;;  %v315_v0 = vld [vmem:[%s8382_s9 + $0x128] sm:$0xff]  ;;  %v7475_v6 = vpack.c.bf16 %v637_v63, %v635_v62  ;;  %v634_v7 = vld [vmem:[#allocation2 + $0x320] sm:$0xff] }
  0x9f   : > { %7570 = vmatpush1.bf16.msra.mxu1 %v7569_v16  ;;  %7442 = vmatpush1.bf16.msra.mxu0 %v7441_v18  ;;  %v620_v16 = vld [vmem:[#allocation2 + $0x2b0] sm:$0xff]  ;;  %v2420_v18 = vld [vmem:[#allocation2 + $0x6d8] sm:$0xff]  ;;  %v638_v21 = vld [vmem:[#allocation2 + $0x340] sm:$0xff] }
  0xa0   : > { %2527 = vmatprep.mubr.f32.mxu1 %v283_v17  ;;  %7572 = vmatprep.subr.bf16.mxu1 %v7571_v19  ;;  %v2418_v17 = vld [vmem:[#allocation2 + $0x6c8] sm:$0xff]  ;;  %v298_v19 = vld [vmem:[%s8382_s9 + $0xa0] sm:$0xff]  ;;  %v7461_v24 = vpack.c.bf16 %v620_v16, %v618_v14  ;;  %v648_v63 = vld [vmem:[#allocation2 + $0x390] sm:$0xff] }
  0xa1   : > { %733 = vmatmul.mubr.f32.gmra.mrb[2].mxu0 %v282_v27  ;;  %7444 = vmatprep.subr.bf16.mxu0 %v7443_v23  ;;  %v7589_v23 = vpack.c.bf16 %v2415_v13, %v2413_v12  ;;  %v7591_v25 = vpack.c.bf16 %v2420_v18, %v2418_v17  ;;  %v319_v12 = vld [vmem:[%s8382_s9 + $0x148] sm:$0xff]  ;;  %v2433_v18 = vld [vmem:[#allocation2 + $0x740] sm:$0xff] }
  0xa2   : > { %2528 = vmatmul.mubr.f32.gmra.mrb[2].mxu1 %v282_v27  ;;  %738 = vmatprep.mubr.f32.mxu0 %v287_v30  ;;  %v2419_v27 = vld [vmem:[#allocation2 + $0x6d0] sm:$0xff]  ;;  %v639_v14 = vld [vmem:[#allocation2 + $0x348] sm:$0xff]  ;;  %v2437_v35 = vld [vmem:[#allocation2 + $0x760] sm:$0xff] }
  0xa3   : > { %2533 = vmatprep.mubr.f32.mxu1 %v287_v30  ;;  %7574 = vmatpush1.bf16.msra.mxu1 %v7573_v31  ;;  %v624_v30 = vld [vmem:[#allocation2 + $0x2d0] sm:$0xff]  ;;  %v2422_v31 = vld [vmem:[#allocation2 + $0x6e8] sm:$0xff]  ;;  %v342_v49 = vld [vmem:[%s8382_s9 + $0x200] sm:$0xff] }
  0xa4   : > { %7446 = vmatpush1.bf16.msra.mxu0 %v7445_v32  ;;  %7576 = vmatprep.subr.bf16.mxu1 %v7575_v33  ;;  %v2424_v32 = vld [vmem:[#allocation2 + $0x6f8] sm:$0xff]  ;;  %v302_v33 = vld [vmem:[%s8382_s9 + $0xc0] sm:$0xff]  ;;  %v7465_v38 = vpack.c.bf16 %v624_v30, %v622_v28  ;;  %v327_v28 = vld [vmem:[%s8382_s9 + $0x188] sm:$0xff] }
  0xa5   : > { %739 = vmatmul.mubr.f32.gmra.mrb[4].mxu0 %v286_v41  ;;  %7448 = vmatprep.subr.bf16.mxu0 %v7447_v37  ;;  %v7593_v37 = vpack.c.bf16 %v2419_v27, %v2417_v26  ;;  %v7595_v39 = vpack.c.bf16 %v2424_v32, %v2422_v31  ;;  %v322_v27 = vld [vmem:[%s8382_s9 + $0x160] sm:$0xff]  ;;  %v331_v30 = vld [vmem:[%s8382_s9 + $0x1a8] sm:$0xff] }
  0xa6   : > { %2534 = vmatmul.mubr.f32.gmra.mrb[4].mxu1 %v286_v41  ;;  %744 = vmatprep.mubr.f32.mxu0 %v291_v44  ;;  %v2423_v41 = vld [vmem:[#allocation2 + $0x6f0] sm:$0xff]  ;;  %v330_v31 = vld [vmem:[%s8382_s9 + $0x1a0] sm:$0xff]  ;;  %v335_v32 = vld [vmem:[%s8382_s9 + $0x1c8] sm:$0xff] }
  0xa7   : > { %2539 = vmatprep.mubr.f32.mxu1 %v291_v44  ;;  %7578 = vmatpush1.bf16.msra.mxu1 %v7577_v45  ;;  %v628_v44 = vld [vmem:[#allocation2 + $0x2f0] sm:$0xff]  ;;  %v2426_v45 = vld [vmem:[#allocation2 + $0x708] sm:$0xff]  ;;  %v646_v62 = vld [vmem:[#allocation2 + $0x380] sm:$0xff] }
  0xa8   : > { %7450 = vmatpush1.bf16.msra.mxu0 %v7449_v46  ;;  %7580 = vmatprep.subr.bf16.mxu1 %v7579_v47  ;;  %v2428_v46 = vld [vmem:[#allocation2 + $0x718] sm:$0xff]  ;;  %v306_v47 = vld [vmem:[%s8382_s9 + $0xe0] sm:$0xff]  ;;  %v7469_v52 = vpack.c.bf16 %v628_v44, %v626_v42  ;;  %v343_v48 = vld [vmem:[%s8382_s9 + $0x208] sm:$0xff] }
  0xa9   : > { %745 = vmatmul.mubr.f32.gmra.mrb[6].mxu0 %v290_v55  ;;  %7452 = vmatprep.subr.bf16.mxu0 %v7451_v51  ;;  %v7597_v51 = vpack.c.bf16 %v2423_v41, %v2421_v40  ;;  %v7599_v53 = vpack.c.bf16 %v2428_v46, %v2426_v45  ;;  %v642_v42 = vld [vmem:[#allocation2 + $0x360] sm:$0xff]  ;;  %v339_v45 = vld [vmem:[%s8382_s9 + $0x1e8] sm:$0xff] }
  0xaa   : > { %2540 = vmatmul.mubr.f32.gmra.mrb[6].mxu1 %v290_v55  ;;  %750 = vmatprep.mubr.f32.mxu0 %v295_v58  ;;  %v2427_v55 = vld [vmem:[#allocation2 + $0x710] sm:$0xff]  ;;  %v334_v44 = vld [vmem:[%s8382_s9 + $0x1c0] sm:$0xff] }
  0xab   : > { %2545 = vmatprep.mubr.f32.mxu1 %v295_v58  ;;  %7582 = vmatpush1.bf16.msra.mxu1 %v7581_v59  ;;  %v632_v58 = vld [vmem:[#allocation2 + $0x310] sm:$0xff]  ;;  %v2430_v59 = vld [vmem:[#allocation2 + $0x728] sm:$0xff] }
  0xac   : > { %7454 = vmatpush1.bf16.msra.mxu0 %v7453_v60  ;;  %7584 = vmatprep.subr.bf16.mxu1 %v7583_v61  ;;  %v2432_v60 = vld [vmem:[#allocation2 + $0x738] sm:$0xff]  ;;  %v310_v61 = vld [vmem:[%s8382_s9 + $0x100] sm:$0xff]  ;;  %v7473_v2 = vpack.c.bf16 %v632_v58, %v630_v56  ;;  %v647_v58 = vld [vmem:[#allocation2 + $0x388] sm:$0xff] }
  0xad   : > { %751 = vmatmul.mubr.f32.gmra.mrb[8].mxu0 %v294_v5  ;;  %7456 = vmatprep.subr.bf16.mxu0 %v7455_v1  ;;  %v7601_v1 = vpack.c.bf16 %v2427_v55, %v2425_v54  ;;  %v7603_v3 = vpack.c.bf16 %v2432_v60, %v2430_v59  ;;  %v2444_v54 = vld [vmem:[#allocation2 + $0x798] sm:$0xff]  ;;  %v2441_v55 = vld [vmem:[#allocation2 + $0x780] sm:$0xff] }
  0xae   : > { %2546 = vmatmul.mubr.f32.gmra.mrb[8].mxu1 %v294_v5  ;;  %756 = vmatprep.mubr.f32.mxu0 %v299_v8  ;;  %v2431_v5 = vld [vmem:[#allocation2 + $0x730] sm:$0xff]  ;;  %v649_v59 = vld [vmem:[#allocation2 + $0x398] sm:$0xff] }
  0xaf   : > { %2551 = vmatprep.mubr.f32.mxu1 %v299_v8  ;;  %7586 = vmatpush1.bf16.msra.mxu1 %v7585_v9  ;;  %v636_v8 = vld [vmem:[#allocation2 + $0x330] sm:$0xff]  ;;  %v314_v9 = vld [vmem:[%s8382_s9 + $0x120] sm:$0xff]  ;;  %v7605_v13 = vpack.c.bf16 %v2431_v5, %v2429_v4  ;;  %v359_v4 = vld [vmem:[%s8382_s9 + $0x288] sm:$0xff] }
  0xb0   : > { %7458 = vmatpush1.bf16.msra.mxu0 %v7457_v10  ;;  %7588 = vmatprep.subr.bf16.mxu1 %v7587_v11  ;;  %v2434_v10 = vld [vmem:[#allocation2 + $0x748] sm:$0xff]  ;;  %v2436_v11 = vld [vmem:[#allocation2 + $0x758] sm:$0xff]  ;;  %v7477_v16 = vpack.c.bf16 %v636_v8, %v634_v7  ;;  %v358_v5 = vld [vmem:[%s8382_s9 + $0x280] sm:$0xff] }
  0xb1   : > { %757 = vmatmul.mubr.f32.gmra.mrb[10].mxu0 %v298_v19  ;;  %7460 = vmatprep.subr.bf16.mxu0 %v7459_v15  ;;  %v641_v15 = vld [vmem:[#allocation2 + $0x358] sm:$0xff]  ;;  %v7607_v17 = vpack.c.bf16 %v2436_v11, %v2434_v10  ;;  %v362_v7 = vld [vmem:[%s8382_s9 + $0x2a0] sm:$0xff]  ;;  %v367_v8 = vld [vmem:[%s8382_s9 + $0x2c8] sm:$0xff] }
  0xb2   : > { %2552 = vmatmul.mubr.f32.gmra.mrb[10].mxu1 %v298_v19  ;;  %762 = vmatprep.mubr.f32.mxu0 %v303_v22  ;;  %v2435_v19 = vld [vmem:[#allocation2 + $0x750] sm:$0xff]  ;;  %v7479_v20 = vpack.c.bf16 %v641_v15, %v639_v14  ;;  %v2448_v10 = vld [vmem:[#allocation2 + $0x7b8] sm:$0xff]  ;;  %v2445_v11 = vld [vmem:[#allocation2 + $0x7a0] sm:$0xff] }
  0xb3   : > { %2557 = vmatprep.mubr.f32.mxu1 %v303_v22  ;;  %7590 = vmatpush1.bf16.msra.mxu1 %v7589_v23  ;;  %v640_v22 = vld [vmem:[#allocation2 + $0x350] sm:$0xff]  ;;  %v318_v23 = vld [vmem:[%s8382_s9 + $0x140] sm:$0xff]  ;;  %v651_v14 = vld [vmem:[#allocation2 + $0x3a8] sm:$0xff] }
  0xb4   : > { %7462 = vmatpush1.bf16.msra.mxu0 %v7461_v24  ;;  %7592 = vmatprep.subr.bf16.mxu1 %v7591_v25  ;;  %v323_v24 = vld [vmem:[%s8382_s9 + $0x168] sm:$0xff]  ;;  %v7609_v25 = vpack.c.bf16 %v2435_v19, %v2433_v18  ;;  %v7481_v26 = vpack.c.bf16 %v640_v22, %v638_v21  ;;  %v653_v15 = vld [vmem:[#allocation2 + $0x3b8] sm:$0xff]  ;;  %v650_v18 = vld [vmem:[#allocation2 + $0x3a0] sm:$0xff] }
  0xb5   : > { %763 = vmatmul.mubr.f32.gmra.mrb[12].mxu0 %v302_v33  ;;  %7464 = vmatprep.subr.bf16.mxu0 %v7463_v29  ;;  %v326_v29 = vld [vmem:[%s8382_s9 + $0x180] sm:$0xff]  ;;  %v652_v19 = vld [vmem:[#allocation2 + $0x3b0] sm:$0xff]  ;;  %v371_v21 = vld [vmem:[%s8382_s9 + $0x2e8] sm:$0xff] }
  0xb6   : > { %2558 = vmatmul.mubr.f32.gmra.mrb[12].mxu1 %v302_v33  ;;  %768 = vmatprep.mubr.f32.mxu0 %v307_v36  ;;  %v2438_v33 = vld [vmem:[#allocation2 + $0x768] sm:$0xff]  ;;  %v7493_v22 = vpack.c.bf16 %v652_v19, %v650_v18  ;;  %v442_v19 = vld [vmem:[%s8382_s9 + $0x520] sm:$0xff] }
  0xb7   : > { %2563 = vmatprep.mubr.f32.mxu1 %v307_v36  ;;  %7594 = vmatpush1.bf16.msra.mxu1 %v7593_v37  ;;  %v7611_v36 = vpack.c.bf16 %v2440_v34, %v2438_v33  ;;  %v2439_v37 = vld [vmem:[#allocation2 + $0x770] sm:$0xff]  ;;  %v655_v34 = vld [vmem:[#allocation2 + $0x3c8] sm:$0xff] }
  0xb8   : > { %7466 = vmatpush1.bf16.msra.mxu0 %v7465_v38  ;;  %7596 = vmatprep.subr.bf16.mxu1 %v7595_v39  ;;  %v643_v38 = vld [vmem:[#allocation2 + $0x368] sm:$0xff]  ;;  %v645_v39 = vld [vmem:[#allocation2 + $0x378] sm:$0xff]  ;;  %v7613_v40 = vpack.c.bf16 %v2439_v37, %v2437_v35  ;;  %v2451_v33 = vld [vmem:[#allocation2 + $0x7d0] sm:$0xff] }
  0xb9   : > { %769 = vmatmul.mubr.f32.gmra.mrb[14].mxu0 %v306_v47  ;;  %7468 = vmatprep.subr.bf16.mxu0 %v7467_v43  ;;  %v7483_v41 = vpack.c.bf16 %v645_v39, %v643_v38  ;;  %v644_v43 = vld [vmem:[#allocation2 + $0x370] sm:$0xff]  ;;  %v657_v35 = vld [vmem:[#allocation2 + $0x3d8] sm:$0xff]  ;;  %v654_v38 = vld [vmem:[#allocation2 + $0x3c0] sm:$0xff] }
  0xba   : > { %2564 = vmatmul.mubr.f32.gmra.mrb[14].mxu1 %v306_v47  ;;  %774 = vmatprep.mubr.f32.mxu0 %v311_v50  ;;  %v7485_v46 = vpack.c.bf16 %v644_v43, %v642_v42  ;;  %v338_v47 = vld [vmem:[%s8382_s9 + $0x1e0] sm:$0xff]  ;;  %v7495_v37 = vpack.c.bf16 %v657_v35, %v655_v34  ;;  %v656_v39 = vld [vmem:[#allocation2 + $0x3d0] sm:$0xff]  ;;  %v443_v18 = vld [vmem:[%s8382_s9 + $0x528] sm:$0xff] }
  0xbb   : > { %2569 = vmatprep.mubr.f32.mxu1 %v311_v50  ;;  %7598 = vmatpush1.bf16.msra.mxu1 %v7597_v51  ;;  %v347_v50 = vld [vmem:[%s8382_s9 + $0x228] sm:$0xff]  ;;  %v346_v51 = vld [vmem:[%s8382_s9 + $0x220] sm:$0xff]  ;;  %v7497_v42 = vpack.c.bf16 %v656_v39, %v654_v38 }
  0xbc   : > { %7470 = vmatpush1.bf16.msra.mxu0 %v7469_v52  ;;  %7600 = vmatprep.subr.bf16.mxu1 %v7599_v53  ;;  %v351_v52 = vld [vmem:[%s8382_s9 + $0x248] sm:$0xff]  ;;  %v386_v43 = vld [vmem:[%s8382_s9 + $0x360] sm:$0xff] }
  0xbd   : > { %775 = vmatmul.mubr.f32.gmra.mrb[16].mxu0 %v310_v61  ;;  %7472 = vmatprep.subr.bf16.mxu0 %v7471_v57  ;;  %v2442_v53 = vld [vmem:[#allocation2 + $0x788] sm:$0xff]  ;;  %v2443_v57 = vld [vmem:[#allocation2 + $0x790] sm:$0xff]  ;;  %v474_v35 = vld [vmem:[%s8382_s9 + $0x620] sm:$0xff] }
  0xbe   : > { %2570 = vmatmul.mubr.f32.gmra.mrb[16].mxu1 %v310_v61  ;;  %780 = vmatprep.mubr.f32.mxu0 %v315_v0  ;;  %v7615_v56 = vpack.c.bf16 %v2444_v54, %v2442_v53  ;;  %v7617_v60 = vpack.c.bf16 %v2443_v57, %v2441_v55  ;;  %v7487_v61 = vpack.c.bf16 %v649_v59, %v647_v58  ;;  %v2455_v53 = vld [vmem:[#allocation2 + $0x7f0] sm:$0xff]  ;;  %v659_v54 = vld [vmem:[#allocation2 + $0x3e8] sm:$0xff]  ;;  %v661_v55 = vld [vmem:[#allocation2 + $0x3f8] sm:$0xff] }
  0xbf   : > { %2575 = vmatprep.mubr.f32.mxu1 %v315_v0  ;;  %7602 = vmatpush1.bf16.msra.mxu1 %v7601_v1  ;;  %v350_v0 = vld [vmem:[%s8382_s9 + $0x240] sm:$0xff]  ;;  %v355_v1 = vld [vmem:[%s8382_s9 + $0x268] sm:$0xff]  ;;  %v7499_v57 = vpack.c.bf16 %v661_v55, %v659_v54  ;;  %v660_v59 = vld [vmem:[#allocation2 + $0x3f0] sm:$0xff] }
  0xc0   : > { %7474 = vmatpush1.bf16.msra.mxu0 %v7473_v2  ;;  %7604 = vmatprep.subr.bf16.mxu1 %v7603_v3  ;;  %v7489_v2 = vpack.c.bf16 %v648_v63, %v646_v62  ;;  %v354_v3 = vld [vmem:[%s8382_s9 + $0x260] sm:$0xff]  ;;  %v475_v34 = vld [vmem:[%s8382_s9 + $0x628] sm:$0xff] }
  0xc1   : > { %781 = vmatmul.mubr.f32.gmra.mrb[18].mxu0 %v314_v9  ;;  %7476 = vmatprep.subr.bf16.mxu0 %v7475_v6  ;;  %v363_v6 = vld [vmem:[%s8382_s9 + $0x2a8] sm:$0xff]  ;;  %v658_v58 = vld [vmem:[#allocation2 + $0x3e0] sm:$0xff] }
  0xc2   : > { %2576 = vmatmul.mubr.f32.gmra.mrb[18].mxu1 %v314_v9  ;;  %786 = vmatprep.mubr.f32.mxu0 %v319_v12  ;;  %v2446_v9 = vld [vmem:[#allocation2 + $0x7a8] sm:$0xff]  ;;  %v7501_v62 = vpack.c.bf16 %v660_v59, %v658_v58  ;;  %v402_v63 = vld [vmem:[%s8382_s9 + $0x3e0] sm:$0xff] }
  0xc3   : > { %2581 = vmatprep.mubr.f32.mxu1 %v319_v12  ;;  %7606 = vmatpush1.bf16.msra.mxu1 %v7605_v13  ;;  %v7619_v12 = vpack.c.bf16 %v2448_v10, %v2446_v9  ;;  %v2447_v13 = vld [vmem:[#allocation2 + $0x7b0] sm:$0xff]  ;;  %v422_v9 = vld [vmem:[%s8382_s9 + $0x480] sm:$0xff]  ;;  %v427_v10 = vld [vmem:[%s8382_s9 + $0x4a8] sm:$0xff] }
  0xc4   : > { %7478 = vmatpush1.bf16.msra.mxu0 %v7477_v16  ;;  %7608 = vmatprep.subr.bf16.mxu1 %v7607_v17  ;;  %v7621_v16 = vpack.c.bf16 %v2447_v13, %v2445_v11  ;;  %v7491_v17 = vpack.c.bf16 %v653_v15, %v651_v14  ;;  %v426_v11 = vld [vmem:[%s8382_s9 + $0x4a0] sm:$0xff]  ;;  %v435_v14 = vld [vmem:[%s8382_s9 + $0x4e8] sm:$0xff] }
  0xc5   : > { %787 = vmatmul.mubr.f32.gmra.mrb[20].mxu0 %v318_v23  ;;  %7480 = vmatprep.subr.bf16.mxu0 %v7479_v20  ;;  %v366_v20 = vld [vmem:[%s8382_s9 + $0x2c0] sm:$0xff]  ;;  %v483_v38 = vld [vmem:[%s8382_s9 + $0x668] sm:$0xff] }
  0xc6   : > { %2582 = vmatmul.mubr.f32.gmra.mrb[20].mxu1 %v318_v23  ;;  %792 = vmatprep.mubr.f32.mxu0 %v323_v24  ;;  %v370_v23 = vld [vmem:[%s8382_s9 + $0x2e0] sm:$0xff]  ;;  %v515_v54 = vld [vmem:[%s8382_s9 + $0x768] sm:$0xff] }
  0xc7   : > { %2587 = vmatprep.mubr.f32.mxu1 %v323_v24  ;;  %7610 = vmatpush1.bf16.msra.mxu1 %v7609_v25  ;;  %v375_v24 = vld [vmem:[%s8382_s9 + $0x308] sm:$0xff]  ;;  %v374_v25 = vld [vmem:[%s8382_s9 + $0x300] sm:$0xff] }
  0xc8   : > { %7482 = vmatpush1.bf16.msra.mxu0 %v7481_v26  ;;  %7612 = vmatprep.subr.bf16.mxu1 %v7611_v36  ;;  %v379_v26 = vld [vmem:[%s8382_s9 + $0x328] sm:$0xff]  ;;  %v430_v13 = vld [vmem:[%s8382_s9 + $0x4c0] sm:$0xff] }
  0xc9   : > { %793 = vmatmul.mubr.f32.gmra.mrb[22].mxu0 %v322_v27  ;;  %7484 = vmatprep.subr.bf16.mxu0 %v7483_v41  ;;  %v387_v41 = vld [vmem:[%s8382_s9 + $0x368] sm:$0xff]  ;;  %v434_v15 = vld [vmem:[%s8382_s9 + $0x4e0] sm:$0xff] }
  0xca   : > { %2588 = vmatmul.mubr.f32.gmra.mrb[22].mxu1 %v322_v27  ;;  %798 = vmatprep.mubr.f32.mxu0 %v327_v28  ;;  %v378_v27 = vld [vmem:[%s8382_s9 + $0x320] sm:$0xff]  ;;  %v523_v58 = vld [vmem:[%s8382_s9 + $0x7a8] sm:$0xff] }
  0xcb   : > { %2593 = vmatprep.mubr.f32.mxu1 %v327_v28  ;;  %7614 = vmatpush1.bf16.msra.mxu1 %v7613_v40  ;;  %v383_v28 = vld [vmem:[%s8382_s9 + $0x348] sm:$0xff]  ;;  %v382_v40 = vld [vmem:[%s8382_s9 + $0x340] sm:$0xff] }
  0xcc   : > { %7486 = vmatpush1.bf16.msra.mxu0 %v7485_v46  ;;  %7616 = vmatprep.subr.bf16.mxu1 %v7615_v56  ;;  %v395_v46 = vld [vmem:[%s8382_s9 + $0x3a8] sm:$0xff]  ;;  %v482_v39 = vld [vmem:[%s8382_s9 + $0x660] sm:$0xff] }
  0xcd   : > { %799 = vmatmul.mubr.f32.gmra.mrb[24].mxu0 %v326_v29  ;;  %7488 = vmatprep.subr.bf16.mxu0 %v7487_v61  ;;  %v403_v61 = vld [vmem:[%s8382_s9 + $0x3e8] sm:$0xff]  ;;  %v514_v55 = vld [vmem:[%s8382_s9 + $0x760] sm:$0xff] }
  0xce   : > { %2594 = vmatmul.mubr.f32.gmra.mrb[24].mxu1 %v326_v29  ;;  %804 = vmatprep.mubr.f32.mxu0 %v331_v30  ;;  %v2450_v29 = vld [vmem:[#allocation2 + $0x7c8] sm:$0xff]  ;;  %v522_v59 = vld [vmem:[%s8382_s9 + $0x7a0] sm:$0xff] }
  0xcf   : > { %2599 = vmatprep.mubr.f32.mxu1 %v331_v30  ;;  %7618 = vmatpush1.bf16.msra.mxu1 %v7617_v60  ;;  %v2452_v30 = vld [vmem:[#allocation2 + $0x7d8] sm:$0xff]  ;;  %v398_v60 = vld [vmem:[%s8382_s9 + $0x3c0] sm:$0xff] }
  0xd0   : > { %7490 = vmatpush1.bf16.msra.mxu0 %v7489_v2  ;;  %7620 = vmatprep.subr.bf16.mxu1 %v7619_v12  ;;  %v411_v2 = vld [vmem:[%s8382_s9 + $0x428] sm:$0xff] }
  0xd1   : > { %805 = vmatmul.mubr.f32.gmra.mrb[26].mxu0 %v330_v31  ;;  %7492 = vmatprep.subr.bf16.mxu0 %v7491_v17  ;;  %v431_v12 = vld [vmem:[%s8382_s9 + $0x4c8] sm:$0xff]  ;;  %v438_v17 = vld [vmem:[%s8382_s9 + $0x500] sm:$0xff] }
  0xd2   : > { %2600 = vmatmul.mubr.f32.gmra.mrb[26].mxu1 %v330_v31  ;;  %810 = vmatprep.mubr.f32.mxu0 %v335_v32  ;;  %v2449_v31 = vld [vmem:[#allocation2 + $0x7c0] sm:$0xff] }
  0xd3   : > { %2605 = vmatprep.mubr.f32.mxu1 %v335_v32  ;;  %7622 = vmatpush1.bf16.msra.mxu1 %v7621_v16  ;;  %v7623_v32 = vpack.c.bf16 %v2452_v30, %v2450_v29  ;;  %v7625_v36 = vpack.c.bf16 %v2451_v33, %v2449_v31  ;;  %v439_v16 = vld [vmem:[%s8382_s9 + $0x508] sm:$0xff]  ;;  %v462_v29 = vld [vmem:[%s8382_s9 + $0x5c0] sm:$0xff] }
  0xd4   : > { %7494 = vmatpush1.bf16.msra.mxu0 %v7493_v22  ;;  %v451_v22 = vld [vmem:[%s8382_s9 + $0x568] sm:$0xff]  ;;  %v466_v31 = vld [vmem:[%s8382_s9 + $0x5e0] sm:$0xff] }
  0xd5   : > { %811 = vmatmul.mubr.f32.gmra.mrb[28].mxu0 %v334_v44  ;;  %7624 = vmatprep.subr.bf16.mxu1 %v7623_v32  ;;  %v467_v30 = vld [vmem:[%s8382_s9 + $0x5e8] sm:$0xff]  ;;  %v470_v33 = vld [vmem:[%s8382_s9 + $0x600] sm:$0xff] }
  0xd6   : > { %2606 = vmatmul.mubr.f32.gmra.mrb[28].mxu1 %v334_v44  ;;  %816 = vmatprep.mubr.f32.mxu0 %v339_v45  ;;  %v391_v44 = vld [vmem:[%s8382_s9 + $0x388] sm:$0xff] }
  0xd7   : > { %2611 = vmatprep.mubr.f32.mxu1 %v339_v45  ;;  %7626 = vmatpush1.bf16.msra.mxu1 %v7625_v36  ;;  %v390_v45 = vld [vmem:[%s8382_s9 + $0x380] sm:$0xff]  ;;  %v471_v32 = vld [vmem:[%s8382_s9 + $0x608] sm:$0xff] }
  0xd8   : > { %7496 = vmatprep.subr.bf16.mxu0 %v7495_v37  ;;  %v479_v36 = vld [vmem:[%s8382_s9 + $0x648] sm:$0xff]  ;;  %v478_v37 = vld [vmem:[%s8382_s9 + $0x640] sm:$0xff] }
  0xd9   : > { %817 = vmatmul.mubr.f32.gmra.mrb[30].mxu0 %v338_v47 }
  0xda   : > { %2612 = vmatmul.mubr.f32.gmra.mrb[30].mxu1 %v338_v47  ;;  %822 = vmatprep.mubr.f32.mxu0 %v343_v48  ;;  %v394_v47 = vld [vmem:[%s8382_s9 + $0x3a0] sm:$0xff] }
  0xdb   : > { %2617 = vmatprep.mubr.f32.mxu1 %v343_v48  ;;  %7498 = vmatpush1.bf16.msra.mxu0 %v7497_v42  ;;  %v399_v48 = vld [vmem:[%s8382_s9 + $0x3c8] sm:$0xff] }
  0xdc   : > { %7500 = vmatprep.subr.bf16.mxu0 %v7499_v57  ;;  %v491_v42 = vld [vmem:[%s8382_s9 + $0x6a8] sm:$0xff]  ;;  %v518_v57 = vld [vmem:[%s8382_s9 + $0x780] sm:$0xff] }
  0xdd   : > { %823 = vmatmul.mubr.f32.gmra.mrb[32].mxu0 %v342_v49 }
  0xde   : > { %2618 = vmatmul.mubr.f32.gmra.mrb[32].mxu1 %v342_v49  ;;  %828 = vmatprep.mubr.f32.mxu0 %v347_v50  ;;  %v2454_v49 = vld [vmem:[#allocation2 + $0x7e8] sm:$0xff] }
  0xdf   : > { %2623 = vmatprep.mubr.f32.mxu1 %v347_v50  ;;  %v2456_v50 = vld [vmem:[#allocation2 + $0x7f8] sm:$0xff]  ;;  %7502 = vmatpush1.bf16.msra.mxu0 %v7501_v62  ;;  %v531_v62 = vld [vmem:[%s8382_s9 + $0x7e8] sm:$0xff] }
  0xe1   : > { %829 = vmatmul.mubr.f32.gmra.mrb[34].mxu0 %v346_v51 }
  0xe2   : > { %2624 = vmatmul.mubr.f32.gmra.mrb[34].mxu1 %v346_v51  ;;  %834 = vmatprep.mubr.f32.mxu0 %v351_v52  ;;  %v2453_v51 = vld [vmem:[#allocation2 + $0x7e0] sm:$0xff] }
  0xe3   : > { %2629 = vmatprep.mubr.f32.mxu1 %v351_v52  ;;  %v7627_v52 = vpack.c.bf16 %v2456_v50, %v2454_v49  ;;  %v7629_v56 = vpack.c.bf16 %v2455_v53, %v2453_v51  ;;  %v502_v49 = vld [vmem:[%s8382_s9 + $0x700] sm:$0xff]  ;;  %v507_v50 = vld [vmem:[%s8382_s9 + $0x728] sm:$0xff] }
  0xe4   : > { %v506_v51 = vld [vmem:[%s8382_s9 + $0x720] sm:$0xff] }
  0xe5   : > { %835 = vmatmul.mubr.f32.gmra.mrb[36].mxu0 %v350_v0  ;;  %7628 = vmatprep.subr.bf16.mxu1 %v7627_v52  ;;  %v511_v52 = vld [vmem:[%s8382_s9 + $0x748] sm:$0xff]  ;;  %v510_v53 = vld [vmem:[%s8382_s9 + $0x740] sm:$0xff] }
  0xe6   : > { %2630 = vmatmul.mubr.f32.gmra.mrb[36].mxu1 %v350_v0  ;;  %840 = vmatprep.mubr.f32.mxu0 %v355_v1  ;;  %v407_v0 = vld [vmem:[%s8382_s9 + $0x408] sm:$0xff] }
  0xe7   : > { %2635 = vmatprep.mubr.f32.mxu1 %v355_v1  ;;  %7630 = vmatpush1.bf16.msra.mxu1 %v7629_v56  ;;  %v406_v1 = vld [vmem:[%s8382_s9 + $0x400] sm:$0xff]  ;;  %v519_v56 = vld [vmem:[%s8382_s9 + $0x788] sm:$0xff] }
  0xe9   : > { %841 = vmatmul.mubr.f32.gmra.mrb[38].mxu0 %v354_v3 }
  0xea   : > { %2636 = vmatmul.mubr.f32.gmra.mrb[38].mxu1 %v354_v3  ;;  %846 = vmatprep.mubr.f32.mxu0 %v359_v4  ;;  %v410_v3 = vld [vmem:[%s8382_s9 + $0x420] sm:$0xff] }
  0xeb   : > { %2641 = vmatprep.mubr.f32.mxu1 %v359_v4  ;;  %v415_v4 = vld [vmem:[%s8382_s9 + $0x448] sm:$0xff] }
  0xed   : > { %847 = vmatmul.mubr.f32.gmra.mrb[40].mxu0 %v358_v5 }
  0xee   : > { %2642 = vmatmul.mubr.f32.gmra.mrb[40].mxu1 %v358_v5  ;;  %852 = vmatprep.mubr.f32.mxu0 %v363_v6  ;;  %v414_v5 = vld [vmem:[%s8382_s9 + $0x440] sm:$0xff] }
  0xef   : > { %2647 = vmatprep.mubr.f32.mxu1 %v363_v6  ;;  %v419_v6 = vld [vmem:[%s8382_s9 + $0x468] sm:$0xff] }
  0xf1   : > { %853 = vmatmul.mubr.f32.gmra.mrb[42].mxu0 %v362_v7 }
  0xf2   : > { %2648 = vmatmul.mubr.f32.gmra.mrb[42].mxu1 %v362_v7  ;;  %858 = vmatprep.mubr.f32.mxu0 %v367_v8  ;;  %v418_v7 = vld [vmem:[%s8382_s9 + $0x460] sm:$0xff] }
  0xf3   : > { %2653 = vmatprep.mubr.f32.mxu1 %v367_v8  ;;  %v423_v8 = vld [vmem:[%s8382_s9 + $0x488] sm:$0xff] }
  0xf5   : > { %859 = vmatmul.mubr.f32.gmra.mrb[44].mxu0 %v366_v20 }
  0xf6   : > { %2654 = vmatmul.mubr.f32.gmra.mrb[44].mxu1 %v366_v20  ;;  %864 = vmatprep.mubr.f32.mxu0 %v371_v21  ;;  %v447_v20 = vld [vmem:[%s8382_s9 + $0x548] sm:$0xff] }
  0xf7   : > { %2659 = vmatprep.mubr.f32.mxu1 %v371_v21  ;;  %v446_v21 = vld [vmem:[%s8382_s9 + $0x540] sm:$0xff] }
  0xf9   : > { %865 = vmatmul.mubr.f32.gmra.mrb[46].mxu0 %v370_v23 }
  0xfa   : > { %2660 = vmatmul.mubr.f32.gmra.mrb[46].mxu1 %v370_v23  ;;  %870 = vmatprep.mubr.f32.mxu0 %v375_v24  ;;  %v450_v23 = vld [vmem:[%s8382_s9 + $0x560] sm:$0xff] }
  0xfb   : > { %2665 = vmatprep.mubr.f32.mxu1 %v375_v24  ;;  %v455_v24 = vld [vmem:[%s8382_s9 + $0x588] sm:$0xff] }
  0xfd   : > { %871 = vmatmul.mubr.f32.gmra.mrb[48].mxu0 %v374_v25 }
  0xfe   : > { %2666 = vmatmul.mubr.f32.gmra.mrb[48].mxu1 %v374_v25  ;;  %876 = vmatprep.mubr.f32.mxu0 %v379_v26  ;;  %v454_v25 = vld [vmem:[%s8382_s9 + $0x580] sm:$0xff] }
  0xff   : > { %2671 = vmatprep.mubr.f32.mxu1 %v379_v26  ;;  %v459_v26 = vld [vmem:[%s8382_s9 + $0x5a8] sm:$0xff] }
 0x101   : > { %877 = vmatmul.mubr.f32.gmra.mrb[50].mxu0 %v378_v27 }
 0x102   : > { %2672 = vmatmul.mubr.f32.gmra.mrb[50].mxu1 %v378_v27  ;;  %882 = vmatprep.mubr.f32.mxu0 %v383_v28  ;;  %v458_v27 = vld [vmem:[%s8382_s9 + $0x5a0] sm:$0xff] }
 0x103   : > { %2677 = vmatprep.mubr.f32.mxu1 %v383_v28  ;;  %v463_v28 = vld [vmem:[%s8382_s9 + $0x5c8] sm:$0xff] }
 0x105   : > { %883 = vmatmul.mubr.f32.gmra.mrb[52].mxu0 %v382_v40 }
 0x106   : > { %2678 = vmatmul.mubr.f32.gmra.mrb[52].mxu1 %v382_v40  ;;  %888 = vmatprep.mubr.f32.mxu0 %v387_v41  ;;  %v487_v40 = vld [vmem:[%s8382_s9 + $0x688] sm:$0xff] }
 0x107   : > { %2683 = vmatprep.mubr.f32.mxu1 %v387_v41  ;;  %v486_v41 = vld [vmem:[%s8382_s9 + $0x680] sm:$0xff] }
 0x109   : > { %889 = vmatmul.mubr.f32.gmra.mrb[54].mxu0 %v386_v43 }
 0x10a   : > { %2684 = vmatmul.mubr.f32.gmra.mrb[54].mxu1 %v386_v43  ;;  %894 = vmatprep.mubr.f32.mxu0 %v391_v44  ;;  %v490_v43 = vld [vmem:[%s8382_s9 + $0x6a0] sm:$0xff] }
 0x10b   : > { %2689 = vmatprep.mubr.f32.mxu1 %v391_v44  ;;  %v495_v44 = vld [vmem:[%s8382_s9 + $0x6c8] sm:$0xff] }
 0x10d   : > { %895 = vmatmul.mubr.f32.gmra.mrb[56].mxu0 %v390_v45 }
 0x10e   : > { %2690 = vmatmul.mubr.f32.gmra.mrb[56].mxu1 %v390_v45  ;;  %900 = vmatprep.mubr.f32.mxu0 %v395_v46  ;;  %v494_v45 = vld [vmem:[%s8382_s9 + $0x6c0] sm:$0xff] }
 0x10f   : > { %2695 = vmatprep.mubr.f32.mxu1 %v395_v46  ;;  %v499_v46 = vld [vmem:[%s8382_s9 + $0x6e8] sm:$0xff] }
 0x111   : > { %901 = vmatmul.mubr.f32.gmra.mrb[58].mxu0 %v394_v47 }
 0x112   : > { %2696 = vmatmul.mubr.f32.gmra.mrb[58].mxu1 %v394_v47  ;;  %906 = vmatprep.mubr.f32.mxu0 %v399_v48  ;;  %v498_v47 = vld [vmem:[%s8382_s9 + $0x6e0] sm:$0xff] }
 0x113   : > { %2701 = vmatprep.mubr.f32.mxu1 %v399_v48  ;;  %v503_v48 = vld [vmem:[%s8382_s9 + $0x708] sm:$0xff] }
 0x115   : > { %907 = vmatmul.mubr.f32.gmra.mrb[60].mxu0 %v398_v60 }
 0x116   : > { %2702 = vmatmul.mubr.f32.gmra.mrb[60].mxu1 %v398_v60  ;;  %912 = vmatprep.mubr.f32.mxu0 %v403_v61  ;;  %v527_v60 = vld [vmem:[%s8382_s9 + $0x7c8] sm:$0xff] }
 0x117   : > { %2707 = vmatprep.mubr.f32.mxu1 %v403_v61  ;;  %v526_v61 = vld [vmem:[%s8382_s9 + $0x7c0] sm:$0xff] }
 0x119   : > { %913 = vmatmul.mubr.f32.gmra.mrb[62].mxu0 %v402_v63 }
 0x11a   : > { %2708 = vmatmul.mubr.f32.gmra.mrb[62].mxu1 %v402_v63  ;;  %918 = vmatprep.mubr.f32.mxu0 %v407_v0  ;;  %v530_v63 = vld [vmem:[%s8382_s9 + $0x7e0] sm:$0xff] }
 0x11b   : > { %2713 = vmatprep.mubr.f32.mxu1 %v407_v0  ;;  %v281_v0 = vld [vmem:[%s8382_s9 + $0x18] sm:$0xff] }
 0x11d   : > { %919 = vmatmul.mubr.f32.gmra.mrb[64].mxu0 %v406_v1 }
 0x11e   : > { %2714 = vmatmul.mubr.f32.gmra.mrb[64].mxu1 %v406_v1  ;;  %924 = vmatprep.mubr.f32.mxu0 %v411_v2  ;;  %v280_v1 = vld [vmem:[%s8382_s9 + $0x10] sm:$0xff] }
 0x11f   : > { %2719 = vmatprep.mubr.f32.mxu1 %v411_v2  ;;  %v285_v2 = vld [vmem:[%s8382_s9 + $0x38] sm:$0xff] }
 0x121   : > { %925 = vmatmul.mubr.f32.gmra.mrb[66].mxu0 %v410_v3 }
 0x122   : > { %2720 = vmatmul.mubr.f32.gmra.mrb[66].mxu1 %v410_v3  ;;  %930 = vmatprep.mubr.f32.mxu0 %v415_v4  ;;  %v284_v3 = vld [vmem:[%s8382_s9 + $0x30] sm:$0xff] }
 0x123   : > { %2725 = vmatprep.mubr.f32.mxu1 %v415_v4  ;;  %v289_v4 = vld [vmem:[%s8382_s9 + $0x58] sm:$0xff] }
 0x125   : > { %931 = vmatmul.mubr.f32.gmra.mrb[68].mxu0 %v414_v5 }
 0x126   : > { %2726 = vmatmul.mubr.f32.gmra.mrb[68].mxu1 %v414_v5  ;;  %936 = vmatprep.mubr.f32.mxu0 %v419_v6  ;;  %v288_v5 = vld [vmem:[%s8382_s9 + $0x50] sm:$0xff] }
 0x127   : > { %2731 = vmatprep.mubr.f32.mxu1 %v419_v6  ;;  %v293_v6 = vld [vmem:[%s8382_s9 + $0x78] sm:$0xff] }
 0x129   : > { %937 = vmatmul.mubr.f32.gmra.mrb[70].mxu0 %v418_v7 }
 0x12a   : > { %2732 = vmatmul.mubr.f32.gmra.mrb[70].mxu1 %v418_v7  ;;  %942 = vmatprep.mubr.f32.mxu0 %v423_v8  ;;  %v292_v7 = vld [vmem:[%s8382_s9 + $0x70] sm:$0xff] }
 0x12b   : > { %2737 = vmatprep.mubr.f32.mxu1 %v423_v8  ;;  %v297_v8 = vld [vmem:[%s8382_s9 + $0x98] sm:$0xff] }
 0x12d   : > { %943 = vmatmul.mubr.f32.gmra.mrb[72].mxu0 %v422_v9 }
 0x12e   : > { %2738 = vmatmul.mubr.f32.gmra.mrb[72].mxu1 %v422_v9  ;;  %948 = vmatprep.mubr.f32.mxu0 %v427_v10  ;;  %v296_v9 = vld [vmem:[%s8382_s9 + $0x90] sm:$0xff] }
 0x12f   : > { %2743 = vmatprep.mubr.f32.mxu1 %v427_v10  ;;  %v301_v10 = vld [vmem:[%s8382_s9 + $0xb8] sm:$0xff] }
 0x131   : > { %949 = vmatmul.mubr.f32.gmra.mrb[74].mxu0 %v426_v11 }
 0x132   : > { %2744 = vmatmul.mubr.f32.gmra.mrb[74].mxu1 %v426_v11  ;;  %954 = vmatprep.mubr.f32.mxu0 %v431_v12  ;;  %v300_v11 = vld [vmem:[%s8382_s9 + $0xb0] sm:$0xff] }
 0x133   : > { %2749 = vmatprep.mubr.f32.mxu1 %v431_v12  ;;  %v305_v12 = vld [vmem:[%s8382_s9 + $0xd8] sm:$0xff] }
 0x135   : > { %955 = vmatmul.mubr.f32.gmra.mrb[76].mxu0 %v430_v13 }
 0x136   : > { %2750 = vmatmul.mubr.f32.gmra.mrb[76].mxu1 %v430_v13  ;;  %960 = vmatprep.mubr.f32.mxu0 %v435_v14  ;;  %v304_v13 = vld [vmem:[%s8382_s9 + $0xd0] sm:$0xff] }
 0x137   : > { %2755 = vmatprep.mubr.f32.mxu1 %v435_v14  ;;  %v309_v14 = vld [vmem:[%s8382_s9 + $0xf8] sm:$0xff] }
 0x139   : > { %961 = vmatmul.mubr.f32.gmra.mrb[78].mxu0 %v434_v15 }
 0x13a   : > { %2756 = vmatmul.mubr.f32.gmra.mrb[78].mxu1 %v434_v15  ;;  %966 = vmatprep.mubr.f32.mxu0 %v439_v16  ;;  %v308_v15 = vld [vmem:[%s8382_s9 + $0xf0] sm:$0xff] }
 0x13b   : > { %2761 = vmatprep.mubr.f32.mxu1 %v439_v16  ;;  %v313_v16 = vld [vmem:[%s8382_s9 + $0x118] sm:$0xff] }
 0x13d   : > { %967 = vmatmul.mubr.f32.gmra.mrb[80].mxu0 %v438_v17 }
 0x13e   : > { %2762 = vmatmul.mubr.f32.gmra.mrb[80].mxu1 %v438_v17  ;;  %972 = vmatprep.mubr.f32.mxu0 %v443_v18  ;;  %v312_v17 = vld [vmem:[%s8382_s9 + $0x110] sm:$0xff] }
 0x13f   : > { %2767 = vmatprep.mubr.f32.mxu1 %v443_v18  ;;  %v317_v18 = vld [vmem:[%s8382_s9 + $0x138] sm:$0xff] }
 0x141   : > { %973 = vmatmul.mubr.f32.gmra.mrb[82].mxu0 %v442_v19 }
 0x142   : > { %2768 = vmatmul.mubr.f32.gmra.mrb[82].mxu1 %v442_v19  ;;  %978 = vmatprep.mubr.f32.mxu0 %v447_v20  ;;  %v316_v19 = vld [vmem:[%s8382_s9 + $0x130] sm:$0xff] }
 0x143   : > { %2773 = vmatprep.mubr.f32.mxu1 %v447_v20  ;;  %v321_v20 = vld [vmem:[%s8382_s9 + $0x158] sm:$0xff] }
 0x145   : > { %979 = vmatmul.mubr.f32.gmra.mrb[84].mxu0 %v446_v21 }
 0x146   : > { %2774 = vmatmul.mubr.f32.gmra.mrb[84].mxu1 %v446_v21  ;;  %984 = vmatprep.mubr.f32.mxu0 %v451_v22  ;;  %v320_v21 = vld [vmem:[%s8382_s9 + $0x150] sm:$0xff] }
 0x147   : > { %2779 = vmatprep.mubr.f32.mxu1 %v451_v22  ;;  %v325_v22 = vld [vmem:[%s8382_s9 + $0x178] sm:$0xff] }
 0x149   : > { %985 = vmatmul.mubr.f32.gmra.mrb[86].mxu0 %v450_v23 }
 0x14a   : > { %2780 = vmatmul.mubr.f32.gmra.mrb[86].mxu1 %v450_v23  ;;  %990 = vmatprep.mubr.f32.mxu0 %v455_v24  ;;  %v324_v23 = vld [vmem:[%s8382_s9 + $0x170] sm:$0xff] }
 0x14b   : > { %2785 = vmatprep.mubr.f32.mxu1 %v455_v24  ;;  %v329_v24 = vld [vmem:[%s8382_s9 + $0x198] sm:$0xff] }
 0x14d   : > { %991 = vmatmul.mubr.f32.gmra.mrb[88].mxu0 %v454_v25 }
 0x14e   : > { %2786 = vmatmul.mubr.f32.gmra.mrb[88].mxu1 %v454_v25  ;;  %996 = vmatprep.mubr.f32.mxu0 %v459_v26  ;;  %v328_v25 = vld [vmem:[%s8382_s9 + $0x190] sm:$0xff] }
 0x14f   : > { %2791 = vmatprep.mubr.f32.mxu1 %v459_v26  ;;  %v333_v26 = vld [vmem:[%s8382_s9 + $0x1b8] sm:$0xff] }
 0x151   : > { %997 = vmatmul.mubr.f32.gmra.mrb[90].mxu0 %v458_v27 }
 0x152   : > { %2792 = vmatmul.mubr.f32.gmra.mrb[90].mxu1 %v458_v27  ;;  %1002 = vmatprep.mubr.f32.mxu0 %v463_v28  ;;  %v332_v27 = vld [vmem:[%s8382_s9 + $0x1b0] sm:$0xff] }
 0x153   : > { %2797 = vmatprep.mubr.f32.mxu1 %v463_v28  ;;  %v337_v28 = vld [vmem:[%s8382_s9 + $0x1d8] sm:$0xff] }
 0x155   : > { %1003 = vmatmul.mubr.f32.gmra.mrb[92].mxu0 %v462_v29 }
 0x156   : > { %2798 = vmatmul.mubr.f32.gmra.mrb[92].mxu1 %v462_v29  ;;  %1008 = vmatprep.mubr.f32.mxu0 %v467_v30  ;;  %v336_v29 = vld [vmem:[%s8382_s9 + $0x1d0] sm:$0xff] }
 0x157   : > { %2803 = vmatprep.mubr.f32.mxu1 %v467_v30  ;;  %v341_v30 = vld [vmem:[%s8382_s9 + $0x1f8] sm:$0xff] }
 0x159   : > { %1009 = vmatmul.mubr.f32.gmra.mrb[94].mxu0 %v466_v31 }
 0x15a   : > { %2804 = vmatmul.mubr.f32.gmra.mrb[94].mxu1 %v466_v31  ;;  %1014 = vmatprep.mubr.f32.mxu0 %v471_v32  ;;  %v340_v31 = vld [vmem:[%s8382_s9 + $0x1f0] sm:$0xff] }
 0x15b   : > { %2809 = vmatprep.mubr.f32.mxu1 %v471_v32  ;;  %v345_v32 = vld [vmem:[%s8382_s9 + $0x218] sm:$0xff] }
 0x15d   : > { %1015 = vmatmul.mubr.f32.gmra.mrb[96].mxu0 %v470_v33 }
 0x15e   : > { %2810 = vmatmul.mubr.f32.gmra.mrb[96].mxu1 %v470_v33  ;;  %1020 = vmatprep.mubr.f32.mxu0 %v475_v34  ;;  %v344_v33 = vld [vmem:[%s8382_s9 + $0x210] sm:$0xff] }
 0x15f   : > { %2815 = vmatprep.mubr.f32.mxu1 %v475_v34  ;;  %v349_v34 = vld [vmem:[%s8382_s9 + $0x238] sm:$0xff] }
 0x161   : > { %1021 = vmatmul.mubr.f32.gmra.mrb[98].mxu0 %v474_v35 }
 0x162   : > { %2816 = vmatmul.mubr.f32.gmra.mrb[98].mxu1 %v474_v35  ;;  %1026 = vmatprep.mubr.f32.mxu0 %v479_v36  ;;  %v348_v35 = vld [vmem:[%s8382_s9 + $0x230] sm:$0xff] }
 0x163   : > { %2821 = vmatprep.mubr.f32.mxu1 %v479_v36  ;;  %v353_v36 = vld [vmem:[%s8382_s9 + $0x258] sm:$0xff] }
 0x165   : > { %1027 = vmatmul.mubr.f32.gmra.mrb[100].mxu0 %v478_v37 }
 0x166   : > { %2822 = vmatmul.mubr.f32.gmra.mrb[100].mxu1 %v478_v37  ;;  %1032 = vmatprep.mubr.f32.mxu0 %v483_v38  ;;  %v352_v37 = vld [vmem:[%s8382_s9 + $0x250] sm:$0xff] }
 0x167   : > { %2827 = vmatprep.mubr.f32.mxu1 %v483_v38  ;;  %v357_v38 = vld [vmem:[%s8382_s9 + $0x278] sm:$0xff] }
 0x169   : > { %1033 = vmatmul.mubr.f32.gmra.mrb[102].mxu0 %v482_v39 }
 0x16a   : > { %2828 = vmatmul.mubr.f32.gmra.mrb[102].mxu1 %v482_v39  ;;  %1038 = vmatprep.mubr.f32.mxu0 %v487_v40  ;;  %v356_v39 = vld [vmem:[%s8382_s9 + $0x270] sm:$0xff] }
 0x16b   : > { %2833 = vmatprep.mubr.f32.mxu1 %v487_v40  ;;  %v361_v40 = vld [vmem:[%s8382_s9 + $0x298] sm:$0xff] }
 0x16d   : > { %1039 = vmatmul.mubr.f32.gmra.mrb[104].mxu0 %v486_v41 }
 0x16e   : > { %2834 = vmatmul.mubr.f32.gmra.mrb[104].mxu1 %v486_v41  ;;  %1044 = vmatprep.mubr.f32.mxu0 %v491_v42  ;;  %v360_v41 = vld [vmem:[%s8382_s9 + $0x290] sm:$0xff] }
 0x16f   : > { %2839 = vmatprep.mubr.f32.mxu1 %v491_v42  ;;  %v365_v42 = vld [vmem:[%s8382_s9 + $0x2b8] sm:$0xff] }
 0x171   : > { %1045 = vmatmul.mubr.f32.gmra.mrb[106].mxu0 %v490_v43 }
 0x172   : > { %2840 = vmatmul.mubr.f32.gmra.mrb[106].mxu1 %v490_v43  ;;  %1050 = vmatprep.mubr.f32.mxu0 %v495_v44  ;;  %v364_v43 = vld [vmem:[%s8382_s9 + $0x2b0] sm:$0xff] }
 0x173   : > { %2845 = vmatprep.mubr.f32.mxu1 %v495_v44  ;;  %v369_v44 = vld [vmem:[%s8382_s9 + $0x2d8] sm:$0xff] }
 0x175   : > { %1051 = vmatmul.mubr.f32.gmra.mrb[108].mxu0 %v494_v45 }
 0x176   : > { %2846 = vmatmul.mubr.f32.gmra.mrb[108].mxu1 %v494_v45  ;;  %1056 = vmatprep.mubr.f32.mxu0 %v499_v46  ;;  %v368_v45 = vld [vmem:[%s8382_s9 + $0x2d0] sm:$0xff] }
 0x177   : > { %2851 = vmatprep.mubr.f32.mxu1 %v499_v46  ;;  %v373_v46 = vld [vmem:[%s8382_s9 + $0x2f8] sm:$0xff] }
 0x179   : > { %1057 = vmatmul.mubr.f32.gmra.mrb[110].mxu0 %v498_v47 }
 0x17a   : > { %2852 = vmatmul.mubr.f32.gmra.mrb[110].mxu1 %v498_v47  ;;  %1062 = vmatprep.mubr.f32.mxu0 %v503_v48  ;;  %v372_v47 = vld [vmem:[%s8382_s9 + $0x2f0] sm:$0xff] }
 0x17b   : > { %2857 = vmatprep.mubr.f32.mxu1 %v503_v48  ;;  %v377_v48 = vld [vmem:[%s8382_s9 + $0x318] sm:$0xff] }
 0x17d   : > { %1063 = vmatmul.mubr.f32.gmra.mrb[112].mxu0 %v502_v49 }
 0x17e   : > { %2858 = vmatmul.mubr.f32.gmra.mrb[112].mxu1 %v502_v49  ;;  %1068 = vmatprep.mubr.f32.mxu0 %v507_v50  ;;  %v376_v49 = vld [vmem:[%s8382_s9 + $0x310] sm:$0xff] }
 0x17f   : > { %2863 = vmatprep.mubr.f32.mxu1 %v507_v50  ;;  %v381_v50 = vld [vmem:[%s8382_s9 + $0x338] sm:$0xff] }
 0x181   : > { %1069 = vmatmul.mubr.f32.gmra.mrb[114].mxu0 %v506_v51 }
 0x182   : > { %2864 = vmatmul.mubr.f32.gmra.mrb[114].mxu1 %v506_v51  ;;  %1074 = vmatprep.mubr.f32.mxu0 %v511_v52  ;;  %v380_v51 = vld [vmem:[%s8382_s9 + $0x330] sm:$0xff] }
 0x183   : > { %2869 = vmatprep.mubr.f32.mxu1 %v511_v52  ;;  %v385_v52 = vld [vmem:[%s8382_s9 + $0x358] sm:$0xff] }
 0x185   : > { %1075 = vmatmul.mubr.f32.gmra.mrb[116].mxu0 %v510_v53 }
 0x186   : > { %2870 = vmatmul.mubr.f32.gmra.mrb[116].mxu1 %v510_v53  ;;  %1080 = vmatprep.mubr.f32.mxu0 %v515_v54  ;;  %v384_v53 = vld [vmem:[%s8382_s9 + $0x350] sm:$0xff] }
 0x187   : > { %2875 = vmatprep.mubr.f32.mxu1 %v515_v54  ;;  %v389_v54 = vld [vmem:[%s8382_s9 + $0x378] sm:$0xff] }
 0x189   : > { %1081 = vmatmul.mubr.f32.gmra.mrb[118].mxu0 %v514_v55 }
 0x18a   : > { %2876 = vmatmul.mubr.f32.gmra.mrb[118].mxu1 %v514_v55  ;;  %1086 = vmatprep.mubr.f32.mxu0 %v519_v56  ;;  %v388_v55 = vld [vmem:[%s8382_s9 + $0x370] sm:$0xff] }
 0x18b   : > { %2881 = vmatprep.mubr.f32.mxu1 %v519_v56  ;;  %v393_v56 = vld [vmem:[%s8382_s9 + $0x398] sm:$0xff] }
 0x18d   : > { %1087 = vmatmul.mubr.f32.gmra.mrb[120].mxu0 %v518_v57 }
 0x18e   : > { %2882 = vmatmul.mubr.f32.gmra.mrb[120].mxu1 %v518_v57  ;;  %1092 = vmatprep.mubr.f32.mxu0 %v523_v58  ;;  %v392_v57 = vld [vmem:[%s8382_s9 + $0x390] sm:$0xff] }
 0x18f   : > { %2887 = vmatprep.mubr.f32.mxu1 %v523_v58  ;;  %v397_v58 = vld [vmem:[%s8382_s9 + $0x3b8] sm:$0xff] }
 0x191   : > { %1093 = vmatmul.mubr.f32.gmra.mrb[122].mxu0 %v522_v59 }
 0x192   : > { %2888 = vmatmul.mubr.f32.gmra.mrb[122].mxu1 %v522_v59  ;;  %1098 = vmatprep.mubr.f32.mxu0 %v527_v60  ;;  %v396_v59 = vld [vmem:[%s8382_s9 + $0x3b0] sm:$0xff] }
 0x193   : > { %2893 = vmatprep.mubr.f32.mxu1 %v527_v60  ;;  %v401_v60 = vld [vmem:[%s8382_s9 + $0x3d8] sm:$0xff] }
 0x195   : > { %1099 = vmatmul.mubr.f32.gmra.mrb[124].mxu0 %v526_v61 }
 0x196   : > { %2894 = vmatmul.mubr.f32.gmra.mrb[124].mxu1 %v526_v61  ;;  %1104 = vmatprep.mubr.f32.mxu0 %v531_v62  ;;  %v400_v61 = vld [vmem:[%s8382_s9 + $0x3d0] sm:$0xff] }
 0x197   : > { %2899 = vmatprep.mubr.f32.mxu1 %v531_v62  ;;  %v405_v62 = vld [vmem:[%s8382_s9 + $0x3f8] sm:$0xff] }
 0x199   : > { %1105 = vmatmul.mubr.f32.gmra.mrb[126].mxu0 %v530_v63 }
 0x19a   : > { %2900 = vmatmul.mubr.f32.gmra.mrb[126].mxu1 %v530_v63  ;;  %1175 = vmatprep.mubr.f32.mxu0 %v281_v0  ;;  %v404_v63 = vld [vmem:[%s8382_s9 + $0x3f0] sm:$0xff] }
 0x19b   : > { %2970 = vmatprep.mubr.f32.mxu1 %v281_v0  ;;  %v409_v0 = vld [vmem:[%s8382_s9 + $0x418] sm:$0xff] }
 0x19d   : > { %1176 = vmatmul.mubr.f32.vlgmr.msra.gmra.mrb[0].mxu0 %v280_v1 }
 0x19e   : > { %2971 = vmatmul.mubr.f32.vlgmr.msra.gmra.mrb[0].mxu1 %v280_v1  ;;  %1181 = vmatprep.mubr.f32.mxu0 %v285_v2  ;;  %v408_v1 = vld [vmem:[%s8382_s9 + $0x410] sm:$0xff] }
 0x19f   : > { %2976 = vmatprep.mubr.f32.mxu1 %v285_v2  ;;  %v413_v2 = vld [vmem:[%s8382_s9 + $0x438] sm:$0xff] }
 0x1a1   : > { %1182 = vmatmul.mubr.f32.gmra.mrb[2].mxu0 %v284_v3 }
 0x1a2   : > { %2977 = vmatmul.mubr.f32.gmra.mrb[2].mxu1 %v284_v3  ;;  %1187 = vmatprep.mubr.f32.mxu0 %v289_v4  ;;  %v412_v3 = vld [vmem:[%s8382_s9 + $0x430] sm:$0xff] }
 0x1a3   : > { %2982 = vmatprep.mubr.f32.mxu1 %v289_v4  ;;  %v417_v4 = vld [vmem:[%s8382_s9 + $0x458] sm:$0xff] }
 0x1a5   : > { %1188 = vmatmul.mubr.f32.gmra.mrb[4].mxu0 %v288_v5 }
 0x1a6   : > { %2983 = vmatmul.mubr.f32.gmra.mrb[4].mxu1 %v288_v5  ;;  %1193 = vmatprep.mubr.f32.mxu0 %v293_v6  ;;  %v416_v5 = vld [vmem:[%s8382_s9 + $0x450] sm:$0xff] }
 0x1a7   : > { %2988 = vmatprep.mubr.f32.mxu1 %v293_v6  ;;  %v421_v6 = vld [vmem:[%s8382_s9 + $0x478] sm:$0xff] }
 0x1a9   : > { %1194 = vmatmul.mubr.f32.gmra.mrb[6].mxu0 %v292_v7 }
 0x1aa   : > { %2989 = vmatmul.mubr.f32.gmra.mrb[6].mxu1 %v292_v7  ;;  %1199 = vmatprep.mubr.f32.mxu0 %v297_v8  ;;  %v420_v7 = vld [vmem:[%s8382_s9 + $0x470] sm:$0xff] }
 0x1ab   : > { %2994 = vmatprep.mubr.f32.mxu1 %v297_v8  ;;  %v425_v8 = vld [vmem:[%s8382_s9 + $0x498] sm:$0xff] }
 0x1ad   : > { %1200 = vmatmul.mubr.f32.gmra.mrb[8].mxu0 %v296_v9 }
 0x1ae   : > { %2995 = vmatmul.mubr.f32.gmra.mrb[8].mxu1 %v296_v9  ;;  %1205 = vmatprep.mubr.f32.mxu0 %v301_v10  ;;  %v424_v9 = vld [vmem:[%s8382_s9 + $0x490] sm:$0xff] }
 0x1af   : > { %3000 = vmatprep.mubr.f32.mxu1 %v301_v10  ;;  %v429_v10 = vld [vmem:[%s8382_s9 + $0x4b8] sm:$0xff] }
 0x1b1   : > { %1206 = vmatmul.mubr.f32.gmra.mrb[10].mxu0 %v300_v11 }
 0x1b2   : > { %3001 = vmatmul.mubr.f32.gmra.mrb[10].mxu1 %v300_v11  ;;  %1211 = vmatprep.mubr.f32.mxu0 %v305_v12  ;;  %v428_v11 = vld [vmem:[%s8382_s9 + $0x4b0] sm:$0xff] }
 0x1b3   : > { %3006 = vmatprep.mubr.f32.mxu1 %v305_v12  ;;  %v433_v12 = vld [vmem:[%s8382_s9 + $0x4d8] sm:$0xff] }
 0x1b5   : > { %1212 = vmatmul.mubr.f32.gmra.mrb[12].mxu0 %v304_v13 }
 0x1b6   : > { %3007 = vmatmul.mubr.f32.gmra.mrb[12].mxu1 %v304_v13  ;;  %1217 = vmatprep.mubr.f32.mxu0 %v309_v14  ;;  %v432_v13 = vld [vmem:[%s8382_s9 + $0x4d0] sm:$0xff] }
 0x1b7   : > { %3012 = vmatprep.mubr.f32.mxu1 %v309_v14  ;;  %v437_v14 = vld [vmem:[%s8382_s9 + $0x4f8] sm:$0xff] }
 0x1b9   : > { %1218 = vmatmul.mubr.f32.gmra.mrb[14].mxu0 %v308_v15 }
 0x1ba   : > { %3013 = vmatmul.mubr.f32.gmra.mrb[14].mxu1 %v308_v15  ;;  %1223 = vmatprep.mubr.f32.mxu0 %v313_v16  ;;  %v436_v15 = vld [vmem:[%s8382_s9 + $0x4f0] sm:$0xff] }
 0x1bb   : > { %3018 = vmatprep.mubr.f32.mxu1 %v313_v16  ;;  %v441_v16 = vld [vmem:[%s8382_s9 + $0x518] sm:$0xff] }
 0x1bd   : > { %1224 = vmatmul.mubr.f32.gmra.mrb[16].mxu0 %v312_v17 }
 0x1be   : > { %3019 = vmatmul.mubr.f32.gmra.mrb[16].mxu1 %v312_v17  ;;  %1229 = vmatprep.mubr.f32.mxu0 %v317_v18  ;;  %v440_v17 = vld [vmem:[%s8382_s9 + $0x510] sm:$0xff] }
 0x1bf   : > { %3024 = vmatprep.mubr.f32.mxu1 %v317_v18  ;;  %v445_v18 = vld [vmem:[%s8382_s9 + $0x538] sm:$0xff] }
 0x1c1   : > { %1230 = vmatmul.mubr.f32.gmra.mrb[18].mxu0 %v316_v19 }
 0x1c2   : > { %3025 = vmatmul.mubr.f32.gmra.mrb[18].mxu1 %v316_v19  ;;  %1235 = vmatprep.mubr.f32.mxu0 %v321_v20  ;;  %v444_v19 = vld [vmem:[%s8382_s9 + $0x530] sm:$0xff] }
 0x1c3   : > { %3030 = vmatprep.mubr.f32.mxu1 %v321_v20  ;;  %v449_v20 = vld [vmem:[%s8382_s9 + $0x558] sm:$0xff] }
 0x1c5   : > { %1236 = vmatmul.mubr.f32.gmra.mrb[20].mxu0 %v320_v21 }
 0x1c6   : > { %3031 = vmatmul.mubr.f32.gmra.mrb[20].mxu1 %v320_v21  ;;  %1241 = vmatprep.mubr.f32.mxu0 %v325_v22  ;;  %v448_v21 = vld [vmem:[%s8382_s9 + $0x550] sm:$0xff] }
 0x1c7   : > { %3036 = vmatprep.mubr.f32.mxu1 %v325_v22  ;;  %v453_v22 = vld [vmem:[%s8382_s9 + $0x578] sm:$0xff] }
 0x1c9   : > { %1242 = vmatmul.mubr.f32.gmra.mrb[22].mxu0 %v324_v23 }
 0x1ca   : > { %3037 = vmatmul.mubr.f32.gmra.mrb[22].mxu1 %v324_v23  ;;  %1247 = vmatprep.mubr.f32.mxu0 %v329_v24  ;;  %v452_v23 = vld [vmem:[%s8382_s9 + $0x570] sm:$0xff] }
 0x1cb   : > { %3042 = vmatprep.mubr.f32.mxu1 %v329_v24  ;;  %v457_v24 = vld [vmem:[%s8382_s9 + $0x598] sm:$0xff] }
 0x1cd   : > { %1248 = vmatmul.mubr.f32.gmra.mrb[24].mxu0 %v328_v25 }
 0x1ce   : > { %3043 = vmatmul.mubr.f32.gmra.mrb[24].mxu1 %v328_v25  ;;  %1253 = vmatprep.mubr.f32.mxu0 %v333_v26  ;;  %v456_v25 = vld [vmem:[%s8382_s9 + $0x590] sm:$0xff] }
 0x1cf   : > { %3048 = vmatprep.mubr.f32.mxu1 %v333_v26  ;;  %v461_v26 = vld [vmem:[%s8382_s9 + $0x5b8] sm:$0xff] }
 0x1d1   : > { %1254 = vmatmul.mubr.f32.gmra.mrb[26].mxu0 %v332_v27 }
 0x1d2   : > { %3049 = vmatmul.mubr.f32.gmra.mrb[26].mxu1 %v332_v27  ;;  %1259 = vmatprep.mubr.f32.mxu0 %v337_v28  ;;  %v460_v27 = vld [vmem:[%s8382_s9 + $0x5b0] sm:$0xff] }
 0x1d3   : > { %3054 = vmatprep.mubr.f32.mxu1 %v337_v28  ;;  %v465_v28 = vld [vmem:[%s8382_s9 + $0x5d8] sm:$0xff] }
 0x1d5   : > { %1260 = vmatmul.mubr.f32.gmra.mrb[28].mxu0 %v336_v29 }
 0x1d6   : > { %3055 = vmatmul.mubr.f32.gmra.mrb[28].mxu1 %v336_v29  ;;  %1265 = vmatprep.mubr.f32.mxu0 %v341_v30  ;;  %v464_v29 = vld [vmem:[%s8382_s9 + $0x5d0] sm:$0xff] }
 0x1d7   : > { %3060 = vmatprep.mubr.f32.mxu1 %v341_v30  ;;  %v469_v30 = vld [vmem:[%s8382_s9 + $0x5f8] sm:$0xff] }
 0x1d9   : > { %1266 = vmatmul.mubr.f32.gmra.mrb[30].mxu0 %v340_v31 }
 0x1da   : > { %3061 = vmatmul.mubr.f32.gmra.mrb[30].mxu1 %v340_v31  ;;  %1271 = vmatprep.mubr.f32.mxu0 %v345_v32  ;;  %v468_v31 = vld [vmem:[%s8382_s9 + $0x5f0] sm:$0xff] }
 0x1db   : > { %3066 = vmatprep.mubr.f32.mxu1 %v345_v32  ;;  %v473_v32 = vld [vmem:[%s8382_s9 + $0x618] sm:$0xff] }
 0x1dd   : > { %1272 = vmatmul.mubr.f32.gmra.mrb[32].mxu0 %v344_v33 }
 0x1de   : > { %3067 = vmatmul.mubr.f32.gmra.mrb[32].mxu1 %v344_v33  ;;  %1277 = vmatprep.mubr.f32.mxu0 %v349_v34  ;;  %v472_v33 = vld [vmem:[%s8382_s9 + $0x610] sm:$0xff] }
 0x1df   : > { %3072 = vmatprep.mubr.f32.mxu1 %v349_v34  ;;  %v477_v34 = vld [vmem:[%s8382_s9 + $0x638] sm:$0xff] }
 0x1e1   : > { %1278 = vmatmul.mubr.f32.gmra.mrb[34].mxu0 %v348_v35 }
 0x1e2   : > { %3073 = vmatmul.mubr.f32.gmra.mrb[34].mxu1 %v348_v35  ;;  %1283 = vmatprep.mubr.f32.mxu0 %v353_v36  ;;  %v476_v35 = vld [vmem:[%s8382_s9 + $0x630] sm:$0xff] }
 0x1e3   : > { %3078 = vmatprep.mubr.f32.mxu1 %v353_v36  ;;  %v481_v36 = vld [vmem:[%s8382_s9 + $0x658] sm:$0xff] }
 0x1e5   : > { %1284 = vmatmul.mubr.f32.gmra.mrb[36].mxu0 %v352_v37 }
 0x1e6   : > { %3079 = vmatmul.mubr.f32.gmra.mrb[36].mxu1 %v352_v37  ;;  %1289 = vmatprep.mubr.f32.mxu0 %v357_v38  ;;  %v480_v37 = vld [vmem:[%s8382_s9 + $0x650] sm:$0xff] }
 0x1e7   : > { %3084 = vmatprep.mubr.f32.mxu1 %v357_v38  ;;  %v485_v38 = vld [vmem:[%s8382_s9 + $0x678] sm:$0xff] }
 0x1e9   : > { %1290 = vmatmul.mubr.f32.gmra.mrb[38].mxu0 %v356_v39 }
 0x1ea   : > { %3085 = vmatmul.mubr.f32.gmra.mrb[38].mxu1 %v356_v39  ;;  %1295 = vmatprep.mubr.f32.mxu0 %v361_v40  ;;  %v484_v39 = vld [vmem:[%s8382_s9 + $0x670] sm:$0xff] }
 0x1eb   : > { %3090 = vmatprep.mubr.f32.mxu1 %v361_v40  ;;  %v489_v40 = vld [vmem:[%s8382_s9 + $0x698] sm:$0xff] }
 0x1ed   : > { %1296 = vmatmul.mubr.f32.gmra.mrb[40].mxu0 %v360_v41 }
 0x1ee   : > { %3091 = vmatmul.mubr.f32.gmra.mrb[40].mxu1 %v360_v41  ;;  %1301 = vmatprep.mubr.f32.mxu0 %v365_v42  ;;  %v488_v41 = vld [vmem:[%s8382_s9 + $0x690] sm:$0xff] }
 0x1ef   : > { %3096 = vmatprep.mubr.f32.mxu1 %v365_v42  ;;  %v493_v42 = vld [vmem:[%s8382_s9 + $0x6b8] sm:$0xff] }
 0x1f1   : > { %1302 = vmatmul.mubr.f32.gmra.mrb[42].mxu0 %v364_v43 }
 0x1f2   : > { %3097 = vmatmul.mubr.f32.gmra.mrb[42].mxu1 %v364_v43  ;;  %1307 = vmatprep.mubr.f32.mxu0 %v369_v44  ;;  %v492_v43 = vld [vmem:[%s8382_s9 + $0x6b0] sm:$0xff] }
 0x1f3   : > { %3102 = vmatprep.mubr.f32.mxu1 %v369_v44  ;;  %v497_v44 = vld [vmem:[%s8382_s9 + $0x6d8] sm:$0xff] }
 0x1f5   : > { %1308 = vmatmul.mubr.f32.gmra.mrb[44].mxu0 %v368_v45 }
 0x1f6   : > { %3103 = vmatmul.mubr.f32.gmra.mrb[44].mxu1 %v368_v45  ;;  %1313 = vmatprep.mubr.f32.mxu0 %v373_v46 }
 0x1f7   : > { %3108 = vmatprep.mubr.f32.mxu1 %v373_v46 }
 0x1f9   : > { %1314 = vmatmul.mubr.f32.gmra.mrb[46].mxu0 %v372_v47 }
 0x1fa   : > { %3109 = vmatmul.mubr.f32.gmra.mrb[46].mxu1 %v372_v47  ;;  %1319 = vmatprep.mubr.f32.mxu0 %v377_v48 }
 0x1fb   : > { %3114 = vmatprep.mubr.f32.mxu1 %v377_v48 }
 0x1fd   : > { %1320 = vmatmul.mubr.f32.gmra.mrb[48].mxu0 %v376_v49 }
 0x1fe   : > { %3115 = vmatmul.mubr.f32.gmra.mrb[48].mxu1 %v376_v49  ;;  %1325 = vmatprep.mubr.f32.mxu0 %v381_v50 }
 0x1ff   : > { %3120 = vmatprep.mubr.f32.mxu1 %v381_v50 }
 0x201   : > { %1326 = vmatmul.mubr.f32.gmra.mrb[50].mxu0 %v380_v51 }
 0x202   : > { %3121 = vmatmul.mubr.f32.gmra.mrb[50].mxu1 %v380_v51  ;;  %1331 = vmatprep.mubr.f32.mxu0 %v385_v52  ;;  %v496_v51 = vld [vmem:[%s8382_s9 + $0x6d0] sm:$0xff] }
 0x203   : > { %3126 = vmatprep.mubr.f32.mxu1 %v385_v52 }
 0x205   : > { %1332 = vmatmul.mubr.f32.gmra.mrb[52].mxu0 %v384_v53 }
 0x206   : > { %3127 = vmatmul.mubr.f32.gmra.mrb[52].mxu1 %v384_v53  ;;  %1337 = vmatprep.mubr.f32.mxu0 %v389_v54 }
 0x207   : > { %3132 = vmatprep.mubr.f32.mxu1 %v389_v54  ;;  %v501_v54 = vld [vmem:[%s8382_s9 + $0x6f8] sm:$0xff] }
 0x209   : > { %1338 = vmatmul.mubr.f32.gmra.mrb[54].mxu0 %v388_v55 }
 0x20a   : > { %3133 = vmatmul.mubr.f32.gmra.mrb[54].mxu1 %v388_v55  ;;  %1343 = vmatprep.mubr.f32.mxu0 %v393_v56 }
 0x20b   : > { %3138 = vmatprep.mubr.f32.mxu1 %v393_v56 }
 0x20d   : > { %1344 = vmatmul.mubr.f32.gmra.mrb[56].mxu0 %v392_v57 }
 0x20e   : > { %3139 = vmatmul.mubr.f32.gmra.mrb[56].mxu1 %v392_v57  ;;  %1349 = vmatprep.mubr.f32.mxu0 %v397_v58 }
 0x20f   : > { %3144 = vmatprep.mubr.f32.mxu1 %v397_v58 }
 0x211   : > { %1350 = vmatmul.mubr.f32.gmra.mrb[58].mxu0 %v396_v59 }
 0x212   : > { %3145 = vmatmul.mubr.f32.gmra.mrb[58].mxu1 %v396_v59  ;;  %1355 = vmatprep.mubr.f32.mxu0 %v401_v60 }
 0x213   : > { %3150 = vmatprep.mubr.f32.mxu1 %v401_v60 }
 0x215   : > { %1356 = vmatmul.mubr.f32.gmra.mrb[60].mxu0 %v400_v61 }
 0x216   : > { %3151 = vmatmul.mubr.f32.gmra.mrb[60].mxu1 %v400_v61  ;;  %1361 = vmatprep.mubr.f32.mxu0 %v405_v62 }
 0x217   : > { %3156 = vmatprep.mubr.f32.mxu1 %v405_v62 }
 0x219   : > { %1362 = vmatmul.mubr.f32.gmra.mrb[62].mxu0 %v404_v63 }
 0x21a   : > { %3157 = vmatmul.mubr.f32.gmra.mrb[62].mxu1 %v404_v63  ;;  %1367 = vmatprep.mubr.f32.mxu0 %v409_v0 }
 0x21b   : > { %3162 = vmatprep.mubr.f32.mxu1 %v409_v0  ;;  %v500_v0 = vld [vmem:[%s8382_s9 + $0x6f0] sm:$0xff] }
 0x21d   : > { %1368 = vmatmul.mubr.f32.gmra.mrb[64].mxu0 %v408_v1 }
 0x21e   : > { %3163 = vmatmul.mubr.f32.gmra.mrb[64].mxu1 %v408_v1  ;;  %1373 = vmatprep.mubr.f32.mxu0 %v413_v2 }
 0x21f   : > { %3168 = vmatprep.mubr.f32.mxu1 %v413_v2 }
 0x221   : > { %1374 = vmatmul.mubr.f32.gmra.mrb[66].mxu0 %v412_v3 }
 0x222   : > { %3169 = vmatmul.mubr.f32.gmra.mrb[66].mxu1 %v412_v3  ;;  %1379 = vmatprep.mubr.f32.mxu0 %v417_v4 }
 0x223   : > { %3174 = vmatprep.mubr.f32.mxu1 %v417_v4 }
 0x225   : > { %1380 = vmatmul.mubr.f32.gmra.mrb[68].mxu0 %v416_v5 }
 0x226   : > { %3175 = vmatmul.mubr.f32.gmra.mrb[68].mxu1 %v416_v5  ;;  %1385 = vmatprep.mubr.f32.mxu0 %v421_v6  ;;  %v505_v5 = vld [vmem:[%s8382_s9 + $0x718] sm:$0xff] }
 0x227   : > { %3180 = vmatprep.mubr.f32.mxu1 %v421_v6 }
 0x229   : > { %1386 = vmatmul.mubr.f32.gmra.mrb[70].mxu0 %v420_v7 }
 0x22a   : > { %3181 = vmatmul.mubr.f32.gmra.mrb[70].mxu1 %v420_v7  ;;  %1391 = vmatprep.mubr.f32.mxu0 %v425_v8 }
 0x22b   : > { %3186 = vmatprep.mubr.f32.mxu1 %v425_v8 }
 0x22d   : > { %1392 = vmatmul.mubr.f32.gmra.mrb[72].mxu0 %v424_v9 }
 0x22e   : > { %3187 = vmatmul.mubr.f32.gmra.mrb[72].mxu1 %v424_v9  ;;  %1397 = vmatprep.mubr.f32.mxu0 %v429_v10 }
 0x22f   : > { %3192 = vmatprep.mubr.f32.mxu1 %v429_v10 }
 0x231   : > { %1398 = vmatmul.mubr.f32.gmra.mrb[74].mxu0 %v428_v11 }
 0x232   : > { %3193 = vmatmul.mubr.f32.gmra.mrb[74].mxu1 %v428_v11  ;;  %1403 = vmatprep.mubr.f32.mxu0 %v433_v12 }
 0x233   : > { %3198 = vmatprep.mubr.f32.mxu1 %v433_v12 }
 0x235   : > { %1404 = vmatmul.mubr.f32.gmra.mrb[76].mxu0 %v432_v13 }
 0x236   : > { %3199 = vmatmul.mubr.f32.gmra.mrb[76].mxu1 %v432_v13  ;;  %1409 = vmatprep.mubr.f32.mxu0 %v437_v14 }
 0x237   : > { %3204 = vmatprep.mubr.f32.mxu1 %v437_v14  ;;  %v504_v14 = vld [vmem:[%s8382_s9 + $0x710] sm:$0xff] }
 0x239   : > { %1410 = vmatmul.mubr.f32.gmra.mrb[78].mxu0 %v436_v15 }
 0x23a   : > { %3205 = vmatmul.mubr.f32.gmra.mrb[78].mxu1 %v436_v15  ;;  %1415 = vmatprep.mubr.f32.mxu0 %v441_v16 }
 0x23b   : > { %3210 = vmatprep.mubr.f32.mxu1 %v441_v16 }
 0x23d   : > { %1416 = vmatmul.mubr.f32.gmra.mrb[80].mxu0 %v440_v17 }
 0x23e   : > { %3211 = vmatmul.mubr.f32.gmra.mrb[80].mxu1 %v440_v17  ;;  %1421 = vmatprep.mubr.f32.mxu0 %v445_v18 }
 0x23f   : > { %3216 = vmatprep.mubr.f32.mxu1 %v445_v18  ;;  %v509_v18 = vld [vmem:[%s8382_s9 + $0x738] sm:$0xff] }
 0x241   : > { %1422 = vmatmul.mubr.f32.gmra.mrb[82].mxu0 %v444_v19 }
 0x242   : > { %3217 = vmatmul.mubr.f32.gmra.mrb[82].mxu1 %v444_v19  ;;  %1427 = vmatprep.mubr.f32.mxu0 %v449_v20 }
 0x243   : > { %3222 = vmatprep.mubr.f32.mxu1 %v449_v20 }
 0x245   : > { %1428 = vmatmul.mubr.f32.gmra.mrb[84].mxu0 %v448_v21 }
 0x246   : > { %3223 = vmatmul.mubr.f32.gmra.mrb[84].mxu1 %v448_v21  ;;  %1433 = vmatprep.mubr.f32.mxu0 %v453_v22 }
 0x247   : > { %3228 = vmatprep.mubr.f32.mxu1 %v453_v22 }
 0x249   : > { %1434 = vmatmul.mubr.f32.gmra.mrb[86].mxu0 %v452_v23 }
 0x24a   : > { %3229 = vmatmul.mubr.f32.gmra.mrb[86].mxu1 %v452_v23  ;;  %1439 = vmatprep.mubr.f32.mxu0 %v457_v24 }
 0x24b   : > { %3234 = vmatprep.mubr.f32.mxu1 %v457_v24 }
 0x24d   : > { %1440 = vmatmul.mubr.f32.gmra.mrb[88].mxu0 %v456_v25 }
 0x24e   : > { %3235 = vmatmul.mubr.f32.gmra.mrb[88].mxu1 %v456_v25  ;;  %1445 = vmatprep.mubr.f32.mxu0 %v461_v26 }
 0x24f   : > { %3240 = vmatprep.mubr.f32.mxu1 %v461_v26 }
 0x251   : > { %1446 = vmatmul.mubr.f32.gmra.mrb[90].mxu0 %v460_v27 }
 0x252   : > { %3241 = vmatmul.mubr.f32.gmra.mrb[90].mxu1 %v460_v27  ;;  %1451 = vmatprep.mubr.f32.mxu0 %v465_v28 }
 0x253   : > { %3246 = vmatprep.mubr.f32.mxu1 %v465_v28  ;;  %v508_v28 = vld [vmem:[%s8382_s9 + $0x730] sm:$0xff] }
 0x255   : > { %1452 = vmatmul.mubr.f32.gmra.mrb[92].mxu0 %v464_v29 }
 0x256   : > { %3247 = vmatmul.mubr.f32.gmra.mrb[92].mxu1 %v464_v29  ;;  %1457 = vmatprep.mubr.f32.mxu0 %v469_v30 }
 0x257   : > { %3252 = vmatprep.mubr.f32.mxu1 %v469_v30 }
 0x259   : > { %1458 = vmatmul.mubr.f32.gmra.mrb[94].mxu0 %v468_v31 }
 0x25a   : > { %3253 = vmatmul.mubr.f32.gmra.mrb[94].mxu1 %v468_v31  ;;  %1463 = vmatprep.mubr.f32.mxu0 %v473_v32 }
 0x25b   : > { %3258 = vmatprep.mubr.f32.mxu1 %v473_v32  ;;  %v513_v32 = vld [vmem:[%s8382_s9 + $0x758] sm:$0xff] }
 0x25d   : > { %1464 = vmatmul.mubr.f32.gmra.mrb[96].mxu0 %v472_v33 }
 0x25e   : > { %3259 = vmatmul.mubr.f32.gmra.mrb[96].mxu1 %v472_v33  ;;  %1469 = vmatprep.mubr.f32.mxu0 %v477_v34 }
 0x25f   : > { %3264 = vmatprep.mubr.f32.mxu1 %v477_v34 }
 0x261   : > { %1470 = vmatmul.mubr.f32.gmra.mrb[98].mxu0 %v476_v35 }
 0x262   : > { %3265 = vmatmul.mubr.f32.gmra.mrb[98].mxu1 %v476_v35  ;;  %1475 = vmatprep.mubr.f32.mxu0 %v481_v36 }
 0x263   : > { %3270 = vmatprep.mubr.f32.mxu1 %v481_v36 }
 0x265   : > { %1476 = vmatmul.mubr.f32.gmra.mrb[100].mxu0 %v480_v37 }
 0x266   : > { %3271 = vmatmul.mubr.f32.gmra.mrb[100].mxu1 %v480_v37  ;;  %1481 = vmatprep.mubr.f32.mxu0 %v485_v38 }
 0x267   : > { %3276 = vmatprep.mubr.f32.mxu1 %v485_v38 }
 0x269   : > { %1482 = vmatmul.mubr.f32.gmra.mrb[102].mxu0 %v484_v39 }
 0x26a   : > { %3277 = vmatmul.mubr.f32.gmra.mrb[102].mxu1 %v484_v39  ;;  %1487 = vmatprep.mubr.f32.mxu0 %v489_v40 }
 0x26b   : > { %3282 = vmatprep.mubr.f32.mxu1 %v489_v40 }
 0x26d   : > { %1488 = vmatmul.mubr.f32.gmra.mrb[104].mxu0 %v488_v41 }
 0x26e   : > { %3283 = vmatmul.mubr.f32.gmra.mrb[104].mxu1 %v488_v41  ;;  %1493 = vmatprep.mubr.f32.mxu0 %v493_v42 }
 0x26f   : > { %3288 = vmatprep.mubr.f32.mxu1 %v493_v42  ;;  %v512_v42 = vld [vmem:[%s8382_s9 + $0x750] sm:$0xff] }
 0x270   : > { %v1177_v45 = vpop.f32.mrb[0].mxu0 }
 0x271   : > { %2200 = vst [vmem:[%s8627_s21] sm:$0xff] %v1177_v45  ;;  %v2972_v46 = vpop.f32.mrb[0].mxu1  ;;  %v1179_v47 = vpop.f32.mrb[1].mxu0  ;;  %1494 = vmatmul.mubr.f32.gmra.mrb[106].mxu0 %v492_v43  ;;  %v1816_v48 = vmul.f32 %v1177_v45, %v1177_v45 }
 0x272   : > { %6981 = vst [vmem:[%s8627_s21 + $0x400] sm:$0xff] %v2972_v46  ;;  %2201 = vst [vmem:[%s8627_s21 + $0x8] sm:$0xff] %v1179_v47  ;;  %v2974_v49 = vpop.f32.mrb[1].mxu1  ;;  %3289 = vmatmul.mubr.f32.gmra.mrb[106].mxu1 %v492_v43  ;;  %1499 = vmatprep.mubr.f32.mxu0 %v497_v44  ;;  %v1560_v50 = vadd.f32 %v1179_v47, %v1177_v45  ;;  %v1817_v52 = vmul.f32 %v1179_v47, %v1179_v47 }
 0x273   : > { %v3611_v53 = vmul.f32 %v2972_v46, %v2972_v46  ;;  %6982 = vst [vmem:[%s8627_s21 + $0x408] sm:$0xff] %v2974_v49  ;;  %3294 = vmatprep.mubr.f32.mxu1 %v497_v44  ;;  %v3355_v55 = vadd.f32 %v2974_v49, %v2972_v46  ;;  %v3612_v56 = vmul.f32 %v2974_v49, %v2974_v49  ;;  %v517_v46 = vld [vmem:[%s8382_s9 + $0x778] sm:$0xff] }
 0x274   : > { %1561 = vadd.xlane.f32.xlu0 %v1560_v50  ;;  %v1183_v57 = vpop.f32.mrb[2].mxu0  ;;  %v1944_v58 = vadd.f32 %v1817_v52, %v1816_v48 }
 0x275   : > { %v2978_v59 = vpop.f32.mrb[2].mxu1  ;;  %2202 = vst [vmem:[%s8627_s21 + $0x10] sm:$0xff] %v1183_v57  ;;  %v1185_v60 = vpop.f32.mrb[3].mxu0  ;;  %1500 = vmatmul.mubr.f32.gmra.mrb[108].mxu0 %v496_v51  ;;  %v1818_v61 = vmul.f32 %v1183_v57, %v1183_v57  ;;  %v8636_v62 = vadd.f32 %v3612_v56, %v3611_v53  ;;  %v516_v56 = vld [vmem:[%s8382_s9 + $0x770] sm:$0xff] }
 0x276   : > { %6983 = vst [vmem:[%s8627_s21 + $0x410] sm:$0xff] %v2978_v59  ;;  %2203 = vst [vmem:[%s8627_s21 + $0x18] sm:$0xff] %v1185_v60  ;;  %v2980_v63 = vpop.f32.mrb[3].mxu1  ;;  %3295 = vmatmul.mubr.f32.gmra.mrb[108].mxu1 %v496_v51  ;;  %1505 = vmatprep.mubr.f32.mxu0 %v501_v54  ;;  %v1819_v1 = vmul.f32 %v1185_v60, %v1185_v60  ;;  %v3613_v2 = vmul.f32 %v2978_v59, %v2978_v59 }
 0x277   : > { %v8641_v3 = vadd.f32 %v1185_v60, %v1183_v57  ;;  %6984 = vst [vmem:[%s8627_s21 + $0x418] sm:$0xff] %v2980_v63  ;;  %3300 = vmatprep.mubr.f32.mxu1 %v501_v54  ;;  %v3358_v4 = vadd.f32 %v2980_v63, %v2978_v59  ;;  %v3614_v6 = vmul.f32 %v2980_v63, %v2980_v63  ;;  %v521_v60 = vld [vmem:[%s8382_s9 + $0x798] sm:$0xff] }
 0x278   : > { %3356 = vadd.xlane.f32.xlu0 %v3355_v55  ;;  %v1189_v7 = vpop.f32.mrb[4].mxu0  ;;  %v1947_v8 = vadd.f32 %v1819_v1, %v1818_v61 }
 0x279   : > { %3359 = vadd.xlane.f32.xlu1 %v3358_v4  ;;  %v2984_v9 = vpop.f32.mrb[4].mxu1  ;;  %2204 = vst [vmem:[%s8627_s21 + $0x20] sm:$0xff] %v1189_v7  ;;  %v1191_v10 = vpop.f32.mrb[5].mxu0  ;;  %1506 = vmatmul.mubr.f32.gmra.mrb[110].mxu0 %v500_v0  ;;  %v3742_v11 = vadd.f32 %v3614_v6, %v3613_v2  ;;  %v1820_v12 = vmul.f32 %v1189_v7, %v1189_v7  ;;  %v520_v6 = vld [vmem:[%s8382_s9 + $0x790] sm:$0xff] }
 0x27a   : > { %6985 = vst [vmem:[%s8627_s21 + $0x420] sm:$0xff] %v2984_v9  ;;  %2205 = vst [vmem:[%s8627_s21 + $0x28] sm:$0xff] %v1191_v10  ;;  %v2986_v13 = vpop.f32.mrb[5].mxu1  ;;  %3301 = vmatmul.mubr.f32.gmra.mrb[110].mxu1 %v500_v0  ;;  %1511 = vmatprep.mubr.f32.mxu0 %v505_v5  ;;  %v1566_v15 = vadd.f32 %v1191_v10, %v1189_v7  ;;  %v1821_v16 = vmul.f32 %v1191_v10, %v1191_v10  ;;  %v525_v10 = vld [vmem:[%s8382_s9 + $0x7b8] sm:$0xff] }
 0x27b   : > { %v3615_v17 = vmul.f32 %v2984_v9, %v2984_v9  ;;  %6986 = vst [vmem:[%s8627_s21 + $0x428] sm:$0xff] %v2986_v13  ;;  %3306 = vmatprep.mubr.f32.mxu1 %v505_v5  ;;  %v8651_v19 = vadd.f32 %v2986_v13, %v2984_v9  ;;  %v3616_v20 = vmul.f32 %v2986_v13, %v2986_v13 }
 0x27c   : > { %1945 = vadd.xlane.f32.xlu0 %v1944_v58  ;;  %v1195_v21 = vpop.f32.mrb[6].mxu0  ;;  %v8653_v22 = vadd.f32 %v1821_v16, %v1820_v12 }
 0x27d   : > { %v2990_v23 = vpop.f32.mrb[6].mxu1  ;;  %1948 = vadd.xlane.f32.xlu1 %v1947_v8  ;;  %2206 = vst [vmem:[%s8627_s21 + $0x30] sm:$0xff] %v1195_v21  ;;  %v1197_v24 = vpop.f32.mrb[7].mxu0  ;;  %1512 = vmatmul.mubr.f32.gmra.mrb[112].mxu0 %v504_v14  ;;  %v8656_v25 = vadd.f32 %v3616_v20, %v3615_v17  ;;  %v1822_v26 = vmul.f32 %v1195_v21, %v1195_v21  ;;  %v524_v20 = vld [vmem:[%s8382_s9 + $0x7b0] sm:$0xff] }
 0x27e   : > { %6987 = vst [vmem:[%s8627_s21 + $0x430] sm:$0xff] %v2990_v23  ;;  %2207 = vst [vmem:[%s8627_s21 + $0x38] sm:$0xff] %v1197_v24  ;;  %v2992_v27 = vpop.f32.mrb[7].mxu1  ;;  %3307 = vmatmul.mubr.f32.gmra.mrb[112].mxu1 %v504_v14  ;;  %1517 = vmatprep.mubr.f32.mxu0 %v509_v18  ;;  %v1569_v29 = vadd.f32 %v1197_v24, %v1195_v21  ;;  %v1823_v30 = vmul.f32 %v1197_v24, %v1197_v24  ;;  %v529_v24 = vld [vmem:[%s8382_s9 + $0x7d8] sm:$0xff] }
 0x27f   : > { %v3617_v31 = vmul.f32 %v2990_v23, %v2990_v23  ;;  %6988 = vst [vmem:[%s8627_s21 + $0x438] sm:$0xff] %v2992_v27  ;;  %3312 = vmatprep.mubr.f32.mxu1 %v509_v18  ;;  %v8663_v33 = vadd.f32 %v2992_v27, %v2990_v23  ;;  %v3618_v34 = vmul.f32 %v2992_v27, %v2992_v27 }
 0x280   : > { %3740 = vadd.xlane.f32.xlu0 %v8636_v62  ;;  %v1201_v35 = vpop.f32.mrb[8].mxu0  ;;  %v8666_v36 = vadd.f32 %v1823_v30, %v1822_v26 }
 0x281   : > { %v2996_v37 = vpop.f32.mrb[8].mxu1  ;;  %3743 = vadd.xlane.f32.xlu1 %v3742_v11  ;;  %2208 = vst [vmem:[%s8627_s21 + $0x40] sm:$0xff] %v1201_v35  ;;  %v1203_v38 = vpop.f32.mrb[9].mxu0  ;;  %1518 = vmatmul.mubr.f32.gmra.mrb[114].mxu0 %v508_v28  ;;  %v8669_v39 = vadd.f32 %v3618_v34, %v3617_v31  ;;  %v1824_v40 = vmul.f32 %v1201_v35, %v1201_v35 }
 0x282   : > { %6989 = vst [vmem:[%s8627_s21 + $0x440] sm:$0xff] %v2996_v37  ;;  %2209 = vst [vmem:[%s8627_s21 + $0x48] sm:$0xff] %v1203_v38  ;;  %v2998_v41 = vpop.f32.mrb[9].mxu1  ;;  %3313 = vmatmul.mubr.f32.gmra.mrb[114].mxu1 %v508_v28  ;;  %1523 = vmatprep.mubr.f32.mxu0 %v513_v32  ;;  %v8674_v43 = vadd.f32 %v1203_v38, %v1201_v35  ;;  %v1825_v44 = vmul.f32 %v1203_v38, %v1203_v38 }
 0x283   : > { %v3619_v45 = vmul.f32 %v2996_v37, %v2996_v37  ;;  %6990 = vst [vmem:[%s8627_s21 + $0x448] sm:$0xff] %v2998_v41  ;;  %3318 = vmatprep.mubr.f32.mxu1 %v513_v32  ;;  %v8678_v47 = vadd.f32 %v2998_v41, %v2996_v37  ;;  %v3620_v48 = vmul.f32 %v2998_v41, %v2998_v41 }
 0x284   : > { %1564 = vadd.xlane.f32.xlu0 %v8641_v3  ;;  %v1207_v49 = vpop.f32.mrb[10].mxu0  ;;  %v8681_v50 = vadd.f32 %v1825_v44, %v1824_v40 }
 0x285   : > { %v3002_v51 = vpop.f32.mrb[10].mxu1  ;;  %1567 = vadd.xlane.f32.xlu1 %v1566_v15  ;;  %2210 = vst [vmem:[%s8627_s21 + $0x50] sm:$0xff] %v1207_v49  ;;  %v1209_v52 = vpop.f32.mrb[11].mxu0  ;;  %1524 = vmatmul.mubr.f32.gmra.mrb[116].mxu0 %v512_v42  ;;  %v8684_v53 = vadd.f32 %v3620_v48, %v3619_v45  ;;  %v1826_v54 = vmul.f32 %v1207_v49, %v1207_v49 }
 0x286   : > { %6991 = vst [vmem:[%s8627_s21 + $0x450] sm:$0xff] %v3002_v51  ;;  %2211 = vst [vmem:[%s8627_s21 + $0x58] sm:$0xff] %v1209_v52  ;;  %v3004_v55 = vpop.f32.mrb[11].mxu1  ;;  %3319 = vmatmul.mubr.f32.gmra.mrb[116].mxu1 %v512_v42  ;;  %1529 = vmatprep.mubr.f32.mxu0 %v517_v46  ;;  %v8689_v57 = vadd.f32 %v1209_v52, %v1207_v49  ;;  %v1827_v58 = vmul.f32 %v1209_v52, %v1209_v52 }
 0x287   : > { %v3621_v59 = vmul.f32 %v3002_v51, %v3002_v51  ;;  %6992 = vst [vmem:[%s8627_s21 + $0x458] sm:$0xff] %v3004_v55  ;;  %3324 = vmatprep.mubr.f32.mxu1 %v517_v46  ;;  %v8693_v61 = vadd.f32 %v3004_v55, %v3002_v51  ;;  %v3622_v62 = vmul.f32 %v3004_v55, %v3004_v55 }
 0x288   : > { %3362 = vadd.xlane.f32.xlu0 %v8651_v19  ;;  %v1213_v63 = vpop.f32.mrb[12].mxu0  ;;  %v8696_v0 = vadd.f32 %v1827_v58, %v1826_v54 }
 0x289   : > { %v3008_v1 = vpop.f32.mrb[12].mxu1  ;;  %1570 = vadd.xlane.f32.xlu1 %v1569_v29  ;;  %2212 = vst [vmem:[%s8627_s21 + $0x60] sm:$0xff] %v1213_v63  ;;  %v1215_v2 = vpop.f32.mrb[13].mxu0  ;;  %1530 = vmatmul.mubr.f32.gmra.mrb[118].mxu0 %v516_v56  ;;  %v8699_v3 = vadd.f32 %v3622_v62, %v3621_v59  ;;  %v1828_v4 = vmul.f32 %v1213_v63, %v1213_v63 }
 0x28a   : > { %6993 = vst [vmem:[%s8627_s21 + $0x460] sm:$0xff] %v3008_v1  ;;  %2213 = vst [vmem:[%s8627_s21 + $0x68] sm:$0xff] %v1215_v2  ;;  %v3010_v5 = vpop.f32.mrb[13].mxu1  ;;  %3325 = vmatmul.mubr.f32.gmra.mrb[118].mxu1 %v516_v56  ;;  %1535 = vmatprep.mubr.f32.mxu0 %v521_v60  ;;  %v8704_v7 = vadd.f32 %v1215_v2, %v1213_v63  ;;  %v1829_v8 = vmul.f32 %v1215_v2, %v1215_v2 }
 0x28b   : > { %v3623_v9 = vmul.f32 %v3008_v1, %v3008_v1  ;;  %6994 = vst [vmem:[%s8627_s21 + $0x468] sm:$0xff] %v3010_v5  ;;  %3330 = vmatprep.mubr.f32.mxu1 %v521_v60  ;;  %v8708_v11 = vadd.f32 %v3010_v5, %v3008_v1  ;;  %v3624_v12 = vmul.f32 %v3010_v5, %v3010_v5 }
 0x28c   : > { %1951 = vadd.xlane.f32.xlu0 %v8653_v22  ;;  %v1219_v13 = vpop.f32.mrb[14].mxu0  ;;  %v8711_v14 = vadd.f32 %v1829_v8, %v1828_v4 }
 0x28d   : > { %v3014_v15 = vpop.f32.mrb[14].mxu1  ;;  %3365 = vadd.xlane.f32.xlu1 %v8663_v33  ;;  %2214 = vst [vmem:[%s8627_s21 + $0x70] sm:$0xff] %v1219_v13  ;;  %v1221_v16 = vpop.f32.mrb[15].mxu0  ;;  %1536 = vmatmul.mubr.f32.gmra.mrb[120].mxu0 %v520_v6  ;;  %v8715_v17 = vadd.f32 %v3624_v12, %v3623_v9  ;;  %v1830_v18 = vmul.f32 %v1219_v13, %v1219_v13 }
 0x28e   : > { %6995 = vst [vmem:[%s8627_s21 + $0x470] sm:$0xff] %v3014_v15  ;;  %2215 = vst [vmem:[%s8627_s21 + $0x78] sm:$0xff] %v1221_v16  ;;  %v3016_v19 = vpop.f32.mrb[15].mxu1  ;;  %3331 = vmatmul.mubr.f32.gmra.mrb[120].mxu1 %v520_v6  ;;  %1541 = vmatprep.mubr.f32.mxu0 %v525_v10  ;;  %v8720_v21 = vadd.f32 %v1221_v16, %v1219_v13  ;;  %v1831_v22 = vmul.f32 %v1221_v16, %v1221_v16 }
 0x28f   : > { %v3625_v23 = vmul.f32 %v3014_v15, %v3014_v15  ;;  %6996 = vst [vmem:[%s8627_s21 + $0x478] sm:$0xff] %v3016_v19  ;;  %3336 = vmatprep.mubr.f32.mxu1 %v525_v10  ;;  %v8724_v26 = vadd.f32 %v3016_v19, %v3014_v15  ;;  %v3626_v27 = vmul.f32 %v3016_v19, %v3016_v19 }
 0x290   : > { %3746 = vadd.xlane.f32.xlu0 %v8656_v25  ;;  %v1225_v28 = vpop.f32.mrb[16].mxu0  ;;  %v8727_v29 = vadd.f32 %v1831_v22, %v1830_v18  ;;  %v528_v25 = vld [vmem:[%s8382_s9 + $0x7d0] sm:$0xff] }
 0x291   : > { %v3020_v30 = vpop.f32.mrb[16].mxu1  ;;  %1954 = vadd.xlane.f32.xlu1 %v8666_v36  ;;  %2216 = vst [vmem:[%s8627_s21 + $0x80] sm:$0xff] %v1225_v28  ;;  %v1227_v31 = vpop.f32.mrb[17].mxu0  ;;  %1542 = vmatmul.mubr.f32.gmra.mrb[122].mxu0 %v524_v20  ;;  %v8731_v32 = vadd.f32 %v3626_v27, %v3625_v23  ;;  %v1832_v33 = vmul.f32 %v1225_v28, %v1225_v28  ;;  %v533_v36 = vld [vmem:[%s8382_s9 + $0x7f8] sm:$0xff] }
 0x292   : > { %6997 = vst [vmem:[%s8627_s21 + $0x480] sm:$0xff] %v3020_v30  ;;  %2217 = vst [vmem:[%s8627_s21 + $0x88] sm:$0xff] %v1227_v31  ;;  %v3022_v34 = vpop.f32.mrb[17].mxu1  ;;  %3337 = vmatmul.mubr.f32.gmra.mrb[122].mxu1 %v524_v20  ;;  %1547 = vmatprep.mubr.f32.mxu0 %v529_v24  ;;  %v8736_v35 = vadd.f32 %v1227_v31, %v1225_v28  ;;  %v1833_v37 = vmul.f32 %v1227_v31, %v1227_v31 }
 0x293   : > { %v3627_v38 = vmul.f32 %v3020_v30, %v3020_v30  ;;  %6998 = vst [vmem:[%s8627_s21 + $0x488] sm:$0xff] %v3022_v34  ;;  %3342 = vmatprep.mubr.f32.mxu1 %v529_v24  ;;  %v8740_v40 = vadd.f32 %v3022_v34, %v3020_v30  ;;  %v3628_v41 = vmul.f32 %v3022_v34, %v3022_v34 }
 0x294   : > { %1573 = vadd.xlane.f32.xlu0 %v8674_v43  ;;  %v1231_v42 = vpop.f32.mrb[18].mxu0  ;;  %v8743_v44 = vadd.f32 %v1833_v37, %v1832_v33  ;;  %v532_v43 = vld [vmem:[%s8382_s9 + $0x7f0] sm:$0xff] }
 0x295   : > { %v3026_v45 = vpop.f32.mrb[18].mxu1  ;;  %3749 = vadd.xlane.f32.xlu1 %v8669_v39  ;;  %2218 = vst [vmem:[%s8627_s21 + $0x90] sm:$0xff] %v1231_v42  ;;  %v1233_v46 = vpop.f32.mrb[19].mxu0  ;;  %1548 = vmatmul.mubr.f32.gmra.mrb[124].mxu0 %v528_v25  ;;  %v8747_v48 = vadd.f32 %v3628_v41, %v3627_v38  ;;  %v1834_v49 = vmul.f32 %v1231_v42, %v1231_v42 }
 0x296   : > { %6999 = vst [vmem:[%s8627_s21 + $0x490] sm:$0xff] %v3026_v45  ;;  %2219 = vst [vmem:[%s8627_s21 + $0x98] sm:$0xff] %v1233_v46  ;;  %v3028_v51 = vpop.f32.mrb[19].mxu1  ;;  %3343 = vmatmul.mubr.f32.gmra.mrb[124].mxu1 %v528_v25  ;;  %1553 = vmatprep.mubr.f32.mxu0 %v533_v36  ;;  %v8752_v52 = vadd.f32 %v1233_v46, %v1231_v42  ;;  %v1835_v54 = vmul.f32 %v1233_v46, %v1233_v46 }
 0x297   : > { %v3629_v55 = vmul.f32 %v3026_v45, %v3026_v45  ;;  %7000 = vst [vmem:[%s8627_s21 + $0x498] sm:$0xff] %v3028_v51  ;;  %3348 = vmatprep.mubr.f32.mxu1 %v533_v36  ;;  %v8755_v39 = vadd.f32 %v3028_v51, %v3026_v45  ;;  %v3630_v56 = vmul.f32 %v3028_v51, %v3028_v51 }
 0x298   : > { %3368 = vadd.xlane.f32.xlu0 %v8678_v47  ;;  %v1237_v58 = vpop.f32.mrb[20].mxu0  ;;  %v8758_v59 = vadd.f32 %v1835_v54, %v1834_v49 }
 0x299   : > { %v3032_v60 = vpop.f32.mrb[20].mxu1  ;;  %1576 = vadd.xlane.f32.xlu1 %v8689_v57  ;;  %2220 = vst [vmem:[%s8627_s21 + $0xa0] sm:$0xff] %v1237_v58  ;;  %v1239_v62 = vpop.f32.mrb[21].mxu0  ;;  %1554 = vmatmul.mubr.f32.gmra.mrb[126].mxu0 %v532_v43  ;;  %v8762_v63 = vadd.f32 %v3630_v56, %v3629_v55  ;;  %v1836_v1 = vmul.f32 %v1237_v58, %v1237_v58 }
 0x29a   : > { %7001 = vst [vmem:[%s8627_s21 + $0x4a0] sm:$0xff] %v3032_v60  ;;  %2221 = vst [vmem:[%s8627_s21 + $0xa8] sm:$0xff] %v1239_v62  ;;  %v3034_v2 = vpop.f32.mrb[21].mxu1  ;;  %3349 = vmatmul.mubr.f32.gmra.mrb[126].mxu1 %v532_v43  ;;  %v8766_v47 = vadd.f32 %v1239_v62, %v1237_v58  ;;  %v1837_v4 = vmul.f32 %v1239_v62, %v1239_v62  ;;  %v3631_v5 = vmul.f32 %v3032_v60, %v3032_v60 }
 0x29b   : > { %7002 = vst [vmem:[%s8627_s21 + $0x4a8] sm:$0xff] %v3034_v2  ;;  %v8769_v6 = vadd.f32 %v3034_v2, %v3032_v60  ;;  %v3632_v57 = vmul.f32 %v3034_v2, %v3034_v2 }
 0x29c   : > { %1957 = vadd.xlane.f32.xlu0 %v8681_v50  ;;  %v1243_v8 = vpop.f32.mrb[22].mxu0  ;;  %v8772_v9 = vadd.f32 %v1837_v4, %v1836_v1 }
 0x29d   : > { %v3038_v10 = vpop.f32.mrb[22].mxu1  ;;  %3371 = vadd.xlane.f32.xlu1 %v8693_v61  ;;  %2222 = vst [vmem:[%s8627_s21 + $0xb0] sm:$0xff] %v1243_v8  ;;  %v1245_v12 = vpop.f32.mrb[23].mxu0  ;;  %v8776_v13 = vadd.f32 %v3632_v57, %v3631_v5  ;;  %v1838_v15 = vmul.f32 %v1243_v8, %v1243_v8 }
 0x29e   : > { %7003 = vst [vmem:[%s8627_s21 + $0x4b0] sm:$0xff] %v3038_v10  ;;  %2223 = vst [vmem:[%s8627_s21 + $0xb8] sm:$0xff] %v1245_v12  ;;  %v3040_v16 = vpop.f32.mrb[23].mxu1  ;;  %v8780_v18 = vadd.f32 %v1245_v12, %v1243_v8  ;;  %v1839_v50 = vmul.f32 %v1245_v12, %v1245_v12  ;;  %v3633_v19 = vmul.f32 %v3038_v10, %v3038_v10 }
 0x29f   : > { %7004 = vst [vmem:[%s8627_s21 + $0x4b8] sm:$0xff] %v3040_v16  ;;  %v8783_v20 = vadd.f32 %v3040_v16, %v3038_v10  ;;  %v3634_v22 = vmul.f32 %v3040_v16, %v3040_v16 }
 0x2a0   : > { %3752 = vadd.xlane.f32.xlu0 %v8684_v53  ;;  %v1249_v61 = vpop.f32.mrb[24].mxu0  ;;  %v8786_v23 = vadd.f32 %v1839_v50, %v1838_v15 }
 0x2a1   : > { %v3044_v24 = vpop.f32.mrb[24].mxu1  ;;  %1960 = vadd.xlane.f32.xlu1 %v8696_v0  ;;  %2224 = vst [vmem:[%s8627_s21 + $0xc0] sm:$0xff] %v1249_v61  ;;  %v1251_v27 = vpop.f32.mrb[25].mxu0  ;;  %v8790_v28 = vadd.f32 %v3634_v22, %v3633_v19  ;;  %v1840_v30 = vmul.f32 %v1249_v61, %v1249_v61 }
 0x2a2   : > { %7005 = vst [vmem:[%s8627_s21 + $0x4c0] sm:$0xff] %v3044_v24  ;;  %2225 = vst [vmem:[%s8627_s21 + $0xc8] sm:$0xff] %v1251_v27  ;;  %v3046_v31 = vpop.f32.mrb[25].mxu1  ;;  %v8794_v33 = vadd.f32 %v1251_v27, %v1249_v61  ;;  %v1841_v53 = vmul.f32 %v1251_v27, %v1251_v27  ;;  %v3635_v34 = vmul.f32 %v3044_v24, %v3044_v24 }
 0x2a3   : > { %7006 = vst [vmem:[%s8627_s21 + $0x4c8] sm:$0xff] %v3046_v31  ;;  %v8797_v25 = vadd.f32 %v3046_v31, %v3044_v24  ;;  %v3636_v37 = vmul.f32 %v3046_v31, %v3046_v31 }
 0x2a4   : > { %1579 = vadd.xlane.f32.xlu0 %v8704_v7  ;;  %v1255_v0 = vpop.f32.mrb[26].mxu0  ;;  %v8800_v38 = vadd.f32 %v1841_v53, %v1840_v30 }
 0x2a5   : > { %v3050_v36 = vpop.f32.mrb[26].mxu1  ;;  %3755 = vadd.xlane.f32.xlu1 %v8699_v3  ;;  %2226 = vst [vmem:[%s8627_s21 + $0xd0] sm:$0xff] %v1255_v0  ;;  %v1257_v41 = vpop.f32.mrb[27].mxu0  ;;  %v8804_v42 = vadd.f32 %v3636_v37, %v3635_v34  ;;  %v1842_v45 = vmul.f32 %v1255_v0, %v1255_v0 }
 0x2a6   : > { %7007 = vst [vmem:[%s8627_s21 + $0x4d0] sm:$0xff] %v3050_v36  ;;  %2227 = vst [vmem:[%s8627_s21 + $0xd8] sm:$0xff] %v1257_v41  ;;  %v3052_v46 = vpop.f32.mrb[27].mxu1  ;;  %v8808_v49 = vadd.f32 %v1257_v41, %v1255_v0  ;;  %v1843_v7 = vmul.f32 %v1257_v41, %v1257_v41  ;;  %v3637_v51 = vmul.f32 %v3050_v36, %v3050_v36 }
 0x2a7   : > { %7008 = vst [vmem:[%s8627_s21 + $0x4d8] sm:$0xff] %v3052_v46  ;;  %v8811_v43 = vadd.f32 %v3052_v46, %v3050_v36  ;;  %v3638_v54 = vmul.f32 %v3052_v46, %v3052_v46 }
 0x2a8   : > { %3374 = vadd.xlane.f32.xlu0 %v8708_v11  ;;  %v1261_v3 = vpop.f32.mrb[28].mxu0  ;;  %v8814_v55 = vadd.f32 %v1843_v7, %v1842_v45 }
 0x2a9   : > { %v3056_v56 = vpop.f32.mrb[28].mxu1  ;;  %1582 = vadd.xlane.f32.xlu1 %v8720_v21  ;;  %2228 = vst [vmem:[%s8627_s21 + $0xe0] sm:$0xff] %v1261_v3  ;;  %v1263_v58 = vpop.f32.mrb[29].mxu0  ;;  %v8818_v60 = vadd.f32 %v3638_v54, %v3637_v51  ;;  %v1844_v62 = vmul.f32 %v1261_v3, %v1261_v3 }
 0x2aa   : > { %7009 = vst [vmem:[%s8627_s21 + $0x4e0] sm:$0xff] %v3056_v56  ;;  %2229 = vst [vmem:[%s8627_s21 + $0xe8] sm:$0xff] %v1263_v58  ;;  %v3058_v1 = vpop.f32.mrb[29].mxu1  ;;  %v8822_v2 = vadd.f32 %v1263_v58, %v1261_v3  ;;  %v1845_v11 = vmul.f32 %v1263_v58, %v1263_v58  ;;  %v3639_v4 = vmul.f32 %v3056_v56, %v3056_v56 }
 0x2ab   : > { %7010 = vst [vmem:[%s8627_s21 + $0x4e8] sm:$0xff] %v3058_v1  ;;  %v8825_v5 = vadd.f32 %v3058_v1, %v3056_v56  ;;  %v3640_v57 = vmul.f32 %v3058_v1, %v3058_v1 }
 0x2ac   : > { %1963 = vadd.xlane.f32.xlu0 %v8711_v14  ;;  %v1267_v21 = vpop.f32.mrb[30].mxu0  ;;  %v8828_v8 = vadd.f32 %v1845_v11, %v1844_v62 }
 0x2ad   : > { %v3062_v10 = vpop.f32.mrb[30].mxu1  ;;  %3377 = vadd.xlane.f32.xlu1 %v8724_v26  ;;  %2230 = vst [vmem:[%s8627_s21 + $0xf0] sm:$0xff] %v1267_v21  ;;  %v1269_v12 = vpop.f32.mrb[31].mxu0  ;;  %v8832_v15 = vadd.f32 %v3640_v57, %v3639_v4  ;;  %v1846_v16 = vmul.f32 %v1267_v21, %v1267_v21 }
 0x2ae   : > { %7011 = vst [vmem:[%s8627_s21 + $0x4f0] sm:$0xff] %v3062_v10  ;;  %2231 = vst [vmem:[%s8627_s21 + $0xf8] sm:$0xff] %v1269_v12  ;;  %v3064_v50 = vpop.f32.mrb[31].mxu1  ;;  %v8836_v19 = vadd.f32 %v1269_v12, %v1267_v21  ;;  %v1847_v14 = vmul.f32 %v1269_v12, %v1269_v12  ;;  %v3641_v22 = vmul.f32 %v3062_v10, %v3062_v10 }
 0x2af   : > { %7012 = vst [vmem:[%s8627_s21 + $0x4f8] sm:$0xff] %v3064_v50  ;;  %v8839_v61 = vadd.f32 %v3064_v50, %v3062_v10  ;;  %v3642_v24 = vmul.f32 %v3064_v50, %v3064_v50 }
 0x2b0   : > { %3758 = vadd.xlane.f32.xlu0 %v8715_v17  ;;  %v1273_v26 = vpop.f32.mrb[32].mxu0  ;;  %v8842_v27 = vadd.f32 %v1847_v14, %v1846_v16 }
 0x2b1   : > { %v3068_v30 = vpop.f32.mrb[32].mxu1  ;;  %1966 = vadd.xlane.f32.xlu1 %v8727_v29  ;;  %2232 = vst [vmem:[%s8627_s21 + $0x100] sm:$0xff] %v1273_v26  ;;  %v1275_v31 = vpop.f32.mrb[33].mxu0  ;;  %v8846_v53 = vadd.f32 %v3642_v24, %v3641_v22  ;;  %v1848_v34 = vmul.f32 %v1273_v26, %v1273_v26 }
 0x2b2   : > { %7013 = vst [vmem:[%s8627_s21 + $0x500] sm:$0xff] %v3068_v30  ;;  %2233 = vst [vmem:[%s8627_s21 + $0x108] sm:$0xff] %v1275_v31  ;;  %v3070_v37 = vpop.f32.mrb[33].mxu1  ;;  %v8850_v0 = vadd.f32 %v1275_v31, %v1273_v26  ;;  %v1849_v17 = vmul.f32 %v1275_v31, %v1275_v31  ;;  %v3643_v36 = vmul.f32 %v3068_v30, %v3068_v30 }
 0x2b3   : > { %7014 = vst [vmem:[%s8627_s21 + $0x508] sm:$0xff] %v3070_v37  ;;  %v8853_v41 = vadd.f32 %v3070_v37, %v3068_v30  ;;  %v3644_v45 = vmul.f32 %v3070_v37, %v3070_v37 }
 0x2b4   : > { %1585 = vadd.xlane.f32.xlu0 %v8736_v35  ;;  %v1279_v29 = vpop.f32.mrb[34].mxu0  ;;  %v8856_v46 = vadd.f32 %v1849_v17, %v1848_v34 }
 0x2b5   : > { %v3074_v7 = vpop.f32.mrb[34].mxu1  ;;  %3761 = vadd.xlane.f32.xlu1 %v8731_v32  ;;  %2234 = vst [vmem:[%s8627_s21 + $0x110] sm:$0xff] %v1279_v29  ;;  %v1281_v51 = vpop.f32.mrb[35].mxu0  ;;  %v8860_v54 = vadd.f32 %v3644_v45, %v3643_v36  ;;  %v1850_v3 = vmul.f32 %v1279_v29, %v1279_v29 }
 0x2b6   : > { %7015 = vst [vmem:[%s8627_s21 + $0x510] sm:$0xff] %v3074_v7  ;;  %2235 = vst [vmem:[%s8627_s21 + $0x118] sm:$0xff] %v1281_v51  ;;  %v3076_v56 = vpop.f32.mrb[35].mxu1  ;;  %v8864_v58 = vadd.f32 %v1281_v51, %v1279_v29  ;;  %v1851_v35 = vmul.f32 %v1281_v51, %v1281_v51  ;;  %v3645_v62 = vmul.f32 %v3074_v7, %v3074_v7 }
 0x2b7   : > { %7016 = vst [vmem:[%s8627_s21 + $0x518] sm:$0xff] %v3076_v56  ;;  %v8867_v1 = vadd.f32 %v3076_v56, %v3074_v7  ;;  %v3646_v11 = vmul.f32 %v3076_v56, %v3076_v56 }
 0x2b8   : > { %3380 = vadd.xlane.f32.xlu0 %v8740_v40  ;;  %v1285_v32 = vpop.f32.mrb[36].mxu0  ;;  %v8870_v4 = vadd.f32 %v1851_v35, %v1850_v3 }
 0x2b9   : > { %v3080_v57 = vpop.f32.mrb[36].mxu1  ;;  %1588 = vadd.xlane.f32.xlu1 %v8752_v52  ;;  %2236 = vst [vmem:[%s8627_s21 + $0x120] sm:$0xff] %v1285_v32  ;;  %v1287_v21 = vpop.f32.mrb[37].mxu0  ;;  %v8874_v10 = vadd.f32 %v3646_v11, %v3645_v62  ;;  %v1852_v12 = vmul.f32 %v1285_v32, %v1285_v32 }
 0x2ba   : > { %7017 = vst [vmem:[%s8627_s21 + $0x520] sm:$0xff] %v3080_v57  ;;  %2237 = vst [vmem:[%s8627_s21 + $0x128] sm:$0xff] %v1287_v21  ;;  %v3082_v16 = vpop.f32.mrb[37].mxu1  ;;  %v8878_v50 = vadd.f32 %v1287_v21, %v1285_v32  ;;  %v1853_v40 = vmul.f32 %v1287_v21, %v1287_v21  ;;  %v3647_v14 = vmul.f32 %v3080_v57, %v3080_v57 }
 0x2bb   : > { %7018 = vst [vmem:[%s8627_s21 + $0x528] sm:$0xff] %v3082_v16  ;;  %v8881_v22 = vadd.f32 %v3082_v16, %v3080_v57  ;;  %v3648_v24 = vmul.f32 %v3082_v16, %v3082_v16 }
 0x2bc   : > { %1969 = vadd.xlane.f32.xlu0 %v8743_v44  ;;  %v1291_v52 = vpop.f32.mrb[38].mxu0  ;;  %v8884_v26 = vadd.f32 %v1853_v40, %v1852_v12 }
 0x2bd   : > { %v3086_v30 = vpop.f32.mrb[38].mxu1  ;;  %3383 = vadd.xlane.f32.xlu1 %v8755_v39  ;;  %2238 = vst [vmem:[%s8627_s21 + $0x130] sm:$0xff] %v1291_v52  ;;  %v1293_v31 = vpop.f32.mrb[39].mxu0  ;;  %v8888_v34 = vadd.f32 %v3648_v24, %v3647_v14  ;;  %v1854_v37 = vmul.f32 %v1291_v52, %v1291_v52 }
 0x2be   : > { %7019 = vst [vmem:[%s8627_s21 + $0x530] sm:$0xff] %v3086_v30  ;;  %2239 = vst [vmem:[%s8627_s21 + $0x138] sm:$0xff] %v1293_v31  ;;  %v3088_v17 = vpop.f32.mrb[39].mxu1  ;;  %v8892_v36 = vadd.f32 %v1293_v31, %v1291_v52  ;;  %v1855_v44 = vmul.f32 %v1293_v31, %v1293_v31  ;;  %v3649_v45 = vmul.f32 %v3086_v30, %v3086_v30 }
 0x2bf   : > { %7020 = vst [vmem:[%s8627_s21 + $0x538] sm:$0xff] %v3088_v17  ;;  %v8895_v29 = vadd.f32 %v3088_v17, %v3086_v30  ;;  %v3650_v7 = vmul.f32 %v3088_v17, %v3088_v17 }
 0x2c0   : > { %3764 = vadd.xlane.f32.xlu0 %v8747_v48  ;;  %v1297_v39 = vpop.f32.mrb[40].mxu0  ;;  %v8898_v51 = vadd.f32 %v1855_v44, %v1854_v37 }
 0x2c1   : > { %v3092_v3 = vpop.f32.mrb[40].mxu1  ;;  %1972 = vadd.xlane.f32.xlu1 %v8758_v59  ;;  %2240 = vst [vmem:[%s8627_s21 + $0x140] sm:$0xff] %v1297_v39  ;;  %v1299_v56 = vpop.f32.mrb[41].mxu0  ;;  %v8902_v35 = vadd.f32 %v3650_v7, %v3649_v45  ;;  %v1856_v62 = vmul.f32 %v1297_v39, %v1297_v39 }
 0x2c2   : > { %7021 = vst [vmem:[%s8627_s21 + $0x540] sm:$0xff] %v3092_v3  ;;  %2241 = vst [vmem:[%s8627_s21 + $0x148] sm:$0xff] %v1299_v56  ;;  %v3094_v11 = vpop.f32.mrb[41].mxu1  ;;  %v8906_v32 = vadd.f32 %v1299_v56, %v1297_v39  ;;  %v1857_v48 = vmul.f32 %v1299_v56, %v1299_v56  ;;  %v3651_v57 = vmul.f32 %v3092_v3, %v3092_v3 }
 0x2c3   : > { %7022 = vst [vmem:[%s8627_s21 + $0x548] sm:$0xff] %v3094_v11  ;;  %v8909_v21 = vadd.f32 %v3094_v11, %v3092_v3  ;;  %v3652_v12 = vmul.f32 %v3094_v11, %v3094_v11 }
 0x2c4   : > { %1591 = vadd.xlane.f32.xlu0 %v8766_v47  ;;  %v1303_v59 = vpop.f32.mrb[42].mxu0  ;;  %v8912_v16 = vadd.f32 %v1857_v48, %v1856_v62 }
 0x2c5   : > { %v3098_v40 = vpop.f32.mrb[42].mxu1  ;;  %3767 = vadd.xlane.f32.xlu1 %v8762_v63  ;;  %2242 = vst [vmem:[%s8627_s21 + $0x150] sm:$0xff] %v1303_v59  ;;  %v1305_v14 = vpop.f32.mrb[43].mxu0  ;;  %v8916_v24 = vadd.f32 %v3652_v12, %v3651_v57  ;;  %v1858_v52 = vmul.f32 %v1303_v59, %v1303_v59 }
 0x2c6   : > { %7023 = vst [vmem:[%s8627_s21 + $0x550] sm:$0xff] %v3098_v40  ;;  %2243 = vst [vmem:[%s8627_s21 + $0x158] sm:$0xff] %v1305_v14  ;;  %v3100_v30 = vpop.f32.mrb[43].mxu1  ;;  %v8920_v31 = vadd.f32 %v1305_v14, %v1303_v59  ;;  %v1859_v47 = vmul.f32 %v1305_v14, %v1305_v14  ;;  %v3653_v37 = vmul.f32 %v3098_v40, %v3098_v40 }
 0x2c7   : > { %7024 = vst [vmem:[%s8627_s21 + $0x558] sm:$0xff] %v3100_v30  ;;  %v8923_v17 = vadd.f32 %v3100_v30, %v3098_v40  ;;  %v3654_v44 = vmul.f32 %v3100_v30, %v3100_v30 }
 0x2c8   : > { %3386 = vadd.xlane.f32.xlu0 %v8769_v6  ;;  %v1309_v63 = vpop.f32.mrb[44].mxu0  ;;  %v8926_v45 = vadd.f32 %v1859_v47, %v1858_v52 }
 0x2c9   : > { %v3104_v7 = vpop.f32.mrb[44].mxu1  ;;  %1594 = vadd.xlane.f32.xlu1 %v8780_v18  ;;  %2244 = vst [vmem:[%s8627_s21 + $0x160] sm:$0xff] %v1309_v63  ;;  %v1311_v39 = vpop.f32.mrb[45].mxu0  ;;  %v8930_v3 = vadd.f32 %v3654_v44, %v3653_v37  ;;  %v1860_v56 = vmul.f32 %v1309_v63, %v1309_v63 }
 0x2ca   : > { %7025 = vst [vmem:[%s8627_s21 + $0x560] sm:$0xff] %v3104_v7  ;;  %2245 = vst [vmem:[%s8627_s21 + $0x168] sm:$0xff] %v1311_v39  ;;  %v3106_v62 = vpop.f32.mrb[45].mxu1  ;;  %v8934_v11 = vadd.f32 %v1311_v39, %v1309_v63  ;;  %v1861_v6 = vmul.f32 %v1311_v39, %v1311_v39  ;;  %v3655_v48 = vmul.f32 %v3104_v7, %v3104_v7 }
 0x2cb   : > { %7026 = vst [vmem:[%s8627_s21 + $0x568] sm:$0xff] %v3106_v62  ;;  %v8937_v57 = vadd.f32 %v3106_v62, %v3104_v7  ;;  %v3656_v12 = vmul.f32 %v3106_v62, %v3106_v62 }
 0x2cc   : > { %1975 = vadd.xlane.f32.xlu0 %v8772_v9  ;;  %v1315_v18 = vpop.f32.mrb[46].mxu0  ;;  %v8940_v59 = vadd.f32 %v1861_v6, %v1860_v56 }
 0x2cd   : > { %v3110_v40 = vpop.f32.mrb[46].mxu1  ;;  %3389 = vadd.xlane.f32.xlu1 %v8783_v20  ;;  %2246 = vst [vmem:[%s8627_s21 + $0x170] sm:$0xff] %v1315_v18  ;;  %v1317_v14 = vpop.f32.mrb[47].mxu0  ;;  %v8944_v52 = vadd.f32 %v3656_v12, %v3655_v48  ;;  %v1862_v30 = vmul.f32 %v1315_v18, %v1315_v18 }
 0x2ce   : > { %7027 = vst [vmem:[%s8627_s21 + $0x570] sm:$0xff] %v3110_v40  ;;  %2247 = vst [vmem:[%s8627_s21 + $0x178] sm:$0xff] %v1317_v14  ;;  %v3112_v47 = vpop.f32.mrb[47].mxu1  ;;  %v8948_v37 = vadd.f32 %v1317_v14, %v1315_v18  ;;  %v1863_v44 = vmul.f32 %v1317_v14, %v1317_v14  ;;  %v3657_v9 = vmul.f32 %v3110_v40, %v3110_v40 }
 0x2cf   : > { %7028 = vst [vmem:[%s8627_s21 + $0x578] sm:$0xff] %v3112_v47  ;;  %v8951_v63 = vadd.f32 %v3112_v47, %v3110_v40  ;;  %v3658_v7 = vmul.f32 %v3112_v47, %v3112_v47 }
 0x2d0   : > { %3770 = vadd.xlane.f32.xlu0 %v8776_v13  ;;  %v1321_v20 = vpop.f32.mrb[48].mxu0  ;;  %v8954_v39 = vadd.f32 %v1863_v44, %v1862_v30 }
 0x2d1   : > { %v3116_v56 = vpop.f32.mrb[48].mxu1  ;;  %1978 = vadd.xlane.f32.xlu1 %v8786_v23  ;;  %v1864_v62 = vmul.f32 %v1321_v20, %v1321_v20  ;;  %2248 = vst [vmem:[%s8627_s21 + $0x180] sm:$0xff] %v1321_v20  ;;  %v1323_v6 = vpop.f32.mrb[49].mxu0  ;;  %v8958_v48 = vadd.f32 %v3658_v7, %v3657_v9 }
 0x2d2   : > { %v3659_v12 = vmul.f32 %v3116_v56, %v3116_v56  ;;  %7029 = vst [vmem:[%s8627_s21 + $0x580] sm:$0xff] %v3116_v56  ;;  %v1865_v18 = vmul.f32 %v1323_v6, %v1323_v6  ;;  %2249 = vst [vmem:[%s8627_s21 + $0x188] sm:$0xff] %v1323_v6  ;;  %v3118_v40 = vpop.f32.mrb[49].mxu1  ;;  %v8962_v13 = vadd.f32 %v1323_v6, %v1321_v20 }
 0x2d3   : > { %11428 = vst [vmem:[#allocation13_spill] sm:$0xff] %v8958_v48  ;;  %v8964_v14 = vadd.f32 %v3118_v40, %v3116_v56  ;;  %v3660_v30 = vmul.f32 %v3118_v40, %v3118_v40  ;;  %7030 = vst [vmem:[%s8627_s21 + $0x588] sm:$0xff] %v3118_v40 }
 0x2d4   : > { %1597 = vadd.xlane.f32.xlu0 %v8794_v33  ;;  %v1327_v23 = vpop.f32.mrb[50].mxu0  ;;  %v8968_v47 = vadd.f32 %v1865_v18, %v1864_v62 }
 0x2d5   : > { %v3122_v44 = vpop.f32.mrb[50].mxu1  ;;  %3773 = vadd.xlane.f32.xlu1 %v8790_v28  ;;  %v1866_v9 = vmul.f32 %v1327_v23, %v1327_v23  ;;  %2250 = vst [vmem:[%s8627_s21 + $0x190] sm:$0xff] %v1327_v23  ;;  %v1329_v7 = vpop.f32.mrb[51].mxu0  ;;  %v8972_v48 = vadd.f32 %v3660_v30, %v3659_v12 }
 0x2d6   : > { %11429 = vst [vmem:[#allocation14_spill] sm:$0xff] %v8968_v47  ;;  %v3661_v20 = vmul.f32 %v3122_v44, %v3122_v44  ;;  %7031 = vst [vmem:[%s8627_s21 + $0x590] sm:$0xff] %v3122_v44  ;;  %v1867_v56 = vmul.f32 %v1329_v7, %v1329_v7  ;;  %v3124_v6 = vpop.f32.mrb[51].mxu1  ;;  %v8976_v33 = vadd.f32 %v1329_v7, %v1327_v23 }
 0x2d7   : > { %11430 = vst [vmem:[#allocation15_spill] sm:$0xff] %v8972_v48  ;;  %2251 = vst [vmem:[%s8627_s21 + $0x198] sm:$0xff] %v1329_v7  ;;  %v8978_v40 = vadd.f32 %v3124_v6, %v3122_v44  ;;  %v3662_v62 = vmul.f32 %v3124_v6, %v3124_v6 }
 0x2d8   : > { %7032 = vst [vmem:[%s8627_s21 + $0x598] sm:$0xff] %v3124_v6  ;;  %3392 = vadd.xlane.f32.xlu0 %v8797_v25  ;;  %v1333_v28 = vpop.f32.mrb[52].mxu0  ;;  %v8982_v12 = vadd.f32 %v1867_v56, %v1866_v9 }
 0x2d9   : > { %v3128_v18 = vpop.f32.mrb[52].mxu1  ;;  %1600 = vadd.xlane.f32.xlu1 %v8808_v49  ;;  %v1868_v30 = vmul.f32 %v1333_v28, %v1333_v28  ;;  %2252 = vst [vmem:[%s8627_s21 + $0x1a0] sm:$0xff] %v1333_v28  ;;  %v1335_v48 = vpop.f32.mrb[53].mxu0  ;;  %v8986_v47 = vadd.f32 %v3662_v62, %v3661_v20 }
 0x2da   : > { %v3663_v23 = vmul.f32 %v3128_v18, %v3128_v18  ;;  %7033 = vst [vmem:[%s8627_s21 + $0x5a0] sm:$0xff] %v3128_v18  ;;  %v8989_v44 = vadd.f32 %v1335_v48, %v1333_v28  ;;  %v1869_v7 = vmul.f32 %v1335_v48, %v1335_v48  ;;  %2253 = vst [vmem:[%s8627_s21 + $0x1a8] sm:$0xff] %v1335_v48  ;;  %v3130_v25 = vpop.f32.mrb[53].mxu1 }
 0x2db   : > { %11431 = vst [vmem:[#allocation16_spill] sm:$0xff] %v8986_v47  ;;  %v8992_v6 = vadd.f32 %v3130_v25, %v3128_v18  ;;  %v3664_v9 = vmul.f32 %v3130_v25, %v3130_v25  ;;  %7034 = vst [vmem:[%s8627_s21 + $0x5a8] sm:$0xff] %v3130_v25 }
 0x2dc   : > { %1981 = vadd.xlane.f32.xlu0 %v8800_v38  ;;  %v1339_v49 = vpop.f32.mrb[54].mxu0  ;;  %v8996_v20 = vadd.f32 %v1869_v7, %v1868_v30 }
 0x2dd   : > { %11432 = vst [vmem:[#allocation17_spill] sm:$0xff] %v8992_v6  ;;  %v3134_v56 = vpop.f32.mrb[54].mxu1  ;;  %3395 = vadd.xlane.f32.xlu1 %v8811_v43  ;;  %v1870_v62 = vmul.f32 %v1339_v49, %v1339_v49  ;;  %2254 = vst [vmem:[%s8627_s21 + $0x1b0] sm:$0xff] %v1339_v49  ;;  %v1341_v28 = vpop.f32.mrb[55].mxu0  ;;  %v9000_v47 = vadd.f32 %v3664_v9, %v3663_v23 }
 0x2de   : > { %v3665_v48 = vmul.f32 %v3134_v56, %v3134_v56  ;;  %7035 = vst [vmem:[%s8627_s21 + $0x5b0] sm:$0xff] %v3134_v56  ;;  %v9003_v18 = vadd.f32 %v1341_v28, %v1339_v49  ;;  %v1871_v25 = vmul.f32 %v1341_v28, %v1341_v28  ;;  %2255 = vst [vmem:[%s8627_s21 + $0x1b8] sm:$0xff] %v1341_v28  ;;  %v3136_v38 = vpop.f32.mrb[55].mxu1 }
 0x2df   : > { %11433 = vst [vmem:[#allocation18_spill] sm:$0xff] %v9000_v47  ;;  %v9006_v6 = vadd.f32 %v3136_v38, %v3134_v56  ;;  %v3666_v30 = vmul.f32 %v3136_v38, %v3136_v38  ;;  %7036 = vst [vmem:[%s8627_s21 + $0x5b8] sm:$0xff] %v3136_v38 }
 0x2e0   : > { %3776 = vadd.xlane.f32.xlu0 %v8804_v42  ;;  %v1345_v43 = vpop.f32.mrb[56].mxu0  ;;  %v9010_v23 = vadd.f32 %v1871_v25, %v1870_v62 }
 0x2e1   : > { %11434 = vst [vmem:[#allocation19_spill] sm:$0xff] %v9006_v6  ;;  %v3140_v7 = vpop.f32.mrb[56].mxu1  ;;  %1984 = vadd.xlane.f32.xlu1 %v8814_v55  ;;  %v1872_v9 = vmul.f32 %v1345_v43, %v1345_v43  ;;  %2256 = vst [vmem:[%s8627_s21 + $0x1c0] sm:$0xff] %v1345_v43  ;;  %v1347_v49 = vpop.f32.mrb[57].mxu0  ;;  %v9014_v47 = vadd.f32 %v3666_v30, %v3665_v48 }
 0x2e2   : > { %v3667_v56 = vmul.f32 %v3140_v7, %v3140_v7  ;;  %7037 = vst [vmem:[%s8627_s21 + $0x5c0] sm:$0xff] %v3140_v7  ;;  %v9017_v28 = vadd.f32 %v1347_v49, %v1345_v43  ;;  %v1873_v38 = vmul.f32 %v1347_v49, %v1347_v49  ;;  %2257 = vst [vmem:[%s8627_s21 + $0x1c8] sm:$0xff] %v1347_v49  ;;  %v3142_v42 = vpop.f32.mrb[57].mxu1 }
 0x2e3   : > { %11435 = vst [vmem:[#allocation20_spill] sm:$0xff] %v9014_v47  ;;  %v9020_v6 = vadd.f32 %v3142_v42, %v3140_v7  ;;  %v3668_v62 = vmul.f32 %v3142_v42, %v3142_v42  ;;  %7038 = vst [vmem:[%s8627_s21 + $0x5c8] sm:$0xff] %v3142_v42 }
 0x2e4   : > { %1603 = vadd.xlane.f32.xlu0 %v8822_v2  ;;  %v1351_v55 = vpop.f32.mrb[58].mxu0  ;;  %v9024_v48 = vadd.f32 %v1873_v38, %v1872_v9 }
 0x2e5   : > { %11436 = vst [vmem:[#allocation21_spill] sm:$0xff] %v9020_v6  ;;  %v3146_v25 = vpop.f32.mrb[58].mxu1  ;;  %3779 = vadd.xlane.f32.xlu1 %v8818_v60  ;;  %v1874_v30 = vmul.f32 %v1351_v55, %v1351_v55  ;;  %2258 = vst [vmem:[%s8627_s21 + $0x1d0] sm:$0xff] %v1351_v55  ;;  %v1353_v43 = vpop.f32.mrb[59].mxu0  ;;  %v9028_v47 = vadd.f32 %v3668_v62, %v3667_v56 }
 0x2e6   : > { %v3669_v7 = vmul.f32 %v3146_v25, %v3146_v25  ;;  %7039 = vst [vmem:[%s8627_s21 + $0x5d0] sm:$0xff] %v3146_v25  ;;  %v9031_v49 = vadd.f32 %v1353_v43, %v1351_v55  ;;  %v1875_v42 = vmul.f32 %v1353_v43, %v1353_v43  ;;  %2259 = vst [vmem:[%s8627_s21 + $0x1d8] sm:$0xff] %v1353_v43  ;;  %v3148_v2 = vpop.f32.mrb[59].mxu1 }
 0x2e7   : > { %11437 = vst [vmem:[#allocation22_spill] sm:$0xff] %v9028_v47  ;;  %v9034_v6 = vadd.f32 %v3148_v2, %v3146_v25  ;;  %v3670_v9 = vmul.f32 %v3148_v2, %v3148_v2  ;;  %7040 = vst [vmem:[%s8627_s21 + $0x5d8] sm:$0xff] %v3148_v2 }
 0x2e8   : > { %3398 = vadd.xlane.f32.xlu0 %v8825_v5  ;;  %v1357_v60 = vpop.f32.mrb[60].mxu0  ;;  %v9038_v56 = vadd.f32 %v1875_v42, %v1874_v30 }
 0x2e9   : > { %11438 = vst [vmem:[#allocation23_spill] sm:$0xff] %v9034_v6  ;;  %v3152_v38 = vpop.f32.mrb[60].mxu1  ;;  %1606 = vadd.xlane.f32.xlu1 %v8836_v19  ;;  %v1876_v62 = vmul.f32 %v1357_v60, %v1357_v60  ;;  %2260 = vst [vmem:[%s8627_s21 + $0x1e0] sm:$0xff] %v1357_v60  ;;  %v1359_v55 = vpop.f32.mrb[61].mxu0  ;;  %v9042_v47 = vadd.f32 %v3670_v9, %v3669_v7 }
 0x2ea   : > { %v3671_v25 = vmul.f32 %v3152_v38, %v3152_v38  ;;  %7041 = vst [vmem:[%s8627_s21 + $0x5e0] sm:$0xff] %v3152_v38  ;;  %v9045_v43 = vadd.f32 %v1359_v55, %v1357_v60  ;;  %v1877_v2 = vmul.f32 %v1359_v55, %v1359_v55  ;;  %2261 = vst [vmem:[%s8627_s21 + $0x1e8] sm:$0xff] %v1359_v55  ;;  %v3154_v5 = vpop.f32.mrb[61].mxu1 }
 0x2eb   : > { %11439 = vst [vmem:[#allocation24_spill] sm:$0xff] %v9042_v47  ;;  %v9048_v6 = vadd.f32 %v3154_v5, %v3152_v38  ;;  %v3672_v30 = vmul.f32 %v3154_v5, %v3154_v5  ;;  %7042 = vst [vmem:[%s8627_s21 + $0x5e8] sm:$0xff] %v3154_v5 }
 0x2ec   : > { %1987 = vadd.xlane.f32.xlu0 %v8828_v8  ;;  %v1363_v19 = vpop.f32.mrb[62].mxu0  ;;  %v9052_v7 = vadd.f32 %v1877_v2, %v1876_v62 }
 0x2ed   : > { %11440 = vst [vmem:[#allocation25_spill] sm:$0xff] %v9048_v6  ;;  %v3158_v42 = vpop.f32.mrb[62].mxu1  ;;  %3401 = vadd.xlane.f32.xlu1 %v8839_v61  ;;  %v1878_v9 = vmul.f32 %v1363_v19, %v1363_v19  ;;  %2262 = vst [vmem:[%s8627_s21 + $0x1f0] sm:$0xff] %v1363_v19  ;;  %v1365_v60 = vpop.f32.mrb[63].mxu0  ;;  %v9056_v47 = vadd.f32 %v3672_v30, %v3671_v25 }
 0x2ee   : > { %v3673_v38 = vmul.f32 %v3158_v42, %v3158_v42  ;;  %7043 = vst [vmem:[%s8627_s21 + $0x5f0] sm:$0xff] %v3158_v42  ;;  %v9059_v55 = vadd.f32 %v1365_v60, %v1363_v19  ;;  %v1879_v5 = vmul.f32 %v1365_v60, %v1365_v60  ;;  %2263 = vst [vmem:[%s8627_s21 + $0x1f8] sm:$0xff] %v1365_v60  ;;  %v3160_v8 = vpop.f32.mrb[63].mxu1 }
 0x2ef   : > { %11441 = vst [vmem:[#allocation26_spill] sm:$0xff] %v9056_v47  ;;  %v9062_v6 = vadd.f32 %v3160_v8, %v3158_v42  ;;  %v3674_v62 = vmul.f32 %v3160_v8, %v3160_v8  ;;  %7044 = vst [vmem:[%s8627_s21 + $0x5f8] sm:$0xff] %v3160_v8 }
 0x2f0   : > { %3782 = vadd.xlane.f32.xlu0 %v8832_v15  ;;  %v1369_v61 = vpop.f32.mrb[64].mxu0  ;;  %v9066_v25 = vadd.f32 %v1879_v5, %v1878_v9 }
 0x2f1   : > { %11442 = vst [vmem:[#allocation27_spill] sm:$0xff] %v9062_v6  ;;  %v3164_v2 = vpop.f32.mrb[64].mxu1  ;;  %1990 = vadd.xlane.f32.xlu1 %v8842_v27  ;;  %v1880_v30 = vmul.f32 %v1369_v61, %v1369_v61  ;;  %2264 = vst [vmem:[%s8627_s21 + $0x200] sm:$0xff] %v1369_v61  ;;  %v1371_v19 = vpop.f32.mrb[65].mxu0  ;;  %v9070_v47 = vadd.f32 %v3674_v62, %v3673_v38 }
 0x2f2   : > { %v3675_v42 = vmul.f32 %v3164_v2, %v3164_v2  ;;  %7045 = vst [vmem:[%s8627_s21 + $0x600] sm:$0xff] %v3164_v2  ;;  %v9073_v60 = vadd.f32 %v1371_v19, %v1369_v61  ;;  %v1881_v8 = vmul.f32 %v1371_v19, %v1371_v19  ;;  %2265 = vst [vmem:[%s8627_s21 + $0x208] sm:$0xff] %v1371_v19  ;;  %v3166_v15 = vpop.f32.mrb[65].mxu1 }
 0x2f3   : > { %11443 = vst [vmem:[#allocation28_spill] sm:$0xff] %v9070_v47  ;;  %v9076_v6 = vadd.f32 %v3166_v15, %v3164_v2  ;;  %v3676_v9 = vmul.f32 %v3166_v15, %v3166_v15  ;;  %7046 = vst [vmem:[%s8627_s21 + $0x608] sm:$0xff] %v3166_v15 }
 0x2f4   : > { %1609 = vadd.xlane.f32.xlu0 %v8850_v0  ;;  %v1375_v27 = vpop.f32.mrb[66].mxu0  ;;  %v9080_v38 = vadd.f32 %v1881_v8, %v1880_v30 }
 0x2f5   : > { %11444 = vst [vmem:[#allocation29_spill] sm:$0xff] %v9076_v6  ;;  %v3170_v5 = vpop.f32.mrb[66].mxu1  ;;  %3785 = vadd.xlane.f32.xlu1 %v8846_v53  ;;  %v1882_v62 = vmul.f32 %v1375_v27, %v1375_v27  ;;  %2266 = vst [vmem:[%s8627_s21 + $0x210] sm:$0xff] %v1375_v27  ;;  %v1377_v61 = vpop.f32.mrb[67].mxu0  ;;  %v9084_v47 = vadd.f32 %v3676_v9, %v3675_v42 }
 0x2f6   : > { %v3677_v2 = vmul.f32 %v3170_v5, %v3170_v5  ;;  %7047 = vst [vmem:[%s8627_s21 + $0x610] sm:$0xff] %v3170_v5  ;;  %v9087_v19 = vadd.f32 %v1377_v61, %v1375_v27  ;;  %v1883_v15 = vmul.f32 %v1377_v61, %v1377_v61  ;;  %2267 = vst [vmem:[%s8627_s21 + $0x218] sm:$0xff] %v1377_v61  ;;  %v3172_v0 = vpop.f32.mrb[67].mxu1 }
 0x2f7   : > { %11445 = vst [vmem:[#allocation30_spill] sm:$0xff] %v9084_v47  ;;  %v9090_v6 = vadd.f32 %v3172_v0, %v3170_v5  ;;  %v3678_v30 = vmul.f32 %v3172_v0, %v3172_v0  ;;  %7048 = vst [vmem:[%s8627_s21 + $0x618] sm:$0xff] %v3172_v0 }
 0x2f8   : > { %3404 = vadd.xlane.f32.xlu0 %v8853_v41  ;;  %v1381_v53 = vpop.f32.mrb[68].mxu0  ;;  %v9094_v42 = vadd.f32 %v1883_v15, %v1882_v62 }
 0x2f9   : > { %11446 = vst [vmem:[#allocation31_spill] sm:$0xff] %v9090_v6  ;;  %v3176_v8 = vpop.f32.mrb[68].mxu1  ;;  %1612 = vadd.xlane.f32.xlu1 %v8864_v58  ;;  %v1884_v9 = vmul.f32 %v1381_v53, %v1381_v53  ;;  %2268 = vst [vmem:[%s8627_s21 + $0x220] sm:$0xff] %v1381_v53  ;;  %v1383_v27 = vpop.f32.mrb[69].mxu0  ;;  %v9098_v47 = vadd.f32 %v3678_v30, %v3677_v2 }
 0x2fa   : > { %v3679_v5 = vmul.f32 %v3176_v8, %v3176_v8  ;;  %7049 = vst [vmem:[%s8627_s21 + $0x620] sm:$0xff] %v3176_v8  ;;  %v9101_v61 = vadd.f32 %v1383_v27, %v1381_v53  ;;  %v1885_v0 = vmul.f32 %v1383_v27, %v1383_v27  ;;  %2269 = vst [vmem:[%s8627_s21 + $0x228] sm:$0xff] %v1383_v27  ;;  %v3178_v41 = vpop.f32.mrb[69].mxu1 }
 0x2fb   : > { %11447 = vst [vmem:[#allocation32_spill] sm:$0xff] %v9098_v47  ;;  %v9104_v6 = vadd.f32 %v3178_v41, %v3176_v8  ;;  %v3680_v62 = vmul.f32 %v3178_v41, %v3178_v41  ;;  %7050 = vst [vmem:[%s8627_s21 + $0x628] sm:$0xff] %v3178_v41 }
 0x2fc   : > { %1993 = vadd.xlane.f32.xlu0 %v8856_v46  ;;  %v1387_v58 = vpop.f32.mrb[70].mxu0  ;;  %v9108_v2 = vadd.f32 %v1885_v0, %v1884_v9 }
 0x2fd   : > { %11448 = vst [vmem:[#allocation33_spill] sm:$0xff] %v9104_v6  ;;  %v3182_v15 = vpop.f32.mrb[70].mxu1  ;;  %3407 = vadd.xlane.f32.xlu1 %v8867_v1  ;;  %v1886_v30 = vmul.f32 %v1387_v58, %v1387_v58  ;;  %2270 = vst [vmem:[%s8627_s21 + $0x230] sm:$0xff] %v1387_v58  ;;  %v1389_v53 = vpop.f32.mrb[71].mxu0  ;;  %v9112_v47 = vadd.f32 %v3680_v62, %v3679_v5 }
 0x2fe   : > { %11449 = vst [vmem:[#allocation34_spill] sm:$0xff] %v9108_v2  ;;  %v3681_v8 = vmul.f32 %v3182_v15, %v3182_v15  ;;  %7051 = vst [vmem:[%s8627_s21 + $0x630] sm:$0xff] %v3182_v15  ;;  %v9115_v27 = vadd.f32 %v1389_v53, %v1387_v58  ;;  %v1887_v41 = vmul.f32 %v1389_v53, %v1389_v53  ;;  %v3184_v46 = vpop.f32.mrb[71].mxu1 }
 0x2ff   : > { %11450 = vst [vmem:[#allocation35_spill] sm:$0xff] %v9112_v47  ;;  %2271 = vst [vmem:[%s8627_s21 + $0x238] sm:$0xff] %v1389_v53  ;;  %v9118_v6 = vadd.f32 %v3184_v46, %v3182_v15  ;;  %v3682_v9 = vmul.f32 %v3184_v46, %v3184_v46 }
 0x300   : > { %7052 = vst [vmem:[%s8627_s21 + $0x638] sm:$0xff] %v3184_v46  ;;  %3788 = vadd.xlane.f32.xlu0 %v8860_v54  ;;  %v1393_v1 = vpop.f32.mrb[72].mxu0  ;;  %v9122_v0 = vadd.f32 %v1887_v41, %v1886_v30 }
 0x301   : > { %11451 = vst [vmem:[#allocation36_spill] sm:$0xff] %v9118_v6  ;;  %v3188_v5 = vpop.f32.mrb[72].mxu1  ;;  %1996 = vadd.xlane.f32.xlu1 %v8870_v4  ;;  %v1888_v62 = vmul.f32 %v1393_v1, %v1393_v1  ;;  %2272 = vst [vmem:[%s8627_s21 + $0x240] sm:$0xff] %v1393_v1  ;;  %v1562_v58 = vpop.xlane.xlu0 %1561  ;;  %v9126_v53 = vadd.f32 %v3682_v9, %v3681_v8 }
 0x302   : > { %11452 = vst [vmem:[#allocation37_spill] sm:$0xff] %v9122_v0  ;;  %v3683_v15 = vmul.f32 %v3188_v5, %v3188_v5  ;;  %7053 = vst [vmem:[%s8627_s21 + $0x640] sm:$0xff] %v3188_v5  ;;  %v3190_v47 = vpop.f32.mrb[73].mxu1  ;;  %v1395_v46 = vpop.f32.mrb[73].mxu0 }
 0x303   : > { %11453 = vst [vmem:[#allocation38_spill] sm:$0xff] %v9126_v53  ;;  %v9129_v6 = vadd.f32 %v3190_v47, %v3188_v5  ;;  %v3684_v54 = vmul.f32 %v3190_v47, %v3190_v47  ;;  %7054 = vst [vmem:[%s8627_s21 + $0x648] sm:$0xff] %v3190_v47  ;;  %v9132_v30 = vadd.f32 %v1395_v46, %v1393_v1 }
 0x304   : > { %v1889_v41 = vmul.f32 %v1395_v46, %v1395_v46  ;;  %2273 = vst [vmem:[%s8627_s21 + $0x248] sm:$0xff] %v1395_v46  ;;  %1615 = vadd.xlane.f32.xlu0 %v8878_v50  ;;  %v1399_v4 = vpop.f32.mrb[74].mxu0 }
 0x305   : > { %11454 = vst [vmem:[#allocation39_spill] sm:$0xff] %v9129_v6  ;;  %11455 = vst [vmem:[#allocation40_spill] sm:$0xff] %v9132_v30  ;;  %v3194_v0 = vpop.f32.mrb[74].mxu1  ;;  %3791 = vadd.xlane.f32.xlu1 %v8874_v10  ;;  %v3357_v8 = vpop.xlane.xlu0 %3356  ;;  %v9140_v5 = vadd.f32 %v3684_v54, %v3683_v15  ;;  %v1890_v47 = vmul.f32 %v1399_v4, %v1399_v4 }
 0x306   : > { %2274 = vst [vmem:[%s8627_s21 + $0x250] sm:$0xff] %v1399_v4  ;;  %v9138_v9 = vadd.f32 %v1889_v41, %v1888_v62  ;;  %v3685_v6 = vmul.f32 %v3194_v0, %v3194_v0  ;;  %7055 = vst [vmem:[%s8627_s21 + $0x650] sm:$0xff] %v3194_v0  ;;  %v9143_v1 = vpop.xlane.xlu1 %3359  ;;  %v3196_v46 = vpop.f32.mrb[75].mxu1  ;;  %v3547_v50 = vadd.f32 %v3357_v8, %v1562_v58 }
 0x307   : > { %11457 = vst [vmem:[#allocation42_spill] sm:$0xff] %v9140_v5  ;;  %v9145_v53 = vadd.f32 %v3196_v46, %v3194_v0  ;;  %v3686_v30 = vmul.f32 %v3196_v46, %v3196_v46  ;;  %7056 = vst [vmem:[%s8627_s21 + $0x658] sm:$0xff] %v3196_v46  ;;  %v1401_v10 = vpop.f32.mrb[75].mxu0 }
 0x308   : > { %11456 = vst [vmem:[#allocation41_spill] sm:$0xff] %v9138_v9  ;;  %v9148_v2 = vadd.f32 %v1401_v10, %v1399_v4  ;;  %v1891_v62 = vmul.f32 %v1401_v10, %v1401_v10  ;;  %2275 = vst [vmem:[%s8627_s21 + $0x258] sm:$0xff] %v1401_v10  ;;  %3410 = vadd.xlane.f32.xlu0 %v8881_v22  ;;  %v1405_v15 = vpop.f32.mrb[76].mxu0 }
 0x309   : > { %11458 = vst [vmem:[#allocation43_spill] sm:$0xff] %v9145_v53  ;;  %v3200_v54 = vpop.f32.mrb[76].mxu1  ;;  %1618 = vadd.xlane.f32.xlu1 %v8892_v36  ;;  %2276 = vst [vmem:[%s8627_s21 + $0x260] sm:$0xff] %v1405_v15  ;;  %v1946_v58 = vpop.xlane.xlu0 %1945  ;;  %v9154_v41 = vadd.f32 %v3686_v30, %v3685_v6  ;;  %v1892_v8 = vmul.f32 %v1405_v15, %v1405_v15  ;;  %v9162_v36 = vmul.f32 0.001953125, %v3547_v50 }
 0x30a   : > { %v3687_v0 = vmul.f32 %v3200_v54, %v3200_v54  ;;  %7057 = vst [vmem:[%s8627_s21 + $0x660] sm:$0xff] %v3200_v54  ;;  %v3202_v4 = vpop.f32.mrb[77].mxu1  ;;  %v1949_v46 = vpop.xlane.xlu1 %1948  ;;  %v9157_v5 = vadd.f32 %v1891_v62, %v1890_v47 }
 0x30b   : > { %11459 = vst [vmem:[#allocation44_spill] sm:$0xff] %v9154_v41  ;;  %v9159_v10 = vadd.f32 %v3202_v4, %v3200_v54  ;;  %v3688_v22 = vmul.f32 %v3202_v4, %v3202_v4  ;;  %7058 = vst [vmem:[%s8627_s21 + $0x668] sm:$0xff] %v3202_v4  ;;  %v1407_v53 = vpop.f32.mrb[77].mxu0 }
 0x30c   : > { %11460 = vst [vmem:[#allocation45_spill] sm:$0xff] %v9157_v5  ;;  %v9164_v9 = vadd.f32 %v1407_v53, %v1405_v15  ;;  %v1893_v6 = vmul.f32 %v1407_v53, %v1407_v53  ;;  %2277 = vst [vmem:[%s8627_s21 + $0x268] sm:$0xff] %v1407_v53  ;;  %1999 = vadd.xlane.f32.xlu0 %v8884_v26  ;;  %v1411_v30 = vpop.f32.mrb[78].mxu0 }
 0x30d   : > { %11461 = vst [vmem:[#allocation46_spill] sm:$0xff] %v9159_v10  ;;  %v3206_v41 = vpop.f32.mrb[78].mxu1  ;;  %3413 = vadd.xlane.f32.xlu1 %v8895_v29  ;;  %2278 = vst [vmem:[%s8627_s21 + $0x270] sm:$0xff] %v1411_v30  ;;  %v3741_v47 = vpop.xlane.xlu0 %3740  ;;  %v9170_v62 = vadd.f32 %v3688_v22, %v3687_v0  ;;  %v1894_v50 = vmul.f32 %v1411_v30, %v1411_v30  ;;  %v4252_v0 = vmul.f32 %v9162_v36, %v9162_v36 }
 0x30e   : > { %11462 = vst [vmem:[#allocation47_spill] sm:$0xff] %v9164_v9  ;;  %v3689_v54 = vmul.f32 %v3206_v41, %v3206_v41  ;;  %7059 = vst [vmem:[%s8627_s21 + $0x670] sm:$0xff] %v3206_v41  ;;  %v3208_v15 = vpop.f32.mrb[79].mxu1  ;;  %v3931_v4 = vadd.f32 %v3741_v47, %v1946_v58  ;;  %v3744_v10 = vpop.xlane.xlu1 %3743  ;;  %v9173_v53 = vadd.f32 %v1893_v6, %v1892_v8 }
 0x30f   : > { %11463 = vst [vmem:[#allocation48_spill] sm:$0xff] %v9170_v62  ;;  %v9175_v26 = vadd.f32 %v3208_v15, %v3206_v41  ;;  %v3690_v9 = vmul.f32 %v3208_v15, %v3208_v15  ;;  %7060 = vst [vmem:[%s8627_s21 + $0x678] sm:$0xff] %v3208_v15  ;;  %v3932_v29 = vadd.f32 %v3744_v10, %v1949_v46  ;;  %v1413_v5 = vpop.f32.mrb[79].mxu0 }
 0x310   : > { %v4188_v22 = vmul.f32 0.001953125, %v3931_v4  ;;  %v9181_v62 = vadd.f32 %v1413_v5, %v1411_v30  ;;  %v1895_v58 = vmul.f32 %v1413_v5, %v1413_v5  ;;  %2279 = vst [vmem:[%s8627_s21 + $0x278] sm:$0xff] %v1413_v5  ;;  %3794 = vadd.xlane.f32.xlu0 %v8888_v34  ;;  %v1417_v8 = vpop.f32.mrb[80].mxu0 }
 0x311   : > { %11464 = vst [vmem:[#allocation49_spill] sm:$0xff] %v9175_v26  ;;  %v3212_v41 = vpop.f32.mrb[80].mxu1  ;;  %2002 = vadd.xlane.f32.xlu1 %v8898_v51  ;;  %2280 = vst [vmem:[%s8627_s21 + $0x280] sm:$0xff] %v1417_v8  ;;  %v1565_v46 = vpop.xlane.xlu0 %1564  ;;  %v9187_v10 = vadd.f32 %v3690_v9, %v3689_v54  ;;  %v1896_v51 = vmul.f32 %v1417_v8, %v1417_v8 }
 0x312   : > { %v4316_v6 = vsub.f32 %v4188_v22, %v4252_v0  ;;  %v3691_v47 = vmul.f32 %v3212_v41, %v3212_v41  ;;  %7061 = vst [vmem:[%s8627_s21 + $0x680] sm:$0xff] %v3212_v41  ;;  %v3214_v15 = vpop.f32.mrb[81].mxu1  ;;  %v3548_v34 = vadd.f32 %v9143_v1, %v1565_v46  ;;  %v1568_v5 = vpop.xlane.xlu1 %1567  ;;  %v9197_v30 = vadd.f32 %v1895_v58, %v1894_v50 }
 0x313   : > { %11465 = vst [vmem:[#allocation50_spill] sm:$0xff] %v9187_v10  ;;  %v9199_v4 = vadd.f32 %v3214_v15, %v3212_v41  ;;  %v3692_v9 = vmul.f32 %v3214_v15, %v3214_v15  ;;  %7062 = vst [vmem:[%s8627_s21 + $0x688] sm:$0xff] %v3214_v15  ;;  %v1419_v54 = vpop.f32.mrb[81].mxu0  ;;  %v4189_v50 = vmul.f32 0.001953125, %v3932_v29 }
 0x314   : > { %v4380_v0 = vmax.f32 %v4316_v6, 0.0  ;;  %v9202_v22 = vmul.f32 0.001953125, %v3548_v34  ;;  %v9204_v10 = vadd.f32 %v1419_v54, %v1417_v8  ;;  %v1897_v26 = vmul.f32 %v1419_v54, %v1419_v54  ;;  %2281 = vst [vmem:[%s8627_s21 + $0x288] sm:$0xff] %v1419_v54  ;;  %1621 = vadd.xlane.f32.xlu0 %v8906_v32  ;;  %v1423_v1 = vpop.f32.mrb[82].mxu0 }
 0x315   : > { %11467 = vst [vmem:[#allocation51_spill] sm:$0xff] %v9199_v4  ;;  %v3218_v58 = vpop.f32.mrb[82].mxu1  ;;  %3797 = vadd.xlane.f32.xlu1 %v8902_v35  ;;  %2282 = vst [vmem:[%s8627_s21 + $0x290] sm:$0xff] %v1423_v1  ;;  %v3363_v41 = vpop.xlane.xlu0 %3362  ;;  %v9210_v46 = vadd.f32 %v3692_v9, %v3691_v47  ;;  %v1898_v35 = vmul.f32 %v1423_v1, %v1423_v1 }
 0x316   : > { %11468 = vst [vmem:[#allocation52_spill] sm:$0xff] %v9204_v10  ;;  %v4444_v6 = vadd.f32 1e-05, %v4380_v0  ;;  %v4253_v8 = vmul.f32 %v9202_v22, %v9202_v22  ;;  %v3693_v32 = vmul.f32 %v3218_v58, %v3218_v58  ;;  %7063 = vst [vmem:[%s8627_s21 + $0x690] sm:$0xff] %v3218_v58  ;;  %v3220_v29 = vpop.f32.mrb[83].mxu1  ;;  %v3549_v15 = vadd.f32 %v3363_v41, %v1568_v5  ;;  %v1571_v34 = vpop.xlane.xlu1 %1570 }
 0x317   : > { %11469 = vst [vmem:[#allocation53_spill] sm:$0xff] %v9210_v46  ;;  %v9221_v54 = vadd.f32 %v3220_v29, %v3218_v58  ;;  %v3694_v47 = vmul.f32 %v3220_v29, %v3220_v29  ;;  %7064 = vst [vmem:[%s8627_s21 + $0x698] sm:$0xff] %v3220_v29  ;;  %v1425_v9 = vpop.f32.mrb[83].mxu0  ;;  %v9224_v0 = vadd.f32 %v1897_v26, %v1896_v51 }
 0x318   : > { %7964 = vrsqrt.f32 %v4444_v6  ;;  %v4317_v46 = vsub.f32 %v4189_v50, %v4253_v8  ;;  %v9226_v4 = vadd.f32 %v1425_v9, %v1423_v1  ;;  %2283 = vst [vmem:[%s8627_s21 + $0x298] sm:$0xff] %v1425_v9  ;;  %3416 = vadd.xlane.f32.xlu0 %v8909_v21  ;;  %v1429_v5 = vpop.f32.mrb[84].mxu0  ;;  %v1899_v41 = vmul.f32 %v1425_v9, %v1425_v9 }
 0x319   : > { %11470 = vst [vmem:[#allocation54_spill] sm:$0xff] %v9221_v54  ;;  %11471 = vst [vmem:[#allocation55_spill] sm:$0xff] %v9224_v0  ;;  %v3224_v10 = vpop.f32.mrb[84].mxu1  ;;  %1624 = vadd.xlane.f32.xlu1 %v8920_v31  ;;  %v1952_v58 = vpop.xlane.xlu0 %1951  ;;  %v9232_v29 = vadd.f32 %v3694_v47, %v3693_v32  ;;  %v9235_v51 = vmul.f32 0.001953125, %v3549_v15  ;;  %v1900_v50 = vmul.f32 %v1429_v5, %v1429_v5 }
 0x31a   : > { %2284 = vst [vmem:[%s8627_s21 + $0x2a0] sm:$0xff] %v1429_v5  ;;  %v4381_v26 = vmax.f32 %v4317_v46, 0.0  ;;  %v3695_v1 = vmul.f32 %v3224_v10, %v3224_v10  ;;  %7065 = vst [vmem:[%s8627_s21 + $0x6a0] sm:$0xff] %v3224_v10  ;;  %v3226_v21 = vpop.f32.mrb[85].mxu1  ;;  %v3366_v6 = vpop.xlane.xlu1 %3365  ;;  %v9241_v32 = vadd.f32 %v1899_v41, %v1898_v35 }
 0x31b   : > { %11472 = vst [vmem:[#allocation56_spill] sm:$0xff] %v9232_v29  ;;  %v9238_v8 = vadd.f32 %v3226_v21, %v3224_v10  ;;  %v3696_v9 = vmul.f32 %v3226_v21, %v3226_v21  ;;  %7066 = vst [vmem:[%s8627_s21 + $0x6a8] sm:$0xff] %v3226_v21  ;;  %v3550_v31 = vadd.f32 %v3366_v6, %v1571_v34  ;;  %v1431_v54 = vpop.f32.mrb[85].mxu0 }
 0x31c   : > { %11474 = vst [vmem:[#allocation58_spill] sm:$0xff] %v9241_v32  ;;  %v4445_v46 = vadd.f32 1e-05, %v4381_v26  ;;  %v9243_v47 = vadd.f32 %v1431_v54, %v1429_v5  ;;  %v1901_v15 = vmul.f32 %v1431_v54, %v1431_v54  ;;  %2285 = vst [vmem:[%s8627_s21 + $0x2a8] sm:$0xff] %v1431_v54  ;;  %2005 = vadd.xlane.f32.xlu0 %v8912_v16  ;;  %v1435_v29 = vpop.f32.mrb[86].mxu0 }
 0x31d   : > { %11473 = vst [vmem:[#allocation57_spill] sm:$0xff] %v9238_v8  ;;  %v3230_v10 = vpop.f32.mrb[86].mxu1  ;;  %3419 = vadd.xlane.f32.xlu1 %v8923_v17  ;;  %v1902_v34 = vmul.f32 %v1435_v29, %v1435_v29  ;;  %2286 = vst [vmem:[%s8627_s21 + $0x2b0] sm:$0xff] %v1435_v29  ;;  %v3747_v35 = vpop.xlane.xlu0 %3746  ;;  %v9256_v5 = vadd.f32 %v3696_v9, %v3695_v1  ;;  %v4254_v6 = vmul.f32 %v9235_v51, %v9235_v51 }
 0x31e   : > { %11475 = vst [vmem:[#allocation59_spill] sm:$0xff] %v9243_v47  ;;  %7966 = vrsqrt.f32 %v4445_v46  ;;  %v3697_v54 = vmul.f32 %v3230_v10, %v3230_v10  ;;  %7067 = vst [vmem:[%s8627_s21 + $0x6b0] sm:$0xff] %v3230_v10  ;;  %v3232_v16 = vpop.f32.mrb[87].mxu1  ;;  %v3933_v41 = vadd.f32 %v3747_v35, %v1952_v58  ;;  %v1955_v26 = vpop.xlane.xlu1 %1954  ;;  %v9259_v21 = vadd.f32 %v1901_v15, %v1900_v50  ;;  %v4572_v50 = vld [vmem:[%s9252_s6] sm:$0xff] }
 0x31f   : > { %11476 = vst [vmem:[#allocation60_spill] sm:$0xff] %v9256_v5  ;;  %v9263_v17 = vadd.f32 %v3232_v16, %v3230_v10  ;;  %v3698_v8 = vmul.f32 %v3232_v16, %v3232_v16  ;;  %7068 = vst [vmem:[%s8627_s21 + $0x6b8] sm:$0xff] %v3232_v16  ;;  %v1437_v1 = vpop.f32.mrb[87].mxu0  ;;  %v9266_v9 = vmul.f32 0.001953125, %v3550_v31 }
 0x320   : > { %11477 = vst [vmem:[#allocation61_spill] sm:$0xff] %v9259_v21  ;;  %v4190_v46 = vmul.f32 0.001953125, %v3933_v41  ;;  %v9268_v5 = vadd.f32 %v1437_v1, %v1435_v29  ;;  %v1903_v47 = vmul.f32 %v1437_v1, %v1437_v1  ;;  %2287 = vst [vmem:[%s8627_s21 + $0x2b8] sm:$0xff] %v1437_v1  ;;  %3800 = vadd.xlane.f32.xlu0 %v8916_v24  ;;  %v1441_v58 = vpop.f32.mrb[88].mxu0 }
 0x321   : > { %11478 = vst [vmem:[#allocation62_spill] sm:$0xff] %v9263_v17  ;;  %v3236_v15 = vpop.f32.mrb[88].mxu1  ;;  %2008 = vadd.xlane.f32.xlu1 %v8926_v45  ;;  %2288 = vst [vmem:[%s8627_s21 + $0x2c0] sm:$0xff] %v1441_v58  ;;  %v1574_v10 = vpop.xlane.xlu0 %1573  ;;  %v9275_v35 = vadd.f32 %v3698_v8, %v3697_v54  ;;  %v1904_v29 = vmul.f32 %v1441_v58, %v1441_v58  ;;  %v4255_v8 = vmul.f32 %v9266_v9, %v9266_v9 }
 0x322   : > { %11479 = vst [vmem:[#allocation63_spill] sm:$0xff] %v9268_v5  ;;  %v7965_v31 = vpop.eup %7964  ;;  %v4318_v16 = vsub.f32 %v4190_v46, %v4254_v6  ;;  %v3699_v17 = vmul.f32 %v3236_v15, %v3236_v15  ;;  %7069 = vst [vmem:[%s8627_s21 + $0x6c0] sm:$0xff] %v3236_v15  ;;  %v3238_v41 = vpop.f32.mrb[89].mxu1  ;;  %v9278_v5 = vadd.f32 %v1903_v47, %v1902_v34 }
 0x323   : > { %11480 = vst [vmem:[#allocation64_spill] sm:$0xff] %v9275_v35  ;;  %v3750_v1 = vpop.xlane.xlu1 %3749  ;;  %v9280_v24 = vadd.f32 %v3238_v41, %v3236_v15  ;;  %v3700_v21 = vmul.f32 %v3238_v41, %v3238_v41  ;;  %7070 = vst [vmem:[%s8627_s21 + $0x6c8] sm:$0xff] %v3238_v41  ;;  %v1443_v32 = vpop.f32.mrb[89].mxu0  ;;  %v9283_v0 = vmul.f32 %v7965_v31, %v4572_v50 }
 0x324   : > { %11481 = vst [vmem:[#allocation65_spill] sm:$0xff] %v9278_v5  ;;  %v3934_v45 = vadd.f32 %v3750_v1, %v1955_v26  ;;  %v4382_v54 = vmax.f32 %v4318_v16, 0.0  ;;  %v9287_v6 = vadd.f32 %v1443_v32, %v1441_v58  ;;  %v1905_v46 = vmul.f32 %v1443_v32, %v1443_v32  ;;  %2289 = vst [vmem:[%s8627_s21 + $0x2c8] sm:$0xff] %v1443_v32  ;;  %v1447_v47 = vpop.f32.mrb[90].mxu0  ;;  %v4573_v16 = vld [vmem:[%s9252_s6 + $0x8] sm:$0xff] }
 0x325   : > { %11482 = vst [vmem:[#allocation66_spill] sm:$0xff] %v9280_v24  ;;  %1627 = vadd.xlane.f32.xlu0 %v8934_v11  ;;  %v3242_v15 = vpop.f32.mrb[90].mxu1  ;;  %3803 = vadd.xlane.f32.xlu1 %v8930_v3  ;;  %v1906_v26 = vmul.f32 %v1447_v47, %v1447_v47  ;;  %2290 = vst [vmem:[%s8627_s21 + $0x2d0] sm:$0xff] %v1447_v47  ;;  %v3369_v50 = vpop.xlane.xlu0 %3368  ;;  %v9295_v31 = vmul.f32 %v9283_v0, %v9162_v36 }
 0x326   : > { %11483 = vst [vmem:[#allocation67_spill] sm:$0xff] %v9287_v6  ;;  %v4191_v34 = vmul.f32 0.001953125, %v3934_v45  ;;  %v9297_v58 = vadd.f32 %v3700_v21, %v3699_v17  ;;  %v4446_v41 = vadd.f32 1e-05, %v4382_v54  ;;  %v3701_v32 = vmul.f32 %v3242_v15, %v3242_v15  ;;  %7071 = vst [vmem:[%s8627_s21 + $0x6d0] sm:$0xff] %v3242_v15  ;;  %v3244_v11 = vpop.f32.mrb[91].mxu1 }
 0x327   : > { %v3551_v1 = vadd.f32 %v3369_v50, %v1574_v10  ;;  %v1577_v45 = vpop.xlane.xlu1 %1576  ;;  %v9301_v24 = vadd.f32 %v1905_v46, %v1904_v29  ;;  %v9303_v6 = vadd.f32 %v3244_v11, %v3242_v15  ;;  %v3702_v35 = vmul.f32 %v3244_v11, %v3244_v11  ;;  %7072 = vst [vmem:[%s8627_s21 + $0x6d8] sm:$0xff] %v3244_v11  ;;  %v1449_v36 = vpop.f32.mrb[91].mxu0 }
 0x328   : > { %v4319_v3 = vsub.f32 %v4191_v34, %v4255_v8  ;;  %v7967_v5 = vpop.eup %7966  ;;  %7968 = vrsqrt.f32 %v4446_v41  ;;  %v9306_v21 = vadd.f32 %v1449_v36, %v1447_v47  ;;  %v1907_v17 = vmul.f32 %v1449_v36, %v1449_v36  ;;  %2291 = vst [vmem:[%s8627_s21 + $0x2d8] sm:$0xff] %v1449_v36  ;;  %v1453_v10 = vpop.f32.mrb[92].mxu0 }
 0x329   : > { %11484 = vst [vmem:[#allocation68_spill] sm:$0xff] %v9303_v6  ;;  %3422 = vadd.xlane.f32.xlu0 %v8937_v57  ;;  %v9310_v54 = vmul.f32 %v7967_v5, %v4573_v16  ;;  %v3248_v8 = vpop.f32.mrb[92].mxu1  ;;  %1630 = vadd.xlane.f32.xlu1 %v8948_v37  ;;  %2292 = vst [vmem:[%s8627_s21 + $0x2e0] sm:$0xff] %v1453_v10  ;;  %v1958_v46 = vpop.xlane.xlu0 %1957  ;;  %v9314_v34 = vadd.f32 %v3702_v35, %v3701_v32  ;;  %v9316_v15 = vmul.f32 0.001953125, %v3551_v1 }
 0x32a   : > { %v4383_v29 = vmax.f32 %v4319_v3, 0.0  ;;  %v3703_v47 = vmul.f32 %v3248_v8, %v3248_v8  ;;  %7073 = vst [vmem:[%s8627_s21 + $0x6e0] sm:$0xff] %v3248_v8  ;;  %v1908_v50 = vmul.f32 %v1453_v10, %v1453_v10  ;;  %v3250_v41 = vpop.f32.mrb[93].mxu1  ;;  %v9319_v11 = vadd.f32 %v1907_v17, %v1906_v26  ;;  %v1455_v32 = vpop.f32.mrb[93].mxu0 }
 0x32b   : > { %11485 = vst [vmem:[#allocation69_spill] sm:$0xff] %v9314_v34  ;;  %v3372_v57 = vpop.xlane.xlu1 %3371  ;;  %v9323_v5 = vmul.f32 %v9310_v54, %v9202_v22  ;;  %v9325_v16 = vadd.f32 %v3250_v41, %v3248_v8  ;;  %v3704_v35 = vmul.f32 %v3250_v41, %v3250_v41  ;;  %7074 = vst [vmem:[%s8627_s21 + $0x6e8] sm:$0xff] %v3250_v41 }
 0x32c   : > { %11486 = vst [vmem:[#allocation70_spill] sm:$0xff] %v9319_v11  ;;  %v4447_v37 = vadd.f32 1e-05, %v4383_v29  ;;  %v3552_v1 = vadd.f32 %v3372_v57, %v1577_v45  ;;  %v9328_v3 = vadd.f32 %v1455_v32, %v1453_v10  ;;  %v1909_v36 = vmul.f32 %v1455_v32, %v1455_v32  ;;  %2293 = vst [vmem:[%s8627_s21 + $0x2e8] sm:$0xff] %v1455_v32  ;;  %v1459_v26 = vpop.f32.mrb[94].mxu0 }
 0x32d   : > { %11487 = vst [vmem:[#allocation71_spill] sm:$0xff] %v9325_v16  ;;  %2011 = vadd.xlane.f32.xlu0 %v8940_v59  ;;  %v3254_v17 = vpop.f32.mrb[94].mxu1  ;;  %3425 = vadd.xlane.f32.xlu1 %v8951_v63  ;;  %2294 = vst [vmem:[%s8627_s21 + $0x2f0] sm:$0xff] %v1459_v26  ;;  %v3753_v22 = vpop.xlane.xlu0 %3752  ;;  %v9334_v29 = vadd.f32 %v3704_v35, %v3703_v47  ;;  %v1910_v45 = vmul.f32 %v1459_v26, %v1459_v26 }
 0x32e   : > { %11488 = vst [vmem:[#allocation72_spill] sm:$0xff] %v9328_v3  ;;  %7970 = vrsqrt.f32 %v4447_v37  ;;  %v3705_v8 = vmul.f32 %v3254_v17, %v3254_v17  ;;  %7075 = vst [vmem:[%s8627_s21 + $0x6f0] sm:$0xff] %v3254_v17  ;;  %v3256_v10 = vpop.f32.mrb[95].mxu1  ;;  %v3935_v41 = vadd.f32 %v3753_v22, %v1958_v46  ;;  %v9337_v32 = vadd.f32 %v1909_v36, %v1908_v50  ;;  %v1461_v47 = vpop.f32.mrb[95].mxu0  ;;  %v4574_v50 = vld [vmem:[%s9252_s6 + $0x10] sm:$0xff] }
 0x32f   : > { %11489 = vst [vmem:[#allocation73_spill] sm:$0xff] %v9334_v29  ;;  %v1961_v57 = vpop.xlane.xlu1 %1960  ;;  %v4256_v59 = vmul.f32 %v9316_v15, %v9316_v15  ;;  %v9341_v37 = vadd.f32 %v3256_v10, %v3254_v17  ;;  %v3706_v63 = vmul.f32 %v3256_v10, %v3256_v10  ;;  %7076 = vst [vmem:[%s8627_s21 + $0x6f8] sm:$0xff] %v3256_v10  ;;  %v9344_v35 = vmul.f32 0.001953125, %v3552_v1 }
 0x330   : > { %11490 = vst [vmem:[#allocation74_spill] sm:$0xff] %v9337_v32  ;;  %v4192_v29 = vmul.f32 0.001953125, %v3935_v41  ;;  %v9346_v16 = vadd.f32 %v1461_v47, %v1459_v26  ;;  %v1911_v3 = vmul.f32 %v1461_v47, %v1461_v47  ;;  %2295 = vst [vmem:[%s8627_s21 + $0x2f8] sm:$0xff] %v1461_v47  ;;  %v1465_v46 = vpop.f32.mrb[96].mxu0 }
 0x331   : > { %11491 = vst [vmem:[#allocation75_spill] sm:$0xff] %v9341_v37  ;;  %3806 = vadd.xlane.f32.xlu0 %v8944_v52  ;;  %v3260_v36 = vpop.f32.mrb[96].mxu1  ;;  %2014 = vadd.xlane.f32.xlu1 %v8954_v39  ;;  %2296 = vst [vmem:[%s8627_s21 + $0x300] sm:$0xff] %v1465_v46  ;;  %v1580_v17 = vpop.xlane.xlu0 %1579  ;;  %v9353_v22 = vadd.f32 %v3706_v63, %v3705_v8  ;;  %v1912_v26 = vmul.f32 %v1465_v46, %v1465_v46 }
 0x332   : > { %11492 = vst [vmem:[#allocation76_spill] sm:$0xff] %v9346_v16  ;;  %v7969_v1 = vpop.eup %7968  ;;  %v4320_v10 = vsub.f32 %v4192_v29, %v4256_v59  ;;  %v3707_v37 = vmul.f32 %v3260_v36, %v3260_v36  ;;  %7077 = vst [vmem:[%s8627_s21 + $0x700] sm:$0xff] %v3260_v36  ;;  %v3262_v41 = vpop.f32.mrb[97].mxu1  ;;  %v9356_v16 = vadd.f32 %v1911_v3, %v1910_v45 }
 0x333   : > { %11493 = vst [vmem:[#allocation77_spill] sm:$0xff] %v9353_v22  ;;  %v3756_v47 = vpop.xlane.xlu1 %3755  ;;  %v9358_v52 = vadd.f32 %v3262_v41, %v3260_v36  ;;  %v3708_v32 = vmul.f32 %v3262_v41, %v3262_v41  ;;  %7078 = vst [vmem:[%s8627_s21 + $0x708] sm:$0xff] %v3262_v41  ;;  %v1467_v34 = vpop.f32.mrb[97].mxu0  ;;  %v9361_v11 = vmul.f32 %v7969_v1, %v4574_v50  ;;  %v11497_v41 = vld [vmem:[#allocation13_spill] sm:$0xff] }
 0x334   : > { %11494 = vst [vmem:[#allocation78_spill] sm:$0xff] %v9356_v16  ;;  %v3936_v39 = vadd.f32 %v3756_v47, %v1961_v57  ;;  %v4257_v29 = vmul.f32 %v9344_v35, %v9344_v35  ;;  %v4384_v8 = vmax.f32 %v4320_v10, 0.0  ;;  %v9365_v59 = vadd.f32 %v1467_v34, %v1465_v46  ;;  %2297 = vst [vmem:[%s8627_s21 + $0x308] sm:$0xff] %v1467_v34  ;;  %v1471_v3 = vpop.f32.mrb[98].mxu0 }
 0x335   : > { %11495 = vst [vmem:[#allocation79_spill] sm:$0xff] %v9358_v52  ;;  %v1913_v63 = vmul.f32 %v1467_v34, %v1467_v34  ;;  %1633 = vadd.xlane.f32.xlu0 %v8962_v13  ;;  %v3266_v36 = vpop.f32.mrb[98].mxu1  ;;  %3809 = vadd.xlane.f32.xlu1 %v11497_v41  ;;  %v1914_v57 = vmul.f32 %v1471_v3, %v1471_v3  ;;  %2298 = vst [vmem:[%s8627_s21 + $0x310] sm:$0xff] %v1471_v3  ;;  %v3375_v50 = vpop.xlane.xlu0 %3374  ;;  %v4575_v52 = vld [vmem:[%s9252_s6 + $0x18] sm:$0xff] }
 0x336   : > { %11496 = vst [vmem:[#allocation80_spill] sm:$0xff] %v9365_v59  ;;  %v4193_v45 = vmul.f32 0.001953125, %v3936_v39  ;;  %v9373_v1 = vmul.f32 %v9361_v11, %v9235_v51  ;;  %v9375_v46 = vadd.f32 %v3708_v32, %v3707_v37  ;;  %v4448_v10 = vadd.f32 1e-05, %v4384_v8  ;;  %7079 = vst [vmem:[%s8627_s21 + $0x710] sm:$0xff] %v3266_v36  ;;  %v3268_v13 = vpop.f32.mrb[99].mxu1 }
 0x337   : > { %v3709_v34 = vmul.f32 %v3266_v36, %v3266_v36  ;;  %v3553_v47 = vadd.f32 %v3375_v50, %v1580_v17  ;;  %v1583_v39 = vpop.xlane.xlu1 %1582  ;;  %v9379_v59 = vadd.f32 %v1913_v63, %v1912_v26  ;;  %v9381_v16 = vadd.f32 %v3268_v13, %v3266_v36  ;;  %7080 = vst [vmem:[%s8627_s21 + $0x718] sm:$0xff] %v3268_v13  ;;  %v1473_v51 = vpop.f32.mrb[99].mxu0 }
 0x338   : > { %11498 = vst [vmem:[#allocation13_spill] sm:$0xff] %v9375_v46  ;;  %v7971_v41 = vpop.eup %7970  ;;  %v4321_v22 = vsub.f32 %v4193_v45, %v4257_v29  ;;  %v3710_v6 = vmul.f32 %v3268_v13, %v3268_v13  ;;  %7972 = vrsqrt.f32 %v4448_v10  ;;  %v9384_v32 = vadd.f32 %v1473_v51, %v1471_v3  ;;  %2299 = vst [vmem:[%s8627_s21 + $0x318] sm:$0xff] %v1473_v51  ;;  %v1477_v17 = vpop.f32.mrb[100].mxu0 }
 0x339   : > { %11499 = vst [vmem:[#allocation81_spill] sm:$0xff] %v9379_v59  ;;  %11500 = vst [vmem:[#allocation82_spill] sm:$0xff] %v9381_v16  ;;  %v1915_v37 = vmul.f32 %v1473_v51, %v1473_v51  ;;  %3428 = vadd.xlane.f32.xlu0 %v8964_v14  ;;  %v3272_v26 = vpop.f32.mrb[100].mxu1  ;;  %1636 = vadd.xlane.f32.xlu1 %v8976_v33  ;;  %v1964_v29 = vpop.xlane.xlu0 %1963  ;;  %v9390_v63 = vmul.f32 %v7971_v41, %v4575_v52  ;;  %v9394_v36 = vmul.f32 0.001953125, %v3553_v47  ;;  %v11506_v41 = vld [vmem:[#allocation14_spill] sm:$0xff] }
 0x33a   : > { %11501 = vst [vmem:[#allocation83_spill] sm:$0xff] %v9384_v32  ;;  %v4385_v8 = vmax.f32 %v4321_v22, 0.0  ;;  %2300 = vst [vmem:[%s8627_s21 + $0x320] sm:$0xff] %v1477_v17  ;;  %v9392_v45 = vadd.f32 %v3710_v6, %v3709_v34  ;;  %v3711_v3 = vmul.f32 %v3272_v26, %v3272_v26  ;;  %v1916_v50 = vmul.f32 %v1477_v17, %v1477_v17  ;;  %v3274_v10 = vpop.f32.mrb[101].mxu1  ;;  %v1479_v6 = vpop.f32.mrb[101].mxu0 }
 0x33b   : > { %7081 = vst [vmem:[%s8627_s21 + $0x720] sm:$0xff] %v3272_v26  ;;  %v3378_v14 = vpop.xlane.xlu1 %3377  ;;  %v9397_v13 = vadd.f32 %v1915_v37, %v1914_v57  ;;  %v9399_v51 = vadd.f32 %v3274_v10, %v3272_v26  ;;  %v3712_v33 = vmul.f32 %v3274_v10, %v3274_v10  ;;  %7082 = vst [vmem:[%s8627_s21 + $0x728] sm:$0xff] %v3274_v10 }
 0x33c   : > { %11502 = vst [vmem:[#allocation84_spill] sm:$0xff] %v9392_v45  ;;  %v4449_v22 = vadd.f32 1e-05, %v4385_v8  ;;  %v3554_v52 = vadd.f32 %v3378_v14, %v1583_v39  ;;  %v9402_v34 = vadd.f32 %v1479_v6, %v1477_v17  ;;  %v1917_v47 = vmul.f32 %v1479_v6, %v1479_v6  ;;  %2301 = vst [vmem:[%s8627_s21 + $0x328] sm:$0xff] %v1479_v6  ;;  %v1483_v45 = vpop.f32.mrb[102].mxu0 }
 0x33d   : > { %11503 = vst [vmem:[#allocation85_spill] sm:$0xff] %v9397_v13  ;;  %11504 = vst [vmem:[#allocation86_spill] sm:$0xff] %v9399_v51  ;;  %2017 = vadd.xlane.f32.xlu0 %v11506_v41  ;;  %v9408_v57 = vmul.f32 %v9390_v63, %v9266_v9  ;;  %v3278_v37 = vpop.f32.mrb[102].mxu1  ;;  %3431 = vadd.xlane.f32.xlu1 %v8978_v40  ;;  %v3759_v8 = vpop.xlane.xlu0 %3758  ;;  %v9412_v39 = vadd.f32 %v3712_v33, %v3711_v3 }
 0x33e   : > { %11505 = vst [vmem:[#allocation87_spill] sm:$0xff] %v9402_v34  ;;  %7974 = vrsqrt.f32 %v4449_v22  ;;  %2302 = vst [vmem:[%s8627_s21 + $0x330] sm:$0xff] %v1483_v45  ;;  %v3713_v17 = vmul.f32 %v3278_v37, %v3278_v37  ;;  %v1918_v26 = vmul.f32 %v1483_v45, %v1483_v45  ;;  %v3280_v10 = vpop.f32.mrb[103].mxu1  ;;  %v3937_v14 = vadd.f32 %v3759_v8, %v1964_v29  ;;  %v1485_v3 = vpop.f32.mrb[103].mxu0  ;;  %v11511_v29 = vld [vmem:[#allocation15_spill] sm:$0xff] }
 0x33f   : > { %11507 = vst [vmem:[#allocation14_spill] sm:$0xff] %v9412_v39  ;;  %7083 = vst [vmem:[%s8627_s21 + $0x730] sm:$0xff] %v3278_v37  ;;  %v1967_v6 = vpop.xlane.xlu1 %1966  ;;  %v9415_v41 = vadd.f32 %v1917_v47, %v1916_v50  ;;  %v4258_v9 = vmul.f32 %v9394_v36, %v9394_v36  ;;  %v9419_v22 = vadd.f32 %v3280_v10, %v3278_v37  ;;  %v9422_v33 = vmul.f32 0.001953125, %v3554_v52  ;;  %v4576_v47 = vld [vmem:[%s9252_s6 + $0x20] sm:$0xff] }
 0x340   : > { %v3714_v40 = vmul.f32 %v3280_v10, %v3280_v10  ;;  %7084 = vst [vmem:[%s8627_s21 + $0x738] sm:$0xff] %v3280_v10  ;;  %v4194_v39 = vmul.f32 0.001953125, %v3937_v14  ;;  %v9424_v51 = vadd.f32 %v1485_v3, %v1483_v45  ;;  %v1919_v34 = vmul.f32 %v1485_v3, %v1485_v3  ;;  %2303 = vst [vmem:[%s8627_s21 + $0x338] sm:$0xff] %v1485_v3  ;;  %v1489_v50 = vpop.f32.mrb[104].mxu0 }
 0x341   : > { %11508 = vst [vmem:[#allocation88_spill] sm:$0xff] %v9415_v41  ;;  %11509 = vst [vmem:[#allocation89_spill] sm:$0xff] %v9419_v22  ;;  %3812 = vadd.xlane.f32.xlu0 %v11511_v29  ;;  %v3284_v8 = vpop.f32.mrb[104].mxu1  ;;  %2020 = vadd.xlane.f32.xlu1 %v8982_v12  ;;  %v1586_v37 = vpop.xlane.xlu0 %1585  ;;  %v1920_v45 = vmul.f32 %v1489_v50, %v1489_v50 }
 0x342   : > { %11510 = vst [vmem:[#allocation90_spill] sm:$0xff] %v9424_v51  ;;  %2304 = vst [vmem:[%s8627_s21 + $0x340] sm:$0xff] %v1489_v50  ;;  %v9431_v10 = vadd.f32 %v3714_v40, %v3713_v17  ;;  %v7973_v52 = vpop.eup %7972  ;;  %v4322_v22 = vsub.f32 %v4194_v39, %v4258_v9  ;;  %v3715_v41 = vmul.f32 %v3284_v8, %v3284_v8  ;;  %v3286_v14 = vpop.f32.mrb[105].mxu1 }
 0x343   : > { %7085 = vst [vmem:[%s8627_s21 + $0x740] sm:$0xff] %v3284_v8  ;;  %v3762_v3 = vpop.xlane.xlu1 %3761  ;;  %v9434_v51 = vadd.f32 %v1919_v34, %v1918_v26  ;;  %v9436_v29 = vadd.f32 %v3286_v14, %v3284_v8  ;;  %v3716_v13 = vmul.f32 %v3286_v14, %v3286_v14  ;;  %7086 = vst [vmem:[%s8627_s21 + $0x748] sm:$0xff] %v3286_v14  ;;  %v1491_v16 = vpop.f32.mrb[105].mxu0  ;;  %v11516_v14 = vld [vmem:[#allocation16_spill] sm:$0xff] }
 0x344   : > { %11512 = vst [vmem:[#allocation15_spill] sm:$0xff] %v9431_v10  ;;  %v3938_v12 = vadd.f32 %v3762_v3, %v1967_v6  ;;  %v9439_v32 = vmul.f32 %v7973_v52, %v4576_v47  ;;  %v4259_v39 = vmul.f32 %v9422_v33, %v9422_v33  ;;  %v4386_v17 = vmax.f32 %v4322_v22, 0.0  ;;  %2305 = vst [vmem:[%s8627_s21 + $0x348] sm:$0xff] %v1491_v16  ;;  %v1495_v34 = vpop.f32.mrb[106].mxu0 }
 0x345   : > { %11513 = vst [vmem:[#allocation91_spill] sm:$0xff] %v9434_v51  ;;  %11514 = vst [vmem:[#allocation92_spill] sm:$0xff] %v9436_v29  ;;  %v9443_v9 = vadd.f32 %v1491_v16, %v1489_v50  ;;  %v1921_v40 = vmul.f32 %v1491_v16, %v1491_v16  ;;  %1639 = vadd.xlane.f32.xlu0 %v8989_v44  ;;  %v3290_v8 = vpop.f32.mrb[106].mxu1  ;;  %3815 = vadd.xlane.f32.xlu1 %v11516_v14  ;;  %v3381_v47 = vpop.xlane.xlu0 %3380  ;;  %v4577_v29 = vld [vmem:[%s9252_s6 + $0x28] sm:$0xff] }
 0x346   : > { %v4195_v26 = vmul.f32 0.001953125, %v3938_v12  ;;  %v1922_v6 = vmul.f32 %v1495_v34, %v1495_v34  ;;  %2306 = vst [vmem:[%s8627_s21 + $0x350] sm:$0xff] %v1495_v34  ;;  %v9451_v22 = vmul.f32 %v9439_v32, %v9316_v15  ;;  %v9453_v50 = vadd.f32 %v3716_v13, %v3715_v41  ;;  %7087 = vst [vmem:[%s8627_s21 + $0x750] sm:$0xff] %v3290_v8  ;;  %v3292_v44 = vpop.f32.mrb[107].mxu1  ;;  %v1497_v15 = vpop.f32.mrb[107].mxu0 }
 0x347   : > { %11515 = vst [vmem:[#allocation93_spill] sm:$0xff] %v9443_v9  ;;  %v4450_v52 = vadd.f32 1e-05, %v4386_v17  ;;  %v3717_v16 = vmul.f32 %v3290_v8, %v3290_v8  ;;  %v3555_v3 = vadd.f32 %v3381_v47, %v1586_v37  ;;  %v1589_v12 = vpop.xlane.xlu1 %1588  ;;  %v9457_v9 = vadd.f32 %v1921_v40, %v1920_v45  ;;  %7088 = vst [vmem:[%s8627_s21 + $0x758] sm:$0xff] %v3292_v44  ;;  %v11521_v17 = vld [vmem:[#allocation17_spill] sm:$0xff] }
 0x348   : > { %11517 = vst [vmem:[#allocation16_spill] sm:$0xff] %v9453_v50  ;;  %v7975_v14 = vpop.eup %7974  ;;  %v4323_v10 = vsub.f32 %v4195_v26, %v4259_v39  ;;  %v9459_v51 = vadd.f32 %v3292_v44, %v3290_v8  ;;  %v3718_v46 = vmul.f32 %v3292_v44, %v3292_v44  ;;  %v9462_v13 = vadd.f32 %v1497_v15, %v1495_v34  ;;  %v1501_v37 = vpop.f32.mrb[108].mxu0 }
 0x349   : > { %11518 = vst [vmem:[#allocation94_spill] sm:$0xff] %v9457_v9  ;;  %7976 = vrsqrt.f32 %v4450_v52  ;;  %v1923_v41 = vmul.f32 %v1497_v15, %v1497_v15  ;;  %2307 = vst [vmem:[%s8627_s21 + $0x358] sm:$0xff] %v1497_v15  ;;  %3434 = vadd.xlane.f32.xlu0 %v11521_v17  ;;  %v3296_v45 = vpop.f32.mrb[108].mxu1  ;;  %1642 = vadd.xlane.f32.xlu1 %v9003_v18  ;;  %v1970_v39 = vpop.xlane.xlu0 %1969  ;;  %v9468_v40 = vmul.f32 %v7975_v14, %v4577_v29 }
 0x34a   : > { %11519 = vst [vmem:[#allocation95_spill] sm:$0xff] %v9459_v51  ;;  %11520 = vst [vmem:[#allocation96_spill] sm:$0xff] %v9462_v13  ;;  %v4387_v47 = vmax.f32 %v4323_v10, 0.0  ;;  %v9470_v26 = vadd.f32 %v3718_v46, %v3717_v16  ;;  %v9472_v8 = vmul.f32 0.001953125, %v3555_v3  ;;  %v3719_v34 = vmul.f32 %v3296_v45, %v3296_v45  ;;  %v3298_v44 = vpop.f32.mrb[109].mxu1  ;;  %v1503_v46 = vpop.f32.mrb[109].mxu0 }
 0x34b   : > { %2308 = vst [vmem:[%s8627_s21 + $0x360] sm:$0xff] %v1501_v37  ;;  %7089 = vst [vmem:[%s8627_s21 + $0x760] sm:$0xff] %v3296_v45  ;;  %v1924_v52 = vmul.f32 %v1501_v37, %v1501_v37  ;;  %v3384_v15 = vpop.xlane.xlu1 %3383  ;;  %v9475_v17 = vadd.f32 %v1923_v41, %v1922_v6  ;;  %v9477_v51 = vadd.f32 %v3298_v44, %v3296_v45 }
 0x34c   : > { %11522 = vst [vmem:[#allocation17_spill] sm:$0xff] %v9470_v26  ;;  %v4451_v10 = vadd.f32 1e-05, %v4387_v47  ;;  %v3720_v18 = vmul.f32 %v3298_v44, %v3298_v44  ;;  %7090 = vst [vmem:[%s8627_s21 + $0x768] sm:$0xff] %v3298_v44  ;;  %v3556_v29 = vadd.f32 %v3384_v15, %v1589_v12  ;;  %v9480_v16 = vadd.f32 %v1503_v46, %v1501_v37  ;;  %v1507_v14 = vpop.f32.mrb[110].mxu0  ;;  %v11526_v47 = vld [vmem:[#allocation19_spill] sm:$0xff] }
 0x34d   : > { %11523 = vst [vmem:[#allocation97_spill] sm:$0xff] %v9475_v17  ;;  %11524 = vst [vmem:[#allocation98_spill] sm:$0xff] %v9477_v51  ;;  %v1925_v3 = vmul.f32 %v1503_v46, %v1503_v46  ;;  %2023 = vadd.xlane.f32.xlu0 %v8996_v20  ;;  %v9486_v6 = vmul.f32 %v9468_v40, %v9344_v35  ;;  %v3302_v41 = vpop.f32.mrb[110].mxu1  ;;  %3437 = vadd.xlane.f32.xlu1 %v11526_v47  ;;  %v3765_v45 = vpop.xlane.xlu0 %3764 }
 0x34e   : > { %11525 = vst [vmem:[#allocation99_spill] sm:$0xff] %v9480_v16  ;;  %2309 = vst [vmem:[%s8627_s21 + $0x368] sm:$0xff] %v1503_v46  ;;  %7978 = vrsqrt.f32 %v4451_v10  ;;  %v9490_v12 = vadd.f32 %v3720_v18, %v3719_v34  ;;  %v3721_v37 = vmul.f32 %v3302_v41, %v3302_v41  ;;  %v1926_v44 = vmul.f32 %v1507_v14, %v1507_v14  ;;  %v3304_v15 = vpop.f32.mrb[111].mxu1  ;;  %v1509_v34 = vpop.f32.mrb[111].mxu0 }
 0x34f   : > { %2310 = vst [vmem:[%s8627_s21 + $0x370] sm:$0xff] %v1507_v14  ;;  %7091 = vst [vmem:[%s8627_s21 + $0x770] sm:$0xff] %v3302_v41  ;;  %v3939_v20 = vadd.f32 %v3765_v45, %v1970_v39  ;;  %v1973_v46 = vpop.xlane.xlu1 %1972  ;;  %v9493_v51 = vadd.f32 %v1925_v3, %v1924_v52  ;;  %v4260_v35 = vmul.f32 %v9472_v8, %v9472_v8  ;;  %v9500_v18 = vmul.f32 0.001953125, %v3556_v29  ;;  %v11531_v39 = vld [vmem:[#allocation18_spill] sm:$0xff]  ;;  %v4578_v3 = vld [vmem:[%s9252_s6 + $0x30] sm:$0xff] }
 0x350   : > { %11527 = vst [vmem:[#allocation19_spill] sm:$0xff] %v9490_v12  ;;  %v9497_v10 = vadd.f32 %v3304_v15, %v3302_v41  ;;  %v3722_v47 = vmul.f32 %v3304_v15, %v3304_v15  ;;  %7092 = vst [vmem:[%s8627_s21 + $0x778] sm:$0xff] %v3304_v15  ;;  %v9502_v16 = vadd.f32 %v1509_v34, %v1507_v14  ;;  %v1513_v52 = vpop.f32.mrb[112].mxu0 }
 0x351   : > { %11528 = vst [vmem:[#allocation100_spill] sm:$0xff] %v9493_v51  ;;  %v4196_v12 = vmul.f32 0.001953125, %v3939_v20  ;;  %v1927_v26 = vmul.f32 %v1509_v34, %v1509_v34  ;;  %2311 = vst [vmem:[%s8627_s21 + $0x378] sm:$0xff] %v1509_v34  ;;  %3818 = vadd.xlane.f32.xlu0 %v11531_v39  ;;  %v3308_v45 = vpop.f32.mrb[112].mxu1  ;;  %2026 = vadd.xlane.f32.xlu1 %v9010_v23  ;;  %v1592_v41 = vpop.xlane.xlu0 %1591 }
 0x352   : > { %11529 = vst [vmem:[#allocation101_spill] sm:$0xff] %v9497_v10  ;;  %11530 = vst [vmem:[#allocation102_spill] sm:$0xff] %v9502_v16  ;;  %v9509_v15 = vadd.f32 %v3722_v47, %v3721_v37  ;;  %v3723_v20 = vmul.f32 %v3308_v45, %v3308_v45  ;;  %v3310_v14 = vpop.f32.mrb[113].mxu1  ;;  %v1515_v23 = vpop.f32.mrb[113].mxu0  ;;  %v4261_v37 = vmul.f32 %v9500_v18, %v9500_v18 }
 0x353   : > { %2312 = vst [vmem:[%s8627_s21 + $0x380] sm:$0xff] %v1513_v52  ;;  %v7977_v29 = vpop.eup %7976  ;;  %v4324_v10 = vsub.f32 %v4196_v12, %v4260_v35  ;;  %7093 = vst [vmem:[%s8627_s21 + $0x780] sm:$0xff] %v3308_v45  ;;  %v3768_v16 = vpop.xlane.xlu1 %3767  ;;  %v9512_v34 = vadd.f32 %v1927_v26, %v1926_v44  ;;  %v9514_v39 = vadd.f32 %v3310_v14, %v3308_v45 }
 0x354   : > { %11532 = vst [vmem:[#allocation18_spill] sm:$0xff] %v9509_v15  ;;  %v3724_v51 = vmul.f32 %v3310_v14, %v3310_v14  ;;  %7094 = vst [vmem:[%s8627_s21 + $0x788] sm:$0xff] %v3310_v14  ;;  %v3940_v17 = vadd.f32 %v3768_v16, %v1973_v46  ;;  %v9517_v13 = vmul.f32 %v7977_v29, %v4578_v3  ;;  %v1519_v26 = vpop.f32.mrb[114].mxu0  ;;  %v11536_v16 = vld [vmem:[#allocation20_spill] sm:$0xff] }
 0x355   : > { %11533 = vst [vmem:[#allocation103_spill] sm:$0xff] %v9512_v34  ;;  %11534 = vst [vmem:[#allocation104_spill] sm:$0xff] %v9514_v39  ;;  %v4388_v12 = vmax.f32 %v4324_v10, 0.0  ;;  %v1928_v35 = vmul.f32 %v1513_v52, %v1513_v52  ;;  %v9521_v47 = vadd.f32 %v1515_v23, %v1513_v52  ;;  %1645 = vadd.xlane.f32.xlu0 %v9017_v28  ;;  %v3314_v14 = vpop.f32.mrb[114].mxu1  ;;  %3821 = vadd.xlane.f32.xlu1 %v11536_v16  ;;  %v3387_v46 = vpop.xlane.xlu0 %3386 }
 0x356   : > { %2313 = vst [vmem:[%s8627_s21 + $0x388] sm:$0xff] %v1515_v23  ;;  %v4197_v44 = vmul.f32 0.001953125, %v3940_v17  ;;  %v1929_v45 = vmul.f32 %v1515_v23, %v1515_v23  ;;  %2314 = vst [vmem:[%s8627_s21 + $0x390] sm:$0xff] %v1519_v26  ;;  %v9529_v3 = vmul.f32 %v9517_v13, %v9394_v36  ;;  %v9531_v10 = vadd.f32 %v3724_v51, %v3723_v20  ;;  %v3316_v28 = vpop.f32.mrb[115].mxu1  ;;  %v4579_v23 = vld [vmem:[%s9252_s6 + $0x38] sm:$0xff]  ;;  %v1521_v50 = vpop.f32.mrb[115].mxu0 }
 0x357   : > { %11535 = vst [vmem:[#allocation105_spill] sm:$0xff] %v9521_v47  ;;  %v4452_v52 = vadd.f32 1e-05, %v4388_v12  ;;  %7095 = vst [vmem:[%s8627_s21 + $0x790] sm:$0xff] %v3314_v14  ;;  %v1930_v29 = vmul.f32 %v1519_v26, %v1519_v26  ;;  %v3557_v39 = vadd.f32 %v3387_v46, %v1592_v41  ;;  %v1595_v17 = vpop.xlane.xlu1 %1594  ;;  %v3725_v16 = vmul.f32 %v3314_v14, %v3314_v14  ;;  %v11540_v12 = vld [vmem:[#allocation21_spill] sm:$0xff] }
 0x358   : > { %11537 = vst [vmem:[#allocation20_spill] sm:$0xff] %v9531_v10  ;;  %v7979_v47 = vpop.eup %7978  ;;  %v4325_v15 = vsub.f32 %v4197_v44, %v4261_v37  ;;  %v9535_v34 = vadd.f32 %v3316_v28, %v3314_v14  ;;  %7096 = vst [vmem:[%s8627_s21 + $0x798] sm:$0xff] %v3316_v28  ;;  %v8200_v36 = vmov 0   ;;  %v3726_v51 = vmul.f32 %v3316_v28, %v3316_v28  ;;  %v1525_v46 = vpop.f32.mrb[116].mxu0 }
 0x359   : > { %7963 = vset.pattern.permute.xlu1 %v8200_v36  ;;  %7962 = vset.pattern.permute.xlu0 %v8200_v36  ;;  %7980 = vrsqrt.f32 %v4452_v52  ;;  %v9538_v20 = vadd.f32 %v1521_v50, %v1519_v26  ;;  %v1931_v41 = vmul.f32 %v1521_v50, %v1521_v50  ;;  %2315 = vst [vmem:[%s8627_s21 + $0x398] sm:$0xff] %v1521_v50  ;;  %v9542_v44 = vmul.f32 0.001953125, %v3557_v39  ;;  %v3320_v14 = vpop.f32.mrb[116].mxu1 }
 0x35a   : > { %11538 = vst [vmem:[#allocation106_spill] sm:$0xff] %v9535_v34  ;;  %3440 = vadd.xlane.f32.xlu0 %v11540_v12  ;;  %v4389_v37 = vmax.f32 %v4325_v15, 0.0  ;;  %1648 = vadd.xlane.f32.xlu1 %v9031_v49  ;;  %2316 = vst [vmem:[%s8627_s21 + $0x3a0] sm:$0xff] %v1525_v46  ;;  %v1976_v34 = vpop.xlane.xlu0 %1975  ;;  %v9546_v36 = vmul.f32 %v7979_v47, %v4579_v23  ;;  %v3727_v52 = vmul.f32 %v3320_v14, %v3320_v14  ;;  %v3322_v28 = vpop.f32.mrb[117].mxu1 }
 0x35b   : > { %11539 = vst [vmem:[#allocation107_spill] sm:$0xff] %v9538_v20  ;;  %7097 = vst [vmem:[%s8627_s21 + $0x7a0] sm:$0xff] %v3320_v14  ;;  %v1932_v26 = vmul.f32 %v1525_v46, %v1525_v46  ;;  %v3390_v50 = vpop.xlane.xlu1 %3389  ;;  %v9549_v20 = vadd.f32 %v1929_v45, %v1928_v35  ;;  %v9551_v12 = vadd.f32 %v1931_v41, %v1930_v29  ;;  %v1527_v47 = vpop.f32.mrb[117].mxu0  ;;  %v11545_v41 = vld [vmem:[#allocation23_spill] sm:$0xff] }
 0x35c   : > { %v4453_v15 = vadd.f32 1e-05, %v4389_v37  ;;  %v9553_v39 = vadd.f32 %v3322_v28, %v3320_v14  ;;  %v3728_v10 = vmul.f32 %v3322_v28, %v3322_v28  ;;  %7098 = vst [vmem:[%s8627_s21 + $0x7a8] sm:$0xff] %v3322_v28  ;;  %v3558_v49 = vadd.f32 %v3390_v50, %v1595_v17  ;;  %2317 = vst [vmem:[%s8627_s21 + $0x3a8] sm:$0xff] %v1527_v47  ;;  %v1531_v59 = vpop.f32.mrb[118].mxu0 }
 0x35d   : > { %11541 = vst [vmem:[#allocation21_spill] sm:$0xff] %v9551_v12  ;;  %v9556_v23 = vadd.f32 %v1527_v47, %v1525_v46  ;;  %v1933_v9 = vmul.f32 %v1527_v47, %v1527_v47  ;;  %v9562_v35 = vmul.f32 %v9546_v36, %v9422_v33  ;;  %v9564_v45 = vadd.f32 %v3726_v51, %v3725_v16  ;;  %v3326_v29 = vpop.f32.mrb[118].mxu1 }
 0x35e   : > { %11542 = vst [vmem:[#allocation108_spill] sm:$0xff] %v9553_v39  ;;  %2029 = vadd.xlane.f32.xlu0 %v9024_v48  ;;  %7982 = vrsqrt.f32 %v4453_v15  ;;  %3443 = vadd.xlane.f32.xlu1 %v11545_v41  ;;  %2318 = vst [vmem:[%s8627_s21 + $0x3b0] sm:$0xff] %v1531_v59  ;;  %v3771_v17 = vpop.xlane.xlu0 %3770  ;;  %v9568_v46 = vadd.f32 %v3728_v10, %v3727_v52  ;;  %v3729_v37 = vmul.f32 %v3326_v29, %v3326_v29  ;;  %v3328_v14 = vpop.f32.mrb[119].mxu1 }
 0x35f   : > { %11543 = vst [vmem:[#allocation109_spill] sm:$0xff] %v9556_v23  ;;  %11544 = vst [vmem:[#allocation110_spill] sm:$0xff] %v9564_v45  ;;  %v1934_v48 = vmul.f32 %v1531_v59, %v1531_v59  ;;  %v3941_v28 = vadd.f32 %v3771_v17, %v1976_v34  ;;  %v1979_v33 = vpop.xlane.xlu1 %1978  ;;  %v9571_v50 = vadd.f32 %v1933_v9, %v1932_v26  ;;  %v1533_v10 = vpop.f32.mrb[119].mxu0  ;;  %v9578_v52 = vmul.f32 0.001953125, %v3558_v49  ;;  %v11550_v34 = vld [vmem:[#allocation22_spill] sm:$0xff]  ;;  %v4580_v26 = vld [vmem:[%s9252_s6 + $0x40] sm:$0xff] }
 0x360   : > { %11546 = vst [vmem:[#allocation23_spill] sm:$0xff] %v9568_v46  ;;  %7099 = vst [vmem:[%s8627_s21 + $0x7b0] sm:$0xff] %v3326_v29  ;;  %v4262_v16 = vmul.f32 %v9542_v44, %v9542_v44  ;;  %v9575_v51 = vadd.f32 %v3328_v14, %v3326_v29  ;;  %v3730_v15 = vmul.f32 %v3328_v14, %v3328_v14  ;;  %v1537_v9 = vpop.f32.mrb[120].mxu0 }
 0x361   : > { %11547 = vst [vmem:[#allocation111_spill] sm:$0xff] %v9571_v50  ;;  %7100 = vst [vmem:[%s8627_s21 + $0x7b8] sm:$0xff] %v3328_v14  ;;  %v4198_v47 = vmul.f32 0.001953125, %v3941_v28  ;;  %v9580_v41 = vadd.f32 %v1533_v10, %v1531_v59  ;;  %v1935_v46 = vmul.f32 %v1533_v10, %v1533_v10  ;;  %v3332_v17 = vpop.f32.mrb[120].mxu1  ;;  %v1936_v59 = vmul.f32 %v1537_v9, %v1537_v9  ;;  %v1539_v23 = vpop.f32.mrb[121].mxu0 }
 0x362   : > { %11548 = vst [vmem:[#allocation112_spill] sm:$0xff] %v9575_v51  ;;  %2319 = vst [vmem:[%s8627_s21 + $0x3b8] sm:$0xff] %v1533_v10  ;;  %3824 = vadd.xlane.f32.xlu0 %v11550_v34  ;;  %2032 = vadd.xlane.f32.xlu1 %v9038_v56  ;;  %v1598_v29 = vpop.xlane.xlu0 %1597  ;;  %v9587_v14 = vadd.f32 %v3730_v15, %v3729_v37  ;;  %v3731_v50 = vmul.f32 %v3332_v17, %v3332_v17  ;;  %v3334_v28 = vpop.f32.mrb[121].mxu1 }
 0x363   : > { %11549 = vst [vmem:[#allocation113_spill] sm:$0xff] %v9580_v41  ;;  %2320 = vst [vmem:[%s8627_s21 + $0x3c0] sm:$0xff] %v1537_v9  ;;  %v7981_v49 = vpop.eup %7980  ;;  %v4326_v51 = vsub.f32 %v4198_v47, %v4262_v16  ;;  %v3774_v10 = vpop.xlane.xlu1 %3773  ;;  %v9590_v41 = vadd.f32 %v1935_v46, %v1934_v48  ;;  %v9592_v34 = vadd.f32 %v3334_v28, %v3332_v17 }
 0x364   : > { %11551 = vst [vmem:[#allocation22_spill] sm:$0xff] %v9587_v14  ;;  %7101 = vst [vmem:[%s8627_s21 + $0x7c0] sm:$0xff] %v3332_v17  ;;  %v3732_v39 = vmul.f32 %v3334_v28, %v3334_v28  ;;  %v3942_v56 = vadd.f32 %v3774_v10, %v1979_v33  ;;  %v9595_v45 = vmul.f32 %v7981_v49, %v4580_v26  ;;  %v1543_v46 = vpop.f32.mrb[122].mxu0 }
 0x365   : > { %11552 = vst [vmem:[#allocation114_spill] sm:$0xff] %v9590_v41  ;;  %11553 = vst [vmem:[#allocation115_spill] sm:$0xff] %v9592_v34  ;;  %v4263_v37 = vmul.f32 %v9578_v52, %v9578_v52  ;;  %v4390_v16 = vmax.f32 %v4326_v51, 0.0  ;;  %v9599_v15 = vadd.f32 %v1539_v23, %v1537_v9  ;;  %v1937_v47 = vmul.f32 %v1539_v23, %v1539_v23  ;;  %v3338_v17 = vpop.f32.mrb[122].mxu1  ;;  %v4581_v34 = vld [vmem:[%s9252_s6 + $0x48] sm:$0xff] }
 0x366   : > { %7102 = vst [vmem:[%s8627_s21 + $0x7c8] sm:$0xff] %v3334_v28  ;;  %2321 = vst [vmem:[%s8627_s21 + $0x3c8] sm:$0xff] %v1539_v23  ;;  %1651 = vadd.xlane.f32.xlu0 %v9045_v43  ;;  %v4199_v48 = vmul.f32 0.001953125, %v3942_v56  ;;  %v11555_v28 = vld [vmem:[#allocation24_spill] sm:$0xff]  ;;  %v1938_v33 = vmul.f32 %v1543_v46, %v1543_v46  ;;  %v3393_v26 = vpop.xlane.xlu0 %3392  ;;  %v9607_v51 = vmul.f32 %v9595_v45, %v9472_v8  ;;  %v3340_v43 = vpop.f32.mrb[123].mxu1 }
 0x367   : > { %11554 = vst [vmem:[#allocation116_spill] sm:$0xff] %v9599_v15  ;;  %3827 = vadd.xlane.f32.xlu1 %v11555_v28  ;;  %2322 = vst [vmem:[%s8627_s21 + $0x3d0] sm:$0xff] %v1543_v46  ;;  %v9609_v9 = vadd.f32 %v3732_v39, %v3731_v50  ;;  %v4454_v49 = vadd.f32 1e-05, %v4390_v16  ;;  %v3733_v23 = vmul.f32 %v3338_v17, %v3338_v17  ;;  %v1601_v56 = vpop.xlane.xlu1 %1600  ;;  %v1545_v8 = vpop.f32.mrb[123].mxu0  ;;  %v11558_v16 = vld [vmem:[#allocation25_spill] sm:$0xff] }
 0x368   : > { %7103 = vst [vmem:[%s8627_s21 + $0x7d0] sm:$0xff] %v3338_v17  ;;  %v3559_v10 = vadd.f32 %v3393_v26, %v1598_v29  ;;  %v9613_v15 = vadd.f32 %v1937_v47, %v1936_v59  ;;  %v7983_v28 = vpop.eup %7982  ;;  %v4327_v14 = vsub.f32 %v4199_v48, %v4263_v37  ;;  %v9615_v41 = vadd.f32 %v3340_v43, %v3338_v17  ;;  %v1549_v29 = vpop.f32.mrb[124].mxu0 }
 0x369   : > { %v3734_v12 = vmul.f32 %v3340_v43, %v3340_v43  ;;  %7104 = vst [vmem:[%s8627_s21 + $0x7d8] sm:$0xff] %v3340_v43  ;;  %7984 = vrsqrt.f32 %v4454_v49  ;;  %v9618_v39 = vadd.f32 %v1545_v8, %v1543_v46  ;;  %v1939_v50 = vmul.f32 %v1545_v8, %v1545_v8  ;;  %2323 = vst [vmem:[%s8627_s21 + $0x3d8] sm:$0xff] %v1545_v8  ;;  %v3344_v59 = vpop.f32.mrb[124].mxu1 }
 0x36a   : > { %11556 = vst [vmem:[#allocation24_spill] sm:$0xff] %v9615_v41  ;;  %3446 = vadd.xlane.f32.xlu0 %v11558_v16  ;;  %v4391_v26 = vmax.f32 %v4327_v14, 0.0  ;;  %2324 = vst [vmem:[%s8627_s21 + $0x3e0] sm:$0xff] %v1549_v29  ;;  %v1982_v37 = vpop.xlane.xlu0 %1981  ;;  %v9624_v47 = vmul.f32 %v7983_v28, %v4581_v34  ;;  %v3735_v17 = vmul.f32 %v3344_v59, %v3344_v59  ;;  %v3346_v49 = vpop.f32.mrb[125].mxu1  ;;  %v9634_v28 = vmul.f32 0.001953125, %v3559_v10 }
 0x36b   : > { %11557 = vst [vmem:[#allocation117_spill] sm:$0xff] %v9618_v39  ;;  %1654 = vadd.xlane.f32.xlu1 %v9059_v55  ;;  %v9626_v48 = vadd.f32 %v3734_v12, %v3733_v23  ;;  %7105 = vst [vmem:[%s8627_s21 + $0x7e0] sm:$0xff] %v3344_v59  ;;  %v1940_v46 = vmul.f32 %v1549_v29, %v1549_v29  ;;  %v3396_v43 = vpop.xlane.xlu1 %3395  ;;  %v9629_v8 = vadd.f32 %v1939_v50, %v1938_v33  ;;  %v1551_v34 = vpop.f32.mrb[125].mxu0  ;;  %v11592_v39 = vld [vmem:[#allocation46_spill] sm:$0xff] }
 0x36c   : > { %v4455_v16 = vadd.f32 1e-05, %v4391_v26  ;;  %v9631_v14 = vadd.f32 %v3346_v49, %v3344_v59  ;;  %v3736_v41 = vmul.f32 %v3346_v49, %v3346_v49  ;;  %7106 = vst [vmem:[%s8627_s21 + $0x7e8] sm:$0xff] %v3346_v49  ;;  %v3560_v55 = vadd.f32 %v3396_v43, %v1601_v56  ;;  %2325 = vst [vmem:[%s8627_s21 + $0x3e8] sm:$0xff] %v1551_v34  ;;  %v11563_v26 = vld [vmem:[#allocation27_spill] sm:$0xff] }
 0x36d   : > { %11559 = vst [vmem:[#allocation25_spill] sm:$0xff] %v9626_v48  ;;  %11560 = vst [vmem:[#allocation118_spill] sm:$0xff] %v9629_v8  ;;  %v9636_v12 = vadd.f32 %v1551_v34, %v1549_v29  ;;  %v1941_v23 = vmul.f32 %v1551_v34, %v1551_v34  ;;  %v1555_v48 = vpop.f32.mrb[126].mxu0  ;;  %v9642_v33 = vmul.f32 %v9624_v47, %v9500_v18  ;;  %v3350_v50 = vpop.f32.mrb[126].mxu1  ;;  %v4582_v8 = vld [vmem:[%s9252_s6 + $0x50] sm:$0xff] }
 0x36e   : > { %11561 = vst [vmem:[#allocation119_spill] sm:$0xff] %v9631_v14  ;;  %2035 = vadd.xlane.f32.xlu0 %v9052_v7  ;;  %7986 = vrsqrt.f32 %v4455_v16  ;;  %2326 = vst [vmem:[%s8627_s21 + $0x3f0] sm:$0xff] %v1555_v48  ;;  %v3777_v56 = vpop.xlane.xlu0 %3776  ;;  %v9646_v10 = vadd.f32 %v3736_v41, %v3735_v17  ;;  %v3737_v29 = vmul.f32 %v3350_v50, %v3350_v50  ;;  %v3352_v7 = vpop.f32.mrb[127].mxu1 }
 0x36f   : > { %11562 = vst [vmem:[#allocation120_spill] sm:$0xff] %v9636_v12  ;;  %3449 = vadd.xlane.f32.xlu1 %v11563_v26  ;;  %7107 = vst [vmem:[%s8627_s21 + $0x7f0] sm:$0xff] %v3350_v50  ;;  %v1942_v59 = vmul.f32 %v1555_v48, %v1555_v48  ;;  %v3943_v49 = vadd.f32 %v3777_v56, %v1982_v37  ;;  %v1985_v43 = vpop.xlane.xlu1 %1984  ;;  %v9649_v34 = vadd.f32 %v1941_v23, %v1940_v46  ;;  %v1557_v14 = vpop.f32.mrb[127].mxu0  ;;  %v11568_v12 = vld [vmem:[#allocation26_spill] sm:$0xff] }
 0x370   : > { %11564 = vst [vmem:[#allocation27_spill] sm:$0xff] %v9646_v10  ;;  %v9651_v18 = vadd.f32 %v3352_v7, %v3350_v50  ;;  %v3738_v16 = vmul.f32 %v3352_v7, %v3352_v7  ;;  %7108 = vst [vmem:[%s8627_s21 + $0x7f8] sm:$0xff] %v3352_v7  ;;  %v4264_v26 = vmul.f32 %v9634_v28, %v9634_v28  ;;  %v9661_v37 = vmul.f32 0.001953125, %v3560_v55 }
 0x371   : > { %11565 = vst [vmem:[#allocation121_spill] sm:$0xff] %v9649_v34  ;;  %v4200_v41 = vmul.f32 0.001953125, %v3943_v49  ;;  %v9656_v17 = vadd.f32 %v1557_v14, %v1555_v48  ;;  %v1943_v10 = vmul.f32 %v1557_v14, %v1557_v14  ;;  %2327 = vst [vmem:[%s8627_s21 + $0x3f8] sm:$0xff] %v1557_v14 }
 0x372   : > { %11566 = vst [vmem:[#allocation122_spill] sm:$0xff] %v9651_v18  ;;  %3830 = vadd.xlane.f32.xlu0 %v11568_v12  ;;  %v9663_v46 = vadd.f32 %v3738_v16, %v3737_v29  ;;  %v1604_v23 = vpop.xlane.xlu0 %1603  ;;  %v4265_v55 = vmul.f32 %v9661_v37, %v9661_v37  ;;  %v11571_v29 = vld [vmem:[#allocation28_spill] sm:$0xff] }
 0x373   : > { %11567 = vst [vmem:[#allocation123_spill] sm:$0xff] %v9656_v17  ;;  %2038 = vadd.xlane.f32.xlu1 %v9066_v25  ;;  %v7985_v50 = vpop.eup %7984  ;;  %v4328_v56 = vsub.f32 %v4200_v41, %v4264_v26  ;;  %v9666_v7 = vadd.f32 %v1943_v10, %v1942_v59  ;;  %v3780_v49 = vpop.xlane.xlu1 %3779  ;;  %v4583_v10 = vld [vmem:[%s9252_s6 + $0x58] sm:$0xff] }
 0x374   : > { %11569 = vst [vmem:[#allocation26_spill] sm:$0xff] %v9663_v46  ;;  %v3944_v48 = vadd.f32 %v3780_v49, %v1985_v43  ;;  %v9668_v18 = vmul.f32 %v7985_v50, %v4582_v8  ;;  %v11572_v50 = vld [vmem:[#allocation29_spill] sm:$0xff] }
 0x375   : > { %11570 = vst [vmem:[#allocation124_spill] sm:$0xff] %v9666_v7  ;;  %v4392_v14 = vmax.f32 %v4328_v56, 0.0  ;;  %v11582_v7 = vld [vmem:[#allocation38_spill] sm:$0xff] }
 0x376   : > { %1657 = vadd.xlane.f32.xlu0 %v9073_v60  ;;  %v4201_v12 = vmul.f32 0.001953125, %v3944_v48  ;;  %v3399_v16 = vpop.xlane.xlu0 %3398  ;;  %v9676_v25 = vmul.f32 %v9668_v18, %v9542_v44 }
 0x377   : > { %3833 = vadd.xlane.f32.xlu1 %v11571_v29  ;;  %v4456_v59 = vadd.f32 1e-05, %v4392_v14  ;;  %v3561_v26 = vadd.f32 %v3399_v16, %v1604_v23  ;;  %v1607_v43 = vpop.xlane.xlu1 %1606 }
 0x378   : > { %v7987_v8 = vpop.eup %7986  ;;  %v4329_v41 = vsub.f32 %v4201_v12, %v4265_v55  ;;  %v11573_v55 = vld [vmem:[#allocation31_spill] sm:$0xff] }
 0x379   : > { %7988 = vrsqrt.f32 %v4456_v59  ;;  %v9680_v60 = vmul.f32 %v7987_v8, %v4583_v10  ;;  %v9687_v29 = vmul.f32 0.001953125, %v3561_v26  ;;  %v11574_v8 = vld [vmem:[#allocation30_spill] sm:$0xff] }
 0x37a   : > { %3452 = vadd.xlane.f32.xlu0 %v11572_v50  ;;  %v4393_v56 = vmax.f32 %v4329_v41, 0.0  ;;  %v1988_v49 = vpop.xlane.xlu0 %1987 }
 0x37b   : > { %1660 = vadd.xlane.f32.xlu1 %v9087_v19  ;;  %v3402_v48 = vpop.xlane.xlu1 %3401  ;;  %v9685_v44 = vmul.f32 %v9680_v60, %v9578_v52  ;;  %v4266_v19 = vmul.f32 %v9687_v29, %v9687_v29  ;;  %v4584_v52 = vld [vmem:[%s9252_s6 + $0x60] sm:$0xff] }
 0x37c   : > { %v4457_v14 = vadd.f32 1e-05, %v4393_v56  ;;  %v3562_v23 = vadd.f32 %v3402_v48, %v1607_v43 }
 0x37e   : > { %2041 = vadd.xlane.f32.xlu0 %v9080_v38  ;;  %7990 = vrsqrt.f32 %v4457_v14  ;;  %v3783_v12 = vpop.xlane.xlu0 %3782  ;;  %v9695_v41 = vmul.f32 0.001953125, %v3562_v23 }
 0x37f   : > { %3455 = vadd.xlane.f32.xlu1 %v11573_v55  ;;  %v3945_v16 = vadd.f32 %v3783_v12, %v1988_v49  ;;  %v1991_v10 = vpop.xlane.xlu1 %1990  ;;  %v11575_v12 = vld [vmem:[#allocation32_spill] sm:$0xff] }
 0x380   : > { %v4267_v14 = vmul.f32 %v9695_v41, %v9695_v41 }
 0x381   : > { %v4202_v59 = vmul.f32 0.001953125, %v3945_v16  ;;  %v4585_v16 = vld [vmem:[%s9252_s6 + $0x68] sm:$0xff] }
 0x382   : > { %3836 = vadd.xlane.f32.xlu0 %v11574_v8  ;;  %v1610_v26 = vpop.xlane.xlu0 %1609 }
 0x383   : > { %2044 = vadd.xlane.f32.xlu1 %v9094_v42  ;;  %v7989_v38 = vpop.eup %7988  ;;  %v4330_v43 = vsub.f32 %v4202_v59, %v4266_v19  ;;  %v3786_v50 = vpop.xlane.xlu1 %3785 }
 0x384   : > { %v3946_v56 = vadd.f32 %v3786_v50, %v1991_v10  ;;  %v9698_v48 = vmul.f32 %v7989_v38, %v4584_v52  ;;  %v11576_v38 = vld [vmem:[#allocation33_spill] sm:$0xff] }
 0x385   : > { %v4394_v49 = vmax.f32 %v4330_v43, 0.0 }
 0x386   : > { %1663 = vadd.xlane.f32.xlu0 %v9101_v61  ;;  %v4203_v55 = vmul.f32 0.001953125, %v3946_v56  ;;  %v3405_v23 = vpop.xlane.xlu0 %3404  ;;  %v9706_v42 = vmul.f32 %v9698_v48, %v9634_v28 }
 0x387   : > { %3839 = vadd.xlane.f32.xlu1 %v11575_v12  ;;  %v4458_v19 = vadd.f32 1e-05, %v4394_v49  ;;  %v3563_v59 = vadd.f32 %v3405_v23, %v1610_v26  ;;  %v1613_v10 = vpop.xlane.xlu1 %1612  ;;  %v11577_v23 = vld [vmem:[#allocation34_spill] sm:$0xff] }
 0x388   : > { %v7991_v8 = vpop.eup %7990  ;;  %v4331_v52 = vsub.f32 %v4203_v55, %v4267_v14  ;;  %v11578_v14 = vld [vmem:[#allocation36_spill] sm:$0xff] }
 0x389   : > { %7992 = vrsqrt.f32 %v4458_v19  ;;  %v9710_v61 = vmul.f32 %v7991_v8, %v4585_v16  ;;  %v4140_v12 = vmul.f32 0.001953125, %v3563_v59 }
 0x38a   : > { %3458 = vadd.xlane.f32.xlu0 %v11576_v38  ;;  %v4395_v43 = vmax.f32 %v4331_v52, 0.0  ;;  %v1994_v50 = vpop.xlane.xlu0 %1993  ;;  %v11579_v52 = vld [vmem:[#allocation35_spill] sm:$0xff] }
 0x38b   : > { %1666 = vadd.xlane.f32.xlu1 %v9115_v27  ;;  %v3408_v56 = vpop.xlane.xlu1 %3407  ;;  %v9715_v28 = vmul.f32 %v9710_v61, %v9661_v37  ;;  %v4268_v8 = vmul.f32 %v4140_v12, %v4140_v12  ;;  %v4586_v38 = vld [vmem:[%s9252_s6 + $0x70] sm:$0xff]  ;;  %v11580_v37 = vld [vmem:[#allocation37_spill] sm:$0xff] }
 0x38c   : > { %v4459_v49 = vadd.f32 1e-05, %v4395_v43  ;;  %v3564_v26 = vadd.f32 %v3408_v56, %v1613_v10 }
 0x38e   : > { %2047 = vadd.xlane.f32.xlu0 %v11577_v23  ;;  %7994 = vrsqrt.f32 %v4459_v49  ;;  %v3789_v55 = vpop.xlane.xlu0 %3788  ;;  %v4141_v46 = vmul.f32 0.001953125, %v3564_v26 }
 0x38f   : > { %3461 = vadd.xlane.f32.xlu1 %v11578_v14  ;;  %v3947_v16 = vadd.f32 %v3789_v55, %v1994_v50  ;;  %v1997_v19 = vpop.xlane.xlu1 %1996  ;;  %v11581_v50 = vld [vmem:[#allocation40_spill] sm:$0xff] }
 0x390   : > { %v4269_v55 = vmul.f32 %v4141_v46, %v4141_v46 }
 0x391   : > { %v4204_v27 = vmul.f32 0.001953125, %v3947_v16 }
 0x392   : > { %3842 = vadd.xlane.f32.xlu0 %v11579_v52  ;;  %v9722_v43 = vpop.xlane.xlu0 %1615 }
 0x393   : > { %2050 = vadd.xlane.f32.xlu1 %v11580_v37  ;;  %v7993_v59 = vpop.eup %7992  ;;  %v4332_v10 = vsub.f32 %v4204_v27, %v4268_v8  ;;  %v3792_v56 = vpop.xlane.xlu1 %3791  ;;  %v4587_v37 = vld [vmem:[%s9252_s6 + $0x78] sm:$0xff] }
 0x394   : > { %v3948_v49 = vadd.f32 %v3792_v56, %v1997_v19  ;;  %v9724_v23 = vmul.f32 %v7993_v59, %v4586_v38  ;;  %v11583_v38 = vld [vmem:[#allocation39_spill] sm:$0xff] }
 0x395   : > { %v4396_v14 = vmax.f32 %v4332_v10, 0.0 }
 0x396   : > { %1669 = vadd.xlane.f32.xlu0 %v11581_v50  ;;  %v4205_v16 = vmul.f32 0.001953125, %v3948_v49  ;;  %v9728_v52 = vpop.xlane.xlu0 %3410  ;;  %v9732_v26 = vmul.f32 %v9724_v23, %v9687_v29 }
 0x397   : > { %3845 = vadd.xlane.f32.xlu1 %v11582_v7  ;;  %v4460_v17 = vadd.f32 1e-05, %v4396_v14  ;;  %v9735_v8 = vpop.xlane.xlu1 %1618  ;;  %v11584_v14 = vld [vmem:[#allocation41_spill] sm:$0xff] }
 0x398   : > { %v7995_v19 = vpop.eup %7994  ;;  %v4333_v27 = vsub.f32 %v4205_v16, %v4269_v55  ;;  %v4588_v16 = vld [vmem:[%s9252_s6 + $0x80] sm:$0xff] }
 0x399   : > { %7996 = vrsqrt.f32 %v4460_v17  ;;  %v9738_v59 = vmul.f32 %v7995_v19, %v4587_v37  ;;  %v11585_v17 = vld [vmem:[#allocation43_spill] sm:$0xff]  ;;  %v11587_v37 = vld [vmem:[#allocation45_spill] sm:$0xff] }
 0x39a   : > { %3464 = vadd.xlane.f32.xlu0 %v11583_v38  ;;  %v4397_v10 = vmax.f32 %v4333_v27, 0.0  ;;  %v9741_v7 = vpop.xlane.xlu0 %1999 }
 0x39b   : > { %1672 = vadd.xlane.f32.xlu1 %v9148_v2  ;;  %v9743_v56 = vpop.xlane.xlu1 %3413  ;;  %v9747_v29 = vmul.f32 %v9738_v59, %v9695_v41  ;;  %v11586_v2 = vld [vmem:[#allocation42_spill] sm:$0xff] }
 0x39c   : > { %v4461_v49 = vadd.f32 1e-05, %v4397_v10  ;;  %v11589_v10 = vld [vmem:[#allocation47_spill] sm:$0xff] }
 0x39e   : > { %2053 = vadd.xlane.f32.xlu0 %v11584_v14  ;;  %7998 = vrsqrt.f32 %v4461_v49  ;;  %v9751_v50 = vpop.xlane.xlu0 %3794  ;;  %v11590_v49 = vld [vmem:[#allocation44_spill] sm:$0xff] }
 0x39f   : > { %3467 = vadd.xlane.f32.xlu1 %v11585_v17  ;;  %v9753_v55 = vpop.xlane.xlu1 %2002 }
 0x3a2   : > { %3848 = vadd.xlane.f32.xlu0 %v11586_v2  ;;  %v9758_v19 = vpop.xlane.xlu0 %1621  ;;  %v4589_v2 = vld [vmem:[%s9252_s6 + $0x88] sm:$0xff] }
 0x3a3   : > { %2056 = vadd.xlane.f32.xlu1 %v11587_v37  ;;  %11588 = vst [vmem:[#allocation28_spill] sm:$0xff] %v9758_v19  ;;  %v7997_v41 = vpop.eup %7996  ;;  %v9760_v27 = vpop.xlane.xlu1 %3797 }
 0x3a4   : > { %v9762_v38 = vmul.f32 %v7997_v41, %v4588_v16 }
 0x3a6   : > { %1675 = vadd.xlane.f32.xlu0 %v11589_v10  ;;  %v9766_v14 = vpop.xlane.xlu0 %3416  ;;  %v9769_v17 = vmul.f32 %v9762_v38, %v4140_v12  ;;  %v11594_v12 = vld [vmem:[#allocation49_spill] sm:$0xff] }
 0x3a7   : > { %3851 = vadd.xlane.f32.xlu1 %v11590_v49  ;;  %v9772_v34 = vpop.xlane.xlu1 %1624 }
 0x3a8   : > { %11591 = vst [vmem:[#allocation29_spill] sm:$0xff] %v9772_v34  ;;  %v7999_v37 = vpop.eup %7998 }
 0x3a9   : > { %v9775_v19 = vmul.f32 %v7999_v37, %v4589_v2  ;;  %v11599_v37 = vld [vmem:[#allocation52_spill] sm:$0xff] }
 0x3aa   : > { %3470 = vadd.xlane.f32.xlu0 %v11592_v39  ;;  %v9778_v16 = vpop.xlane.xlu0 %2005  ;;  %v11596_v39 = vld [vmem:[#allocation48_spill] sm:$0xff] }
 0x3ab   : > { %1678 = vadd.xlane.f32.xlu1 %v9181_v62  ;;  %v9780_v41 = vpop.xlane.xlu1 %3419  ;;  %v9783_v10 = vmul.f32 %v9775_v19, %v4141_v46  ;;  %v11600_v46 = vld [vmem:[#allocation50_spill] sm:$0xff] }
 0x3ac   : > { %11593 = vst [vmem:[#allocation31_spill] sm:$0xff] %v9780_v41 }
 0x3ae   : > { %2059 = vadd.xlane.f32.xlu0 %v9173_v53  ;;  %v9787_v49 = vpop.xlane.xlu0 %3800 }
 0x3af   : > { %3473 = vadd.xlane.f32.xlu1 %v11594_v12  ;;  %v9789_v34 = vpop.xlane.xlu1 %2008  ;;  %v11603_v12 = vld [vmem:[#allocation51_spill] sm:$0xff] }
 0x3b0   : > { %11595 = vst [vmem:[#allocation30_spill] sm:$0xff] %v9789_v34 }
 0x3b2   : > { %3854 = vadd.xlane.f32.xlu0 %v11596_v39  ;;  %v9793_v62 = vpop.xlane.xlu0 %1627 }
 0x3b3   : > { %2062 = vadd.xlane.f32.xlu1 %v9197_v30  ;;  %11597 = vst [vmem:[#allocation32_spill] sm:$0xff] %v9793_v62  ;;  %v9795_v2 = vpop.xlane.xlu1 %3803  ;;  %v11606_v30 = vld [vmem:[#allocation55_spill] sm:$0xff]  ;;  %v11607_v62 = vld [vmem:[#allocation54_spill] sm:$0xff] }
 0x3b4   : > { %11598 = vst [vmem:[#allocation33_spill] sm:$0xff] %v9795_v2 }
 0x3b6   : > { %1681 = vadd.xlane.f32.xlu0 %v11599_v37  ;;  %v9799_v41 = vpop.xlane.xlu0 %3422 }
 0x3b7   : > { %3857 = vadd.xlane.f32.xlu1 %v11600_v46  ;;  %11601 = vst [vmem:[#allocation34_spill] sm:$0xff] %v9799_v41  ;;  %v9801_v53 = vpop.xlane.xlu1 %1630  ;;  %v11610_v41 = vld [vmem:[#allocation53_spill] sm:$0xff] }
 0x3b8   : > { %11602 = vst [vmem:[#allocation36_spill] sm:$0xff] %v9801_v53  ;;  %v11611_v53 = vld [vmem:[#allocation58_spill] sm:$0xff] }
 0x3ba   : > { %3476 = vadd.xlane.f32.xlu0 %v11603_v12  ;;  %v9805_v34 = vpop.xlane.xlu0 %2011 }
 0x3bb   : > { %1684 = vadd.xlane.f32.xlu1 %v9226_v4  ;;  %11604 = vst [vmem:[#allocation35_spill] sm:$0xff] %v9805_v34  ;;  %v9807_v39 = vpop.xlane.xlu1 %3425  ;;  %v11613_v34 = vld [vmem:[#allocation56_spill] sm:$0xff] }
 0x3bc   : > { %11605 = vst [vmem:[#allocation37_spill] sm:$0xff] %v9807_v39 }
 0x3be   : > { %2065 = vadd.xlane.f32.xlu0 %v11606_v30  ;;  %v9811_v37 = vpop.xlane.xlu0 %3806 }
 0x3bf   : > { %3479 = vadd.xlane.f32.xlu1 %v11607_v62  ;;  %11608 = vst [vmem:[#allocation40_spill] sm:$0xff] %v9811_v37  ;;  %v9813_v46 = vpop.xlane.xlu1 %2014 }
 0x3c0   : > { %11609 = vst [vmem:[#allocation38_spill] sm:$0xff] %v9813_v46 }
 0x3c2   : > { %3860 = vadd.xlane.f32.xlu0 %v11610_v41  ;;  %v9817_v12 = vpop.xlane.xlu0 %1633 }
 0x3c3   : > { %2068 = vadd.xlane.f32.xlu1 %v11611_v53  ;;  %11612 = vst [vmem:[#allocation39_spill] sm:$0xff] %v9817_v12  ;;  %v9819_v4 = vpop.xlane.xlu1 %3809 }
 0x3c6   : > { %v9822_v39 = vpop.xlane.xlu0 %3428 }
 0x3c7   : > { %3863 = vadd.xlane.f32.xlu1 %v11613_v34  ;;  %11614 = vst [vmem:[#allocation41_spill] sm:$0xff] %v9822_v39  ;;  %v9824_v30 = vpop.xlane.xlu1 %1636 }
 0x3ca   : > { %v9826_v2 = vpop.xlane.xlu0 %2017 }
 0x3cb   : > { %11615 = vst [vmem:[#allocation43_spill] sm:$0xff] %v9826_v2  ;;  %v9828_v62 = vpop.xlane.xlu1 %3431  ;;  %v4700_v2 = vld [vmem:[%s9841_s26] sm:$0xff] }
 0x3cc   : > { %11616 = vst [vmem:[#allocation42_spill] sm:$0xff] %v9828_v62 }
 0x3ce   : > { %v9830_v37 = vpop.xlane.xlu0 %3812 }
 0x3cf   : > { %11617 = vst [vmem:[#allocation45_spill] sm:$0xff] %v9830_v37  ;;  %v9832_v46 = vpop.xlane.xlu1 %2020 }
 0x3d0   : > { %11618 = vst [vmem:[#allocation47_spill] sm:$0xff] %v9832_v46 }
 0x3d2   : > { %v9834_v41 = vpop.xlane.xlu0 %1639 }
 0x3d3   : > { %11619 = vst [vmem:[#allocation44_spill] sm:$0xff] %v9834_v41  ;;  %v9843_v34 = vpop.xlane.xlu1 %3815  ;;  %v4828_v41 = vsub.f32 %v4700_v2, %v9295_v31 }
 0x3d4   : > { %11620 = vst [vmem:[#allocation46_spill] sm:$0xff] %v9843_v34 }
 0x3d6   : > { %v9845_v53 = vpop.xlane.xlu0 %3434 }
 0x3d7   : > { %11621 = vst [vmem:[#allocation49_spill] sm:$0xff] %v9845_v53  ;;  %v9848_v39 = vpop.xlane.xlu1 %1642 }
 0x3d8   : > { %11622 = vst [vmem:[#allocation48_spill] sm:$0xff] %v9848_v39  ;;  %5027 = vperm.xlu1 %7963, %v9310_v54   ;;  %5022 = vperm.xlu0 %7962, %v9283_v0  }
 0x3da   : > { %v9853_v37 = vpop.xlane.xlu0 %2023 }
 0x3db   : > { %11623 = vst [vmem:[#allocation52_spill] sm:$0xff] %v9853_v37  ;;  %v9855_v12 = vpop.xlane.xlu1 %3437 }
 0x3dc   : > { %11624 = vst [vmem:[#allocation50_spill] sm:$0xff] %v9855_v12  ;;  %5470 = vperm.xlu1 %7963, %v4828_v41  }
 0x3de   : > { %v9857_v46 = vpop.xlane.xlu0 %3818 }
 0x3df   : > { %11625 = vst [vmem:[#allocation51_spill] sm:$0xff] %v9857_v46  ;;  %v9859_v62 = vpop.xlane.xlu1 %2026 }
 0x3e0   : > { %11626 = vst [vmem:[#allocation55_spill] sm:$0xff] %v9859_v62 }
 0x3e2   : > { %v9861_v34 = vpop.xlane.xlu0 %1645 }
 0x3e3   : > { %11627 = vst [vmem:[#allocation54_spill] sm:$0xff] %v9861_v34  ;;  %v9863_v53 = vpop.xlane.xlu1 %3821  ;;  %v11638_v34 = vld [vmem:[#allocation59_spill] sm:$0xff] }
 0x3e4   : > { %11628 = vst [vmem:[#allocation53_spill] sm:$0xff] %v9863_v53 }
 0x3e7   : > { %v9865_v39 = vpop.xlane.xlu0 %3440  ;;  %v9867_v54 = vpop.xlane.xlu1 %1648 }
 0x3e8   : > { %11629 = vst [vmem:[#allocation58_spill] sm:$0xff] %v9865_v39  ;;  %11630 = vst [vmem:[#allocation56_spill] sm:$0xff] %v9867_v54  ;;  %v11641_v54 = vld [vmem:[#allocation57_spill] sm:$0xff] }
 0x3eb   : > { %v9869_v0 = vpop.xlane.xlu0 %2029  ;;  %v9871_v31 = vpop.xlane.xlu1 %3443 }
 0x3ec   : > { %11631 = vst [vmem:[#allocation125_spill] sm:$0xff] %v9869_v0  ;;  %11632 = vst [vmem:[#allocation126_spill] sm:$0xff] %v9871_v31 }
 0x3ef   : > { %v9873_v2 = vpop.xlane.xlu0 %3824  ;;  %v9875_v37 = vpop.xlane.xlu1 %2032 }
 0x3f0   : > { %11633 = vst [vmem:[#allocation127_spill] sm:$0xff] %v9873_v2  ;;  %11634 = vst [vmem:[#allocation128_spill] sm:$0xff] %v9875_v37  ;;  %v11644_v2 = vld [vmem:[#allocation61_spill] sm:$0xff] }
 0x3f3   : > { %v9877_v41 = vpop.xlane.xlu0 %1651 }
 0x3f4   : > { %11635 = vst [vmem:[#allocation129_spill] sm:$0xff] %v9877_v41  ;;  %v9879_v46 = vpop.xlane.xlu1 %3827 }
 0x3f5   : > { %11636 = vst [vmem:[#allocation130_spill] sm:$0xff] %v9879_v46  ;;  %v11646_v46 = vld [vmem:[#allocation63_spill] sm:$0xff] }
 0x3f7   : > { %v9881_v62 = vpop.xlane.xlu0 %3446  ;;  %1687 = vadd.xlane.f32.xlu0 %v11638_v34  ;;  %v11648_v34 = vld [vmem:[#allocation60_spill] sm:$0xff] }
 0x3f8   : > { %11637 = vst [vmem:[#allocation131_spill] sm:$0xff] %v9881_v62  ;;  %v9884_v53 = vpop.xlane.xlu1 %1654 }
 0x3f9   : > { %11639 = vst [vmem:[#allocation59_spill] sm:$0xff] %v9884_v53 }
 0x3fb   : > { %v9886_v39 = vpop.xlane.xlu0 %2035  ;;  %3482 = vadd.xlane.f32.xlu0 %v11641_v54 }
 0x3fc   : > { %11640 = vst [vmem:[#allocation132_spill] sm:$0xff] %v9886_v39  ;;  %v9889_v0 = vpop.xlane.xlu1 %3449  ;;  %v11650_v39 = vld [vmem:[#allocation62_spill] sm:$0xff] }
 0x3fd   : > { %11642 = vst [vmem:[#allocation57_spill] sm:$0xff] %v9889_v0 }
 0x3ff   : > { %v9891_v31 = vpop.xlane.xlu0 %3830  ;;  %2071 = vadd.xlane.f32.xlu0 %v11644_v2 }
 0x400   : > { %11643 = vst [vmem:[#allocation133_spill] sm:$0xff] %v9891_v31  ;;  %v9894_v41 = vpop.xlane.xlu1 %2038  ;;  %1690 = vadd.xlane.f32.xlu1 %v11646_v46  ;;  %v11653_v31 = vld [vmem:[#allocation65_spill] sm:$0xff] }
 0x401   : > { %11645 = vst [vmem:[#allocation61_spill] sm:$0xff] %v9894_v41  ;;  %v11656_v41 = vld [vmem:[#allocation64_spill] sm:$0xff] }
 0x403   : > { %v9897_v62 = vpop.xlane.xlu0 %1657  ;;  %3866 = vadd.xlane.f32.xlu0 %v11648_v34 }
 0x404   : > { %11647 = vst [vmem:[#allocation63_spill] sm:$0xff] %v9897_v62  ;;  %v9900_v53 = vpop.xlane.xlu1 %3833  ;;  %3485 = vadd.xlane.f32.xlu1 %v11650_v39  ;;  %v4701_v39 = vld [vmem:[%s9841_s26 + $0x8] sm:$0xff] }
 0x405   : > { %11649 = vst [vmem:[#allocation60_spill] sm:$0xff] %v9900_v53 }
 0x407   : > { %v9903_v54 = vpop.xlane.xlu0 %3452 }
 0x408   : > { %11651 = vst [vmem:[#allocation62_spill] sm:$0xff] %v9903_v54  ;;  %v9905_v0 = vpop.xlane.xlu1 %1660  ;;  %2074 = vadd.xlane.f32.xlu1 %v11653_v31  ;;  %v4829_v54 = vsub.f32 %v4701_v39, %v9323_v5 }
 0x409   : > { %11652 = vst [vmem:[#allocation134_spill] sm:$0xff] %v9905_v0 }
 0x40b   : > { %v9908_v2 = vpop.xlane.xlu0 %2041 }
 0x40c   : > { %11654 = vst [vmem:[#allocation65_spill] sm:$0xff] %v9908_v2  ;;  %v9910_v37 = vpop.xlane.xlu1 %3455  ;;  %3869 = vadd.xlane.f32.xlu1 %v11656_v41 }
 0x40d   : > { %11655 = vst [vmem:[#allocation135_spill] sm:$0xff] %v9910_v37 }
 0x40f   : > { %v9913_v46 = vpop.xlane.xlu0 %3836 }
 0x410   : > { %11657 = vst [vmem:[#allocation64_spill] sm:$0xff] %v9913_v46  ;;  %v9915_v34 = vpop.xlane.xlu1 %2044 }
 0x411   : > { %11658 = vst [vmem:[#allocation136_spill] sm:$0xff] %v9915_v34 }
 0x413   : > { %v9917_v62 = vpop.xlane.xlu0 %1663 }
 0x414   : > { %11659 = vst [vmem:[#allocation137_spill] sm:$0xff] %v9917_v62  ;;  %v9920_v53 = vpop.xlane.xlu1 %3839  ;;  %v4702_v62 = vld [vmem:[%s9841_s26 + $0x10] sm:$0xff] }
 0x415   : > { %11660 = vst [vmem:[#allocation138_spill] sm:$0xff] %v9920_v53  ;;  %v4830_v5 = vsub.f32 %v4702_v62, %v9373_v1 }
 0x417   : > { %v9923_v0 = vpop.xlane.xlu0 %3458 }
 0x418   : > { %11661 = vst [vmem:[#allocation139_spill] sm:$0xff] %v9923_v0  ;;  %v9925_v31 = vpop.xlane.xlu1 %1666 }
 0x419   : > { %11662 = vst [vmem:[#allocation140_spill] sm:$0xff] %v9925_v31  ;;  %5475 = vperm.xlu0 %7962, %v4829_v54  }
 0x41b   : > { %v9927_v2 = vpop.xlane.xlu0 %2047 }
 0x41c   : > { %11663 = vst [vmem:[#allocation141_spill] sm:$0xff] %v9927_v2  ;;  %v9929_v37 = vpop.xlane.xlu1 %3461 }
 0x41d   : > { %11664 = vst [vmem:[#allocation142_spill] sm:$0xff] %v9929_v37  ;;  %5032 = vperm.xlu1 %7963, %v9361_v11  }
 0x41f   : > { %v9932_v41 = vpop.xlane.xlu0 %3842 }
 0x420   : > { %11665 = vst [vmem:[#allocation143_spill] sm:$0xff] %v9932_v41  ;;  %v9934_v46 = vpop.xlane.xlu1 %2050 }
 0x421   : > { %11666 = vst [vmem:[#allocation144_spill] sm:$0xff] %v9934_v46  ;;  %5037 = vperm.xlu1 %7963, %v9390_v63  }
 0x423   : > { %v9938_v53 = vpop.xlane.xlu0 %1669 }
 0x424   : > { %11667 = vst [vmem:[#allocation145_spill] sm:$0xff] %v9938_v53  ;;  %v9941_v39 = vpop.xlane.xlu1 %3845 }
 0x425   : > { %11668 = vst [vmem:[#allocation146_spill] sm:$0xff] %v9941_v39  ;;  %5480 = vperm.xlu1 %7963, %v4830_v5   ;;  %v11679_v5 = vld [vmem:[#allocation67_spill] sm:$0xff] }
 0x427   : > { %v9943_v54 = vpop.xlane.xlu0 %3464 }
 0x428   : > { %11669 = vst [vmem:[#allocation147_spill] sm:$0xff] %v9943_v54  ;;  %v9945_v2 = vpop.xlane.xlu1 %1672 }
 0x429   : > { %11670 = vst [vmem:[#allocation148_spill] sm:$0xff] %v9945_v2 }
 0x42b   : > { %v9947_v0 = vpop.xlane.xlu0 %2053 }
 0x42c   : > { %11671 = vst [vmem:[#allocation149_spill] sm:$0xff] %v9947_v0  ;;  %v9949_v11 = vpop.xlane.xlu1 %3467  ;;  %v11682_v0 = vld [vmem:[#allocation66_spill] sm:$0xff] }
 0x42d   : > { %11672 = vst [vmem:[#allocation150_spill] sm:$0xff] %v9949_v11 }
 0x42f   : > { %v9951_v41 = vpop.xlane.xlu0 %3848 }
 0x430   : > { %11673 = vst [vmem:[#allocation151_spill] sm:$0xff] %v9951_v41  ;;  %v9953_v46 = vpop.xlane.xlu1 %2056 }
 0x431   : > { %11674 = vst [vmem:[#allocation152_spill] sm:$0xff] %v9953_v46 }
 0x433   : > { %v9955_v63 = vpop.xlane.xlu0 %1675 }
 0x434   : > { %11675 = vst [vmem:[#allocation153_spill] sm:$0xff] %v9955_v63  ;;  %v9957_v53 = vpop.xlane.xlu1 %3851 }
 0x435   : > { %11676 = vst [vmem:[#allocation154_spill] sm:$0xff] %v9957_v53  ;;  %v4893_v53 = vld [vmem:[%s8627_s21 + $0x8] sm:$0xff] }
 0x437   : > { %v9959_v1 = vpop.xlane.xlu0 %3470 }
 0x438   : > { %11677 = vst [vmem:[#allocation155_spill] sm:$0xff] %v9959_v1  ;;  %v9961_v62 = vpop.xlane.xlu1 %1678  ;;  %1693 = vadd.xlane.f32.xlu0 %v11679_v5 }
 0x439   : > { %11678 = vst [vmem:[#allocation156_spill] sm:$0xff] %v9961_v62  ;;  %v4892_v62 = vld [vmem:[%s8627_s21] sm:$0xff] }
 0x43b   : > { %v9964_v54 = vpop.xlane.xlu0 %2059 }
 0x43c   : > { %11680 = vst [vmem:[#allocation67_spill] sm:$0xff] %v9964_v54  ;;  %v9966_v2 = vpop.xlane.xlu1 %3473  ;;  %3488 = vadd.xlane.f32.xlu0 %v11682_v0 }
 0x43d   : > { %11681 = vst [vmem:[#allocation157_spill] sm:$0xff] %v9966_v2 }
 0x43f   : > { %v9969_v11 = vpop.xlane.xlu0 %3854 }
 0x440   : > { %11683 = vst [vmem:[#allocation66_spill] sm:$0xff] %v9969_v11  ;;  %v9971_v41 = vpop.xlane.xlu1 %2062  ;;  %2077 = vadd.xlane.f32.xlu0 %v9301_v24  ;;  %v11690_v11 = vld [vmem:[#allocation68_spill] sm:$0xff] }
 0x441   : > { %11684 = vst [vmem:[#allocation158_spill] sm:$0xff] %v9971_v41  ;;  %v11696_v41 = vld [vmem:[#allocation69_spill] sm:$0xff] }
 0x443   : > { %v9974_v63 = vpop.xlane.xlu0 %1681 }
 0x444   : > { %11685 = vst [vmem:[#allocation159_spill] sm:$0xff] %v9974_v63  ;;  %v9976_v1 = vpop.xlane.xlu1 %3857  ;;  %3872 = vadd.xlane.f32.xlu0 %v9297_v58 }
 0x445   : > { %11686 = vst [vmem:[#allocation160_spill] sm:$0xff] %v9976_v1  ;;  %v11693_v1 = vld [vmem:[#allocation70_spill] sm:$0xff] }
 0x447   : > { %v9979_v5 = vpop.xlane.xlu0 %3476 }
 0x448   : > { %11687 = vst [vmem:[#allocation161_spill] sm:$0xff] %v9979_v5  ;;  %v9981_v54 = vpop.xlane.xlu1 %1684 }
 0x449   : > { %11688 = vst [vmem:[#allocation162_spill] sm:$0xff] %v9981_v54  ;;  %1696 = vadd.xlane.f32.xlu1 %v9306_v21  ;;  %v4703_v54 = vld [vmem:[%s9841_s26 + $0x18] sm:$0xff] }
 0x44b   : > { %v9987_v24 = vpop.xlane.xlu0 %2065 }
 0x44c   : > { %v9984_v0 = vpop.xlane.xlu1 %3479  ;;  %11691 = vst [vmem:[#allocation68_spill] sm:$0xff] %v9987_v24  ;;  %v7110_v24 = vld [vmem:[%s8627_s21 + $0x408] sm:$0xff] }
 0x44d   : > { %11689 = vst [vmem:[#allocation163_spill] sm:$0xff] %v9984_v0  ;;  %3491 = vadd.xlane.f32.xlu1 %v11690_v11  ;;  %v4831_v0 = vsub.f32 %v4703_v54, %v9408_v57  ;;  %v7109_v11 = vld [vmem:[%s8627_s21 + $0x400] sm:$0xff] }
 0x44f   : > { %v9992_v58 = vpop.xlane.xlu0 %3860 }
 0x450   : > { %v9989_v63 = vpop.xlane.xlu1 %2068  ;;  %11694 = vst [vmem:[#allocation70_spill] sm:$0xff] %v9992_v58 }
 0x451   : > { %11692 = vst [vmem:[#allocation164_spill] sm:$0xff] %v9989_v63  ;;  %2080 = vadd.xlane.f32.xlu1 %v11693_v1 }
 0x454   : > { %v9994_v5 = vpop.xlane.xlu1 %3863 }
 0x455   : > { %11695 = vst [vmem:[#allocation165_spill] sm:$0xff] %v9994_v5  ;;  %3875 = vadd.xlane.f32.xlu1 %v11696_v41 }
 0x457   : > { %v5023_v2 = vpop.permute.xlu0 %5022 }
 0x458   : > { %v5028_v21 = vpop.permute.xlu1 %5027  ;;  %v5340_v1 = vmul.f32 %v5023_v2, %v4892_v62  ;;  %v5341_v58 = vmul.f32 %v5023_v2, %v4893_v53  ;;  %v6300_v63 = vmul.f32 %v7109_v11, %v5023_v2  ;;  %v6301_v5 = vmul.f32 %v7110_v24, %v5023_v2  ;;  %v4704_v53 = vld [vmem:[%s9841_s26 + $0x20] sm:$0xff]  ;;  %v4895_v24 = vld [vmem:[%s8627_s21 + $0x18] sm:$0xff]  ;;  %v11705_v11 = vld [vmem:[#allocation75_spill] sm:$0xff] }
 0x459   : > { %v4832_v2 = vsub.f32 %v4704_v53, %v9451_v22 }
 0x45a   : > { %5485 = vperm.xlu0 %7962, %v4831_v0  }
 0x45c   : > { %v5471_v41 = vpop.permute.xlu1 %5470 }
 0x45d   : > { %v5788_v46 = vadd.f32 %v5471_v41, %v5340_v1  ;;  %v5789_v39 = vadd.f32 %v5471_v41, %v5341_v58  ;;  %v6428_v37 = vadd.f32 %v6300_v63, %v5471_v41  ;;  %v6429_v31 = vadd.f32 %v6301_v5, %v5471_v41  ;;  %v11697_v63 = vld [vmem:[#allocation72_spill] sm:$0xff]  ;;  %v4894_v5 = vld [vmem:[%s8627_s21 + $0x10] sm:$0xff]  ;;  %v4705_v1 = vld [vmem:[%s9841_s26 + $0x28] sm:$0xff] }
 0x45e   : > { %v7111_v58 = vld [vmem:[%s8627_s21 + $0x410] sm:$0xff]  ;;  %v7112_v41 = vld [vmem:[%s8627_s21 + $0x418] sm:$0xff] }
 0x45f   : > { %v5916_v57 = vmax.f32 %v5788_v46, 0.0  ;;  %v5917_v54 = vmax.f32 %v5789_v39, 0.0  ;;  %v6556_v34 = vmax.f32 %v6428_v37, 0.0  ;;  %v6557_v12 = vmax.f32 %v6429_v31, 0.0  ;;  %v11698_v46 = vld [vmem:[#allocation71_spill] sm:$0xff]  ;;  %v11699_v37 = vld [vmem:[#allocation74_spill] sm:$0xff] }
 0x460   : > { %v11703_v39 = vld [vmem:[#allocation76_spill] sm:$0xff]  ;;  %v6302_v53 = vmul.f32 %v7111_v58, %v5028_v21 }
 0x461   : > { %6044 = vst [vmem:[%s8627_s21] sm:$0xff] %v5916_v57  ;;  %6045 = vst [vmem:[%s8627_s21 + $0x8] sm:$0xff] %v5917_v54  ;;  %v5342_v57 = vmul.f32 %v5028_v21, %v4894_v5  ;;  %v5343_v54 = vmul.f32 %v5028_v21, %v4895_v24 }
 0x462   : > { %7237 = vst [vmem:[%s8627_s21 + $0x400] sm:$0xff] %v6556_v34  ;;  %7238 = vst [vmem:[%s8627_s21 + $0x408] sm:$0xff] %v6557_v12 }
 0x466   : > { %5042 = vperm.xlu1 %7963, %v9439_v32   ;;  %v11700_v32 = vld [vmem:[#allocation73_spill] sm:$0xff] }
 0x46a   : > { %5047 = vperm.xlu1 %7963, %v9468_v40  }
 0x46e   : > { %5490 = vperm.xlu1 %7963, %v4832_v2   ;;  %v6303_v2 = vmul.f32 %v7112_v41, %v5028_v21 }
 0x479   : > { %1699 = vadd.xlane.f32.xlu0 %v11697_v63 }
 0x47d   : > { %3494 = vadd.xlane.f32.xlu0 %v11698_v46 }
 0x481   : > { %2083 = vadd.xlane.f32.xlu0 %v11699_v37 }
 0x484   : > { %v10014_v12 = vpop.xlane.xlu0 %1687 }
 0x485   : > { %3878 = vadd.xlane.f32.xlu0 %v11700_v32 }
 0x488   : > { %v10017_v34 = vpop.xlane.xlu0 %3482 }
 0x489   : > { %11701 = vst [vmem:[#allocation69_spill] sm:$0xff] %v10017_v34 }
 0x48c   : > { %v10021_v31 = vpop.xlane.xlu0 %2071 }
 0x48d   : > { %v10019_v40 = vpop.xlane.xlu1 %1690  ;;  %11702 = vst [vmem:[#allocation72_spill] sm:$0xff] %v10021_v31  ;;  %v11706_v31 = vld [vmem:[#allocation78_spill] sm:$0xff] }
 0x490   : > { %v10026_v62 = vpop.xlane.xlu0 %3866 }
 0x491   : > { %v10023_v22 = vpop.xlane.xlu1 %3485  ;;  %11704 = vst [vmem:[#allocation71_spill] sm:$0xff] %v10026_v62  ;;  %v4833_v62 = vsub.f32 %v4705_v1, %v9486_v6  ;;  %v4896_v6 = vld [vmem:[%s8627_s21 + $0x20] sm:$0xff]  ;;  %v4897_v1 = vld [vmem:[%s8627_s21 + $0x28] sm:$0xff] }
 0x492   : > { %1702 = vadd.xlane.f32.xlu1 %v11703_v39 }
 0x495   : > { %v10029_v0 = vpop.xlane.xlu1 %2074 }
 0x496   : > { %3497 = vadd.xlane.f32.xlu1 %v11705_v11 }
 0x498   : > { %v5476_v63 = vpop.permute.xlu0 %5475 }
 0x499   : > { %v5790_v46 = vadd.f32 %v5476_v63, %v5342_v57  ;;  %v5791_v37 = vadd.f32 %v5476_v63, %v5343_v54  ;;  %v6430_v32 = vadd.f32 %v6302_v53, %v5476_v63  ;;  %v10036_v39 = vpop.xlane.xlu1 %3869  ;;  %v6431_v11 = vadd.f32 %v6303_v2, %v5476_v63  ;;  %v11707_v57 = vld [vmem:[#allocation77_spill] sm:$0xff] }
 0x49a   : > { %2086 = vadd.xlane.f32.xlu1 %v11706_v31  ;;  %v7113_v53 = vld [vmem:[%s8627_s21 + $0x420] sm:$0xff]  ;;  %v7114_v31 = vld [vmem:[%s8627_s21 + $0x428] sm:$0xff] }
 0x49b   : > { %v5918_v5 = vmax.f32 %v5790_v46, 0.0  ;;  %v5919_v24 = vmax.f32 %v5791_v37, 0.0  ;;  %v6558_v21 = vmax.f32 %v6430_v32, 0.0  ;;  %5495 = vperm.xlu0 %7962, %v4833_v62   ;;  %v6559_v58 = vmax.f32 %v6431_v11, 0.0 }
 0x49d   : > { %6046 = vst [vmem:[%s8627_s21 + $0x10] sm:$0xff] %v5918_v5  ;;  %6047 = vst [vmem:[%s8627_s21 + $0x18] sm:$0xff] %v5919_v24  ;;  %v5033_v41 = vpop.permute.xlu1 %5032 }
 0x49e   : > { %7239 = vst [vmem:[%s8627_s21 + $0x410] sm:$0xff] %v6558_v21  ;;  %7240 = vst [vmem:[%s8627_s21 + $0x418] sm:$0xff] %v6559_v58  ;;  %3881 = vadd.xlane.f32.xlu1 %v11707_v57  ;;  %v5344_v2 = vmul.f32 %v5033_v41, %v4896_v6  ;;  %v5345_v63 = vmul.f32 %v5033_v41, %v4897_v1  ;;  %v6304_v62 = vmul.f32 %v7113_v53, %v5033_v41  ;;  %v4706_v6 = vld [vmem:[%s9841_s26 + $0x30] sm:$0xff]  ;;  %v11708_v1 = vld [vmem:[#allocation80_spill] sm:$0xff] }
 0x49f   : > { %v6305_v46 = vmul.f32 %v7114_v31, %v5033_v41  ;;  %v4834_v41 = vsub.f32 %v4706_v6, %v9529_v3  ;;  %v11709_v53 = vld [vmem:[#allocation79_spill] sm:$0xff]  ;;  %v11710_v31 = vld [vmem:[#allocation81_spill] sm:$0xff]  ;;  %v4899_v3 = vld [vmem:[%s8627_s21 + $0x38] sm:$0xff] }
 0x4a1   : > { %v5038_v54 = vpop.permute.xlu1 %5037 }
 0x4a5   : > { %v5481_v37 = vpop.permute.xlu1 %5480 }
 0x4a6   : > { %v5792_v32 = vadd.f32 %v5481_v37, %v5344_v2  ;;  %v5793_v11 = vadd.f32 %v5481_v37, %v5345_v63  ;;  %v6432_v5 = vadd.f32 %v6304_v62, %v5481_v37  ;;  %v6433_v24 = vadd.f32 %v6305_v46, %v5481_v37  ;;  %v7115_v37 = vld [vmem:[%s8627_s21 + $0x430] sm:$0xff] }
 0x4a8   : > { %v5920_v21 = vmax.f32 %v5792_v32, 0.0  ;;  %v5921_v58 = vmax.f32 %v5793_v11, 0.0  ;;  %v6560_v57 = vmax.f32 %v6432_v5, 0.0  ;;  %v6561_v34 = vmax.f32 %v6433_v24, 0.0  ;;  %v4707_v32 = vld [vmem:[%s9841_s26 + $0x38] sm:$0xff] }
 0x4a9   : > { %v7116_v11 = vld [vmem:[%s8627_s21 + $0x438] sm:$0xff]  ;;  %v5347_v24 = vmul.f32 %v5038_v54, %v4899_v3 }
 0x4aa   : > { %6048 = vst [vmem:[%s8627_s21 + $0x20] sm:$0xff] %v5920_v21  ;;  %6049 = vst [vmem:[%s8627_s21 + $0x28] sm:$0xff] %v5921_v58  ;;  %v6306_v21 = vmul.f32 %v7115_v37, %v5038_v54  ;;  %v6307_v58 = vmul.f32 %v7116_v11, %v5038_v54  ;;  %v11717_v11 = vld [vmem:[#allocation82_spill] sm:$0xff] }
 0x4ab   : > { %7241 = vst [vmem:[%s8627_s21 + $0x420] sm:$0xff] %v6560_v57  ;;  %7242 = vst [vmem:[%s8627_s21 + $0x428] sm:$0xff] %v6561_v34  ;;  %v11712_v34 = vld [vmem:[#allocation13_spill] sm:$0xff] }
 0x4af   : > { %5052 = vperm.xlu1 %7963, %v9517_v13  }
 0x4b3   : > { %5057 = vperm.xlu1 %7963, %v9546_v36   ;;  %v4898_v36 = vld [vmem:[%s8627_s21 + $0x30] sm:$0xff] }
 0x4b4   : > { %v5346_v5 = vmul.f32 %v5038_v54, %v4898_v36 }
 0x4b7   : > { %5500 = vperm.xlu1 %7963, %v4834_v41  }
 0x4ba   : > { %1705 = vadd.xlane.f32.xlu0 %v11708_v1 }
 0x4be   : > { %3500 = vadd.xlane.f32.xlu0 %v11709_v53 }
 0x4c2   : > { %2089 = vadd.xlane.f32.xlu0 %v11710_v31  ;;  %v4835_v31 = vsub.f32 %v4707_v32, %v9562_v35 }
 0x4c5   : > { %v10060_v2 = vpop.xlane.xlu0 %1693 }
 0x4c6   : > { %11711 = vst [vmem:[#allocation74_spill] sm:$0xff] %v10060_v2  ;;  %3884 = vadd.xlane.f32.xlu0 %v11712_v34 }
 0x4c9   : > { %v10063_v13 = vpop.xlane.xlu0 %3488 }
 0x4ca   : > { %11713 = vst [vmem:[#allocation73_spill] sm:$0xff] %v10063_v13 }
 0x4cd   : > { %v10065_v63 = vpop.xlane.xlu0 %2077 }
 0x4ce   : > { %11714 = vst [vmem:[#allocation76_spill] sm:$0xff] %v10065_v63 }
 0x4d1   : > { %v10067_v62 = vpop.xlane.xlu0 %3872 }
 0x4d2   : > { %11715 = vst [vmem:[#allocation75_spill] sm:$0xff] %v10067_v62  ;;  %v11716_v62 = vld [vmem:[#allocation83_spill] sm:$0xff] }
 0x4d6   : > { %v10070_v46 = vpop.xlane.xlu1 %1696 }
 0x4d9   : > { %v5486_v57 = vpop.permute.xlu0 %5485 }
 0x4da   : > { %v5794_v6 = vadd.f32 %v5486_v57, %v5346_v5  ;;  %v5795_v41 = vadd.f32 %v5486_v57, %v5347_v24  ;;  %v6434_v1 = vadd.f32 %v6306_v21, %v5486_v57  ;;  %v10076_v53 = vpop.xlane.xlu1 %3491  ;;  %v6435_v34 = vadd.f32 %v6307_v58, %v5486_v57  ;;  %v11719_v5 = vld [vmem:[#allocation84_spill] sm:$0xff]  ;;  %v4900_v21 = vld [vmem:[%s8627_s21 + $0x40] sm:$0xff]  ;;  %v4901_v58 = vld [vmem:[%s8627_s21 + $0x48] sm:$0xff] }
 0x4db   : > { %1708 = vadd.xlane.f32.xlu1 %v11716_v62  ;;  %v11718_v62 = vld [vmem:[#allocation85_spill] sm:$0xff] }
 0x4dc   : > { %v5922_v63 = vmax.f32 %v5794_v6, 0.0  ;;  %v5923_v36 = vmax.f32 %v5795_v41, 0.0  ;;  %v6562_v3 = vmax.f32 %v6434_v1, 0.0  ;;  %5505 = vperm.xlu0 %7962, %v4835_v31   ;;  %v6563_v54 = vmax.f32 %v6435_v34, 0.0  ;;  %v7117_v57 = vld [vmem:[%s8627_s21 + $0x440] sm:$0xff] }
 0x4de   : > { %6050 = vst [vmem:[%s8627_s21 + $0x30] sm:$0xff] %v5922_v63  ;;  %6051 = vst [vmem:[%s8627_s21 + $0x38] sm:$0xff] %v5923_v36  ;;  %v10083_v37 = vpop.xlane.xlu1 %2080  ;;  %v7118_v63 = vld [vmem:[%s8627_s21 + $0x448] sm:$0xff] }
 0x4df   : > { %7243 = vst [vmem:[%s8627_s21 + $0x430] sm:$0xff] %v6562_v3  ;;  %7244 = vst [vmem:[%s8627_s21 + $0x438] sm:$0xff] %v6563_v54  ;;  %3503 = vadd.xlane.f32.xlu1 %v11717_v11 }
 0x4e2   : > { %v10087_v35 = vpop.xlane.xlu1 %3875 }
 0x4e3   : > { %2092 = vadd.xlane.f32.xlu1 %v11718_v62 }
 0x4e6   : > { %v5043_v32 = vpop.permute.xlu1 %5042 }
 0x4e7   : > { %3887 = vadd.xlane.f32.xlu1 %v11719_v5  ;;  %v5348_v6 = vmul.f32 %v5043_v32, %v4900_v21  ;;  %v5349_v41 = vmul.f32 %v5043_v32, %v4901_v58  ;;  %v6308_v1 = vmul.f32 %v7117_v57, %v5043_v32  ;;  %v6309_v31 = vmul.f32 %v7118_v63, %v5043_v32  ;;  %v4708_v21 = vld [vmem:[%s9841_s26 + $0x40] sm:$0xff]  ;;  %v11720_v58 = vld [vmem:[#allocation87_spill] sm:$0xff]  ;;  %v11721_v57 = vld [vmem:[#allocation86_spill] sm:$0xff] }
 0x4e8   : > { %v4836_v32 = vsub.f32 %v4708_v21, %v9607_v51  ;;  %v11722_v63 = vld [vmem:[#allocation88_spill] sm:$0xff] }
 0x4e9   : > { %v4903_v51 = vld [vmem:[%s8627_s21 + $0x58] sm:$0xff] }
 0x4ea   : > { %v5048_v24 = vpop.permute.xlu1 %5047 }
 0x4ee   : > { %v5491_v34 = vpop.permute.xlu1 %5490 }
 0x4ef   : > { %v5796_v36 = vadd.f32 %v5491_v34, %v5348_v6  ;;  %v5797_v3 = vadd.f32 %v5491_v34, %v5349_v41  ;;  %v6436_v54 = vadd.f32 %v6308_v1, %v5491_v34  ;;  %v6437_v11 = vadd.f32 %v6309_v31, %v5491_v34  ;;  %v11724_v41 = vld [vmem:[#allocation14_spill] sm:$0xff]  ;;  %v7119_v31 = vld [vmem:[%s8627_s21 + $0x450] sm:$0xff]  ;;  %v7120_v34 = vld [vmem:[%s8627_s21 + $0x458] sm:$0xff] }
 0x4f1   : > { %v5924_v62 = vmax.f32 %v5796_v36, 0.0  ;;  %v5925_v5 = vmax.f32 %v5797_v3, 0.0  ;;  %v6564_v13 = vmax.f32 %v6436_v54, 0.0  ;;  %v6565_v2 = vmax.f32 %v6437_v11, 0.0 }
 0x4f2   : > { %v5351_v3 = vmul.f32 %v5048_v24, %v4903_v51  ;;  %v6310_v54 = vmul.f32 %v7119_v31, %v5048_v24  ;;  %v6311_v11 = vmul.f32 %v7120_v34, %v5048_v24  ;;  %v11728_v51 = vld [vmem:[#allocation90_spill] sm:$0xff]  ;;  %v11729_v34 = vld [vmem:[#allocation89_spill] sm:$0xff] }
 0x4f3   : > { %6052 = vst [vmem:[%s8627_s21 + $0x40] sm:$0xff] %v5924_v62  ;;  %6053 = vst [vmem:[%s8627_s21 + $0x48] sm:$0xff] %v5925_v5 }
 0x4f4   : > { %7245 = vst [vmem:[%s8627_s21 + $0x440] sm:$0xff] %v6564_v13  ;;  %7246 = vst [vmem:[%s8627_s21 + $0x448] sm:$0xff] %v6565_v2 }
 0x4f8   : > { %5062 = vperm.xlu1 %7963, %v9595_v45   ;;  %v4902_v45 = vld [vmem:[%s8627_s21 + $0x50] sm:$0xff] }
 0x4f9   : > { %v5350_v36 = vmul.f32 %v5048_v24, %v4902_v45 }
 0x4fb   : > { %1711 = vadd.xlane.f32.xlu0 %v11720_v58 }
 0x4fc   : > { %5510 = vperm.xlu1 %7963, %v4836_v32  }
 0x4ff   : > { %3506 = vadd.xlane.f32.xlu0 %v11721_v57  ;;  %v4709_v57 = vld [vmem:[%s9841_s26 + $0x48] sm:$0xff] }
 0x500   : > { %v4837_v45 = vsub.f32 %v4709_v57, %v9642_v33  ;;  %v4905_v33 = vld [vmem:[%s8627_s21 + $0x68] sm:$0xff] }
 0x503   : > { %2095 = vadd.xlane.f32.xlu0 %v11722_v63 }
 0x506   : > { %v10105_v6 = vpop.xlane.xlu0 %1699 }
 0x507   : > { %11723 = vst [vmem:[#allocation78_spill] sm:$0xff] %v10105_v6  ;;  %3890 = vadd.xlane.f32.xlu0 %v11724_v41 }
 0x50a   : > { %v10108_v13 = vpop.xlane.xlu0 %3494 }
 0x50b   : > { %11725 = vst [vmem:[#allocation77_spill] sm:$0xff] %v10108_v13 }
 0x50e   : > { %v10110_v2 = vpop.xlane.xlu0 %2083 }
 0x50f   : > { %11726 = vst [vmem:[#allocation80_spill] sm:$0xff] %v10110_v2 }
 0x512   : > { %v10112_v1 = vpop.xlane.xlu0 %3878 }
 0x513   : > { %11727 = vst [vmem:[#allocation79_spill] sm:$0xff] %v10112_v1 }
 0x51a   : > { %v5496_v62 = vpop.permute.xlu0 %5495 }
 0x51b   : > { %v5798_v5 = vadd.f32 %v5496_v62, %v5350_v36  ;;  %v5799_v21 = vadd.f32 %v5496_v62, %v5351_v3  ;;  %v6438_v32 = vadd.f32 %v6310_v54, %v5496_v62  ;;  %v6439_v58 = vadd.f32 %v6311_v11, %v5496_v62  ;;  %v11730_v36 = vld [vmem:[#allocation91_spill] sm:$0xff]  ;;  %v4904_v62 = vld [vmem:[%s8627_s21 + $0x60] sm:$0xff] }
 0x51d   : > { %v5926_v63 = vmax.f32 %v5798_v5, 0.0  ;;  %v5927_v41 = vmax.f32 %v5799_v21, 0.0  ;;  %v6566_v1 = vmax.f32 %v6438_v32, 0.0  ;;  %5067 = vperm.xlu0 %7962, %v9624_v47   ;;  %v6567_v2 = vmax.f32 %v6439_v58, 0.0  ;;  %v7122_v5 = vld [vmem:[%s8627_s21 + $0x468] sm:$0xff] }
 0x51f   : > { %6054 = vst [vmem:[%s8627_s21 + $0x50] sm:$0xff] %v5926_v63  ;;  %6055 = vst [vmem:[%s8627_s21 + $0x58] sm:$0xff] %v5927_v41  ;;  %v10123_v24 = vpop.xlane.xlu1 %1702 }
 0x520   : > { %7247 = vst [vmem:[%s8627_s21 + $0x450] sm:$0xff] %v6566_v1  ;;  %7248 = vst [vmem:[%s8627_s21 + $0x458] sm:$0xff] %v6567_v2  ;;  %1714 = vadd.xlane.f32.xlu1 %v11728_v51  ;;  %v11731_v1 = vld [vmem:[#allocation15_spill] sm:$0xff]  ;;  %v7121_v2 = vld [vmem:[%s8627_s21 + $0x460] sm:$0xff] }
 0x521   : > { %5515 = vperm.xlu0 %7962, %v4837_v45  }
 0x523   : > { %v10128_v31 = vpop.xlane.xlu1 %3497 }
 0x524   : > { %3509 = vadd.xlane.f32.xlu1 %v11729_v34 }
 0x527   : > { %v10131_v47 = vpop.xlane.xlu1 %2086 }
 0x528   : > { %2098 = vadd.xlane.f32.xlu1 %v11730_v36 }
 0x52b   : > { %v10134_v3 = vpop.xlane.xlu1 %3881 }
 0x52c   : > { %3893 = vadd.xlane.f32.xlu1 %v11731_v1 }
 0x52f   : > { %v5053_v54 = vpop.permute.xlu1 %5052 }
 0x530   : > { %v5352_v21 = vmul.f32 %v5053_v54, %v4904_v62  ;;  %v5353_v32 = vmul.f32 %v5053_v54, %v4905_v33  ;;  %v6312_v58 = vmul.f32 %v7121_v2, %v5053_v54  ;;  %v6313_v57 = vmul.f32 %v7122_v5, %v5053_v54  ;;  %v4710_v62 = vld [vmem:[%s9841_s26 + $0x50] sm:$0xff]  ;;  %v11732_v33 = vld [vmem:[#allocation93_spill] sm:$0xff]  ;;  %v11733_v2 = vld [vmem:[#allocation92_spill] sm:$0xff] }
 0x531   : > { %v4838_v54 = vsub.f32 %v4710_v62, %v9676_v25  ;;  %v7123_v25 = vld [vmem:[%s8627_s21 + $0x470] sm:$0xff] }
 0x533   : > { %v5058_v11 = vpop.permute.xlu1 %5057 }
 0x537   : > { %v5501_v63 = vpop.permute.xlu1 %5500 }
 0x538   : > { %v5800_v41 = vadd.f32 %v5501_v63, %v5352_v21  ;;  %v5801_v45 = vadd.f32 %v5501_v63, %v5353_v32  ;;  %v6440_v51 = vadd.f32 %v6312_v58, %v5501_v63  ;;  %v6441_v34 = vadd.f32 %v6313_v57, %v5501_v63  ;;  %v11735_v21 = vld [vmem:[#allocation94_spill] sm:$0xff]  ;;  %v4907_v57 = vld [vmem:[%s8627_s21 + $0x78] sm:$0xff] }
 0x539   : > { %v7124_v63 = vld [vmem:[%s8627_s21 + $0x478] sm:$0xff] }
 0x53a   : > { %v5928_v36 = vmax.f32 %v5800_v41, 0.0  ;;  %v5929_v1 = vmax.f32 %v5801_v45, 0.0  ;;  %v6568_v13 = vmax.f32 %v6440_v51, 0.0  ;;  %v6569_v6 = vmax.f32 %v6441_v34, 0.0 }
 0x53b   : > { %v5355_v45 = vmul.f32 %v5058_v11, %v4907_v57  ;;  %v6314_v51 = vmul.f32 %v7123_v25, %v5058_v11  ;;  %v6315_v34 = vmul.f32 %v7124_v63, %v5058_v11  ;;  %v11740_v57 = vld [vmem:[#allocation96_spill] sm:$0xff]  ;;  %v11741_v63 = vld [vmem:[#allocation95_spill] sm:$0xff] }
 0x53c   : > { %6056 = vst [vmem:[%s8627_s21 + $0x60] sm:$0xff] %v5928_v36  ;;  %6057 = vst [vmem:[%s8627_s21 + $0x68] sm:$0xff] %v5929_v1 }
 0x53d   : > { %7249 = vst [vmem:[%s8627_s21 + $0x460] sm:$0xff] %v6568_v13  ;;  %7250 = vst [vmem:[%s8627_s21 + $0x468] sm:$0xff] %v6569_v6  ;;  %5072 = vperm.xlu1 %7963, %v9668_v18   ;;  %v11737_v13 = vld [vmem:[#allocation16_spill] sm:$0xff]  ;;  %v4906_v18 = vld [vmem:[%s8627_s21 + $0x70] sm:$0xff] }
 0x53e   : > { %v5354_v41 = vmul.f32 %v5058_v11, %v4906_v18  ;;  %v4711_v18 = vld [vmem:[%s9841_s26 + $0x58] sm:$0xff] }
 0x53f   : > { %v4839_v11 = vsub.f32 %v4711_v18, %v9685_v44  ;;  %v4909_v44 = vld [vmem:[%s8627_s21 + $0x88] sm:$0xff] }
 0x540   : > { %1717 = vadd.xlane.f32.xlu0 %v11732_v33 }
 0x541   : > { %5520 = vperm.xlu1 %7963, %v4838_v54  }
 0x544   : > { %3512 = vadd.xlane.f32.xlu0 %v11733_v2 }
 0x547   : > { %v10150_v5 = vpop.xlane.xlu0 %1705 }
 0x548   : > { %11734 = vst [vmem:[#allocation81_spill] sm:$0xff] %v10150_v5  ;;  %2101 = vadd.xlane.f32.xlu0 %v11735_v21 }
 0x54b   : > { %v10153_v32 = vpop.xlane.xlu0 %3500 }
 0x54c   : > { %11736 = vst [vmem:[#allocation13_spill] sm:$0xff] %v10153_v32  ;;  %3896 = vadd.xlane.f32.xlu0 %v11737_v13 }
 0x54f   : > { %v10156_v6 = vpop.xlane.xlu0 %2089 }
 0x550   : > { %11738 = vst [vmem:[#allocation83_spill] sm:$0xff] %v10156_v6 }
 0x553   : > { %v10158_v58 = vpop.xlane.xlu0 %3884 }
 0x554   : > { %11739 = vst [vmem:[#allocation82_spill] sm:$0xff] %v10158_v58 }
 0x55b   : > { %v5506_v36 = vpop.permute.xlu0 %5505 }
 0x55c   : > { %v5802_v1 = vadd.f32 %v5506_v36, %v5354_v41  ;;  %v5803_v62 = vadd.f32 %v5506_v36, %v5355_v45  ;;  %v6442_v54 = vadd.f32 %v6314_v51, %v5506_v36  ;;  %v6443_v33 = vadd.f32 %v6315_v34, %v5506_v36  ;;  %v11742_v45 = vld [vmem:[#allocation97_spill] sm:$0xff] }
 0x55d   : > { %v4908_v36 = vld [vmem:[%s8627_s21 + $0x80] sm:$0xff] }
 0x55e   : > { %v5930_v2 = vmax.f32 %v5802_v1, 0.0  ;;  %v5931_v21 = vmax.f32 %v5803_v62, 0.0  ;;  %v6570_v13 = vmax.f32 %v6442_v54, 0.0  ;;  %v6571_v58 = vmax.f32 %v6443_v33, 0.0  ;;  %v7125_v1 = vld [vmem:[%s8627_s21 + $0x480] sm:$0xff]  ;;  %v7126_v62 = vld [vmem:[%s8627_s21 + $0x488] sm:$0xff] }
 0x560   : > { %6058 = vst [vmem:[%s8627_s21 + $0x70] sm:$0xff] %v5930_v2  ;;  %6059 = vst [vmem:[%s8627_s21 + $0x78] sm:$0xff] %v5931_v21 }
 0x561   : > { %7251 = vst [vmem:[%s8627_s21 + $0x470] sm:$0xff] %v6570_v13  ;;  %7252 = vst [vmem:[%s8627_s21 + $0x478] sm:$0xff] %v6571_v58  ;;  %v11743_v58 = vld [vmem:[#allocation17_spill] sm:$0xff] }
 0x562   : > { %5077 = vperm.xlu0 %7962, %v9680_v60  }
 0x565   : > { %1720 = vadd.xlane.f32.xlu1 %v11740_v57 }
 0x566   : > { %5525 = vperm.xlu0 %7962, %v4839_v11  }
 0x568   : > { %v10172_v25 = vpop.xlane.xlu1 %1708 }
 0x569   : > { %3515 = vadd.xlane.f32.xlu1 %v11741_v63 }
 0x56c   : > { %v10175_v41 = vpop.xlane.xlu1 %3503 }
 0x56d   : > { %2104 = vadd.xlane.f32.xlu1 %v11742_v45 }
 0x570   : > { %v10178_v51 = vpop.xlane.xlu1 %2092 }
 0x571   : > { %3899 = vadd.xlane.f32.xlu1 %v11743_v58 }
 0x574   : > { %v10181_v34 = vpop.xlane.xlu1 %3887 }
 0x578   : > { %v5063_v60 = vpop.permute.xlu1 %5062 }
 0x579   : > { %v5356_v54 = vmul.f32 %v5063_v60, %v4908_v36  ;;  %v5357_v33 = vmul.f32 %v5063_v60, %v4909_v44  ;;  %v6316_v2 = vmul.f32 %v7125_v1, %v5063_v60  ;;  %v6317_v21 = vmul.f32 %v7126_v62, %v5063_v60  ;;  %v4712_v36 = vld [vmem:[%s9841_s26 + $0x60] sm:$0xff]  ;;  %v11744_v44 = vld [vmem:[#allocation99_spill] sm:$0xff]  ;;  %v11746_v62 = vld [vmem:[#allocation98_spill] sm:$0xff] }
 0x57a   : > { %v4840_v60 = vsub.f32 %v4712_v36, %v9706_v42  ;;  %v4911_v42 = vld [vmem:[%s8627_s21 + $0x98] sm:$0xff] }
 0x57c   : > { %v5511_v13 = vpop.permute.xlu1 %5510 }
 0x57d   : > { %v5804_v18 = vadd.f32 %v5511_v13, %v5356_v54  ;;  %v5805_v11 = vadd.f32 %v5511_v13, %v5357_v33  ;;  %v6444_v57 = vadd.f32 %v6316_v2, %v5511_v13  ;;  %v6445_v63 = vadd.f32 %v6317_v21, %v5511_v13  ;;  %v11748_v33 = vld [vmem:[#allocation100_spill] sm:$0xff]  ;;  %v4910_v21 = vld [vmem:[%s8627_s21 + $0x90] sm:$0xff] }
 0x57e   : > { %v7127_v13 = vld [vmem:[%s8627_s21 + $0x490] sm:$0xff] }
 0x57f   : > { %v5932_v45 = vmax.f32 %v5804_v18, 0.0  ;;  %v5933_v58 = vmax.f32 %v5805_v11, 0.0  ;;  %v6572_v6 = vmax.f32 %v6444_v57, 0.0  ;;  %v6573_v32 = vmax.f32 %v6445_v63, 0.0  ;;  %v7128_v18 = vld [vmem:[%s8627_s21 + $0x498] sm:$0xff] }
 0x581   : > { %6060 = vst [vmem:[%s8627_s21 + $0x80] sm:$0xff] %v5932_v45  ;;  %6061 = vst [vmem:[%s8627_s21 + $0x88] sm:$0xff] %v5933_v58 }
 0x582   : > { %7253 = vst [vmem:[%s8627_s21 + $0x480] sm:$0xff] %v6572_v6  ;;  %7254 = vst [vmem:[%s8627_s21 + $0x488] sm:$0xff] %v6573_v32  ;;  %5082 = vperm.xlu1 %7963, %v9698_v48   ;;  %v11749_v6 = vld [vmem:[#allocation19_spill] sm:$0xff] }
 0x585   : > { %1723 = vadd.xlane.f32.xlu0 %v11744_v44 }
 0x586   : > { %5530 = vperm.xlu1 %7963, %v4840_v60  }
 0x588   : > { %v10195_v1 = vpop.xlane.xlu0 %1711 }
 0x589   : > { %11745 = vst [vmem:[#allocation85_spill] sm:$0xff] %v10195_v1  ;;  %3518 = vadd.xlane.f32.xlu0 %v11746_v62 }
 0x58c   : > { %v10198_v54 = vpop.xlane.xlu0 %3506 }
 0x58d   : > { %11747 = vst [vmem:[#allocation84_spill] sm:$0xff] %v10198_v54  ;;  %2107 = vadd.xlane.f32.xlu0 %v11748_v33 }
 0x590   : > { %v10202_v2 = vpop.xlane.xlu0 %2095 }
 0x591   : > { %3902 = vadd.xlane.f32.xlu0 %v11749_v6  ;;  %11750 = vst [vmem:[#allocation87_spill] sm:$0xff] %v10202_v2 }
 0x594   : > { %v10204_v32 = vpop.xlane.xlu0 %3890 }
 0x595   : > { %11751 = vst [vmem:[#allocation86_spill] sm:$0xff] %v10204_v32 }
 0x59c   : > { %v5068_v48 = vpop.permute.xlu0 %5067 }
 0x59d   : > { %v5358_v11 = vmul.f32 %v5068_v48, %v4910_v21  ;;  %v5359_v57 = vmul.f32 %v5068_v48, %v4911_v42  ;;  %v6318_v63 = vmul.f32 %v7127_v13, %v5068_v48  ;;  %v6319_v45 = vmul.f32 %v7128_v18, %v5068_v48  ;;  %v4713_v21 = vld [vmem:[%s9841_s26 + $0x68] sm:$0xff]  ;;  %v11753_v18 = vld [vmem:[#allocation101_spill] sm:$0xff] }
 0x59e   : > { %v4841_v48 = vsub.f32 %v4713_v21, %v9715_v28  ;;  %v11752_v42 = vld [vmem:[#allocation102_spill] sm:$0xff] }
 0x59f   : > { %v4913_v28 = vld [vmem:[%s8627_s21 + $0xa8] sm:$0xff] }
 0x5a0   : > { %v5516_v58 = vpop.permute.xlu0 %5515 }
 0x5a1   : > { %v5806_v36 = vadd.f32 %v5516_v58, %v5358_v11  ;;  %v5807_v60 = vadd.f32 %v5516_v58, %v5359_v57  ;;  %v6446_v44 = vadd.f32 %v6318_v63, %v5516_v58  ;;  %v6447_v62 = vadd.f32 %v6319_v45, %v5516_v58  ;;  %v11754_v57 = vld [vmem:[#allocation103_spill] sm:$0xff]  ;;  %v4912_v45 = vld [vmem:[%s8627_s21 + $0xa0] sm:$0xff] }
 0x5a2   : > { %v7129_v58 = vld [vmem:[%s8627_s21 + $0x4a0] sm:$0xff] }
 0x5a3   : > { %v5934_v33 = vmax.f32 %v5806_v36, 0.0  ;;  %v5935_v6 = vmax.f32 %v5807_v60, 0.0  ;;  %v6574_v32 = vmax.f32 %v6446_v44, 0.0  ;;  %v6575_v2 = vmax.f32 %v6447_v62, 0.0  ;;  %v7130_v36 = vld [vmem:[%s8627_s21 + $0x4a8] sm:$0xff] }
 0x5a5   : > { %6062 = vst [vmem:[%s8627_s21 + $0x90] sm:$0xff] %v5934_v33  ;;  %6063 = vst [vmem:[%s8627_s21 + $0x98] sm:$0xff] %v5935_v6 }
 0x5a6   : > { %7255 = vst [vmem:[%s8627_s21 + $0x490] sm:$0xff] %v6574_v32  ;;  %7256 = vst [vmem:[%s8627_s21 + $0x498] sm:$0xff] %v6575_v2  ;;  %v11755_v2 = vld [vmem:[#allocation18_spill] sm:$0xff] }
 0x5a7   : > { %5087 = vperm.xlu0 %7962, %v9710_v61  }
 0x5aa   : > { %1726 = vadd.xlane.f32.xlu1 %v11752_v42 }
 0x5ab   : > { %5535 = vperm.xlu0 %7962, %v4841_v48  }
 0x5ad   : > { %v10218_v13 = vpop.xlane.xlu1 %1714 }
 0x5ae   : > { %3521 = vadd.xlane.f32.xlu1 %v11753_v18 }
 0x5b1   : > { %v10221_v11 = vpop.xlane.xlu1 %3509 }
 0x5b2   : > { %2110 = vadd.xlane.f32.xlu1 %v11754_v57 }
 0x5b5   : > { %v10224_v32 = vpop.xlane.xlu1 %2098 }
 0x5b6   : > { %3905 = vadd.xlane.f32.xlu1 %v11755_v2 }
 0x5b9   : > { %v10227_v63 = vpop.xlane.xlu1 %3893 }
 0x5bd   : > { %v5073_v61 = vpop.permute.xlu1 %5072 }
 0x5be   : > { %v5360_v60 = vmul.f32 %v5073_v61, %v4912_v45  ;;  %v5361_v44 = vmul.f32 %v5073_v61, %v4913_v28  ;;  %v6320_v62 = vmul.f32 %v7129_v58, %v5073_v61  ;;  %v6321_v33 = vmul.f32 %v7130_v36, %v5073_v61  ;;  %v4714_v45 = vld [vmem:[%s9841_s26 + $0x70] sm:$0xff]  ;;  %v11756_v28 = vld [vmem:[#allocation105_spill] sm:$0xff]  ;;  %v11758_v36 = vld [vmem:[#allocation104_spill] sm:$0xff] }
 0x5bf   : > { %v4842_v61 = vsub.f32 %v4714_v45, %v9732_v26  ;;  %v4915_v26 = vld [vmem:[%s8627_s21 + $0xb8] sm:$0xff] }
 0x5c1   : > { %v5521_v6 = vpop.permute.xlu1 %5520 }
 0x5c2   : > { %v5808_v21 = vadd.f32 %v5521_v6, %v5360_v60  ;;  %v5809_v48 = vadd.f32 %v5521_v6, %v5361_v44  ;;  %v6448_v42 = vadd.f32 %v6320_v62, %v5521_v6  ;;  %v6449_v18 = vadd.f32 %v6321_v33, %v5521_v6  ;;  %v4914_v62 = vld [vmem:[%s8627_s21 + $0xb0] sm:$0xff]  ;;  %v7132_v6 = vld [vmem:[%s8627_s21 + $0x4b8] sm:$0xff] }
 0x5c3   : > { %v7131_v33 = vld [vmem:[%s8627_s21 + $0x4b0] sm:$0xff] }
 0x5c4   : > { %v5936_v57 = vmax.f32 %v5808_v21, 0.0  ;;  %v5937_v2 = vmax.f32 %v5809_v48, 0.0  ;;  %v6576_v54 = vmax.f32 %v6448_v42, 0.0  ;;  %v6577_v1 = vmax.f32 %v6449_v18, 0.0 }
 0x5c6   : > { %6064 = vst [vmem:[%s8627_s21 + $0xa0] sm:$0xff] %v5936_v57  ;;  %6065 = vst [vmem:[%s8627_s21 + $0xa8] sm:$0xff] %v5937_v2 }
 0x5c7   : > { %7257 = vst [vmem:[%s8627_s21 + $0x4a0] sm:$0xff] %v6576_v54  ;;  %7258 = vst [vmem:[%s8627_s21 + $0x4a8] sm:$0xff] %v6577_v1  ;;  %5092 = vperm.xlu1 %7963, %v9724_v23   ;;  %v11760_v54 = vld [vmem:[#allocation20_spill] sm:$0xff] }
 0x5ca   : > { %1729 = vadd.xlane.f32.xlu0 %v11756_v28 }
 0x5cb   : > { %5540 = vperm.xlu1 %7963, %v4842_v61  }
 0x5cd   : > { %v10241_v58 = vpop.xlane.xlu0 %1717 }
 0x5ce   : > { %11757 = vst [vmem:[#allocation88_spill] sm:$0xff] %v10241_v58  ;;  %3524 = vadd.xlane.f32.xlu0 %v11758_v36  ;;  %v4716_v58 = vld [vmem:[%s9841_s26 + $0x80] sm:$0xff] }
 0x5d1   : > { %v10244_v60 = vpop.xlane.xlu0 %3512 }
 0x5d2   : > { %11759 = vst [vmem:[#allocation14_spill] sm:$0xff] %v10244_v60  ;;  %2113 = vadd.xlane.f32.xlu0 %v9549_v20 }
 0x5d5   : > { %v10248_v44 = vpop.xlane.xlu0 %2101 }
 0x5d6   : > { %3908 = vadd.xlane.f32.xlu0 %v11760_v54  ;;  %11761 = vst [vmem:[#allocation90_spill] sm:$0xff] %v10248_v44 }
 0x5d9   : > { %v10250_v1 = vpop.xlane.xlu0 %3896 }
 0x5da   : > { %11762 = vst [vmem:[#allocation89_spill] sm:$0xff] %v10250_v1 }
 0x5e1   : > { %v5078_v23 = vpop.permute.xlu0 %5077 }
 0x5e2   : > { %v5362_v21 = vmul.f32 %v5078_v23, %v4914_v62  ;;  %v5363_v48 = vmul.f32 %v5078_v23, %v4915_v26  ;;  %v6322_v42 = vmul.f32 %v7131_v33, %v5078_v23  ;;  %v6323_v20 = vmul.f32 %v7132_v6, %v5078_v23  ;;  %v4715_v62 = vld [vmem:[%s9841_s26 + $0x78] sm:$0xff]  ;;  %v11763_v26 = vld [vmem:[#allocation107_spill] sm:$0xff]  ;;  %v11764_v6 = vld [vmem:[#allocation106_spill] sm:$0xff] }
 0x5e3   : > { %v4843_v23 = vsub.f32 %v4715_v62, %v9747_v29  ;;  %v4917_v29 = vld [vmem:[%s8627_s21 + $0xc8] sm:$0xff] }
 0x5e5   : > { %v5526_v18 = vpop.permute.xlu0 %5525 }
 0x5e6   : > { %v5810_v57 = vadd.f32 %v5526_v18, %v5362_v21  ;;  %v5811_v2 = vadd.f32 %v5526_v18, %v5363_v48  ;;  %v6450_v45 = vadd.f32 %v6322_v42, %v5526_v18  ;;  %v6451_v61 = vadd.f32 %v6323_v20, %v5526_v18  ;;  %v11765_v48 = vld [vmem:[#allocation21_spill] sm:$0xff] }
 0x5e7   : > { %v4916_v18 = vld [vmem:[%s8627_s21 + $0xc0] sm:$0xff] }
 0x5e8   : > { %v5938_v28 = vmax.f32 %v5810_v57, 0.0  ;;  %v5939_v36 = vmax.f32 %v5811_v2, 0.0  ;;  %v6578_v54 = vmax.f32 %v6450_v45, 0.0  ;;  %v6579_v1 = vmax.f32 %v6451_v61, 0.0  ;;  %v7133_v57 = vld [vmem:[%s8627_s21 + $0x4c0] sm:$0xff]  ;;  %v7134_v2 = vld [vmem:[%s8627_s21 + $0x4c8] sm:$0xff] }
 0x5ea   : > { %6066 = vst [vmem:[%s8627_s21 + $0xb0] sm:$0xff] %v5938_v28  ;;  %6067 = vst [vmem:[%s8627_s21 + $0xb8] sm:$0xff] %v5939_v36 }
 0x5eb   : > { %7259 = vst [vmem:[%s8627_s21 + $0x4b0] sm:$0xff] %v6578_v54  ;;  %7260 = vst [vmem:[%s8627_s21 + $0x4b8] sm:$0xff] %v6579_v1  ;;  %v11767_v1 = vld [vmem:[#allocation110_spill] sm:$0xff] }
 0x5ec   : > { %5097 = vperm.xlu0 %7962, %v9738_v59  }
 0x5ef   : > { %1732 = vadd.xlane.f32.xlu1 %v11763_v26 }
 0x5f0   : > { %5545 = vperm.xlu0 %7962, %v4843_v23  }
 0x5f2   : > { %v10264_v33 = vpop.xlane.xlu1 %1720 }
 0x5f3   : > { %3527 = vadd.xlane.f32.xlu1 %v11764_v6 }
 0x5f6   : > { %v10267_v21 = vpop.xlane.xlu1 %3515 }
 0x5f7   : > { %2116 = vadd.xlane.f32.xlu1 %v11765_v48 }
 0x5fa   : > { %v10270_v42 = vpop.xlane.xlu1 %2104 }
 0x5fb   : > { %11766 = vst [vmem:[#allocation91_spill] sm:$0xff] %v10270_v42  ;;  %3911 = vadd.xlane.f32.xlu1 %v11767_v1 }
 0x5fe   : > { %v10273_v20 = vpop.xlane.xlu1 %3899 }
 0x5ff   : > { %11768 = vst [vmem:[#allocation15_spill] sm:$0xff] %v10273_v20 }
 0x602   : > { %v5083_v59 = vpop.permute.xlu1 %5082 }
 0x603   : > { %v5364_v45 = vmul.f32 %v5083_v59, %v4916_v18  ;;  %v5365_v61 = vmul.f32 %v5083_v59, %v4917_v29  ;;  %v6324_v28 = vmul.f32 %v7133_v57, %v5083_v59  ;;  %v6325_v36 = vmul.f32 %v7134_v2, %v5083_v59  ;;  %v11769_v18 = vld [vmem:[#allocation109_spill] sm:$0xff]  ;;  %v11771_v57 = vld [vmem:[#allocation108_spill] sm:$0xff] }
 0x604   : > { %v4844_v59 = vsub.f32 %v4716_v58, %v9769_v17  ;;  %v3565_v17 = vadd.f32 %v9728_v52, %v9722_v43  ;;  %v4919_v58 = vld [vmem:[%s8627_s21 + $0xd8] sm:$0xff] }
 0x606   : > { %v5531_v54 = vpop.permute.xlu1 %5530  ;;  %v4142_v52 = vmul.f32 0.001953125, %v3565_v17 }
 0x607   : > { %v5812_v62 = vadd.f32 %v5531_v54, %v5364_v45  ;;  %v5813_v23 = vadd.f32 %v5531_v54, %v5365_v61  ;;  %v6452_v26 = vadd.f32 %v6324_v28, %v5531_v54  ;;  %v6453_v6 = vadd.f32 %v6325_v36, %v5531_v54  ;;  %v11773_v45 = vld [vmem:[#allocation111_spill] sm:$0xff]  ;;  %v7136_v54 = vld [vmem:[%s8627_s21 + $0x4d8] sm:$0xff] }
 0x608   : > { %v4918_v28 = vld [vmem:[%s8627_s21 + $0xd0] sm:$0xff] }
 0x609   : > { %v5940_v48 = vmax.f32 %v5812_v62, 0.0  ;;  %v5941_v1 = vmax.f32 %v5813_v23, 0.0  ;;  %v6580_v44 = vmax.f32 %v6452_v26, 0.0  ;;  %v6581_v60 = vmax.f32 %v6453_v6, 0.0  ;;  %v7135_v36 = vld [vmem:[%s8627_s21 + $0x4d0] sm:$0xff] }
 0x60b   : > { %6068 = vst [vmem:[%s8627_s21 + $0xc0] sm:$0xff] %v5940_v48  ;;  %6069 = vst [vmem:[%s8627_s21 + $0xc8] sm:$0xff] %v5941_v1  ;;  %v3949_v48 = vadd.f32 %v9751_v50, %v9741_v7 }
 0x60c   : > { %7261 = vst [vmem:[%s8627_s21 + $0x4c0] sm:$0xff] %v6580_v44  ;;  %7262 = vst [vmem:[%s8627_s21 + $0x4c8] sm:$0xff] %v6581_v60  ;;  %5102 = vperm.xlu1 %7963, %v9762_v38   ;;  %v11774_v44 = vld [vmem:[#allocation23_spill] sm:$0xff] }
 0x60f   : > { %1735 = vadd.xlane.f32.xlu0 %v11769_v18 }
 0x610   : > { %5550 = vperm.xlu1 %7963, %v4844_v59  }
 0x612   : > { %v10287_v29 = vpop.xlane.xlu0 %1723 }
 0x613   : > { %11770 = vst [vmem:[#allocation93_spill] sm:$0xff] %v10287_v29  ;;  %3530 = vadd.xlane.f32.xlu0 %v11771_v57 }
 0x616   : > { %v10290_v2 = vpop.xlane.xlu0 %3518 }
 0x617   : > { %11772 = vst [vmem:[#allocation92_spill] sm:$0xff] %v10290_v2  ;;  %2119 = vadd.xlane.f32.xlu0 %v11773_v45  ;;  %v11829_v2 = vld [vmem:[#allocation130_spill] sm:$0xff] }
 0x61a   : > { %v10294_v60 = vpop.xlane.xlu0 %2107 }
 0x61b   : > { %3914 = vadd.xlane.f32.xlu0 %v11774_v44  ;;  %11775 = vst [vmem:[#allocation94_spill] sm:$0xff] %v10294_v60 }
 0x61e   : > { %v10296_v61 = vpop.xlane.xlu0 %3902 }
 0x61f   : > { %11776 = vst [vmem:[#allocation16_spill] sm:$0xff] %v10296_v61 }
 0x626   : > { %v5088_v38 = vpop.permute.xlu0 %5087 }
 0x627   : > { %v5366_v62 = vmul.f32 %v5088_v38, %v4918_v28  ;;  %v5367_v23 = vmul.f32 %v5088_v38, %v4919_v58  ;;  %v6326_v26 = vmul.f32 %v7135_v36, %v5088_v38  ;;  %v6327_v6 = vmul.f32 %v7136_v54, %v5088_v38  ;;  %v4717_v36 = vld [vmem:[%s9841_s26 + $0x88] sm:$0xff]  ;;  %v11777_v54 = vld [vmem:[#allocation113_spill] sm:$0xff] }
 0x628   : > { %v4206_v58 = vmul.f32 0.001953125, %v3949_v48  ;;  %v4270_v38 = vmul.f32 %v4142_v52, %v4142_v52  ;;  %v4845_v50 = vsub.f32 %v4717_v36, %v9783_v10  ;;  %v11783_v10 = vld [vmem:[#allocation22_spill] sm:$0xff] }
 0x62a   : > { %v5536_v1 = vpop.permute.xlu0 %5535  ;;  %v4334_v7 = vsub.f32 %v4206_v58, %v4270_v38 }
 0x62b   : > { %v5814_v59 = vadd.f32 %v5536_v1, %v5366_v62  ;;  %v5815_v18 = vadd.f32 %v5536_v1, %v5367_v23  ;;  %v6454_v57 = vadd.f32 %v6326_v26, %v5536_v1  ;;  %v6455_v43 = vadd.f32 %v6327_v6, %v5536_v1  ;;  %v11779_v23 = vld [vmem:[#allocation112_spill] sm:$0xff] }
 0x62c   : > { %v4398_v17 = vmax.f32 %v4334_v7, 0.0 }
 0x62d   : > { %v5942_v45 = vmax.f32 %v5814_v59, 0.0  ;;  %v5943_v44 = vmax.f32 %v5815_v18, 0.0  ;;  %v6582_v28 = vmax.f32 %v6454_v57, 0.0  ;;  %v6583_v61 = vmax.f32 %v6455_v43, 0.0  ;;  %v4590_v18 = vld [vmem:[%s9252_s6 + $0x90] sm:$0xff]  ;;  %v4920_v57 = vld [vmem:[%s8627_s21 + $0xe0] sm:$0xff] }
 0x62e   : > { %v4921_v43 = vld [vmem:[%s8627_s21 + $0xe8] sm:$0xff] }
 0x62f   : > { %6070 = vst [vmem:[%s8627_s21 + $0xd0] sm:$0xff] %v5942_v45  ;;  %6071 = vst [vmem:[%s8627_s21 + $0xd8] sm:$0xff] %v5943_v44  ;;  %v7137_v45 = vld [vmem:[%s8627_s21 + $0x4e0] sm:$0xff]  ;;  %v7138_v44 = vld [vmem:[%s8627_s21 + $0x4e8] sm:$0xff] }
 0x630   : > { %7263 = vst [vmem:[%s8627_s21 + $0x4d0] sm:$0xff] %v6582_v28  ;;  %7264 = vst [vmem:[%s8627_s21 + $0x4d8] sm:$0xff] %v6583_v61  ;;  %v4462_v61 = vadd.f32 1e-05, %v4398_v17 }
 0x631   : > { %5107 = vperm.xlu0 %7962, %v9775_v19   ;;  %v11781_v19 = vld [vmem:[#allocation114_spill] sm:$0xff] }
 0x632   : > { %8000 = vrsqrt.f32 %v4462_v61 }
 0x634   : > { %1738 = vadd.xlane.f32.xlu1 %v11777_v54  ;;  %v3566_v54 = vadd.f32 %v9743_v56, %v9735_v8 }
 0x635   : > { %5555 = vperm.xlu0 %7962, %v4845_v50  }
 0x636   : > { %v4143_v60 = vmul.f32 0.001953125, %v3566_v54 }
 0x637   : > { %v10314_v62 = vpop.xlane.xlu1 %1726 }
 0x638   : > { %11778 = vst [vmem:[#allocation96_spill] sm:$0xff] %v10314_v62  ;;  %3533 = vadd.xlane.f32.xlu1 %v11779_v23 }
 0x63b   : > { %v10317_v26 = vpop.xlane.xlu1 %3521 }
 0x63c   : > { %11780 = vst [vmem:[#allocation95_spill] sm:$0xff] %v10317_v26  ;;  %2122 = vadd.xlane.f32.xlu1 %v11781_v19  ;;  %v8001_v59 = vpop.eup %8000 }
 0x63d   : > { %v4654_v50 = vmul.f32 %v8001_v59, %v4590_v18  ;;  %v4718_v59 = vld [vmem:[%s9841_s26 + $0x90] sm:$0xff]  ;;  %v4271_v18 = vmul.f32 %v4143_v60, %v4143_v60 }
 0x63f   : > { %v10320_v6 = vpop.xlane.xlu1 %2110 }
 0x640   : > { %11782 = vst [vmem:[#allocation97_spill] sm:$0xff] %v10320_v6  ;;  %3917 = vadd.xlane.f32.xlu1 %v11783_v10  ;;  %v3950_v10 = vadd.f32 %v9760_v27, %v9753_v55 }
 0x642   : > { %v4207_v8 = vmul.f32 0.001953125, %v3950_v10 }
 0x643   : > { %v10323_v48 = vpop.xlane.xlu1 %3905 }
 0x644   : > { %11784 = vst [vmem:[#allocation17_spill] sm:$0xff] %v10323_v48  ;;  %v4335_v55 = vsub.f32 %v4207_v8, %v4271_v18  ;;  %v11864_v48 = vld [vmem:[#allocation146_spill] sm:$0xff] }
 0x647   : > { %v5093_v1 = vpop.permute.xlu1 %5092 }
 0x648   : > { %v5368_v28 = vmul.f32 %v5093_v1, %v4920_v57  ;;  %v5369_v58 = vmul.f32 %v5093_v1, %v4921_v43  ;;  %v6328_v38 = vmul.f32 %v7137_v45, %v5093_v1  ;;  %v6329_v36 = vmul.f32 %v7138_v44, %v5093_v1 }
 0x649   : > { %v4782_v44 = vmul.f32 %v4654_v50, %v4142_v52  ;;  %v11787_v52 = vld [vmem:[#allocation115_spill] sm:$0xff] }
 0x64b   : > { %v5541_v7 = vpop.permute.xlu1 %5540  ;;  %v4846_v56 = vsub.f32 %v4718_v59, %v4782_v44  ;;  %v3951_v59 = vadd.f32 %v9787_v49, %v9778_v16  ;;  %v4719_v49 = vld [vmem:[%s9841_s26 + $0x98] sm:$0xff] }
 0x64c   : > { %v5816_v17 = vadd.f32 %v5541_v7, %v5368_v28  ;;  %v5817_v23 = vadd.f32 %v5541_v7, %v5369_v58  ;;  %v6456_v61 = vadd.f32 %v6328_v38, %v5541_v7  ;;  %v6457_v19 = vadd.f32 %v6329_v36, %v5541_v7  ;;  %v11785_v28 = vld [vmem:[#allocation116_spill] sm:$0xff] }
 0x64d   : > { %v4399_v58 = vmax.f32 %v4335_v55, 0.0 }
 0x64e   : > { %v5944_v57 = vmax.f32 %v5816_v17, 0.0  ;;  %v5945_v43 = vmax.f32 %v5817_v23, 0.0  ;;  %v6584_v45 = vmax.f32 %v6456_v61, 0.0  ;;  %v6585_v1 = vmax.f32 %v6457_v19, 0.0  ;;  %v4922_v23 = vld [vmem:[%s8627_s21 + $0xf0] sm:$0xff]  ;;  %v4591_v61 = vld [vmem:[%s9252_s6 + $0x98] sm:$0xff] }
 0x64f   : > { %v4463_v36 = vadd.f32 1e-05, %v4399_v58  ;;  %v11791_v19 = vld [vmem:[#allocation28_spill] sm:$0xff] }
 0x650   : > { %6072 = vst [vmem:[%s8627_s21 + $0xe0] sm:$0xff] %v5944_v57  ;;  %6073 = vst [vmem:[%s8627_s21 + $0xe8] sm:$0xff] %v5945_v43  ;;  %v3567_v10 = vadd.f32 %v9766_v14, %v11791_v19  ;;  %v4923_v57 = vld [vmem:[%s8627_s21 + $0xf8] sm:$0xff]  ;;  %v7139_v43 = vld [vmem:[%s8627_s21 + $0x4f0] sm:$0xff] }
 0x651   : > { %7265 = vst [vmem:[%s8627_s21 + $0x4e0] sm:$0xff] %v6584_v45  ;;  %7266 = vst [vmem:[%s8627_s21 + $0x4e8] sm:$0xff] %v6585_v1  ;;  %5112 = vperm.xlu1 %7963, %v4654_v50   ;;  %8002 = vrsqrt.f32 %v4463_v36  ;;  %v7140_v45 = vld [vmem:[%s8627_s21 + $0x4f8] sm:$0xff] }
 0x654   : > { %1741 = vadd.xlane.f32.xlu0 %v11785_v28 }
 0x655   : > { %5560 = vperm.xlu1 %7963, %v4846_v56  }
 0x657   : > { %v10340_v27 = vpop.xlane.xlu0 %1729 }
 0x658   : > { %11786 = vst [vmem:[#allocation99_spill] sm:$0xff] %v10340_v27  ;;  %3536 = vadd.xlane.f32.xlu0 %v11787_v52  ;;  %v4144_v52 = vmul.f32 0.001953125, %v3567_v10  ;;  %v11828_v27 = vld [vmem:[#allocation128_spill] sm:$0xff] }
 0x659   : > { %v3960_v29 = vadd.f32 %v11829_v2, %v11828_v27 }
 0x65a   : > { %v4272_v16 = vmul.f32 %v4144_v52, %v4144_v52 }
 0x65b   : > { %v10343_v38 = vpop.xlane.xlu0 %3524  ;;  %v8003_v17 = vpop.eup %8002 }
 0x65c   : > { %11788 = vst [vmem:[#allocation98_spill] sm:$0xff] %v10343_v38  ;;  %2125 = vadd.xlane.f32.xlu0 %v9613_v15  ;;  %v4655_v56 = vmul.f32 %v8003_v17, %v4591_v61 }
 0x65f   : > { %v10347_v7 = vpop.xlane.xlu0 %2113 }
 0x660   : > { %3920 = vadd.xlane.f32.xlu0 %v9609_v9  ;;  %11789 = vst [vmem:[#allocation100_spill] sm:$0xff] %v10347_v7 }
 0x663   : > { %v10349_v50 = vpop.xlane.xlu0 %3908 }
 0x664   : > { %11790 = vst [vmem:[#allocation19_spill] sm:$0xff] %v10349_v50  ;;  %v11803_v50 = vld [vmem:[#allocation33_spill] sm:$0xff] }
 0x66b   : > { %v5098_v54 = vpop.permute.xlu0 %5097 }
 0x66c   : > { %v5370_v1 = vmul.f32 %v5098_v54, %v4922_v23  ;;  %v5371_v15 = vmul.f32 %v5098_v54, %v4923_v57  ;;  %v6330_v44 = vmul.f32 %v7139_v43, %v5098_v54  ;;  %v6331_v9 = vmul.f32 %v7140_v45, %v5098_v54  ;;  %v11792_v43 = vld [vmem:[#allocation117_spill] sm:$0xff] }
 0x66d   : > { %v4208_v57 = vmul.f32 0.001953125, %v3951_v59  ;;  %v4783_v54 = vmul.f32 %v4655_v56, %v4143_v60  ;;  %v11798_v59 = vld [vmem:[#allocation25_spill] sm:$0xff] }
 0x66f   : > { %v5546_v8 = vpop.permute.xlu0 %5545  ;;  %v4336_v17 = vsub.f32 %v4208_v57, %v4272_v16  ;;  %v4847_v61 = vsub.f32 %v4719_v49, %v4783_v54 }
 0x670   : > { %v5818_v18 = vadd.f32 %v5546_v8, %v5370_v1  ;;  %v5819_v28 = vadd.f32 %v5546_v8, %v5371_v15  ;;  %v6458_v14 = vadd.f32 %v6330_v44, %v5546_v8  ;;  %v6459_v55 = vadd.f32 %v6331_v9, %v5546_v8  ;;  %v11794_v1 = vld [vmem:[#allocation24_spill] sm:$0xff]  ;;  %v11796_v44 = vld [vmem:[#allocation118_spill] sm:$0xff] }
 0x671   : > { %v4400_v10 = vmax.f32 %v4336_v17, 0.0  ;;  %v11800_v17 = vld [vmem:[#allocation29_spill] sm:$0xff] }
 0x672   : > { %v5946_v58 = vmax.f32 %v5818_v18, 0.0  ;;  %v5947_v36 = vmax.f32 %v5819_v28, 0.0  ;;  %v6586_v23 = vmax.f32 %v6458_v14, 0.0  ;;  %v6587_v19 = vmax.f32 %v6459_v55, 0.0  ;;  %v4592_v28 = vld [vmem:[%s9252_s6 + $0xa0] sm:$0xff]  ;;  %v4925_v55 = vld [vmem:[%s8627_s21 + $0x108] sm:$0xff] }
 0x673   : > { %v4464_v15 = vadd.f32 1e-05, %v4400_v10  ;;  %v4924_v14 = vld [vmem:[%s8627_s21 + $0x100] sm:$0xff] }
 0x674   : > { %6074 = vst [vmem:[%s8627_s21 + $0xf0] sm:$0xff] %v5946_v58  ;;  %6075 = vst [vmem:[%s8627_s21 + $0xf8] sm:$0xff] %v5947_v36  ;;  %v7141_v58 = vld [vmem:[%s8627_s21 + $0x500] sm:$0xff]  ;;  %v7142_v36 = vld [vmem:[%s8627_s21 + $0x508] sm:$0xff] }
 0x675   : > { %7267 = vst [vmem:[%s8627_s21 + $0x4f0] sm:$0xff] %v6586_v23  ;;  %7268 = vst [vmem:[%s8627_s21 + $0x4f8] sm:$0xff] %v6587_v19  ;;  %8004 = vrsqrt.f32 %v4464_v15 }
 0x676   : > { %5117 = vperm.xlu0 %7962, %v4655_v56  }
 0x679   : > { %1744 = vadd.xlane.f32.xlu1 %v11792_v43 }
 0x67a   : > { %5565 = vperm.xlu0 %7962, %v4847_v61   ;;  %v11801_v61 = vld [vmem:[#allocation31_spill] sm:$0xff] }
 0x67b   : > { %v3568_v43 = vadd.f32 %v11801_v61, %v11800_v17  ;;  %v11807_v17 = vld [vmem:[#allocation38_spill] sm:$0xff] }
 0x67c   : > { %v10366_v45 = vpop.xlane.xlu1 %1732  ;;  %v3954_v61 = vadd.f32 %v9819_v4, %v11807_v17  ;;  %v11814_v4 = vld [vmem:[#allocation46_spill] sm:$0xff] }
 0x67d   : > { %11793 = vst [vmem:[#allocation102_spill] sm:$0xff] %v10366_v45  ;;  %3539 = vadd.xlane.f32.xlu1 %v11794_v1  ;;  %v10386_v38 = vmul.f32 0.001953125, %v3568_v43  ;;  %v11830_v45 = vld [vmem:[#allocation39_spill] sm:$0xff] }
 0x67f   : > { %v8005_v18 = vpop.eup %8004 }
 0x680   : > { %v10369_v60 = vpop.xlane.xlu1 %3527  ;;  %v4656_v49 = vmul.f32 %v8005_v18, %v4592_v28  ;;  %v4720_v18 = vld [vmem:[%s9841_s26 + $0xa0] sm:$0xff] }
 0x681   : > { %11795 = vst [vmem:[#allocation101_spill] sm:$0xff] %v10369_v60  ;;  %2128 = vadd.xlane.f32.xlu1 %v11796_v44 }
 0x684   : > { %v10372_v9 = vpop.xlane.xlu1 %2116 }
 0x685   : > { %11797 = vst [vmem:[#allocation103_spill] sm:$0xff] %v10372_v9  ;;  %3923 = vadd.xlane.f32.xlu1 %v11798_v59  ;;  %v11802_v59 = vld [vmem:[#allocation30_spill] sm:$0xff] }
 0x688   : > { %v10375_v8 = vpop.xlane.xlu1 %3911 }
 0x689   : > { %11799 = vst [vmem:[#allocation18_spill] sm:$0xff] %v10375_v8 }
 0x68c   : > { %v5103_v56 = vpop.permute.xlu1 %5102 }
 0x68d   : > { %v5372_v23 = vmul.f32 %v5103_v56, %v4924_v14  ;;  %v5373_v19 = vmul.f32 %v5103_v56, %v4925_v55  ;;  %v6332_v57 = vmul.f32 %v7141_v58, %v5103_v56  ;;  %v6333_v54 = vmul.f32 %v7142_v36, %v5103_v56 }
 0x68e   : > { %v3952_v14 = vadd.f32 %v11803_v50, %v11802_v59  ;;  %v4784_v36 = vmul.f32 %v4656_v49, %v4144_v52  ;;  %v11805_v50 = vld [vmem:[#allocation36_spill] sm:$0xff] }
 0x690   : > { %v5551_v16 = vpop.permute.xlu1 %5550  ;;  %v4209_v28 = vmul.f32 0.001953125, %v3952_v14  ;;  %v11812_v14 = vld [vmem:[#allocation121_spill] sm:$0xff] }
 0x691   : > { %v5820_v10 = vadd.f32 %v5551_v16, %v5372_v23  ;;  %v5821_v1 = vadd.f32 %v5551_v16, %v5373_v19  ;;  %v6460_v15 = vadd.f32 %v6332_v57, %v5551_v16  ;;  %v6461_v44 = vadd.f32 %v6333_v54, %v5551_v16  ;;  %v11804_v57 = vld [vmem:[#allocation120_spill] sm:$0xff]  ;;  %v11806_v54 = vld [vmem:[#allocation37_spill] sm:$0xff] }
 0x692   : > { %v4848_v23 = vsub.f32 %v4720_v18, %v4784_v36  ;;  %v4273_v19 = vmul.f32 %v10386_v38, %v10386_v38  ;;  %v3570_v16 = vadd.f32 %v11806_v54, %v11805_v50  ;;  %v11817_v54 = vld [vmem:[#allocation32_spill] sm:$0xff] }
 0x693   : > { %v5948_v55 = vmax.f32 %v5820_v10, 0.0  ;;  %v5949_v58 = vmax.f32 %v5821_v1, 0.0  ;;  %v6588_v7 = vmax.f32 %v6460_v15, 0.0  ;;  %v6589_v56 = vmax.f32 %v6461_v44, 0.0  ;;  %v11810_v15 = vld [vmem:[#allocation42_spill] sm:$0xff] }
 0x694   : > { %v4337_v52 = vsub.f32 %v4209_v28, %v4273_v19  ;;  %v4211_v1 = vmul.f32 0.001953125, %v3954_v61  ;;  %v3572_v44 = vadd.f32 %v11810_v15, %v9824_v30  ;;  %v11819_v61 = vld [vmem:[#allocation48_spill] sm:$0xff] }
 0x695   : > { %6076 = vst [vmem:[%s8627_s21 + $0x100] sm:$0xff] %v5948_v55  ;;  %6077 = vst [vmem:[%s8627_s21 + $0x108] sm:$0xff] %v5949_v58  ;;  %v11813_v58 = vld [vmem:[#allocation47_spill] sm:$0xff]  ;;  %v11822_v15 = vld [vmem:[#allocation40_spill] sm:$0xff] }
 0x696   : > { %7269 = vst [vmem:[%s8627_s21 + $0x500] sm:$0xff] %v6588_v7  ;;  %7270 = vst [vmem:[%s8627_s21 + $0x508] sm:$0xff] %v6589_v56  ;;  %5122 = vperm.xlu1 %7963, %v4656_v49   ;;  %v11809_v7 = vld [vmem:[#allocation119_spill] sm:$0xff]  ;;  %v10403_v49 = vmul.f32 0.001953125, %v3570_v16  ;;  %v4401_v10 = vmax.f32 %v4337_v52, 0.0  ;;  %v3956_v56 = vadd.f32 %v11814_v4, %v11813_v58  ;;  %v10414_v28 = vmul.f32 0.001953125, %v3572_v44 }
 0x697   : > { %v11818_v16 = vld [vmem:[#allocation34_spill] sm:$0xff]  ;;  %v11824_v58 = vld [vmem:[#allocation53_spill] sm:$0xff] }
 0x698   : > { %v4275_v55 = vmul.f32 %v10403_v49, %v10403_v49  ;;  %v4465_v36 = vadd.f32 1e-05, %v4401_v10  ;;  %v4213_v19 = vmul.f32 0.001953125, %v3956_v56  ;;  %v4277_v50 = vmul.f32 %v10414_v28, %v10414_v28 }
 0x699   : > { %1747 = vadd.xlane.f32.xlu0 %v11804_v57  ;;  %v3569_v52 = vadd.f32 %v11818_v16, %v11817_v54 }
 0x69a   : > { %5570 = vperm.xlu1 %7963, %v4848_v23   ;;  %v4339_v18 = vsub.f32 %v4211_v1, %v4275_v55  ;;  %v11815_v23 = vld [vmem:[#allocation27_spill] sm:$0xff]  ;;  %8006 = vrsqrt.f32 %v4465_v36  ;;  %v4341_v17 = vsub.f32 %v4213_v19, %v4277_v50 }
 0x69b   : > { %v11821_v1 = vld [vmem:[#allocation35_spill] sm:$0xff]  ;;  %v10431_v36 = vmul.f32 0.001953125, %v3569_v52  ;;  %v11826_v52 = vld [vmem:[#allocation56_spill] sm:$0xff] }
 0x69c   : > { %v10400_v43 = vpop.xlane.xlu0 %1735  ;;  %v4403_v30 = vmax.f32 %v4339_v18, 0.0  ;;  %v3953_v44 = vadd.f32 %v11822_v15, %v11821_v1  ;;  %v11823_v55 = vld [vmem:[#allocation55_spill] sm:$0xff]  ;;  %v4405_v18 = vmax.f32 %v4341_v17, 0.0  ;;  %v4927_v17 = vld [vmem:[%s8627_s21 + $0x118] sm:$0xff] }
 0x69d   : > { %11808 = vst [vmem:[#allocation105_spill] sm:$0xff] %v10400_v43  ;;  %3542 = vadd.xlane.f32.xlu0 %v11809_v7  ;;  %v11820_v7 = vld [vmem:[#allocation50_spill] sm:$0xff]  ;;  %v3958_v4 = vadd.f32 %v11824_v58, %v11823_v55 }
 0x69e   : > { %v3574_v10 = vadd.f32 %v11820_v7, %v11819_v61  ;;  %v4210_v19 = vmul.f32 0.001953125, %v3953_v44  ;;  %v4926_v61 = vld [vmem:[%s8627_s21 + $0x110] sm:$0xff]  ;;  %v4274_v7 = vmul.f32 %v10431_v36, %v10431_v36  ;;  %v4469_v1 = vadd.f32 1e-05, %v4405_v18  ;;  %v11827_v55 = vld [vmem:[#allocation126_spill] sm:$0xff] }
 0x69f   : > { %v4215_v50 = vmul.f32 0.001953125, %v3958_v4  ;;  %v3576_v58 = vadd.f32 %v11827_v55, %v11826_v52 }
 0x6a0   : > { %v10407_v59 = vpop.xlane.xlu0 %3530 }
 0x6a1   : > { %11811 = vst [vmem:[#allocation104_spill] sm:$0xff] %v10407_v59  ;;  %2131 = vadd.xlane.f32.xlu0 %v11812_v14  ;;  %v4467_v14 = vadd.f32 1e-05, %v4403_v30  ;;  %v4593_v30 = vld [vmem:[%s9252_s6 + $0xa8] sm:$0xff]  ;;  %v4338_v59 = vsub.f32 %v4210_v19, %v4274_v7  ;;  %v11833_v7 = vld [vmem:[#allocation45_spill] sm:$0xff] }
 0x6a3   : > { %8008 = vrsqrt.f32 %v4467_v14 }
 0x6a4   : > { %v10417_v57 = vpop.xlane.xlu0 %2119  ;;  %v8007_v16 = vpop.eup %8006  ;;  %8010 = vrsqrt.f32 %v4469_v1 }
 0x6a5   : > { %3926 = vadd.xlane.f32.xlu0 %v11815_v23  ;;  %11816 = vst [vmem:[#allocation20_spill] sm:$0xff] %v10417_v57  ;;  %v10433_v23 = vmul.f32 0.001953125, %v3574_v10  ;;  %v7143_v10 = vld [vmem:[%s8627_s21 + $0x510] sm:$0xff]  ;;  %v4657_v18 = vmul.f32 %v8007_v16, %v4593_v30  ;;  %v4217_v16 = vmul.f32 0.001953125, %v3960_v29  ;;  %v4402_v30 = vmax.f32 %v4338_v59, 0.0  ;;  %v11836_v59 = vld [vmem:[#allocation44_spill] sm:$0xff] }
 0x6a7   : > { %v4279_v15 = vmul.f32 %v10433_v23, %v10433_v23 }
 0x6a8   : > { %v10429_v56 = vpop.xlane.xlu0 %3914 }
 0x6a9   : > { %11825 = vst [vmem:[#allocation107_spill] sm:$0xff] %v10429_v56  ;;  %v7144_v56 = vld [vmem:[%s8627_s21 + $0x518] sm:$0xff]  ;;  %v4343_v43 = vsub.f32 %v4215_v50, %v4279_v15  ;;  %v11835_v15 = vld [vmem:[#allocation57_spill] sm:$0xff] }
 0x6b0   : > { %v5108_v54 = vpop.permute.xlu0 %5107 }
 0x6b1   : > { %v5374_v44 = vmul.f32 %v5108_v54, %v4926_v61  ;;  %v5375_v14 = vmul.f32 %v5108_v54, %v4927_v17  ;;  %v6334_v4 = vmul.f32 %v7143_v10, %v5108_v54  ;;  %v6335_v57 = vmul.f32 %v7144_v56, %v5108_v54  ;;  %v11831_v61 = vld [vmem:[#allocation41_spill] sm:$0xff]  ;;  %v4721_v10 = vld [vmem:[%s9841_s26 + $0xa8] sm:$0xff] }
 0x6b2   : > { %v3571_v17 = vadd.f32 %v11831_v61, %v11830_v45  ;;  %v10450_v56 = vmul.f32 0.001953125, %v3576_v58  ;;  %v4407_v54 = vmax.f32 %v4343_v43, 0.0  ;;  %v11832_v45 = vld [vmem:[#allocation43_spill] sm:$0xff]  ;;  %v4595_v43 = vld [vmem:[%s9252_s6 + $0xb8] sm:$0xff] }
 0x6b3   : > { %v3955_v1 = vadd.f32 %v11833_v7, %v11832_v45  ;;  %v11840_v45 = vld [vmem:[#allocation52_spill] sm:$0xff]  ;;  %v11841_v7 = vld [vmem:[#allocation51_spill] sm:$0xff] }
 0x6b4   : > { %v5556_v8 = vpop.permute.xlu0 %5555  ;;  %v10465_v29 = vmul.f32 0.001953125, %v3571_v17  ;;  %v11842_v17 = vld [vmem:[#allocation123_spill] sm:$0xff] }
 0x6b5   : > { %v5822_v9 = vadd.f32 %v5556_v8, %v5374_v44  ;;  %v5823_v60 = vadd.f32 %v5556_v8, %v5375_v14  ;;  %v6462_v52 = vadd.f32 %v6334_v4, %v5556_v8  ;;  %v6463_v55 = vadd.f32 %v6335_v57, %v5556_v8  ;;  %v8009_v57 = vpop.eup %8008  ;;  %v11837_v44 = vld [vmem:[#allocation49_spill] sm:$0xff] }
 0x6b6   : > { %v4785_v8 = vmul.f32 %v4657_v18, %v10386_v38  ;;  %v3573_v14 = vadd.f32 %v11837_v44, %v11836_v59  ;;  %v4471_v4 = vadd.f32 1e-05, %v4407_v54  ;;  %v8011_v54 = vpop.eup %8010 }
 0x6b7   : > { %v5950_v19 = vmax.f32 %v5822_v9, 0.0  ;;  %v5951_v50 = vmax.f32 %v5823_v60, 0.0  ;;  %v6590_v2 = vmax.f32 %v6462_v52, 0.0  ;;  %v6591_v27 = vmax.f32 %v6463_v55, 0.0  ;;  %v11834_v60 = vld [vmem:[#allocation59_spill] sm:$0xff]  ;;  %v11838_v52 = vld [vmem:[#allocation61_spill] sm:$0xff] }
 0x6b8   : > { %v4281_v9 = vmul.f32 %v10450_v56, %v10450_v56  ;;  %v3578_v58 = vadd.f32 %v11835_v15, %v11834_v60  ;;  %v11839_v55 = vld [vmem:[#allocation60_spill] sm:$0xff]  ;;  %v3957_v60 = vadd.f32 %v11841_v7, %v11840_v45  ;;  %8012 = vrsqrt.f32 %v4471_v4 }
 0x6b9   : > { %6078 = vst [vmem:[%s8627_s21 + $0x110] sm:$0xff] %v5950_v19  ;;  %6079 = vst [vmem:[%s8627_s21 + $0x118] sm:$0xff] %v5951_v50  ;;  %v3962_v61 = vadd.f32 %v11839_v55, %v11838_v52  ;;  %v4466_v19 = vadd.f32 1e-05, %v4402_v30  ;;  %v4849_v50 = vsub.f32 %v4721_v10, %v4785_v8  ;;  %v11846_v55 = vld [vmem:[#allocation122_spill] sm:$0xff]  ;;  %v11847_v4 = vld [vmem:[#allocation136_spill] sm:$0xff] }
 0x6ba   : > { %7271 = vst [vmem:[%s8627_s21 + $0x510] sm:$0xff] %v6590_v2  ;;  %7272 = vst [vmem:[%s8627_s21 + $0x518] sm:$0xff] %v6591_v27  ;;  %v4345_v38 = vsub.f32 %v4217_v16, %v4281_v9  ;;  %v4659_v2 = vmul.f32 %v8009_v57, %v4595_v43  ;;  %v4212_v27 = vmul.f32 0.001953125, %v3955_v1  ;;  %v10473_v15 = vmul.f32 0.001953125, %v3578_v58  ;;  %v11843_v57 = vld [vmem:[#allocation134_spill] sm:$0xff]  ;;  %v11844_v1 = vld [vmem:[#allocation135_spill] sm:$0xff] }
 0x6bb   : > { %5127 = vperm.xlu0 %7962, %v4657_v18   ;;  %v4276_v18 = vmul.f32 %v10465_v29, %v10465_v29  ;;  %v10478_v16 = vmul.f32 0.001953125, %v3573_v14  ;;  %v4219_v8 = vmul.f32 0.001953125, %v3962_v61  ;;  %8014 = vrsqrt.f32 %v4466_v19  ;;  %v4597_v43 = vld [vmem:[%s9252_s6 + $0xc8] sm:$0xff]  ;;  %v4723_v14 = vld [vmem:[%s9841_s26 + $0xb8] sm:$0xff] }
 0x6bc   : > { %v4409_v30 = vmax.f32 %v4345_v38, 0.0  ;;  %v3580_v9 = vadd.f32 %v11844_v1, %v11843_v57  ;;  %v4787_v58 = vmul.f32 %v4659_v2, %v10403_v49  ;;  %v4214_v44 = vmul.f32 0.001953125, %v3957_v60  ;;  %v11848_v38 = vld [vmem:[#allocation138_spill] sm:$0xff]  ;;  %v11850_v57 = vld [vmem:[#allocation124_spill] sm:$0xff] }
 0x6bd   : > { %v4340_v59 = vsub.f32 %v4212_v27, %v4276_v18  ;;  %v4283_v52 = vmul.f32 %v10473_v15, %v10473_v15  ;;  %v3964_v61 = vadd.f32 %v11848_v38, %v11847_v4  ;;  %v4278_v19 = vmul.f32 %v10478_v16, %v10478_v16  ;;  %v11851_v1 = vld [vmem:[#allocation54_spill] sm:$0xff]  ;;  %v11856_v38 = vld [vmem:[#allocation131_spill] sm:$0xff] }
 0x6be   : > { %1750 = vadd.xlane.f32.xlu1 %v11842_v17  ;;  %v4661_v7 = vmul.f32 %v8011_v54, %v4597_v43  ;;  %v10494_v49 = vmul.f32 0.001953125, %v3580_v9  ;;  %v4851_v60 = vsub.f32 %v4723_v14, %v4787_v58  ;;  %v11854_v9 = vld [vmem:[#allocation127_spill] sm:$0xff]  ;;  %v11858_v14 = vld [vmem:[#allocation142_spill] sm:$0xff] }
 0x6bf   : > { %5575 = vperm.xlu0 %7962, %v4849_v50   ;;  %v4473_v50 = vadd.f32 1e-05, %v4409_v30  ;;  %v4347_v45 = vsub.f32 %v4219_v8, %v4283_v52  ;;  %v4404_v17 = vmax.f32 %v4340_v59, 0.0  ;;  %v4342_v18 = vsub.f32 %v4214_v44, %v4278_v19  ;;  %v11853_v8 = vld [vmem:[#allocation125_spill] sm:$0xff]  ;;  %v11857_v44 = vld [vmem:[#allocation140_spill] sm:$0xff] }
 0x6c0   : > { %v4789_v54 = vmul.f32 %v4661_v7, %v10414_v28  ;;  %v3959_v43 = vadd.f32 %v11854_v9, %v11853_v8  ;;  %v11855_v52 = vld [vmem:[#allocation129_spill] sm:$0xff]  ;;  %v4285_v59 = vmul.f32 %v10494_v49, %v10494_v49  ;;  %v3582_v19 = vadd.f32 %v11858_v14, %v11857_v44  ;;  %v11860_v28 = vld [vmem:[#allocation26_spill] sm:$0xff]  ;;  %v11861_v9 = vld [vmem:[#allocation132_spill] sm:$0xff] }
 0x6c1   : > { %v10482_v10 = vpop.xlane.xlu1 %1738  ;;  %8016 = vrsqrt.f32 %v4473_v50  ;;  %v4411_v30 = vmax.f32 %v4347_v45, 0.0  ;;  %v3577_v58 = vadd.f32 %v11856_v38, %v11855_v52  ;;  %v4468_v45 = vadd.f32 1e-05, %v4404_v17  ;;  %v11862_v52 = vld [vmem:[#allocation133_spill] sm:$0xff]  ;;  %v4594_v44 = vld [vmem:[%s9252_s6 + $0xb0] sm:$0xff] }
 0x6c2   : > { %11845 = vst [vmem:[#allocation106_spill] sm:$0xff] %v10482_v10  ;;  %3545 = vadd.xlane.f32.xlu1 %v11846_v55  ;;  %v11852_v55 = vld [vmem:[#allocation58_spill] sm:$0xff]  ;;  %v8013_v50 = vpop.eup %8012  ;;  %v3961_v38 = vadd.f32 %v11862_v52, %v11861_v9  ;;  %v11863_v10 = vld [vmem:[#allocation144_spill] sm:$0xff]  ;;  %v4216_v26 = vmul.f32 0.001953125, %v3959_v43  ;;  %v4928_v9 = vld [vmem:[%s8627_s21 + $0x120] sm:$0xff] }
 0x6c3   : > { %5137 = vperm.xlu0 %7962, %v4659_v2   ;;  %v3575_v4 = vadd.f32 %v11852_v55, %v11851_v1  ;;  %v4221_v2 = vmul.f32 0.001953125, %v3964_v61  ;;  %v4725_v61 = vld [vmem:[%s9841_s26 + $0xc8] sm:$0xff]  ;;  %v4599_v1 = vld [vmem:[%s9252_s6 + $0xd8] sm:$0xff]  ;;  %v3966_v6 = vadd.f32 %v11864_v48, %v11863_v10  ;;  %v4475_v14 = vadd.f32 1e-05, %v4411_v30 }
 0x6c4   : > { %v10522_v17 = vmul.f32 0.001953125, %v3577_v58  ;;  %8018 = vrsqrt.f32 %v4468_v45  ;;  %v4218_v10 = vmul.f32 0.001953125, %v3961_v38  ;;  %v4601_v45 = vld [vmem:[%s9252_s6 + $0xe8] sm:$0xff]  ;;  %v7145_v38 = vld [vmem:[%s8627_s21 + $0x520] sm:$0xff] }
 0x6c5   : > { %v10496_v27 = vpop.xlane.xlu1 %3533  ;;  %v8015_v55 = vpop.eup %8014  ;;  %v10515_v8 = vmul.f32 0.001953125, %v3575_v4  ;;  %v4663_v4 = vmul.f32 %v8013_v50, %v4599_v1  ;;  %v4223_v30 = vmul.f32 0.001953125, %v3966_v6  ;;  %8020 = vrsqrt.f32 %v4475_v14  ;;  %v11866_v50 = vld [vmem:[#allocation148_spill] sm:$0xff]  ;;  %v4929_v52 = vld [vmem:[%s8627_s21 + $0x128] sm:$0xff] }
 0x6c6   : > { %11849 = vst [vmem:[#allocation21_spill] sm:$0xff] %v10496_v27  ;;  %2134 = vadd.xlane.f32.xlu1 %v11850_v57  ;;  %v4349_v27 = vsub.f32 %v4221_v2, %v4285_v59  ;;  %v10528_v2 = vmul.f32 %v8015_v55, %v4594_v44  ;;  %v4282_v43 = vmul.f32 %v10522_v17, %v10522_v17  ;;  %v11868_v44 = vld [vmem:[#allocation152_spill] sm:$0xff] }
 0x6c7   : > { %5585 = vperm.xlu0 %7962, %v4851_v60   ;;  %v4406_v60 = vmax.f32 %v4342_v18, 0.0  ;;  %v10524_v18 = vmul.f32 0.001953125, %v3582_v19  ;;  %v4280_v48 = vmul.f32 %v10515_v8, %v10515_v8  ;;  %v4791_v19 = vmul.f32 %v4663_v4, %v10433_v23  ;;  %v11869_v23 = vld [vmem:[#allocation154_spill] sm:$0xff] }
 0x6c8   : > { %v3968_v14 = vadd.f32 %v11869_v23, %v11868_v44  ;;  %v11873_v23 = vld [vmem:[#allocation157_spill] sm:$0xff] }
 0x6c9   : > { %v10510_v57 = vpop.xlane.xlu1 %2122  ;;  %v4470_v62 = vadd.f32 1e-05, %v4406_v60  ;;  %v4287_v58 = vmul.f32 %v10524_v18, %v10524_v18  ;;  %v4346_v60 = vsub.f32 %v4218_v10, %v4282_v43 }
 0x6ca   : > { %11859 = vst [vmem:[#allocation110_spill] sm:$0xff] %v10510_v57  ;;  %3929 = vadd.xlane.f32.xlu1 %v11860_v28  ;;  %v4853_v57 = vsub.f32 %v4725_v61, %v4789_v54  ;;  %v4344_v54 = vsub.f32 %v4216_v26, %v4280_v48  ;;  %v10543_v26 = vmul.f32 %v10528_v2, %v10431_v36  ;;  %v7146_v48 = vld [vmem:[%s8627_s21 + $0x528] sm:$0xff] }
 0x6cb   : > { %5147 = vperm.xlu0 %7962, %v4661_v7   ;;  %v4413_v7 = vmax.f32 %v4349_v27, 0.0  ;;  %v8017_v61 = vpop.eup %8016  ;;  %v11867_v27 = vld [vmem:[#allocation150_spill] sm:$0xff]  ;;  %8022 = vrsqrt.f32 %v4470_v62  ;;  %v4351_v55 = vsub.f32 %v4223_v30, %v4287_v58 }
 0x6cc   : > { %v3584_v6 = vadd.f32 %v11867_v27, %v11866_v50  ;;  %v4408_v5 = vmax.f32 %v4344_v54, 0.0  ;;  %v4665_v62 = vmul.f32 %v8017_v61, %v4601_v45  ;;  %v4225_v54 = vmul.f32 0.001953125, %v3968_v14  ;;  %v11871_v45 = vld [vmem:[#allocation62_spill] sm:$0xff] }
 0x6cd   : > { %v10526_v28 = vpop.xlane.xlu1 %3917  ;;  %v4477_v1 = vadd.f32 1e-05, %v4413_v7  ;;  %v4415_v58 = vmax.f32 %v4351_v55, 0.0 }
 0x6ce   : > { %11865 = vst [vmem:[#allocation109_spill] sm:$0xff] %v10526_v28  ;;  %v10551_v10 = vmul.f32 0.001953125, %v3584_v6  ;;  %v4722_v6 = vld [vmem:[%s9841_s26 + $0xb0] sm:$0xff] }
 0x6cf   : > { %5595 = vperm.xlu0 %7962, %v4853_v57   ;;  %v4727_v57 = vld [vmem:[%s9841_s26 + $0xd8] sm:$0xff]  ;;  %8024 = vrsqrt.f32 %v4477_v1 }
 0x6d0   : > { %v4855_v36 = vsub.f32 %v4727_v57, %v4791_v19  ;;  %v11870_v57 = vld [vmem:[#allocation63_spill] sm:$0xff] }
 0x6d1   : > { %v5113_v59 = vpop.permute.xlu1 %5112 }
 0x6d2   : > { %v5376_v28 = vmul.f32 %v5113_v59, %v4928_v9  ;;  %v5377_v50 = vmul.f32 %v5113_v59, %v4929_v52  ;;  %v6336_v27 = vmul.f32 %v7145_v38, %v5113_v59  ;;  %v6337_v20 = vmul.f32 %v7146_v48, %v5113_v59  ;;  %v8019_v9 = vpop.eup %8018  ;;  %v11872_v38 = vld [vmem:[#allocation156_spill] sm:$0xff]  ;;  %v4729_v48 = vld [vmem:[%s9841_s26 + $0xe8] sm:$0xff] }
 0x6d3   : > { %5157 = vperm.xlu0 %7962, %v4663_v4   ;;  %v4410_v4 = vmax.f32 %v4346_v60, 0.0  ;;  %v3579_v60 = vadd.f32 %v11871_v45, %v11870_v57  ;;  %v8021_v55 = vpop.eup %8020  ;;  %v4289_v52 = vmul.f32 %v10551_v10, %v10551_v10  ;;  %v3586_v14 = vadd.f32 %v11873_v23, %v11872_v38  ;;  %v11877_v57 = vld [vmem:[#allocation160_spill] sm:$0xff] }
 0x6d5   : > { %v5561_v42 = vpop.permute.xlu1 %5560  ;;  %v10574_v45 = vmul.f32 0.001953125, %v3579_v60  ;;  %v11880_v60 = vld [vmem:[#allocation162_spill] sm:$0xff] }
 0x6d6   : > { %v5824_v7 = vadd.f32 %v5561_v42, %v5376_v28  ;;  %v5825_v30 = vadd.f32 %v5561_v42, %v5377_v50  ;;  %v6464_v43 = vadd.f32 %v6336_v27, %v5561_v42  ;;  %v6465_v44 = vadd.f32 %v6337_v20, %v5561_v42  ;;  %v4596_v20 = vld [vmem:[%s9252_s6 + $0xc0] sm:$0xff]  ;;  %v4603_v50 = vld [vmem:[%s9252_s6 + $0xf8] sm:$0xff] }
 0x6d7   : > { %5605 = vperm.xlu0 %7962, %v4855_v36   ;;  %v4472_v28 = vadd.f32 1e-05, %v4408_v5  ;;  %v4793_v42 = vmul.f32 %v4665_v62, %v10450_v56  ;;  %v11874_v5 = vld [vmem:[#allocation65_spill] sm:$0xff]  ;;  %v11875_v27 = vld [vmem:[#allocation64_spill] sm:$0xff]  ;;  %v4850_v56 = vsub.f32 %v4722_v6, %v10543_v26  ;;  %v4667_v23 = vmul.f32 %v8021_v55, %v4603_v50 }
 0x6d8   : > { %v5952_v59 = vmax.f32 %v5824_v7, 0.0  ;;  %v5953_v19 = vmax.f32 %v5825_v30, 0.0  ;;  %v6592_v61 = vmax.f32 %v6464_v43, 0.0  ;;  %v6593_v1 = vmax.f32 %v6465_v44, 0.0  ;;  %v11876_v44 = vld [vmem:[#allocation158_spill] sm:$0xff]  ;;  %v11883_v50 = vld [vmem:[#allocation141_spill] sm:$0xff] }
 0x6d9   : > { %v3963_v36 = vadd.f32 %v11875_v27, %v11874_v5  ;;  %v4479_v7 = vadd.f32 1e-05, %v4415_v58  ;;  %v4474_v30 = vadd.f32 1e-05, %v4410_v4  ;;  %v4353_v43 = vsub.f32 %v4225_v54, %v4289_v52  ;;  %v11879_v5 = vld [vmem:[#allocation139_spill] sm:$0xff]  ;;  %v4724_v52 = vld [vmem:[%s9841_s26 + $0xc0] sm:$0xff] }
 0x6da   : > { %6080 = vst [vmem:[%s8627_s21 + $0x120] sm:$0xff] %v5952_v59  ;;  %6081 = vst [vmem:[%s8627_s21 + $0x128] sm:$0xff] %v5953_v19  ;;  %v3970_v59 = vadd.f32 %v11877_v57, %v11876_v44  ;;  %v4660_v19 = vmul.f32 %v8019_v9, %v4596_v20  ;;  %8026 = vrsqrt.f32 %v4472_v28  ;;  %v4857_v38 = vsub.f32 %v4729_v48, %v4793_v42  ;;  %v11881_v42 = vld [vmem:[#allocation163_spill] sm:$0xff]  ;;  %v11885_v44 = vld [vmem:[#allocation164_spill] sm:$0xff] }
 0x6db   : > { %7273 = vst [vmem:[%s8627_s21 + $0x520] sm:$0xff] %v6592_v61  ;;  %7274 = vst [vmem:[%s8627_s21 + $0x528] sm:$0xff] %v6593_v1  ;;  %5132 = vperm.xlu1 %7963, %v10528_v2   ;;  %5167 = vperm.xlu0 %7962, %v4665_v62   ;;  %v8023_v61 = vpop.eup %8022  ;;  %v10576_v58 = vmul.f32 0.001953125, %v3586_v14  ;;  %v4598_v1 = vld [vmem:[%s9252_s6 + $0xd0] sm:$0xff]  ;;  %v4220_v2 = vmul.f32 0.001953125, %v3963_v36  ;;  %v11878_v62 = vld [vmem:[#allocation137_spill] sm:$0xff]  ;;  %8028 = vrsqrt.f32 %v4479_v7  ;;  %v4284_v28 = vmul.f32 %v10574_v45, %v10574_v45 }
 0x6dc   : > { %v3581_v26 = vadd.f32 %v11879_v5, %v11878_v62  ;;  %8030 = vrsqrt.f32 %v4474_v30  ;;  %v4417_v4 = vmax.f32 %v4353_v43, 0.0  ;;  %v4227_v9 = vmul.f32 0.001953125, %v3970_v59  ;;  %v8025_v6 = vpop.eup %8024  ;;  %v11884_v27 = vld [vmem:[#allocation143_spill] sm:$0xff]  ;;  %v11886_v57 = vld [vmem:[#allocation165_spill] sm:$0xff] }
 0x6dd   : > { %v4788_v54 = vmul.f32 %v4660_v19, %v10465_v29  ;;  %v3588_v20 = vadd.f32 %v11881_v42, %v11880_v60  ;;  %v4795_v14 = vmul.f32 %v4667_v23, %v10473_v15  ;;  %v4662_v48 = vmul.f32 %v8023_v61, %v4598_v1  ;;  %v4731_v29 = vld [vmem:[%s9841_s26 + $0xf8] sm:$0xff]  ;;  %v11888_v15 = vld [vmem:[#allocation147_spill] sm:$0xff] }
 0x6de   : > { %v3965_v36 = vadd.f32 %v11884_v27, %v11883_v50  ;;  %v4291_v7 = vmul.f32 %v10576_v58, %v10576_v58  ;;  %v4348_v30 = vsub.f32 %v4220_v2, %v4284_v28  ;;  %v10596_v43 = vmul.f32 0.001953125, %v3581_v26  ;;  %v11890_v27 = vld [vmem:[#allocation149_spill] sm:$0xff] }
 0x6df   : > { %5580 = vperm.xlu1 %7963, %v4850_v56   ;;  %5615 = vperm.xlu0 %7962, %v4857_v38   ;;  %v4605_v56 = vld [vmem:[%s9252_s6 + $0x108] sm:$0xff]  ;;  %v3972_v59 = vadd.f32 %v11886_v57, %v11885_v44  ;;  %v11887_v38 = vld [vmem:[#allocation145_spill] sm:$0xff]  ;;  %v4481_v1 = vadd.f32 1e-05, %v4417_v4  ;;  %v4852_v5 = vsub.f32 %v4724_v52, %v4788_v54  ;;  %v10602_v60 = vmul.f32 0.001953125, %v3588_v20  ;;  %v11891_v44 = vld [vmem:[#allocation151_spill] sm:$0xff] }
 0x6e0   : > { %v3583_v61 = vadd.f32 %v11888_v15, %v11887_v38  ;;  %v4355_v62 = vsub.f32 %v4227_v9, %v4291_v7  ;;  %v4859_v2 = vsub.f32 %v4731_v29, %v4795_v14  ;;  %v4669_v28 = vmul.f32 %v8025_v6, %v4605_v56  ;;  %v4600_v54 = vld [vmem:[%s9252_s6 + $0xe0] sm:$0xff]  ;;  %v11893_v6 = vld [vmem:[#allocation155_spill] sm:$0xff] }
 0x6e1   : > { %v10586_v55 = vpop.xlane.xlu0 %1741  ;;  %v4790_v26 = vmul.f32 %v4662_v48, %v10478_v16  ;;  %v4222_v50 = vmul.f32 0.001953125, %v3965_v36  ;;  %v4412_v38 = vmax.f32 %v4348_v30, 0.0  ;;  %v4286_v4 = vmul.f32 %v10596_v43, %v10596_v43  ;;  %v11892_v16 = vld [vmem:[#allocation153_spill] sm:$0xff] }
 0x6e2   : > { %11882 = vst [vmem:[#allocation108_spill] sm:$0xff] %v10586_v55  ;;  %v4229_v9 = vmul.f32 0.001953125, %v3972_v59  ;;  %v10613_v20 = vmul.f32 0.001953125, %v3583_v61  ;;  %8032 = vrsqrt.f32 %v4481_v1  ;;  %v3585_v52 = vadd.f32 %v11893_v6, %v11892_v16  ;;  %v4607_v59 = vld [vmem:[%s9252_s6 + $0x118] sm:$0xff]  ;;  %v11895_v1 = vld [vmem:[#allocation66_spill] sm:$0xff] }
 0x6e3   : > { %5142 = vperm.xlu1 %7963, %v4660_v19   ;;  %5177 = vperm.xlu0 %7962, %v4667_v23   ;;  %v3967_v19 = vadd.f32 %v11891_v44, %v11890_v27  ;;  %v4726_v23 = vld [vmem:[%s9841_s26 + $0xd0] sm:$0xff]  ;;  %v4419_v14 = vmax.f32 %v4355_v62, 0.0  ;;  %v4293_v7 = vmul.f32 %v10602_v60, %v10602_v60  ;;  %v3590_v29 = vadd.f32 %v10023_v22, %v10019_v40  ;;  %v4733_v44 = vld [vmem:[%s9841_s26 + $0x108] sm:$0xff] }
 0x6e4   : > { %v8027_v57 = vpop.eup %8026  ;;  %v4854_v56 = vsub.f32 %v4726_v23, %v4790_v26  ;;  %v4797_v30 = vmul.f32 %v4669_v28, %v10494_v49  ;;  %v4350_v61 = vsub.f32 %v4222_v50, %v4286_v4  ;;  %v4602_v62 = vld [vmem:[%s9252_s6 + $0xf0] sm:$0xff]  ;;  %v4476_v6 = vadd.f32 1e-05, %v4412_v38 }
 0x6e5   : > { %v10604_v42 = vpop.xlane.xlu0 %3536  ;;  %v8029_v36 = vpop.eup %8028  ;;  %v4664_v16 = vmul.f32 %v8027_v57, %v4600_v54  ;;  %v3974_v55 = vadd.f32 %v10036_v39, %v10029_v0  ;;  %v3592_v40 = vadd.f32 %v10076_v53, %v10070_v46  ;;  %v4288_v49 = vmul.f32 %v10613_v20, %v10613_v20  ;;  %v11896_v54 = vld [vmem:[#allocation159_spill] sm:$0xff] }
 0x6e6   : > { %11889 = vst [vmem:[#allocation111_spill] sm:$0xff] %v10604_v42  ;;  %v8031_v15 = vpop.eup %8030  ;;  %v4357_v42 = vsub.f32 %v4229_v9, %v4293_v7  ;;  %v10635_v26 = vmul.f32 0.001953125, %v3585_v52  ;;  %v4483_v50 = vadd.f32 1e-05, %v4419_v14  ;;  %v10637_v23 = vmul.f32 0.001953125, %v3590_v29  ;;  %v11897_v52 = vld [vmem:[#allocation161_spill] sm:$0xff] }
 0x6e7   : > { %5590 = vperm.xlu1 %7963, %v4852_v5   ;;  %5625 = vperm.xlu0 %7962, %v4859_v2   ;;  %v4224_v5 = vmul.f32 0.001953125, %v3967_v19  ;;  %v11894_v2 = vld [vmem:[#allocation67_spill] sm:$0xff]  ;;  %v4671_v19 = vmul.f32 %v8029_v36, %v4607_v59  ;;  %v3976_v57 = vadd.f32 %v10087_v35, %v10083_v37  ;;  %v4861_v0 = vsub.f32 %v4733_v44, %v4797_v30  ;;  %v4728_v7 = vld [vmem:[%s9841_s26 + $0xe0] sm:$0xff]  ;;  %v4735_v29 = vld [vmem:[%s9841_s26 + $0x118] sm:$0xff] }
 0x6e8   : > { %v3969_v27 = vadd.f32 %v11895_v1, %v11894_v2  ;;  %v10641_v39 = vmul.f32 %v8031_v15, %v4602_v62  ;;  %v4414_v46 = vmax.f32 %v4350_v61, 0.0  ;;  %8034 = vrsqrt.f32 %v4476_v6  ;;  %v11898_v15 = vld [vmem:[#allocation68_spill] sm:$0xff]  ;;  %v11899_v61 = vld [vmem:[#allocation70_spill] sm:$0xff] }
 0x6e9   : > { %v10631_v22 = vpop.xlane.xlu0 %2125  ;;  %v4352_v53 = vsub.f32 %v4224_v5, %v4288_v49  ;;  %v4231_v38 = vmul.f32 0.001953125, %v3974_v55  ;;  %v10643_v4 = vmul.f32 0.001953125, %v3592_v40  ;;  %v4290_v9 = vmul.f32 %v10635_v26, %v10635_v26  ;;  %v4609_v2 = vld [vmem:[%s9252_s6 + $0x128] sm:$0xff] }
 0x6ea   : > { %8036 = vrsqrt.f32 %v4483_v50  ;;  %v4792_v37 = vmul.f32 %v4664_v16, %v10515_v8  ;;  %v4799_v35 = vmul.f32 %v4671_v19, %v10524_v18  ;;  %v3587_v14 = vadd.f32 %v11897_v52, %v11896_v54 }
 0x6eb   : > { %5152 = vperm.xlu1 %7963, %v4662_v48   ;;  %5187 = vperm.xlu0 %7962, %v4669_v28   ;;  %v4226_v48 = vmul.f32 0.001953125, %v3969_v27  ;;  %v4421_v28 = vmax.f32 %v4357_v42, 0.0  ;;  %v4295_v42 = vmul.f32 %v10637_v23, %v10637_v23  ;;  %v4233_v55 = vmul.f32 0.001953125, %v3976_v57 }
 0x6ec   : > { %v8033_v30 = vpop.eup %8032  ;;  %v4478_v8 = vadd.f32 1e-05, %v4414_v46  ;;  %v4416_v59 = vmax.f32 %v4352_v53, 0.0  ;;  %v3971_v5 = vadd.f32 %v11899_v61, %v11898_v15  ;;  %v4297_v44 = vmul.f32 %v10643_v4, %v10643_v4  ;;  %v4737_v15 = vld [vmem:[%s9841_s26 + $0x128] sm:$0xff]  ;;  %v4604_v61 = vld [vmem:[%s9252_s6 + $0x100] sm:$0xff] }
 0x6ed   : > { %v10653_v36 = vpop.xlane.xlu0 %3920  ;;  %v4354_v18 = vsub.f32 %v4226_v48, %v4290_v9  ;;  %v4485_v1 = vadd.f32 1e-05, %v4421_v28  ;;  %v4359_v27 = vsub.f32 %v4231_v38, %v4295_v42  ;;  %v3594_v62 = vadd.f32 %v10128_v31, %v10123_v24  ;;  %v4930_v24 = vld [vmem:[%s8627_s21 + $0x130] sm:$0xff]  ;;  %v4931_v38 = vld [vmem:[%s8627_s21 + $0x138] sm:$0xff] }
 0x6ee   : > { %v4856_v6 = vsub.f32 %v4728_v7, %v4792_v37  ;;  %v4863_v40 = vsub.f32 %v4735_v29, %v4799_v35  ;;  %v10669_v49 = vmul.f32 0.001953125, %v3587_v14  ;;  %v4361_v50 = vsub.f32 %v4233_v55, %v4297_v44  ;;  %v7147_v9 = vld [vmem:[%s8627_s21 + $0x530] sm:$0xff]  ;;  %v7148_v37 = vld [vmem:[%s8627_s21 + $0x538] sm:$0xff] }
 0x6ef   : > { %5600 = vperm.xlu1 %7963, %v4854_v56   ;;  %5635 = vperm.xlu0 %7962, %v4861_v0   ;;  %v10659_v56 = vmul.f32 %v10641_v39, %v10522_v17  ;;  %v4730_v17 = vld [vmem:[%s9841_s26 + $0xf0] sm:$0xff]  ;;  %v3978_v57 = vadd.f32 %v10134_v3, %v10131_v47  ;;  %v4673_v46 = vmul.f32 %v8033_v30, %v4609_v2  ;;  %8038 = vrsqrt.f32 %v4478_v8 }
 0x6f0   : > { %v4480_v53 = vadd.f32 1e-05, %v4416_v59  ;;  %v4418_v48 = vmax.f32 %v4354_v18, 0.0  ;;  %8040 = vrsqrt.f32 %v4485_v1  ;;  %v10675_v28 = vmul.f32 0.001953125, %v3594_v62 }
 0x6f1   : > { %v4858_v31 = vsub.f32 %v4730_v17, %v10659_v56  ;;  %v4292_v14 = vmul.f32 %v10669_v49, %v10669_v49  ;;  %v4425_v42 = vmax.f32 %v4361_v50, 0.0  ;;  %v4235_v55 = vmul.f32 0.001953125, %v3978_v57 }
 0x6f2   : > { %v8035_v52 = vpop.eup %8034  ;;  %v4801_v29 = vmul.f32 %v4673_v46, %v10551_v10  ;;  %v4482_v2 = vadd.f32 1e-05, %v4418_v48  ;;  %v4299_v44 = vmul.f32 %v10675_v28, %v10675_v28  ;;  %8042 = vrsqrt.f32 %v4480_v53  ;;  %v11901_v53 = vld [vmem:[#allocation72_spill] sm:$0xff] }
 0x6f3   : > { %5162 = vperm.xlu1 %7963, %v4664_v16   ;;  %5197 = vperm.xlu0 %7962, %v4671_v19   ;;  %v4228_v16 = vmul.f32 0.001953125, %v3971_v5  ;;  %v4423_v19 = vmax.f32 %v4359_v27, 0.0  ;;  %v4611_v5 = vld [vmem:[%s9252_s6 + $0x138] sm:$0xff]  ;;  %v4668_v57 = vmul.f32 %v8035_v52, %v4604_v61  ;;  %v4613_v52 = vld [vmem:[%s9252_s6 + $0x148] sm:$0xff] }
 0x6f4   : > { %v8037_v56 = vpop.eup %8036  ;;  %v4865_v50 = vsub.f32 %v4737_v15, %v4801_v29  ;;  %v4363_v48 = vsub.f32 %v4235_v55, %v4299_v44  ;;  %8044 = vrsqrt.f32 %v4482_v2  ;;  %v11904_v29 = vld [vmem:[#allocation73_spill] sm:$0xff]  ;;  %v4734_v44 = vld [vmem:[%s9841_s26 + $0x110] sm:$0xff] }
 0x6f5   : > { %v5118_v0 = vpop.permute.xlu0 %5117  ;;  %v4356_v1 = vsub.f32 %v4228_v16, %v4292_v14  ;;  %v4487_v27 = vadd.f32 1e-05, %v4423_v19  ;;  %v4606_v19 = vld [vmem:[%s9252_s6 + $0x110] sm:$0xff] }
 0x6f6   : > { %v5378_v47 = vmul.f32 %v5118_v0, %v4930_v24  ;;  %v5379_v3 = vmul.f32 %v5118_v0, %v4931_v38  ;;  %v6338_v35 = vmul.f32 %v7147_v9, %v5118_v0  ;;  %v6339_v54 = vmul.f32 %v7148_v37, %v5118_v0  ;;  %v11902_v9 = vld [vmem:[#allocation71_spill] sm:$0xff] }
 0x6f7   : > { %5610 = vperm.xlu1 %7963, %v4856_v6   ;;  %5645 = vperm.xlu0 %7962, %v4863_v40   ;;  %v4489_v40 = vadd.f32 1e-05, %v4425_v42  ;;  %v4675_v0 = vmul.f32 %v8037_v56, %v4611_v5  ;;  %v4420_v16 = vmax.f32 %v4356_v1, 0.0  ;;  %8046 = vrsqrt.f32 %v4487_v27 }
 0x6f8   : > { %v3973_v37 = vadd.f32 %v11902_v9, %v11901_v53  ;;  %v11909_v53 = vld [vmem:[#allocation80_spill] sm:$0xff]  ;;  %v11910_v9 = vld [vmem:[#allocation79_spill] sm:$0xff] }
 0x6f9   : > { %v5566_v7 = vpop.permute.xlu0 %5565  ;;  %v8039_v24 = vpop.eup %8038  ;;  %8048 = vrsqrt.f32 %v4489_v40  ;;  %v4484_v55 = vadd.f32 1e-05, %v4420_v16  ;;  %v11908_v40 = vld [vmem:[#allocation77_spill] sm:$0xff]  ;;  %v4741_v16 = vld [vmem:[%s9841_s26 + $0x148] sm:$0xff] }
 0x6fa   : > { %v5826_v30 = vadd.f32 %v5566_v7, %v5378_v47  ;;  %v5827_v8 = vadd.f32 %v5566_v7, %v5379_v3  ;;  %v6466_v59 = vadd.f32 %v6338_v35, %v5566_v7  ;;  %v6467_v18 = vadd.f32 %v6339_v54, %v5566_v7  ;;  %v8041_v38 = vpop.eup %8040  ;;  %v4732_v54 = vld [vmem:[%s9841_s26 + $0x100] sm:$0xff]  ;;  %v11903_v7 = vld [vmem:[#allocation74_spill] sm:$0xff] }
 0x6fb   : > { %5172 = vperm.xlu1 %7963, %v10641_v39   ;;  %5207 = vperm.xlu0 %7962, %v4673_v46   ;;  %v11900_v39 = vld [vmem:[#allocation69_spill] sm:$0xff]  ;;  %v4796_v47 = vmul.f32 %v4668_v57, %v10574_v45  ;;  %v4803_v3 = vmul.f32 %v4675_v0, %v10576_v58  ;;  %v4427_v35 = vmax.f32 %v4363_v48, 0.0  ;;  %v4670_v42 = vmul.f32 %v8039_v24, %v4606_v19  ;;  %v4615_v19 = vld [vmem:[%s9252_s6 + $0x158] sm:$0xff] }
 0x6fc   : > { %v5954_v10 = vmax.f32 %v5826_v30, 0.0  ;;  %v5955_v62 = vmax.f32 %v5827_v8, 0.0  ;;  %v6594_v17 = vmax.f32 %v6466_v59, 0.0  ;;  %v6595_v6 = vmax.f32 %v6467_v18, 0.0  ;;  %v11905_v8 = vld [vmem:[#allocation76_spill] sm:$0xff]  ;;  %v11906_v59 = vld [vmem:[#allocation75_spill] sm:$0xff] }
 0x6fd   : > { %v3589_v46 = vadd.f32 %v11900_v39, %v10014_v12  ;;  %v3596_v12 = vadd.f32 %v10175_v41, %v10172_v25  ;;  %v3591_v56 = vadd.f32 %v11904_v29, %v11903_v7  ;;  %v3980_v45 = vadd.f32 %v10181_v34, %v10178_v51  ;;  %v8043_v34 = vpop.eup %8042 }
 0x6fe   : > { %6082 = vst [vmem:[%s8627_s21 + $0x130] sm:$0xff] %v5954_v10  ;;  %6083 = vst [vmem:[%s8627_s21 + $0x138] sm:$0xff] %v5955_v62  ;;  %v4230_v58 = vmul.f32 0.001953125, %v3973_v37  ;;  %v4860_v30 = vsub.f32 %v4732_v54, %v4796_v47  ;;  %v4677_v41 = vmul.f32 %v8041_v38, %v4613_v52  ;;  %v3975_v18 = vadd.f32 %v11906_v59, %v11905_v8  ;;  %v4608_v10 = vld [vmem:[%s9252_s6 + $0x120] sm:$0xff]  ;;  %v8045_v62 = vpop.eup %8044 }
 0x6ff   : > { %7275 = vst [vmem:[%s8627_s21 + $0x530] sm:$0xff] %v6594_v17  ;;  %7276 = vst [vmem:[%s8627_s21 + $0x538] sm:$0xff] %v6595_v6  ;;  %5620 = vperm.xlu1 %7963, %v4858_v31   ;;  %5655 = vperm.xlu0 %7962, %v4865_v50   ;;  %v4739_v31 = vld [vmem:[%s9841_s26 + $0x138] sm:$0xff]  ;;  %v10705_v14 = vmul.f32 0.001953125, %v3589_v46  ;;  %v4491_v15 = vadd.f32 1e-05, %v4427_v35  ;;  %v4798_v51 = vmul.f32 %v4670_v42, %v10596_v43  ;;  %8050 = vrsqrt.f32 %v4484_v55 }
 0x700   : > { %v4867_v25 = vsub.f32 %v4739_v31, %v4803_v3  ;;  %v10713_v61 = vmul.f32 0.001953125, %v3596_v12  ;;  %v10720_v1 = vmul.f32 0.001953125, %v3591_v56  ;;  %v4237_v27 = vmul.f32 0.001953125, %v3980_v45  ;;  %v11907_v6 = vld [vmem:[#allocation78_spill] sm:$0xff]  ;;  %v4736_v8 = vld [vmem:[%s9841_s26 + $0x120] sm:$0xff] }
 0x701   : > { %v4294_v2 = vmul.f32 %v10705_v14, %v10705_v14  ;;  %v3593_v50 = vadd.f32 %v11908_v40, %v11907_v6  ;;  %v8047_v48 = vpop.eup %8046  ;;  %v4232_v43 = vmul.f32 0.001953125, %v3975_v18  ;;  %8052 = vrsqrt.f32 %v4491_v15  ;;  %v4617_v3 = vld [vmem:[%s9252_s6 + $0x168] sm:$0xff] }
 0x702   : > { %v4301_v39 = vmul.f32 %v10713_v61, %v10713_v61  ;;  %v3598_v46 = vadd.f32 %v10221_v11, %v10218_v13  ;;  %v3977_v37 = vadd.f32 %v11910_v9, %v11909_v53  ;;  %v4672_v47 = vmul.f32 %v8043_v34, %v4608_v10  ;;  %v10782_v40 = vld [vmem:[%s9841_s26 + $0x168] sm:$0xff] }
 0x703   : > { %5182 = vperm.xlu1 %7963, %v4668_v57   ;;  %5217 = vperm.xlu0 %7962, %v4675_v0   ;;  %v4358_v17 = vsub.f32 %v4230_v58, %v4294_v2  ;;  %v4805_v57 = vmul.f32 %v4677_v41, %v10602_v60  ;;  %v4610_v0 = vld [vmem:[%s9252_s6 + $0x130] sm:$0xff]  ;;  %v8049_v38 = vpop.eup %8048  ;;  %v4862_v60 = vsub.f32 %v4734_v44, %v4798_v51  ;;  %v10745_v31 = vmul.f32 0.001953125, %v3593_v50  ;;  %v11916_v53 = vld [vmem:[#allocation82_spill] sm:$0xff] }
 0x704   : > { %v4296_v35 = vmul.f32 %v10720_v1, %v10720_v1  ;;  %v4365_v12 = vsub.f32 %v4237_v27, %v4301_v39  ;;  %v3982_v13 = vadd.f32 %v10227_v63, %v10224_v32  ;;  %v10743_v11 = vmul.f32 %v8045_v62, %v4610_v0  ;;  %v4743_v27 = vld [vmem:[%s9841_s26 + $0x158] sm:$0xff]  ;;  %v10772_v44 = vld [vmem:[%s9841_s26 + $0x130] sm:$0xff]  ;;  %v11913_v62 = vld [vmem:[#allocation81_spill] sm:$0xff] }
 0x705   : > { %v4422_v54 = vmax.f32 %v4358_v17, 0.0  ;;  %v4869_v52 = vsub.f32 %v4741_v16, %v4805_v57  ;;  %v4679_v55 = vmul.f32 %v8047_v48, %v4615_v19  ;;  %v10747_v7 = vmul.f32 0.001953125, %v3598_v46  ;;  %v11914_v17 = vld [vmem:[#allocation13_spill] sm:$0xff]  ;;  %v4619_v39 = vld [vmem:[%s9252_s6 + $0x178] sm:$0xff] }
 0x706   : > { %v10715_v5 = vpop.xlane.xlu1 %1744  ;;  %v10751_v56 = vmul.f32 %v8049_v38, %v4617_v3  ;;  %v4234_v45 = vmul.f32 0.001953125, %v3977_v37  ;;  %v4429_v32 = vmax.f32 %v4365_v12, 0.0  ;;  %v4239_v63 = vmul.f32 0.001953125, %v3982_v13  ;;  %v11915_v38 = vld [vmem:[#allocation83_spill] sm:$0xff]  ;;  %v11917_v12 = vld [vmem:[#allocation96_spill] sm:$0xff] }
 0x707   : > { %5630 = vperm.xlu1 %7963, %v4860_v30   ;;  %5665 = vperm.xlu0 %7962, %v4867_v25   ;;  %v3600_v58 = vadd.f32 %v10267_v21, %v10264_v33  ;;  %v4800_v30 = vmul.f32 %v4672_v47, %v10613_v20  ;;  %v4486_v25 = vadd.f32 1e-05, %v4422_v54  ;;  %v4807_v59 = vmul.f32 %v4679_v55, %v10637_v23  ;;  %v11911_v33 = vld [vmem:[#allocation91_spill] sm:$0xff] }
 0x708   : > { %v10762_v18 = vmul.f32 %v10743_v11, %v10635_v26  ;;  %v4303_v51 = vmul.f32 %v10747_v7, %v10747_v7  ;;  %v11912_v21 = vld [vmem:[#allocation15_spill] sm:$0xff]  ;;  %v10776_v23 = vmul.f32 %v10751_v56, %v10643_v4  ;;  %v4612_v26 = vld [vmem:[%s9252_s6 + $0x140] sm:$0xff]  ;;  %v3595_v6 = vadd.f32 %v11914_v17, %v11913_v62 }
 0x709   : > { %v8051_v15 = vpop.eup %8050  ;;  %v3984_v20 = vadd.f32 %v11912_v21, %v11911_v33  ;;  %v4493_v57 = vadd.f32 1e-05, %v4429_v32  ;;  %v10784_v48 = vmul.f32 0.001953125, %v3600_v58  ;;  %8054 = vrsqrt.f32 %v4486_v25  ;;  %v11918_v13 = vld [vmem:[#allocation95_spill] sm:$0xff]  ;;  %v4932_v58 = vld [vmem:[%s8627_s21 + $0x140] sm:$0xff] }
 0x70a   : > { %v10732_v24 = vpop.xlane.xlu1 %3539  ;;  %v4367_v0 = vsub.f32 %v4239_v63, %v4303_v51  ;;  %v4871_v46 = vsub.f32 %v4743_v27, %v4807_v59  ;;  %v4866_v4 = vsub.f32 %v10772_v44, %v10762_v18  ;;  %v10789_v16 = vmul.f32 %v8051_v15, %v4612_v26  ;;  %v7149_v25 = vld [vmem:[%s8627_s21 + $0x540] sm:$0xff]  ;;  %v7150_v18 = vld [vmem:[%s8627_s21 + $0x548] sm:$0xff]  ;;  %v11923_v21 = vld [vmem:[#allocation87_spill] sm:$0xff] }
 0x70b   : > { %5192 = vperm.xlu1 %7963, %v4670_v42   ;;  %5227 = vperm.xlu0 %7962, %v4677_v41   ;;  %v4360_v42 = vsub.f32 %v4232_v43, %v4296_v35  ;;  %v4298_v41 = vmul.f32 %v10745_v31, %v10745_v31  ;;  %v8053_v50 = vpop.eup %8052  ;;  %v4864_v43 = vsub.f32 %v4736_v8, %v4800_v30  ;;  %v4241_v37 = vmul.f32 0.001953125, %v3984_v20  ;;  %v4933_v30 = vld [vmem:[%s8627_s21 + $0x148] sm:$0xff]  ;;  %v11922_v8 = vld [vmem:[#allocation17_spill] sm:$0xff] }
 0x70c   : > { %v3979_v9 = vadd.f32 %v11916_v53, %v11915_v38  ;;  %v10795_v35 = vmul.f32 0.001953125, %v3595_v6  ;;  %v3602_v54 = vadd.f32 %v11918_v13, %v11917_v12  ;;  %8056 = vrsqrt.f32 %v4493_v57  ;;  %v11924_v20 = vld [vmem:[#allocation86_spill] sm:$0xff] }
 0x70d   : > { %v4424_v2 = vmax.f32 %v4360_v42, 0.0  ;;  %v4362_v10 = vsub.f32 %v4234_v45, %v4298_v41  ;;  %v11920_v42 = vld [vmem:[#allocation84_spill] sm:$0xff]  ;;  %v4431_v32 = vmax.f32 %v4367_v0, 0.0  ;;  %v4305_v63 = vmul.f32 %v10784_v48, %v10784_v48  ;;  %v11921_v41 = vld [vmem:[#allocation97_spill] sm:$0xff] }
 0x70e   : > { %v10749_v29 = vpop.xlane.xlu1 %2128  ;;  %v3986_v59 = vadd.f32 %v11922_v8, %v11921_v41  ;;  %v4236_v33 = vmul.f32 0.001953125, %v3979_v9  ;;  %v3981_v27 = vadd.f32 %v11924_v20, %v11923_v21  ;;  %v4747_v41 = vld [vmem:[%s9841_s26 + $0x178] sm:$0xff]  ;;  %v11927_v8 = vld [vmem:[#allocation103_spill] sm:$0xff] }
 0x70f   : > { %5640 = vperm.xlu1 %7963, %v4862_v60   ;;  %5675 = vperm.xlu0 %7962, %v4869_v52   ;;  %v4488_v19 = vadd.f32 1e-05, %v4424_v2  ;;  %v4426_v3 = vmax.f32 %v4362_v10, 0.0  ;;  %v10799_v52 = vmul.f32 %v8053_v50, %v4619_v39  ;;  %v4369_v44 = vsub.f32 %v4241_v37, %v4305_v63  ;;  %v4740_v63 = vld [vmem:[%s9841_s26 + $0x140] sm:$0xff] }
 0x710   : > { %v10813_v10 = vmul.f32 0.001953125, %v3602_v54  ;;  %v4495_v57 = vadd.f32 1e-05, %v4431_v32  ;;  %v4238_v9 = vmul.f32 0.001953125, %v3981_v27  ;;  %v4804_v54 = vmul.f32 %v10789_v16, %v10669_v49  ;;  %v4621_v49 = vld [vmem:[%s9252_s6 + $0x188] sm:$0xff] }
 0x711   : > { %8058 = vrsqrt.f32 %v4488_v19  ;;  %v4614_v19 = vld [vmem:[%s9252_s6 + $0x150] sm:$0xff] }
 0x712   : > { %v10768_v34 = vpop.xlane.xlu1 %3923  ;;  %v4307_v12 = vmul.f32 %v10813_v10, %v10813_v10  ;;  %8060 = vrsqrt.f32 %v4495_v57 }
 0x713   : > { %5202 = vperm.xlu1 %7963, %v4672_v47   ;;  %5237 = vperm.xlu0 %7962, %v4679_v55   ;;  %v4873_v47 = vsub.f32 %v10782_v40, %v10776_v23  ;;  %v11919_v55 = vld [vmem:[#allocation85_spill] sm:$0xff]  ;;  %v4300_v40 = vmul.f32 %v10795_v35, %v10795_v35 }
 0x714   : > { %v3597_v45 = vadd.f32 %v11920_v42, %v11919_v55  ;;  %v11925_v42 = vld [vmem:[#allocation102_spill] sm:$0xff] }
 0x715   : > { %v4364_v53 = vsub.f32 %v4236_v33, %v4300_v40 }
 0x716   : > { %v5123_v60 = vpop.permute.xlu1 %5122  ;;  %v10818_v50 = vmul.f32 0.001953125, %v3597_v45  ;;  %v11926_v45 = vld [vmem:[#allocation101_spill] sm:$0xff] }
 0x717   : > { %5650 = vperm.xlu1 %7963, %v4864_v43   ;;  %5685 = vperm.xlu0 %7962, %v4871_v46   ;;  %v5380_v15 = vmul.f32 %v5123_v60, %v4932_v58  ;;  %v5381_v2 = vmul.f32 %v5123_v60, %v4933_v30  ;;  %v6340_v51 = vmul.f32 %v7149_v25, %v5123_v60  ;;  %v4243_v43 = vmul.f32 0.001953125, %v3986_v59 }
 0x718   : > { %v6341_v23 = vmul.f32 %v7150_v18, %v5123_v60  ;;  %v8055_v60 = vpop.eup %8054  ;;  %v4302_v13 = vmul.f32 %v10818_v50, %v10818_v50  ;;  %v3604_v32 = vadd.f32 %v11926_v45, %v11925_v42  ;;  %v4428_v58 = vmax.f32 %v4364_v53, 0.0  ;;  %v11934_v53 = vld [vmem:[#allocation21_spill] sm:$0xff]  ;;  %v4749_v42 = vld [vmem:[%s9841_s26 + $0x188] sm:$0xff]  ;;  %v4623_v45 = vld [vmem:[%s9252_s6 + $0x198] sm:$0xff] }
 0x719   : > { %v4371_v55 = vsub.f32 %v4243_v43, %v4307_v12  ;;  %v4868_v18 = vsub.f32 %v4740_v63, %v4804_v54  ;;  %v4742_v43 = vld [vmem:[%s9841_s26 + $0x150] sm:$0xff]  ;;  %v11938_v63 = vld [vmem:[#allocation109_spill] sm:$0xff] }
 0x71a   : > { %v5571_v26 = vpop.permute.xlu1 %5570  ;;  %v4366_v30 = vsub.f32 %v4238_v9, %v4302_v13  ;;  %v10845_v21 = vmul.f32 0.001953125, %v3604_v32  ;;  %v4492_v27 = vadd.f32 1e-05, %v4428_v58  ;;  %v11936_v13 = vld [vmem:[#allocation92_spill] sm:$0xff]  ;;  %v11937_v32 = vld [vmem:[#allocation110_spill] sm:$0xff] }
 0x71b   : > { %v5828_v62 = vadd.f32 %v5571_v26, %v5380_v15  ;;  %v5829_v17 = vadd.f32 %v5571_v26, %v5381_v2  ;;  %v6468_v6 = vadd.f32 %v6340_v51, %v5571_v26  ;;  %5212 = vperm.xlu1 %7963, %v10743_v11   ;;  %v6469_v0 = vadd.f32 %v6341_v23, %v5571_v26  ;;  %v11929_v2 = vld [vmem:[#allocation88_spill] sm:$0xff]  ;;  %v11930_v51 = vld [vmem:[#allocation14_spill] sm:$0xff] }
 0x71c   : > { %5247 = vperm.xlu0 %7962, %v10751_v56   ;;  %v4433_v11 = vmax.f32 %v4369_v44, 0.0  ;;  %v4490_v56 = vadd.f32 1e-05, %v4426_v3  ;;  %v8057_v3 = vpop.eup %8056  ;;  %v4678_v15 = vmul.f32 %v8055_v60, %v4614_v19  ;;  %v4435_v33 = vmax.f32 %v4371_v55, 0.0  ;;  %v11931_v26 = vld [vmem:[#allocation90_spill] sm:$0xff]  ;;  %v11940_v58 = vld [vmem:[#allocation16_spill] sm:$0xff] }
 0x71d   : > { %v5956_v39 = vmax.f32 %v5828_v62, 0.0  ;;  %v5957_v46 = vmax.f32 %v5829_v17, 0.0  ;;  %v6596_v38 = vmax.f32 %v6468_v6, 0.0  ;;  %v6597_v37 = vmax.f32 %v6469_v0, 0.0  ;;  %v11932_v62 = vld [vmem:[#allocation89_spill] sm:$0xff] }
 0x71e   : > { %v4497_v25 = vadd.f32 1e-05, %v4433_v11  ;;  %8062 = vrsqrt.f32 %v4490_v56  ;;  %v4430_v44 = vmax.f32 %v4366_v30, 0.0  ;;  %v4806_v6 = vmul.f32 %v4678_v15, %v10705_v14  ;;  %v4616_v14 = vld [vmem:[%s9252_s6 + $0x160] sm:$0xff] }
 0x71f   : > { %6084 = vst [vmem:[%s8627_s21 + $0x140] sm:$0xff] %v5956_v39  ;;  %6085 = vst [vmem:[%s8627_s21 + $0x148] sm:$0xff] %v5957_v46  ;;  %5660 = vperm.xlu1 %7963, %v4866_v4   ;;  %v4811_v4 = vmul.f32 %v10799_v52, %v10675_v28  ;;  %v3599_v28 = vadd.f32 %v11930_v51, %v11929_v2  ;;  %v4499_v57 = vadd.f32 1e-05, %v4435_v33  ;;  %v8059_v39 = vpop.eup %8058  ;;  %v11935_v56 = vld [vmem:[#allocation93_spill] sm:$0xff] }
 0x720   : > { %7277 = vst [vmem:[%s8627_s21 + $0x540] sm:$0xff] %v6596_v38  ;;  %7278 = vst [vmem:[%s8627_s21 + $0x548] sm:$0xff] %v6597_v37  ;;  %5695 = vperm.xlu0 %7962, %v4873_v47   ;;  %v11928_v47 = vld [vmem:[#allocation18_spill] sm:$0xff]  ;;  %8064 = vrsqrt.f32 %v4497_v25  ;;  %v4309_v0 = vmul.f32 %v10845_v21, %v10845_v21  ;;  %v4494_v46 = vadd.f32 1e-05, %v4430_v44  ;;  %v8061_v60 = vpop.eup %8060  ;;  %v3601_v54 = vadd.f32 %v11936_v13, %v11935_v56 }
 0x721   : > { %v3988_v59 = vadd.f32 %v11928_v47, %v11927_v8  ;;  %v4875_v20 = vsub.f32 %v4747_v41, %v4811_v4  ;;  %v10852_v40 = vmul.f32 0.001953125, %v3599_v28  ;;  %8066 = vrsqrt.f32 %v4492_v27  ;;  %v11933_v38 = vld [vmem:[#allocation106_spill] sm:$0xff] }
 0x722   : > { %v3606_v9 = vadd.f32 %v11934_v53, %v11933_v38  ;;  %v3990_v4 = vadd.f32 %v11938_v63, %v11937_v32  ;;  %v4870_v19 = vsub.f32 %v4742_v43, %v4806_v6  ;;  %8068 = vrsqrt.f32 %v4499_v57  ;;  %v4625_v27 = vld [vmem:[%s9252_s6 + $0x1a8] sm:$0xff]  ;;  %v11943_v53 = vld [vmem:[#allocation100_spill] sm:$0xff] }
 0x723   : > { %5222 = vperm.xlu1 %7963, %v10789_v16   ;;  %v4685_v16 = vmul.f32 %v8057_v3, %v4621_v49  ;;  %v4245_v17 = vmul.f32 0.001953125, %v3988_v59  ;;  %v4304_v3 = vmul.f32 %v10852_v40, %v10852_v40  ;;  %v4680_v25 = vmul.f32 %v8059_v39, %v4616_v14  ;;  %v4618_v49 = vld [vmem:[%s9252_s6 + $0x170] sm:$0xff] }
 0x724   : > { %5257 = vperm.xlu0 %7962, %v10799_v52   ;;  %v3983_v52 = vadd.f32 %v11932_v62, %v11931_v26  ;;  %8070 = vrsqrt.f32 %v4494_v46  ;;  %v10873_v8 = vmul.f32 0.001953125, %v3606_v9  ;;  %v4687_v59 = vmul.f32 %v8061_v60, %v4623_v45  ;;  %v11941_v62 = vld [vmem:[#allocation99_spill] sm:$0xff] }
 0x725   : > { %v4813_v37 = vmul.f32 %v4685_v16, %v10713_v61  ;;  %v4373_v55 = vsub.f32 %v4245_v17, %v4309_v0  ;;  %v11939_v61 = vld [vmem:[#allocation94_spill] sm:$0xff]  ;;  %v4247_v28 = vmul.f32 0.001953125, %v3990_v4  ;;  %v3608_v33 = vadd.f32 %v10732_v24, %v10715_v5  ;;  %v4744_v5 = vld [vmem:[%s9841_s26 + $0x160] sm:$0xff]  ;;  %v11944_v9 = vld [vmem:[#allocation19_spill] sm:$0xff] }
 0x726   : > { %v10847_v23 = vpop.xlane.xlu0 %1747  ;;  %v4240_v12 = vmul.f32 0.001953125, %v3983_v52  ;;  %v3985_v30 = vadd.f32 %v11940_v58, %v11939_v61  ;;  %v11942_v52 = vld [vmem:[#allocation98_spill] sm:$0xff]  ;;  %v4311_v6 = vmul.f32 %v10873_v8, %v10873_v8  ;;  %v3992_v57 = vadd.f32 %v10768_v34, %v10749_v29  ;;  %v4620_v29 = vld [vmem:[%s9252_s6 + $0x180] sm:$0xff]  ;;  %v4627_v4 = vld [vmem:[%s9252_s6 + $0x1b8] sm:$0xff] }
 0x727   : > { %5670 = vperm.xlu1 %7963, %v4868_v18   ;;  %v4877_v47 = vsub.f32 %v4749_v42, %v4813_v37  ;;  %v4437_v2 = vmax.f32 %v4373_v55, 0.0  ;;  %v3603_v17 = vadd.f32 %v11942_v52, %v11941_v62  ;;  %v4815_v24 = vmul.f32 %v4687_v59, %v10747_v7  ;;  %v11945_v61 = vld [vmem:[#allocation105_spill] sm:$0xff]  ;;  %v11946_v58 = vld [vmem:[#allocation104_spill] sm:$0xff] }
 0x728   : > { %5705 = vperm.xlu0 %7962, %v4875_v20   ;;  %v8063_v41 = vpop.eup %8062  ;;  %v4368_v18 = vsub.f32 %v4240_v12, %v4304_v3  ;;  %v4242_v44 = vmul.f32 0.001953125, %v3985_v30  ;;  %v3987_v37 = vadd.f32 %v11944_v9, %v11943_v53  ;;  %v4375_v14 = vsub.f32 %v4247_v28, %v4311_v6 }
 0x729   : > { %v4682_v26 = vmul.f32 %v8063_v41, %v4618_v49  ;;  %v4501_v39 = vadd.f32 1e-05, %v4437_v2  ;;  %v10897_v60 = vmul.f32 0.001953125, %v3608_v33  ;;  %v10900_v12 = vmul.f32 0.001953125, %v3603_v17  ;;  %v4746_v41 = vld [vmem:[%s9841_s26 + $0x170] sm:$0xff]  ;;  %v4753_v49 = vld [vmem:[%s9841_s26 + $0x1a8] sm:$0xff] }
 0x72a   : > { %v10859_v11 = vpop.xlane.xlu0 %3542  ;;  %v8065_v51 = vpop.eup %8064  ;;  %v4432_v0 = vmax.f32 %v4368_v18, 0.0  ;;  %v4249_v56 = vmul.f32 0.001953125, %v3992_v57  ;;  %v4244_v3 = vmul.f32 0.001953125, %v3987_v37  ;;  %v3605_v30 = vadd.f32 %v11946_v58, %v11945_v61  ;;  %v11947_v18 = vld [vmem:[#allocation20_spill] sm:$0xff]  ;;  %v11948_v2 = vld [vmem:[#allocation107_spill] sm:$0xff] }
 0x72b   : > { %5232 = vperm.xlu1 %7963, %v4678_v15   ;;  %v10876_v15 = vmul.f32 0.001953125, %v3601_v54  ;;  %v4689_v46 = vmul.f32 %v8065_v51, %v4625_v27  ;;  %v8067_v38 = vpop.eup %8066  ;;  %v4810_v55 = vmul.f32 %v4682_v26, %v10745_v31  ;;  %8072 = vrsqrt.f32 %v4501_v39  ;;  %v4755_v58 = vld [vmem:[%s9841_s26 + $0x1b8] sm:$0xff] }
 0x72c   : > { %5267 = vperm.xlu0 %7962, %v4685_v16   ;;  %v4808_v16 = vmul.f32 %v4680_v25, %v10720_v1  ;;  %v4751_v1 = vld [vmem:[%s9841_s26 + $0x198] sm:$0xff]  ;;  %v8069_v42 = vpop.eup %8068  ;;  %v4496_v45 = vadd.f32 1e-05, %v4432_v0  ;;  %v10906_v63 = vmul.f32 %v8067_v38, %v4620_v29  ;;  %v4313_v31 = vmul.f32 %v10897_v60, %v10897_v60 }
 0x72d   : > { %v4306_v43 = vmul.f32 %v10876_v15, %v10876_v15  ;;  %v4879_v54 = vsub.f32 %v4751_v1, %v4815_v24  ;;  %v4817_v32 = vmul.f32 %v4689_v46, %v10784_v48  ;;  %v4308_v48 = vmul.f32 %v10900_v12, %v10900_v12  ;;  %v7151_v24 = vld [vmem:[%s8627_s21 + $0x550] sm:$0xff]  ;;  %v7152_v0 = vld [vmem:[%s8627_s21 + $0x558] sm:$0xff] }
 0x72e   : > { %v10880_v20 = vpop.xlane.xlu0 %2131  ;;  %v4872_v7 = vsub.f32 %v4744_v5, %v4808_v16  ;;  %v3989_v51 = vadd.f32 %v11948_v2, %v11947_v18  ;;  %v4377_v28 = vsub.f32 %v4249_v56, %v4313_v31  ;;  %v4691_v27 = vmul.f32 %v8069_v42, %v4627_v4  ;;  %v4935_v5 = vld [vmem:[%s8627_s21 + $0x158] sm:$0xff]  ;;  %v11950_v42 = vld [vmem:[#allocation111_spill] sm:$0xff] }
 0x72f   : > { %5680 = vperm.xlu1 %7963, %v4870_v19   ;;  %v4370_v34 = vsub.f32 %v4242_v44, %v4306_v43  ;;  %v8071_v19 = vpop.eup %8070  ;;  %8074 = vrsqrt.f32 %v4496_v45  ;;  %v4934_v44 = vld [vmem:[%s8627_s21 + $0x150] sm:$0xff]  ;;  %v4874_v16 = vsub.f32 %v4746_v41, %v4810_v55  ;;  %v10923_v62 = vmul.f32 %v10906_v63, %v10795_v35  ;;  %v11949_v55 = vld [vmem:[#allocation108_spill] sm:$0xff] }
 0x730   : > { %5715 = vperm.xlu0 %7962, %v4877_v47   ;;  %v4622_v47 = vld [vmem:[%s9252_s6 + $0x190] sm:$0xff]  ;;  %v4372_v17 = vsub.f32 %v4244_v3, %v4308_v48  ;;  %v10927_v6 = vmul.f32 0.001953125, %v3605_v30  ;;  %v4881_v43 = vsub.f32 %v4753_v49, %v4817_v32  ;;  %v4246_v9 = vmul.f32 0.001953125, %v3989_v51  ;;  %v4629_v30 = vld [vmem:[%s9252_s6 + $0x1c8] sm:$0xff]  ;;  %v7156_v51 = vld [vmem:[%s8627_s21 + $0x578] sm:$0xff] }
 0x731   : > { %v10925_v52 = vmul.f32 %v8071_v19, %v4622_v47  ;;  %v4441_v35 = vmax.f32 %v4377_v28, 0.0  ;;  %v3607_v45 = vadd.f32 %v11950_v42, %v11949_v55  ;;  %v3991_v31 = vadd.f32 %v10653_v36, %v10631_v22  ;;  %v4939_v22 = vld [vmem:[%s8627_s21 + $0x178] sm:$0xff]  ;;  %v7155_v36 = vld [vmem:[%s8627_s21 + $0x570] sm:$0xff] }
 0x732   : > { %v10902_v13 = vpop.xlane.xlu0 %3926  ;;  %v4943_v55 = vld [vmem:[%s8627_s21 + $0x198] sm:$0xff]  ;;  %v7159_v42 = vld [vmem:[%s8627_s21 + $0x590] sm:$0xff] }
 0x733   : > { %5242 = vperm.xlu1 %7963, %v4680_v25   ;;  %v4439_v25 = vmax.f32 %v4375_v14, 0.0  ;;  %v4819_v14 = vmul.f32 %v4691_v27, %v10813_v10  ;;  %v4748_v10 = vld [vmem:[%s9841_s26 + $0x180] sm:$0xff]  ;;  %v4505_v41 = vadd.f32 1e-05, %v4441_v35  ;;  %v10951_v48 = vmul.f32 %v10925_v52, %v10818_v50 }
 0x734   : > { %5277 = vperm.xlu0 %7962, %v4687_v59   ;;  %v4434_v59 = vmax.f32 %v4370_v34, 0.0  ;;  %v4876_v49 = vsub.f32 %v4748_v10, %v10923_v62  ;;  %v10953_v2 = vmul.f32 0.001953125, %v3607_v45  ;;  %v3609_v50 = vadd.f32 %v10859_v11, %v10847_v23  ;;  %v4750_v23 = vld [vmem:[%s9841_s26 + $0x190] sm:$0xff]  ;;  %v7160_v45 = vld [vmem:[%s8627_s21 + $0x598] sm:$0xff] }
 0x735   : > { %v4503_v57 = vadd.f32 1e-05, %v4439_v25  ;;  %v8073_v32 = vpop.eup %8072  ;;  %v4883_v28 = vsub.f32 %v4755_v58, %v4819_v14  ;;  %v4624_v14 = vld [vmem:[%s9252_s6 + $0x1a0] sm:$0xff]  ;;  %v4878_v10 = vsub.f32 %v4750_v23, %v10951_v48  ;;  %v4947_v23 = vld [vmem:[%s8627_s21 + $0x1b8] sm:$0xff] }
 0x736   : > { %v4498_v53 = vadd.f32 1e-05, %v4434_v59  ;;  %v4938_v59 = vld [vmem:[%s8627_s21 + $0x170] sm:$0xff] }
 0x737   : > { %5690 = vperm.xlu1 %7963, %v4872_v7   ;;  %8076 = vrsqrt.f32 %v4503_v57 }
 0x738   : > { %5725 = vperm.xlu0 %7962, %v4879_v54   ;;  %v4310_v54 = vmul.f32 %v10927_v6, %v10927_v6  ;;  %8078 = vrsqrt.f32 %v4498_v53 }
 0x739   : > { %8080 = vrsqrt.f32 %v4505_v41 }
 0x73a   : > { %v5128_v33 = vpop.permute.xlu0 %5127  ;;  %v4374_v25 = vsub.f32 %v4246_v9, %v4310_v54 }
 0x73b   : > { %5252 = vperm.xlu1 %7963, %v4682_v26   ;;  %v5382_v39 = vmul.f32 %v5128_v33, %v4934_v44  ;;  %v5383_v1 = vmul.f32 %v5128_v33, %v4935_v5  ;;  %v6342_v38 = vmul.f32 %v7151_v24, %v5128_v33  ;;  %v6343_v26 = vmul.f32 %v7152_v0, %v5128_v33  ;;  %v8075_v44 = vpop.eup %8074 }
 0x73c   : > { %5287 = vperm.xlu0 %7962, %v4689_v46   ;;  %v4436_v46 = vmax.f32 %v4372_v17, 0.0  ;;  %v4693_v33 = vmul.f32 %v8073_v32, %v4629_v30  ;;  %v4438_v62 = vmax.f32 %v4374_v25, 0.0  ;;  %v4248_v5 = vmul.f32 0.001953125, %v3991_v31  ;;  %v4626_v25 = vld [vmem:[%s9252_s6 + $0x1b0] sm:$0xff] }
 0x73e   : > { %v5576_v37 = vpop.permute.xlu0 %5575  ;;  %v4500_v18 = vadd.f32 1e-05, %v4436_v46  ;;  %v4821_v11 = vmul.f32 %v4693_v33, %v10845_v21  ;;  %v4942_v21 = vld [vmem:[%s8627_s21 + $0x190] sm:$0xff]  ;;  %v4631_v46 = vld [vmem:[%s9252_s6 + $0x1d8] sm:$0xff] }
 0x73f   : > { %v5830_v29 = vadd.f32 %v5576_v37, %v5382_v39  ;;  %v5831_v34 = vadd.f32 %v5576_v37, %v5383_v1  ;;  %v6470_v7 = vadd.f32 %v6342_v38, %v5576_v37  ;;  %v6471_v56 = vadd.f32 %v6343_v26, %v5576_v37  ;;  %5700 = vperm.xlu1 %7963, %v4874_v16   ;;  %v4757_v37 = vld [vmem:[%s9841_s26 + $0x1c8] sm:$0xff] }
 0x740   : > { %5735 = vperm.xlu0 %7962, %v4881_v43   ;;  %8082 = vrsqrt.f32 %v4500_v18  ;;  %v4312_v1 = vmul.f32 %v10953_v2, %v10953_v2  ;;  %v3993_v38 = vadd.f32 %v10902_v13, %v10880_v20  ;;  %v4502_v20 = vadd.f32 1e-05, %v4438_v62  ;;  %v4633_v62 = vld [vmem:[%s9252_s6 + $0x1e8] sm:$0xff] }
 0x741   : > { %v5958_v4 = vmax.f32 %v5830_v29, 0.0  ;;  %v5959_v19 = vmax.f32 %v5831_v34, 0.0  ;;  %v6598_v3 = vmax.f32 %v6470_v7, 0.0  ;;  %v6599_v61 = vmax.f32 %v6471_v56, 0.0  ;;  %v8077_v29 = vpop.eup %8076 }
 0x742   : > { %v5138_v47 = vpop.permute.xlu0 %5137  ;;  %v4376_v13 = vsub.f32 %v4248_v5, %v4312_v1  ;;  %v10968_v34 = vmul.f32 0.001953125, %v3609_v50  ;;  %v4250_v54 = vmul.f32 0.001953125, %v3993_v38  ;;  %v4885_v32 = vsub.f32 %v4757_v37, %v4821_v11  ;;  %v4628_v1 = vld [vmem:[%s9252_s6 + $0x1c0] sm:$0xff]  ;;  %v7163_v11 = vld [vmem:[%s8627_s21 + $0x5b0] sm:$0xff] }
 0x743   : > { %6086 = vst [vmem:[%s8627_s21 + $0x150] sm:$0xff] %v5958_v4  ;;  %6087 = vst [vmem:[%s8627_s21 + $0x158] sm:$0xff] %v5959_v19  ;;  %5262 = vperm.xlu1 %7963, %v10906_v63   ;;  %v5386_v16 = vmul.f32 %v5138_v47, %v4938_v59  ;;  %v5387_v17 = vmul.f32 %v5138_v47, %v4939_v22  ;;  %v6346_v57 = vmul.f32 %v7155_v36, %v5138_v47  ;;  %v8079_v19 = vpop.eup %8078 }
 0x744   : > { %7279 = vst [vmem:[%s8627_s21 + $0x550] sm:$0xff] %v6598_v3  ;;  %7280 = vst [vmem:[%s8627_s21 + $0x558] sm:$0xff] %v6599_v61  ;;  %5297 = vperm.xlu0 %7962, %v4691_v27   ;;  %v6347_v63 = vmul.f32 %v7156_v51, %v5138_v47  ;;  %v4688_v4 = vmul.f32 %v8075_v44, %v4624_v14  ;;  %8084 = vrsqrt.f32 %v4502_v20  ;;  %v8081_v36 = vpop.eup %8080 }
 0x745   : > { %v4314_v31 = vmul.f32 %v10968_v34, %v10968_v34  ;;  %v4695_v47 = vmul.f32 %v8077_v29, %v4631_v46 }
 0x746   : > { %v5586_v24 = vpop.permute.xlu0 %5585 }
 0x747   : > { %v5834_v0 = vadd.f32 %v5586_v24, %v5386_v16  ;;  %v5835_v43 = vadd.f32 %v5586_v24, %v5387_v17  ;;  %v6474_v27 = vadd.f32 %v6346_v57, %v5586_v24  ;;  %v6475_v39 = vadd.f32 %v6347_v63, %v5586_v24  ;;  %5710 = vperm.xlu1 %7963, %v4876_v49   ;;  %v4752_v63 = vld [vmem:[%s9841_s26 + $0x1a0] sm:$0xff] }
 0x748   : > { %5745 = vperm.xlu0 %7962, %v4883_v28   ;;  %v4378_v51 = vsub.f32 %v4250_v54, %v4314_v31  ;;  %v4816_v28 = vmul.f32 %v4688_v4, %v10852_v40  ;;  %v4823_v40 = vmul.f32 %v4695_v47, %v10873_v8 }
 0x749   : > { %v5962_v26 = vmax.f32 %v5834_v0, 0.0  ;;  %v5963_v53 = vmax.f32 %v5835_v43, 0.0  ;;  %v6602_v9 = vmax.f32 %v6474_v27, 0.0  ;;  %v6603_v35 = vmax.f32 %v6475_v39, 0.0  ;;  %v4946_v43 = vld [vmem:[%s8627_s21 + $0x1b0] sm:$0xff]  ;;  %v4759_v39 = vld [vmem:[%s9841_s26 + $0x1d8] sm:$0xff] }
 0x74a   : > { %v5148_v7 = vpop.permute.xlu0 %5147  ;;  %v8083_v5 = vpop.eup %8082  ;;  %v4442_v38 = vmax.f32 %v4378_v51, 0.0  ;;  %v7167_v51 = vld [vmem:[%s8627_s21 + $0x5d0] sm:$0xff] }
 0x74b   : > { %6090 = vst [vmem:[%s8627_s21 + $0x170] sm:$0xff] %v5962_v26  ;;  %6091 = vst [vmem:[%s8627_s21 + $0x178] sm:$0xff] %v5963_v53  ;;  %5272 = vperm.xlu1 %7963, %v10925_v52   ;;  %v1751_v56 = vpop.xlane.xlu1 %1750  ;;  %v5390_v3 = vmul.f32 %v5148_v7, %v4942_v21  ;;  %v5391_v61 = vmul.f32 %v5148_v7, %v4943_v55  ;;  %v6350_v58 = vmul.f32 %v7159_v42, %v5148_v7  ;;  %v7164_v26 = vld [vmem:[%s8627_s21 + $0x5b8] sm:$0xff] }
 0x74c   : > { %7283 = vst [vmem:[%s8627_s21 + $0x570] sm:$0xff] %v6602_v9  ;;  %7284 = vst [vmem:[%s8627_s21 + $0x578] sm:$0xff] %v6603_v35  ;;  %5307 = vperm.xlu0 %7962, %v4693_v33   ;;  %v6351_v30 = vmul.f32 %v7160_v45, %v5148_v7  ;;  %v4440_v52 = vmax.f32 %v4376_v13, 0.0  ;;  %v10985_v33 = vmul.f32 %v8079_v19, %v4626_v25  ;;  %v4506_v45 = vadd.f32 1e-05, %v4442_v38  ;;  %v4630_v19 = vld [vmem:[%s9252_s6 + $0x1d0] sm:$0xff] }
 0x74d   : > { %v4880_v53 = vsub.f32 %v4752_v63, %v4816_v28  ;;  %v4697_v9 = vmul.f32 %v8081_v36, %v4633_v62  ;;  %v4887_v7 = vsub.f32 %v4759_v39, %v4823_v40  ;;  %v11006_v21 = vmul.f32 %v8083_v5, %v4628_v1  ;;  %v4761_v25 = vld [vmem:[%s9841_s26 + $0x1e8] sm:$0xff]  ;;  %v4951_v36 = vld [vmem:[%s8627_s21 + $0x1d8] sm:$0xff]  ;;  %v7153_v62 = vld [vmem:[%s8627_s21 + $0x560] sm:$0xff] }
 0x74e   : > { %v5596_v41 = vpop.permute.xlu0 %5595  ;;  %v4504_v50 = vadd.f32 1e-05, %v4440_v52  ;;  %v11002_v35 = vmul.f32 %v10985_v33, %v10876_v15  ;;  %v8085_v42 = vpop.eup %8084  ;;  %v7168_v28 = vld [vmem:[%s8627_s21 + $0x5d8] sm:$0xff]  ;;  %v4937_v63 = vld [vmem:[%s8627_s21 + $0x168] sm:$0xff] }
 0x74f   : > { %v5838_v59 = vadd.f32 %v5596_v41, %v5390_v3  ;;  %v5839_v49 = vadd.f32 %v5596_v41, %v5391_v61  ;;  %v6478_v48 = vadd.f32 %v6350_v58, %v5596_v41  ;;  %v6479_v18 = vadd.f32 %v6351_v30, %v5596_v41  ;;  %5720 = vperm.xlu1 %7963, %v4878_v10   ;;  %v3546_v22 = vpop.xlane.xlu1 %3545  ;;  %v7154_v5 = vld [vmem:[%s8627_s21 + $0x568] sm:$0xff] }
 0x750   : > { %5755 = vperm.xlu0 %7962, %v4885_v32   ;;  %v3610_v24 = vadd.f32 %v3546_v22, %v1751_v56  ;;  %8086 = vrsqrt.f32 %v4504_v50  ;;  %v4754_v32 = vld [vmem:[%s9841_s26 + $0x1b0] sm:$0xff] }
 0x751   : > { %v5966_v44 = vmax.f32 %v5838_v59, 0.0  ;;  %v5967_v16 = vmax.f32 %v5839_v49, 0.0  ;;  %v6606_v17 = vmax.f32 %v6478_v48, 0.0  ;;  %v6607_v57 = vmax.f32 %v6479_v18, 0.0 }
 0x752   : > { %v5158_v0 = vpop.permute.xlu0 %5157  ;;  %v11004_v20 = vmul.f32 0.001953125, %v3610_v24  ;;  %v4882_v49 = vsub.f32 %v4754_v32, %v11002_v35  ;;  %v11024_v48 = vmul.f32 %v11006_v21, %v10900_v12  ;;  %v11026_v18 = vmul.f32 %v8085_v42, %v4630_v19  ;;  %v4954_v42 = vld [vmem:[%s8627_s21 + $0x1f0] sm:$0xff] }
 0x753   : > { %6094 = vst [vmem:[%s8627_s21 + $0x190] sm:$0xff] %v5966_v44  ;;  %6095 = vst [vmem:[%s8627_s21 + $0x198] sm:$0xff] %v5967_v16  ;;  %5282 = vperm.xlu1 %7963, %v4688_v4   ;;  %v2135_v27 = vpop.xlane.xlu1 %2134  ;;  %v5394_v8 = vmul.f32 %v5158_v0, %v4946_v43  ;;  %v5395_v37 = vmul.f32 %v5158_v0, %v4947_v23  ;;  %v6354_v14 = vmul.f32 %v7163_v11, %v5158_v0  ;;  %v7171_v19 = vld [vmem:[%s8627_s21 + $0x5f0] sm:$0xff] }
 0x754   : > { %7287 = vst [vmem:[%s8627_s21 + $0x590] sm:$0xff] %v6606_v17  ;;  %7288 = vst [vmem:[%s8627_s21 + $0x598] sm:$0xff] %v6607_v57  ;;  %5317 = vperm.xlu0 %7962, %v4695_v47   ;;  %v6355_v29 = vmul.f32 %v7164_v26, %v5158_v0  ;;  %v4825_v4 = vmul.f32 %v4697_v9, %v10897_v60  ;;  %v4315_v52 = vmul.f32 %v11004_v20, %v11004_v20  ;;  %v4950_v60 = vld [vmem:[%s8627_s21 + $0x1d0] sm:$0xff]  ;;  %v4936_v47 = vld [vmem:[%s8627_s21 + $0x160] sm:$0xff] }
 0x755   : > { %8088 = vrsqrt.f32 %v4506_v45  ;;  %v4940_v45 = vld [vmem:[%s8627_s21 + $0x180] sm:$0xff] }
 0x756   : > { %v5606_v13 = vpop.permute.xlu0 %5605 }
 0x757   : > { %v5842_v56 = vadd.f32 %v5606_v13, %v5394_v8  ;;  %v5843_v46 = vadd.f32 %v5606_v13, %v5395_v37  ;;  %v6482_v54 = vadd.f32 %v6354_v14, %v5606_v13  ;;  %v6483_v55 = vadd.f32 %v6355_v29, %v5606_v13  ;;  %5730 = vperm.xlu1 %7963, %v4880_v53   ;;  %v3930_v15 = vpop.xlane.xlu1 %3929  ;;  %v4756_v13 = vld [vmem:[%s9841_s26 + $0x1c0] sm:$0xff] }
 0x758   : > { %v3994_v10 = vadd.f32 %v3930_v15, %v2135_v27  ;;  %5765 = vperm.xlu0 %7962, %v4887_v7   ;;  %v4632_v7 = vld [vmem:[%s9252_s6 + $0x1e0] sm:$0xff] }
 0x759   : > { %v5970_v3 = vmax.f32 %v5842_v56, 0.0  ;;  %v5971_v61 = vmax.f32 %v5843_v46, 0.0  ;;  %v6610_v58 = vmax.f32 %v6482_v54, 0.0  ;;  %v6611_v30 = vmax.f32 %v6483_v55, 0.0 }
 0x75a   : > { %v4251_v31 = vmul.f32 0.001953125, %v3994_v10  ;;  %v5168_v41 = vpop.permute.xlu0 %5167  ;;  %v8087_v11 = vpop.eup %8086 }
 0x75b   : > { %6098 = vst [vmem:[%s8627_s21 + $0x1b0] sm:$0xff] %v5970_v3  ;;  %6099 = vst [vmem:[%s8627_s21 + $0x1b8] sm:$0xff] %v5971_v61  ;;  %5292 = vperm.xlu1 %7963, %v10985_v33   ;;  %v5133_v59 = vpop.permute.xlu1 %5132  ;;  %v5398_v44 = vmul.f32 %v5168_v41, %v4950_v60  ;;  %v4889_v33 = vsub.f32 %v4761_v25, %v4825_v4  ;;  %v5399_v16 = vmul.f32 %v5168_v41, %v4951_v36  ;;  %v4955_v4 = vld [vmem:[%s8627_s21 + $0x1f8] sm:$0xff]  ;;  %v7157_v60 = vld [vmem:[%s8627_s21 + $0x580] sm:$0xff] }
 0x75c   : > { %7291 = vst [vmem:[%s8627_s21 + $0x5b0] sm:$0xff] %v6610_v58  ;;  %7292 = vst [vmem:[%s8627_s21 + $0x5b8] sm:$0xff] %v6611_v30  ;;  %v4379_v22 = vsub.f32 %v4251_v31, %v4315_v52  ;;  %5327 = vperm.xlu0 %7962, %v4697_v9   ;;  %v6358_v17 = vmul.f32 %v7167_v51, %v5168_v41  ;;  %v6359_v57 = vmul.f32 %v7168_v28, %v5168_v41  ;;  %v7172_v3 = vld [vmem:[%s8627_s21 + $0x5f8] sm:$0xff]  ;;  %v4941_v41 = vld [vmem:[%s8627_s21 + $0x188] sm:$0xff] }
 0x75d   : > { %v5384_v50 = vmul.f32 %v5133_v59, %v4936_v47  ;;  %v5385_v12 = vmul.f32 %v5133_v59, %v4937_v63  ;;  %v6344_v0 = vmul.f32 %v7153_v62, %v5133_v59  ;;  %v6345_v40 = vmul.f32 %v7154_v5, %v5133_v59  ;;  %v7158_v47 = vld [vmem:[%s8627_s21 + $0x588] sm:$0xff] }
 0x75e   : > { %v4443_v24 = vmax.f32 %v4379_v22, 0.0  ;;  %v5616_v43 = vpop.permute.xlu0 %5615  ;;  %v4884_v61 = vsub.f32 %v4756_v13, %v11024_v48  ;;  %v11051_v58 = vmul.f32 %v11026_v18, %v10927_v6  ;;  %v11053_v30 = vmul.f32 %v8087_v11, %v4632_v7  ;;  %v4958_v11 = vld [vmem:[%s8627_s21 + $0x210] sm:$0xff] }
 0x75f   : > { %v5846_v27 = vadd.f32 %v5616_v43, %v5398_v44  ;;  %v5847_v39 = vadd.f32 %v5616_v43, %v5399_v16  ;;  %v6486_v1 = vadd.f32 %v6358_v17, %v5616_v43  ;;  %v6487_v38 = vadd.f32 %v6359_v57, %v5616_v43  ;;  %5740 = vperm.xlu1 %7963, %v4882_v49   ;;  %v5581_v23 = vpop.permute.xlu1 %5580  ;;  %v8089_v59 = vpop.eup %8088 }
 0x760   : > { %v4507_v26 = vadd.f32 1e-05, %v4443_v24  ;;  %v5832_v53 = vadd.f32 %v5581_v23, %v5384_v50  ;;  %v5833_v9 = vadd.f32 %v5581_v23, %v5385_v12  ;;  %v6472_v35 = vadd.f32 %v6344_v0, %v5581_v23  ;;  %5775 = vperm.xlu0 %7962, %v4889_v33   ;;  %v4758_v0 = vld [vmem:[%s9841_s26 + $0x1d0] sm:$0xff] }
 0x761   : > { %v5974_v8 = vmax.f32 %v5846_v27, 0.0  ;;  %v5975_v37 = vmax.f32 %v5847_v39, 0.0  ;;  %v6614_v14 = vmax.f32 %v6486_v1, 0.0  ;;  %v6615_v29 = vmax.f32 %v6487_v38, 0.0 }
 0x762   : > { %8090 = vrsqrt.f32 %v4507_v26  ;;  %v5960_v56 = vmax.f32 %v5832_v53, 0.0  ;;  %v5961_v46 = vmax.f32 %v5833_v9, 0.0  ;;  %v6473_v54 = vadd.f32 %v6345_v40, %v5581_v23  ;;  %v5178_v55 = vpop.permute.xlu0 %5177  ;;  %v4634_v40 = vld [vmem:[%s9252_s6 + $0x1f0] sm:$0xff]  ;;  %v4635_v23 = vld [vmem:[%s9252_s6 + $0x1f8] sm:$0xff]  ;;  %v4944_v26 = vld [vmem:[%s8627_s21 + $0x1a0] sm:$0xff] }
 0x763   : > { %6102 = vst [vmem:[%s8627_s21 + $0x1d0] sm:$0xff] %v5974_v8  ;;  %6103 = vst [vmem:[%s8627_s21 + $0x1d8] sm:$0xff] %v5975_v37  ;;  %v6600_v15 = vmax.f32 %v6472_v35, 0.0  ;;  %5302 = vperm.xlu1 %7963, %v11006_v21   ;;  %v5143_v10 = vpop.permute.xlu1 %5142  ;;  %v5402_v21 = vmul.f32 %v5178_v55, %v4954_v42  ;;  %v5403_v25 = vmul.f32 %v5178_v55, %v4955_v4  ;;  %v4959_v35 = vld [vmem:[%s8627_s21 + $0x218] sm:$0xff]  ;;  %v7175_v8 = vld [vmem:[%s8627_s21 + $0x610] sm:$0xff] }
 0x764   : > { %7295 = vst [vmem:[%s8627_s21 + $0x5d0] sm:$0xff] %v6614_v14  ;;  %7296 = vst [vmem:[%s8627_s21 + $0x5d8] sm:$0xff] %v6615_v29  ;;  %v6601_v32 = vmax.f32 %v6473_v54, 0.0  ;;  %v6362_v52 = vmul.f32 %v7171_v19, %v5178_v55  ;;  %v6363_v31 = vmul.f32 %v7172_v3, %v5178_v55  ;;  %v5388_v49 = vmul.f32 %v5143_v10, %v4940_v45  ;;  %v7176_v37 = vld [vmem:[%s8627_s21 + $0x618] sm:$0xff]  ;;  %v4945_v54 = vld [vmem:[%s8627_s21 + $0x1a8] sm:$0xff] }
 0x765   : > { %6088 = vst [vmem:[%s8627_s21 + $0x160] sm:$0xff] %v5960_v56  ;;  %6089 = vst [vmem:[%s8627_s21 + $0x168] sm:$0xff] %v5961_v46  ;;  %v5389_v22 = vmul.f32 %v5143_v10, %v4941_v41  ;;  %v6348_v36 = vmul.f32 %v7157_v60, %v5143_v10  ;;  %v6349_v48 = vmul.f32 %v7158_v47, %v5143_v10  ;;  %v7161_v55 = vld [vmem:[%s8627_s21 + $0x5a0] sm:$0xff] }
 0x766   : > { %7281 = vst [vmem:[%s8627_s21 + $0x560] sm:$0xff] %v6600_v15  ;;  %7282 = vst [vmem:[%s8627_s21 + $0x568] sm:$0xff] %v6601_v32  ;;  %v5626_v51 = vpop.permute.xlu0 %5625  ;;  %v4886_v29 = vsub.f32 %v4758_v0, %v11051_v58  ;;  %v11080_v13 = vmul.f32 %v11053_v30, %v10953_v2  ;;  %v7162_v15 = vld [vmem:[%s8627_s21 + $0x5a8] sm:$0xff] }
 0x767   : > { %v5850_v6 = vadd.f32 %v5626_v51, %v5402_v21  ;;  %v5851_v28 = vadd.f32 %v5626_v51, %v5403_v25  ;;  %v6490_v44 = vadd.f32 %v6362_v52, %v5626_v51  ;;  %v6491_v33 = vadd.f32 %v6363_v31, %v5626_v51  ;;  %5750 = vperm.xlu1 %7963, %v4884_v61   ;;  %v5591_v16 = vpop.permute.xlu1 %5590 }
 0x768   : > { %v5836_v17 = vadd.f32 %v5591_v16, %v5388_v49  ;;  %v5837_v57 = vadd.f32 %v5591_v16, %v5389_v22  ;;  %v6476_v63 = vadd.f32 %v6348_v36, %v5591_v16  ;;  %v6477_v62 = vadd.f32 %v6349_v48, %v5591_v16  ;;  %v4760_v22 = vld [vmem:[%s9841_s26 + $0x1e0] sm:$0xff] }
 0x769   : > { %v5978_v5 = vmax.f32 %v5850_v6, 0.0  ;;  %v5979_v50 = vmax.f32 %v5851_v28, 0.0  ;;  %v6618_v24 = vmax.f32 %v6490_v44, 0.0  ;;  %v6619_v12 = vmax.f32 %v6491_v33, 0.0  ;;  %v4962_v44 = vld [vmem:[%s8627_s21 + $0x230] sm:$0xff]  ;;  %v4763_v33 = vld [vmem:[%s9841_s26 + $0x1f8] sm:$0xff] }
 0x76a   : > { %v5964_v43 = vmax.f32 %v5836_v17, 0.0  ;;  %v5965_v27 = vmax.f32 %v5837_v57, 0.0  ;;  %v6604_v39 = vmax.f32 %v6476_v63, 0.0  ;;  %v6605_v1 = vmax.f32 %v6477_v62, 0.0  ;;  %v5188_v38 = vpop.permute.xlu0 %5187  ;;  %v4948_v16 = vld [vmem:[%s8627_s21 + $0x1c0] sm:$0xff]  ;;  %v4963_v57 = vld [vmem:[%s8627_s21 + $0x238] sm:$0xff] }
 0x76b   : > { %6106 = vst [vmem:[%s8627_s21 + $0x1f0] sm:$0xff] %v5978_v5  ;;  %6107 = vst [vmem:[%s8627_s21 + $0x1f8] sm:$0xff] %v5979_v50  ;;  %5312 = vperm.xlu1 %7963, %v11026_v18   ;;  %v5153_v53 = vpop.permute.xlu1 %5152  ;;  %v5406_v14 = vmul.f32 %v5188_v38, %v4958_v11  ;;  %v11082_v18 = vmul.f32 %v8089_v59, %v4634_v40  ;;  %v5407_v7 = vmul.f32 %v5188_v38, %v4959_v35  ;;  %v7179_v63 = vld [vmem:[%s8627_s21 + $0x630] sm:$0xff]  ;;  %v7180_v62 = vld [vmem:[%s8627_s21 + $0x638] sm:$0xff] }
 0x76c   : > { %7299 = vst [vmem:[%s8627_s21 + $0x5f0] sm:$0xff] %v6618_v24  ;;  %7300 = vst [vmem:[%s8627_s21 + $0x5f8] sm:$0xff] %v6619_v12  ;;  %v8091_v9 = vpop.eup %8090  ;;  %v6366_v56 = vmul.f32 %v7175_v8, %v5188_v38  ;;  %v6367_v46 = vmul.f32 %v7176_v37, %v5188_v38  ;;  %v5392_v45 = vmul.f32 %v5153_v53, %v4944_v26 }
 0x76d   : > { %6092 = vst [vmem:[%s8627_s21 + $0x180] sm:$0xff] %v5964_v43  ;;  %6093 = vst [vmem:[%s8627_s21 + $0x188] sm:$0xff] %v5965_v27  ;;  %v4699_v42 = vmul.f32 %v8091_v9, %v4635_v23  ;;  %v5393_v10 = vmul.f32 %v5153_v53, %v4945_v54  ;;  %v6352_v32 = vmul.f32 %v7161_v55, %v5153_v53  ;;  %v4949_v43 = vld [vmem:[%s8627_s21 + $0x1c8] sm:$0xff]  ;;  %v7165_v27 = vld [vmem:[%s8627_s21 + $0x5c0] sm:$0xff] }
 0x76e   : > { %7285 = vst [vmem:[%s8627_s21 + $0x580] sm:$0xff] %v6604_v39  ;;  %7286 = vst [vmem:[%s8627_s21 + $0x588] sm:$0xff] %v6605_v1  ;;  %v6353_v4 = vmul.f32 %v7162_v15, %v5153_v53  ;;  %v5636_v19 = vpop.permute.xlu0 %5635  ;;  %v4888_v24 = vsub.f32 %v4760_v22, %v11080_v13  ;;  %v7166_v39 = vld [vmem:[%s8627_s21 + $0x5c8] sm:$0xff]  ;;  %v4762_v55 = vld [vmem:[%s9841_s26 + $0x1f0] sm:$0xff] }
 0x76f   : > { %v5854_v3 = vadd.f32 %v5636_v19, %v5406_v14  ;;  %v5855_v61 = vadd.f32 %v5636_v19, %v5407_v7  ;;  %v6494_v58 = vadd.f32 %v6366_v56, %v5636_v19  ;;  %v6495_v2 = vadd.f32 %v6367_v46, %v5636_v19  ;;  %5760 = vperm.xlu1 %7963, %v4886_v29   ;;  %v5601_v21 = vpop.permute.xlu1 %5600  ;;  %v4952_v19 = vld [vmem:[%s8627_s21 + $0x1e0] sm:$0xff] }
 0x770   : > { %5337 = vperm.xlu0 %7962, %v4699_v42   ;;  %v5840_v25 = vadd.f32 %v5601_v21, %v5392_v45  ;;  %v5841_v52 = vadd.f32 %v5601_v21, %v5393_v10  ;;  %v6480_v31 = vadd.f32 %v6352_v32, %v5601_v21  ;;  %v6481_v41 = vadd.f32 %v6353_v4, %v5601_v21  ;;  %v4966_v4 = vld [vmem:[%s8627_s21 + $0x250] sm:$0xff] }
 0x771   : > { %v5982_v60 = vmax.f32 %v5854_v3, 0.0  ;;  %v5983_v47 = vmax.f32 %v5855_v61, 0.0  ;;  %v6622_v59 = vmax.f32 %v6494_v58, 0.0  ;;  %v6623_v49 = vmax.f32 %v6495_v2, 0.0  ;;  %v4967_v61 = vld [vmem:[%s8627_s21 + $0x258] sm:$0xff]  ;;  %v7183_v58 = vld [vmem:[%s8627_s21 + $0x650] sm:$0xff] }
 0x772   : > { %v5968_v36 = vmax.f32 %v5840_v25, 0.0  ;;  %v5969_v48 = vmax.f32 %v5841_v52, 0.0  ;;  %v6608_v51 = vmax.f32 %v6480_v31, 0.0  ;;  %v6609_v6 = vmax.f32 %v6481_v41, 0.0  ;;  %v5198_v28 = vpop.permute.xlu0 %5197  ;;  %v7184_v2 = vld [vmem:[%s8627_s21 + $0x658] sm:$0xff] }
 0x773   : > { %6110 = vst [vmem:[%s8627_s21 + $0x210] sm:$0xff] %v5982_v60  ;;  %6111 = vst [vmem:[%s8627_s21 + $0x218] sm:$0xff] %v5983_v47  ;;  %5322 = vperm.xlu1 %7963, %v11053_v30   ;;  %v5163_v17 = vpop.permute.xlu1 %5162  ;;  %v5410_v5 = vmul.f32 %v5198_v28, %v4962_v44  ;;  %v4827_v50 = vmul.f32 %v4699_v42, %v11004_v20  ;;  %v11107_v30 = vmul.f32 %v11082_v18, %v10968_v34  ;;  %v4953_v60 = vld [vmem:[%s8627_s21 + $0x1e8] sm:$0xff]  ;;  %v7169_v47 = vld [vmem:[%s8627_s21 + $0x5e0] sm:$0xff] }
 0x774   : > { %7303 = vst [vmem:[%s8627_s21 + $0x610] sm:$0xff] %v6622_v59  ;;  %7304 = vst [vmem:[%s8627_s21 + $0x618] sm:$0xff] %v6623_v49  ;;  %v5411_v12 = vmul.f32 %v5198_v28, %v4963_v57  ;;  %v6370_v0 = vmul.f32 %v7179_v63, %v5198_v28  ;;  %v6371_v40 = vmul.f32 %v7180_v62, %v5198_v28 }
 0x775   : > { %6096 = vst [vmem:[%s8627_s21 + $0x1a0] sm:$0xff] %v5968_v36  ;;  %6097 = vst [vmem:[%s8627_s21 + $0x1a8] sm:$0xff] %v5969_v48  ;;  %v5396_v1 = vmul.f32 %v5163_v17, %v4948_v16  ;;  %v4891_v38 = vsub.f32 %v4763_v33, %v4827_v50  ;;  %v5397_v23 = vmul.f32 %v5163_v17, %v4949_v43 }
 0x776   : > { %7289 = vst [vmem:[%s8627_s21 + $0x5a0] sm:$0xff] %v6608_v51  ;;  %7290 = vst [vmem:[%s8627_s21 + $0x5a8] sm:$0xff] %v6609_v6  ;;  %v6356_v11 = vmul.f32 %v7165_v27, %v5163_v17  ;;  %v6357_v26 = vmul.f32 %v7166_v39, %v5163_v17  ;;  %v5646_v53 = vpop.permute.xlu0 %5645  ;;  %v4890_v21 = vsub.f32 %v4762_v55, %v11107_v30  ;;  %v4970_v27 = vld [vmem:[%s8627_s21 + $0x270] sm:$0xff]  ;;  %v4956_v39 = vld [vmem:[%s8627_s21 + $0x200] sm:$0xff] }
 0x777   : > { %v5858_v20 = vadd.f32 %v5646_v53, %v5410_v5  ;;  %v5859_v9 = vadd.f32 %v5646_v53, %v5411_v12  ;;  %v6498_v35 = vadd.f32 %v6370_v0, %v5646_v53  ;;  %v6499_v8 = vadd.f32 %v6371_v40, %v5646_v53  ;;  %5770 = vperm.xlu1 %7963, %v4888_v24   ;;  %v5611_v34 = vpop.permute.xlu1 %5610 }
 0x778   : > { %5785 = vperm.xlu0 %7962, %v4891_v38   ;;  %v5844_v37 = vadd.f32 %v5611_v34, %v5396_v1  ;;  %v5845_v14 = vadd.f32 %v5611_v34, %v5397_v23  ;;  %v6484_v29 = vadd.f32 %v6356_v11, %v5611_v34  ;;  %v6485_v13 = vadd.f32 %v6357_v26, %v5611_v34  ;;  %v4971_v38 = vld [vmem:[%s8627_s21 + $0x278] sm:$0xff]  ;;  %v7187_v23 = vld [vmem:[%s8627_s21 + $0x670] sm:$0xff]  ;;  %v7174_v34 = vld [vmem:[%s8627_s21 + $0x608] sm:$0xff] }
 0x779   : > { %v5986_v7 = vmax.f32 %v5858_v20, 0.0  ;;  %v5987_v56 = vmax.f32 %v5859_v9, 0.0  ;;  %v6626_v46 = vmax.f32 %v6498_v35, 0.0  ;;  %v6627_v54 = vmax.f32 %v6499_v8, 0.0  ;;  %v7188_v11 = vld [vmem:[%s8627_s21 + $0x678] sm:$0xff]  ;;  %v4957_v35 = vld [vmem:[%s8627_s21 + $0x208] sm:$0xff] }
 0x77a   : > { %v5972_v15 = vmax.f32 %v5844_v37, 0.0  ;;  %v5973_v42 = vmax.f32 %v5845_v14, 0.0  ;;  %v6612_v45 = vmax.f32 %v6484_v29, 0.0  ;;  %v6613_v10 = vmax.f32 %v6485_v13, 0.0  ;;  %v5208_v32 = vpop.permute.xlu0 %5207  ;;  %v7173_v8 = vld [vmem:[%s8627_s21 + $0x600] sm:$0xff] }
 0x77b   : > { %6114 = vst [vmem:[%s8627_s21 + $0x230] sm:$0xff] %v5986_v7  ;;  %6115 = vst [vmem:[%s8627_s21 + $0x238] sm:$0xff] %v5987_v56  ;;  %5332 = vperm.xlu1 %7963, %v11082_v18   ;;  %v5173_v3 = vpop.permute.xlu1 %5172  ;;  %v5414_v25 = vmul.f32 %v5208_v32, %v4966_v4  ;;  %v5415_v52 = vmul.f32 %v5208_v32, %v4967_v61  ;;  %v6374_v31 = vmul.f32 %v7183_v58, %v5208_v32  ;;  %v7170_v18 = vld [vmem:[%s8627_s21 + $0x5e8] sm:$0xff] }
 0x77c   : > { %7307 = vst [vmem:[%s8627_s21 + $0x630] sm:$0xff] %v6626_v46  ;;  %7308 = vst [vmem:[%s8627_s21 + $0x638] sm:$0xff] %v6627_v54  ;;  %v6375_v41 = vmul.f32 %v7184_v2, %v5208_v32  ;;  %v5400_v59 = vmul.f32 %v5173_v3, %v4952_v19  ;;  %v5401_v49 = vmul.f32 %v5173_v3, %v4953_v60 }
 0x77d   : > { %6100 = vst [vmem:[%s8627_s21 + $0x1c0] sm:$0xff] %v5972_v15  ;;  %6101 = vst [vmem:[%s8627_s21 + $0x1c8] sm:$0xff] %v5973_v42  ;;  %v6360_v22 = vmul.f32 %v7169_v47, %v5173_v3  ;;  %v6361_v36 = vmul.f32 %v7170_v18, %v5173_v3  ;;  %v4975_v47 = vld [vmem:[%s8627_s21 + $0x298] sm:$0xff]  ;;  %v7191_v18 = vld [vmem:[%s8627_s21 + $0x690] sm:$0xff] }
 0x77e   : > { %7293 = vst [vmem:[%s8627_s21 + $0x5c0] sm:$0xff] %v6612_v45  ;;  %7294 = vst [vmem:[%s8627_s21 + $0x5c8] sm:$0xff] %v6613_v10  ;;  %v5656_v48 = vpop.permute.xlu0 %5655 }
 0x77f   : > { %v5862_v51 = vadd.f32 %v5656_v48, %v5414_v25  ;;  %v5863_v6 = vadd.f32 %v5656_v48, %v5415_v52  ;;  %v6502_v28 = vadd.f32 %v6374_v31, %v5656_v48  ;;  %v6503_v44 = vadd.f32 %v6375_v41, %v5656_v48  ;;  %5780 = vperm.xlu1 %7963, %v4890_v21   ;;  %v5621_v33 = vpop.permute.xlu1 %5620  ;;  %v4974_v31 = vld [vmem:[%s8627_s21 + $0x290] sm:$0xff]  ;;  %v4960_v41 = vld [vmem:[%s8627_s21 + $0x220] sm:$0xff] }
 0x780   : > { %v5848_v16 = vadd.f32 %v5621_v33, %v5400_v59  ;;  %v5849_v17 = vadd.f32 %v5621_v33, %v5401_v49  ;;  %v6488_v57 = vadd.f32 %v6360_v22, %v5621_v33  ;;  %v6489_v63 = vadd.f32 %v6361_v36, %v5621_v33  ;;  %v7192_v59 = vld [vmem:[%s8627_s21 + $0x698] sm:$0xff] }
 0x781   : > { %v5990_v62 = vmax.f32 %v5862_v51, 0.0  ;;  %v5991_v5 = vmax.f32 %v5863_v6, 0.0  ;;  %v6630_v50 = vmax.f32 %v6502_v28, 0.0  ;;  %v6631_v24 = vmax.f32 %v6503_v44, 0.0  ;;  %v4961_v51 = vld [vmem:[%s8627_s21 + $0x228] sm:$0xff]  ;;  %v7177_v6 = vld [vmem:[%s8627_s21 + $0x620] sm:$0xff] }
 0x782   : > { %v5976_v30 = vmax.f32 %v5848_v16, 0.0  ;;  %v5977_v12 = vmax.f32 %v5849_v17, 0.0  ;;  %v6616_v0 = vmax.f32 %v6488_v57, 0.0  ;;  %v6617_v40 = vmax.f32 %v6489_v63, 0.0  ;;  %v5218_v43 = vpop.permute.xlu0 %5217  ;;  %v7178_v28 = vld [vmem:[%s8627_s21 + $0x628] sm:$0xff] }
 0x783   : > { %6118 = vst [vmem:[%s8627_s21 + $0x250] sm:$0xff] %v5990_v62  ;;  %6119 = vst [vmem:[%s8627_s21 + $0x258] sm:$0xff] %v5991_v5  ;;  %v5183_v1 = vpop.permute.xlu1 %5182  ;;  %v5418_v26 = vmul.f32 %v5218_v43, %v4970_v27  ;;  %v5419_v53 = vmul.f32 %v5218_v43, %v4971_v38  ;;  %v6378_v20 = vmul.f32 %v7187_v23, %v5218_v43 }
 0x784   : > { %7311 = vst [vmem:[%s8627_s21 + $0x650] sm:$0xff] %v6630_v50  ;;  %7312 = vst [vmem:[%s8627_s21 + $0x658] sm:$0xff] %v6631_v24  ;;  %v6379_v9 = vmul.f32 %v7188_v11, %v5218_v43  ;;  %v5404_v37 = vmul.f32 %v5183_v1, %v4956_v39  ;;  %v5405_v14 = vmul.f32 %v5183_v1, %v4957_v35  ;;  %v4964_v35 = vld [vmem:[%s8627_s21 + $0x240] sm:$0xff] }
 0x785   : > { %6104 = vst [vmem:[%s8627_s21 + $0x1e0] sm:$0xff] %v5976_v30  ;;  %6105 = vst [vmem:[%s8627_s21 + $0x1e8] sm:$0xff] %v5977_v12  ;;  %v6364_v29 = vmul.f32 %v7173_v8, %v5183_v1  ;;  %v6365_v13 = vmul.f32 %v7174_v34, %v5183_v1  ;;  %v4979_v8 = vld [vmem:[%s8627_s21 + $0x2b8] sm:$0xff]  ;;  %v7195_v34 = vld [vmem:[%s8627_s21 + $0x6b0] sm:$0xff] }
 0x786   : > { %7297 = vst [vmem:[%s8627_s21 + $0x5e0] sm:$0xff] %v6616_v0  ;;  %7298 = vst [vmem:[%s8627_s21 + $0x5e8] sm:$0xff] %v6617_v40  ;;  %v5666_v7 = vpop.permute.xlu0 %5665 }
 0x787   : > { %v5866_v56 = vadd.f32 %v5666_v7, %v5418_v26  ;;  %v5867_v46 = vadd.f32 %v5666_v7, %v5419_v53  ;;  %v6506_v54 = vadd.f32 %v6378_v20, %v5666_v7  ;;  %v6507_v55 = vadd.f32 %v6379_v9, %v5666_v7  ;;  %v5631_v15 = vpop.permute.xlu1 %5630  ;;  %v4978_v9 = vld [vmem:[%s8627_s21 + $0x2b0] sm:$0xff] }
 0x788   : > { %v5852_v42 = vadd.f32 %v5631_v15, %v5404_v37  ;;  %v5853_v45 = vadd.f32 %v5631_v15, %v5405_v14  ;;  %v6492_v10 = vadd.f32 %v6364_v29, %v5631_v15  ;;  %v6493_v32 = vadd.f32 %v6365_v13, %v5631_v15  ;;  %v7196_v37 = vld [vmem:[%s8627_s21 + $0x6b8] sm:$0xff] }
 0x789   : > { %v5994_v4 = vmax.f32 %v5866_v56, 0.0  ;;  %v5995_v19 = vmax.f32 %v5867_v46, 0.0  ;;  %v6634_v3 = vmax.f32 %v6506_v54, 0.0  ;;  %v6635_v61 = vmax.f32 %v6507_v55, 0.0  ;;  %v4965_v56 = vld [vmem:[%s8627_s21 + $0x248] sm:$0xff]  ;;  %v7181_v46 = vld [vmem:[%s8627_s21 + $0x640] sm:$0xff] }
 0x78a   : > { %v5980_v58 = vmax.f32 %v5852_v42, 0.0  ;;  %v5981_v2 = vmax.f32 %v5853_v45, 0.0  ;;  %v6620_v21 = vmax.f32 %v6492_v10, 0.0  ;;  %v6621_v25 = vmax.f32 %v6493_v32, 0.0  ;;  %v5228_v52 = vpop.permute.xlu0 %5227  ;;  %v7182_v54 = vld [vmem:[%s8627_s21 + $0x648] sm:$0xff] }
 0x78b   : > { %6122 = vst [vmem:[%s8627_s21 + $0x270] sm:$0xff] %v5994_v4  ;;  %6123 = vst [vmem:[%s8627_s21 + $0x278] sm:$0xff] %v5995_v19  ;;  %v5193_v60 = vpop.permute.xlu1 %5192  ;;  %v5422_v49 = vmul.f32 %v5228_v52, %v4974_v31  ;;  %v5423_v22 = vmul.f32 %v5228_v52, %v4975_v47  ;;  %v6382_v36 = vmul.f32 %v7191_v18, %v5228_v52 }
 0x78c   : > { %7315 = vst [vmem:[%s8627_s21 + $0x670] sm:$0xff] %v6634_v3  ;;  %7316 = vst [vmem:[%s8627_s21 + $0x678] sm:$0xff] %v6635_v61  ;;  %v6383_v48 = vmul.f32 %v7192_v59, %v5228_v52  ;;  %v5408_v44 = vmul.f32 %v5193_v60, %v4960_v41  ;;  %v5409_v33 = vmul.f32 %v5193_v60, %v4961_v51  ;;  %v4968_v51 = vld [vmem:[%s8627_s21 + $0x260] sm:$0xff] }
 0x78d   : > { %6108 = vst [vmem:[%s8627_s21 + $0x200] sm:$0xff] %v5980_v58  ;;  %6109 = vst [vmem:[%s8627_s21 + $0x208] sm:$0xff] %v5981_v2  ;;  %v6368_v16 = vmul.f32 %v7177_v6, %v5193_v60  ;;  %v6369_v17 = vmul.f32 %v7178_v28, %v5193_v60  ;;  %v4983_v6 = vld [vmem:[%s8627_s21 + $0x2d8] sm:$0xff]  ;;  %v7199_v28 = vld [vmem:[%s8627_s21 + $0x6d0] sm:$0xff] }
 0x78e   : > { %7301 = vst [vmem:[%s8627_s21 + $0x600] sm:$0xff] %v6620_v21  ;;  %7302 = vst [vmem:[%s8627_s21 + $0x608] sm:$0xff] %v6621_v25  ;;  %v5676_v57 = vpop.permute.xlu0 %5675 }
 0x78f   : > { %v5870_v63 = vadd.f32 %v5676_v57, %v5422_v49  ;;  %v5871_v62 = vadd.f32 %v5676_v57, %v5423_v22  ;;  %v6510_v5 = vadd.f32 %v6382_v36, %v5676_v57  ;;  %v6511_v50 = vadd.f32 %v6383_v48, %v5676_v57  ;;  %v5641_v24 = vpop.permute.xlu1 %5640  ;;  %v4982_v48 = vld [vmem:[%s8627_s21 + $0x2d0] sm:$0xff] }
 0x790   : > { %v5856_v30 = vadd.f32 %v5641_v24, %v5408_v44  ;;  %v5857_v12 = vadd.f32 %v5641_v24, %v5409_v33  ;;  %v6496_v0 = vadd.f32 %v6368_v16, %v5641_v24  ;;  %v6497_v40 = vadd.f32 %v6369_v17, %v5641_v24  ;;  %v7200_v44 = vld [vmem:[%s8627_s21 + $0x6d8] sm:$0xff] }
 0x791   : > { %v5998_v43 = vmax.f32 %v5870_v63, 0.0  ;;  %v5999_v27 = vmax.f32 %v5871_v62, 0.0  ;;  %v6638_v39 = vmax.f32 %v6510_v5, 0.0  ;;  %v6639_v1 = vmax.f32 %v6511_v50, 0.0  ;;  %v4969_v63 = vld [vmem:[%s8627_s21 + $0x268] sm:$0xff]  ;;  %v7185_v62 = vld [vmem:[%s8627_s21 + $0x660] sm:$0xff] }
 0x792   : > { %v5984_v38 = vmax.f32 %v5856_v30, 0.0  ;;  %v5985_v23 = vmax.f32 %v5857_v12, 0.0  ;;  %v6624_v11 = vmax.f32 %v6496_v0, 0.0  ;;  %v6625_v26 = vmax.f32 %v6497_v40, 0.0  ;;  %v5238_v53 = vpop.permute.xlu0 %5237  ;;  %v7186_v5 = vld [vmem:[%s8627_s21 + $0x668] sm:$0xff] }
 0x793   : > { %6126 = vst [vmem:[%s8627_s21 + $0x290] sm:$0xff] %v5998_v43  ;;  %6127 = vst [vmem:[%s8627_s21 + $0x298] sm:$0xff] %v5999_v27  ;;  %v5203_v20 = vpop.permute.xlu1 %5202  ;;  %v5426_v14 = vmul.f32 %v5238_v53, %v4978_v9  ;;  %v5427_v29 = vmul.f32 %v5238_v53, %v4979_v8  ;;  %v6386_v13 = vmul.f32 %v7195_v34, %v5238_v53 }
 0x794   : > { %7319 = vst [vmem:[%s8627_s21 + $0x690] sm:$0xff] %v6638_v39  ;;  %7320 = vst [vmem:[%s8627_s21 + $0x698] sm:$0xff] %v6639_v1  ;;  %v6387_v7 = vmul.f32 %v7196_v37, %v5238_v53  ;;  %v5412_v55 = vmul.f32 %v5203_v20, %v4964_v35  ;;  %v5413_v15 = vmul.f32 %v5203_v20, %v4965_v56  ;;  %v4972_v56 = vld [vmem:[%s8627_s21 + $0x280] sm:$0xff] }
 0x795   : > { %6112 = vst [vmem:[%s8627_s21 + $0x220] sm:$0xff] %v5984_v38  ;;  %6113 = vst [vmem:[%s8627_s21 + $0x228] sm:$0xff] %v5985_v23  ;;  %v6372_v42 = vmul.f32 %v7181_v46, %v5203_v20  ;;  %v6373_v45 = vmul.f32 %v7182_v54, %v5203_v20  ;;  %v4987_v46 = vld [vmem:[%s8627_s21 + $0x2f8] sm:$0xff]  ;;  %v7203_v54 = vld [vmem:[%s8627_s21 + $0x6f0] sm:$0xff] }
 0x796   : > { %7305 = vst [vmem:[%s8627_s21 + $0x620] sm:$0xff] %v6624_v11  ;;  %7306 = vst [vmem:[%s8627_s21 + $0x628] sm:$0xff] %v6625_v26  ;;  %v5686_v10 = vpop.permute.xlu0 %5685 }
 0x797   : > { %v5651_v32 = vpop.permute.xlu1 %5650  ;;  %v5874_v4 = vadd.f32 %v5686_v10, %v5426_v14  ;;  %v5875_v19 = vadd.f32 %v5686_v10, %v5427_v29  ;;  %v6514_v3 = vadd.f32 %v6386_v13, %v5686_v10  ;;  %v6515_v61 = vadd.f32 %v6387_v7, %v5686_v10  ;;  %v4986_v7 = vld [vmem:[%s8627_s21 + $0x2f0] sm:$0xff] }
 0x798   : > { %v5860_v58 = vadd.f32 %v5651_v32, %v5412_v55  ;;  %v5861_v2 = vadd.f32 %v5651_v32, %v5413_v15  ;;  %v6500_v21 = vadd.f32 %v6372_v42, %v5651_v32  ;;  %v6501_v25 = vadd.f32 %v6373_v45, %v5651_v32  ;;  %v7204_v55 = vld [vmem:[%s8627_s21 + $0x6f8] sm:$0xff]  ;;  %v4973_v32 = vld [vmem:[%s8627_s21 + $0x288] sm:$0xff] }
 0x799   : > { %v6002_v52 = vmax.f32 %v5874_v4, 0.0  ;;  %v6003_v31 = vmax.f32 %v5875_v19, 0.0  ;;  %v6642_v41 = vmax.f32 %v6514_v3, 0.0  ;;  %v6643_v60 = vmax.f32 %v6515_v61, 0.0  ;;  %v7189_v4 = vld [vmem:[%s8627_s21 + $0x680] sm:$0xff]  ;;  %v7190_v19 = vld [vmem:[%s8627_s21 + $0x688] sm:$0xff] }
 0x79a   : > { %v5988_v47 = vmax.f32 %v5860_v58, 0.0  ;;  %v5989_v18 = vmax.f32 %v5861_v2, 0.0  ;;  %v6628_v59 = vmax.f32 %v6500_v21, 0.0  ;;  %v6629_v49 = vmax.f32 %v6501_v25, 0.0 }
 0x79b   : > { %v5248_v22 = vpop.permute.xlu0 %5247  ;;  %v5213_v36 = vpop.permute.xlu1 %5212  ;;  %6130 = vst [vmem:[%s8627_s21 + $0x2b0] sm:$0xff] %v6002_v52  ;;  %6131 = vst [vmem:[%s8627_s21 + $0x2b8] sm:$0xff] %v6003_v31 }
 0x79c   : > { %7323 = vst [vmem:[%s8627_s21 + $0x6b0] sm:$0xff] %v6642_v41  ;;  %7324 = vst [vmem:[%s8627_s21 + $0x6b8] sm:$0xff] %v6643_v60  ;;  %v5430_v33 = vmul.f32 %v5248_v22, %v4982_v48  ;;  %v5431_v16 = vmul.f32 %v5248_v22, %v4983_v6  ;;  %v6390_v17 = vmul.f32 %v7199_v28, %v5248_v22 }
 0x79d   : > { %6116 = vst [vmem:[%s8627_s21 + $0x240] sm:$0xff] %v5988_v47  ;;  %6117 = vst [vmem:[%s8627_s21 + $0x248] sm:$0xff] %v5989_v18  ;;  %v6391_v57 = vmul.f32 %v7200_v44, %v5248_v22  ;;  %v5416_v50 = vmul.f32 %v5213_v36, %v4968_v51  ;;  %v5417_v24 = vmul.f32 %v5213_v36, %v4969_v63  ;;  %v4976_v63 = vld [vmem:[%s8627_s21 + $0x2a0] sm:$0xff] }
 0x79e   : > { %7309 = vst [vmem:[%s8627_s21 + $0x640] sm:$0xff] %v6628_v59  ;;  %7310 = vst [vmem:[%s8627_s21 + $0x648] sm:$0xff] %v6629_v49  ;;  %v6376_v30 = vmul.f32 %v7185_v62, %v5213_v36  ;;  %v6377_v12 = vmul.f32 %v7186_v5, %v5213_v36  ;;  %v4991_v62 = vld [vmem:[%s8627_s21 + $0x318] sm:$0xff]  ;;  %v7207_v5 = vld [vmem:[%s8627_s21 + $0x710] sm:$0xff] }
 0x79f   : > { %v5696_v0 = vpop.permute.xlu0 %5695  ;;  %v5661_v40 = vpop.permute.xlu1 %5660 }
 0x7a0   : > { %v5878_v43 = vadd.f32 %v5696_v0, %v5430_v33  ;;  %v5879_v27 = vadd.f32 %v5696_v0, %v5431_v16  ;;  %v6518_v39 = vadd.f32 %v6390_v17, %v5696_v0  ;;  %v6519_v1 = vadd.f32 %v6391_v57, %v5696_v0  ;;  %v4990_v57 = vld [vmem:[%s8627_s21 + $0x310] sm:$0xff] }
 0x7a1   : > { %v5864_v38 = vadd.f32 %v5661_v40, %v5416_v50  ;;  %v5865_v23 = vadd.f32 %v5661_v40, %v5417_v24  ;;  %v6504_v11 = vadd.f32 %v6376_v30, %v5661_v40  ;;  %v6505_v26 = vadd.f32 %v6377_v12, %v5661_v40  ;;  %v7208_v50 = vld [vmem:[%s8627_s21 + $0x718] sm:$0xff]  ;;  %v4977_v40 = vld [vmem:[%s8627_s21 + $0x2a8] sm:$0xff] }
 0x7a2   : > { %v6006_v53 = vmax.f32 %v5878_v43, 0.0  ;;  %v6007_v20 = vmax.f32 %v5879_v27, 0.0  ;;  %v6646_v9 = vmax.f32 %v6518_v39, 0.0  ;;  %v6647_v35 = vmax.f32 %v6519_v1, 0.0  ;;  %v7193_v43 = vld [vmem:[%s8627_s21 + $0x6a0] sm:$0xff]  ;;  %v7194_v27 = vld [vmem:[%s8627_s21 + $0x6a8] sm:$0xff] }
 0x7a3   : > { %v5992_v8 = vmax.f32 %v5864_v38, 0.0  ;;  %v5993_v34 = vmax.f32 %v5865_v23, 0.0  ;;  %v6632_v37 = vmax.f32 %v6504_v11, 0.0  ;;  %v6633_v14 = vmax.f32 %v6505_v26, 0.0  ;;  %v5258_v29 = vpop.permute.xlu0 %5257  ;;  %v5223_v13 = vpop.permute.xlu1 %5222 }
 0x7a4   : > { %6134 = vst [vmem:[%s8627_s21 + $0x2d0] sm:$0xff] %v6006_v53  ;;  %6135 = vst [vmem:[%s8627_s21 + $0x2d8] sm:$0xff] %v6007_v20  ;;  %v5434_v15 = vmul.f32 %v5258_v29, %v4986_v7  ;;  %v5435_v42 = vmul.f32 %v5258_v29, %v4987_v46  ;;  %v6394_v45 = vmul.f32 %v7203_v54, %v5258_v29 }
 0x7a5   : > { %7327 = vst [vmem:[%s8627_s21 + $0x6d0] sm:$0xff] %v6646_v9  ;;  %7328 = vst [vmem:[%s8627_s21 + $0x6d8] sm:$0xff] %v6647_v35  ;;  %v6395_v10 = vmul.f32 %v7204_v55, %v5258_v29  ;;  %v5420_v3 = vmul.f32 %v5223_v13, %v4972_v56  ;;  %v5421_v61 = vmul.f32 %v5223_v13, %v4973_v32  ;;  %v4980_v32 = vld [vmem:[%s8627_s21 + $0x2c0] sm:$0xff] }
 0x7a6   : > { %6120 = vst [vmem:[%s8627_s21 + $0x260] sm:$0xff] %v5992_v8  ;;  %6121 = vst [vmem:[%s8627_s21 + $0x268] sm:$0xff] %v5993_v34  ;;  %v6380_v58 = vmul.f32 %v7189_v4, %v5223_v13  ;;  %v6381_v2 = vmul.f32 %v7190_v19, %v5223_v13  ;;  %v4995_v4 = vld [vmem:[%s8627_s21 + $0x338] sm:$0xff]  ;;  %v7211_v19 = vld [vmem:[%s8627_s21 + $0x730] sm:$0xff] }
 0x7a7   : > { %7313 = vst [vmem:[%s8627_s21 + $0x660] sm:$0xff] %v6632_v37  ;;  %7314 = vst [vmem:[%s8627_s21 + $0x668] sm:$0xff] %v6633_v14  ;;  %v5706_v21 = vpop.permute.xlu0 %5705  ;;  %v5671_v25 = vpop.permute.xlu1 %5670 }
 0x7a8   : > { %v5882_v52 = vadd.f32 %v5706_v21, %v5434_v15  ;;  %v5883_v31 = vadd.f32 %v5706_v21, %v5435_v42  ;;  %v6522_v41 = vadd.f32 %v6394_v45, %v5706_v21  ;;  %v6523_v60 = vadd.f32 %v6395_v10, %v5706_v21  ;;  %v4994_v10 = vld [vmem:[%s8627_s21 + $0x330] sm:$0xff] }
 0x7a9   : > { %v5868_v47 = vadd.f32 %v5671_v25, %v5420_v3  ;;  %v5869_v18 = vadd.f32 %v5671_v25, %v5421_v61  ;;  %v6508_v59 = vadd.f32 %v6380_v58, %v5671_v25  ;;  %v6509_v49 = vadd.f32 %v6381_v2, %v5671_v25  ;;  %v7212_v3 = vld [vmem:[%s8627_s21 + $0x738] sm:$0xff]  ;;  %v4981_v25 = vld [vmem:[%s8627_s21 + $0x2c8] sm:$0xff] }
 0x7aa   : > { %v6010_v22 = vmax.f32 %v5882_v52, 0.0  ;;  %v6011_v36 = vmax.f32 %v5883_v31, 0.0  ;;  %v6650_v48 = vmax.f32 %v6522_v41, 0.0  ;;  %v6651_v51 = vmax.f32 %v6523_v60, 0.0  ;;  %v7197_v52 = vld [vmem:[%s8627_s21 + $0x6c0] sm:$0xff]  ;;  %v7198_v31 = vld [vmem:[%s8627_s21 + $0x6c8] sm:$0xff] }
 0x7ab   : > { %v5996_v6 = vmax.f32 %v5868_v47, 0.0  ;;  %v5997_v28 = vmax.f32 %v5869_v18, 0.0  ;;  %v6636_v44 = vmax.f32 %v6508_v59, 0.0  ;;  %v6637_v33 = vmax.f32 %v6509_v49, 0.0  ;;  %v5268_v16 = vpop.permute.xlu0 %5267  ;;  %v5233_v17 = vpop.permute.xlu1 %5232 }
 0x7ac   : > { %6138 = vst [vmem:[%s8627_s21 + $0x2f0] sm:$0xff] %v6010_v22  ;;  %6139 = vst [vmem:[%s8627_s21 + $0x2f8] sm:$0xff] %v6011_v36  ;;  %v5438_v24 = vmul.f32 %v5268_v16, %v4990_v57  ;;  %v5439_v30 = vmul.f32 %v5268_v16, %v4991_v62  ;;  %v6398_v12 = vmul.f32 %v7207_v5, %v5268_v16 }
 0x7ad   : > { %7331 = vst [vmem:[%s8627_s21 + $0x6f0] sm:$0xff] %v6650_v48  ;;  %7332 = vst [vmem:[%s8627_s21 + $0x6f8] sm:$0xff] %v6651_v51  ;;  %v6399_v0 = vmul.f32 %v7208_v50, %v5268_v16  ;;  %v5424_v39 = vmul.f32 %v5233_v17, %v4976_v63  ;;  %v5425_v1 = vmul.f32 %v5233_v17, %v4977_v40  ;;  %v4984_v40 = vld [vmem:[%s8627_s21 + $0x2e0] sm:$0xff] }
 0x7ae   : > { %6124 = vst [vmem:[%s8627_s21 + $0x280] sm:$0xff] %v5996_v6  ;;  %6125 = vst [vmem:[%s8627_s21 + $0x288] sm:$0xff] %v5997_v28  ;;  %v6384_v38 = vmul.f32 %v7193_v43, %v5233_v17  ;;  %v6385_v23 = vmul.f32 %v7194_v27, %v5233_v17  ;;  %v4999_v43 = vld [vmem:[%s8627_s21 + $0x358] sm:$0xff]  ;;  %v7215_v27 = vld [vmem:[%s8627_s21 + $0x750] sm:$0xff] }
 0x7af   : > { %7317 = vst [vmem:[%s8627_s21 + $0x680] sm:$0xff] %v6636_v44  ;;  %7318 = vst [vmem:[%s8627_s21 + $0x688] sm:$0xff] %v6637_v33  ;;  %v5716_v11 = vpop.permute.xlu0 %5715  ;;  %v5681_v26 = vpop.permute.xlu1 %5680 }
 0x7b0   : > { %v5886_v53 = vadd.f32 %v5716_v11, %v5438_v24  ;;  %v5887_v20 = vadd.f32 %v5716_v11, %v5439_v30  ;;  %v6526_v9 = vadd.f32 %v6398_v12, %v5716_v11  ;;  %v6527_v35 = vadd.f32 %v6399_v0, %v5716_v11  ;;  %v4998_v0 = vld [vmem:[%s8627_s21 + $0x350] sm:$0xff] }
 0x7b1   : > { %v5872_v8 = vadd.f32 %v5681_v26, %v5424_v39  ;;  %v5873_v34 = vadd.f32 %v5681_v26, %v5425_v1  ;;  %v6512_v37 = vadd.f32 %v6384_v38, %v5681_v26  ;;  %v6513_v14 = vadd.f32 %v6385_v23, %v5681_v26  ;;  %v7216_v39 = vld [vmem:[%s8627_s21 + $0x758] sm:$0xff]  ;;  %v4985_v26 = vld [vmem:[%s8627_s21 + $0x2e8] sm:$0xff] }
 0x7b2   : > { %v6014_v29 = vmax.f32 %v5886_v53, 0.0  ;;  %v6015_v13 = vmax.f32 %v5887_v20, 0.0  ;;  %v6654_v7 = vmax.f32 %v6526_v9, 0.0  ;;  %v6655_v56 = vmax.f32 %v6527_v35, 0.0  ;;  %v7201_v53 = vld [vmem:[%s8627_s21 + $0x6e0] sm:$0xff]  ;;  %v7202_v20 = vld [vmem:[%s8627_s21 + $0x6e8] sm:$0xff] }
 0x7b3   : > { %v6000_v46 = vmax.f32 %v5872_v8, 0.0  ;;  %v6001_v54 = vmax.f32 %v5873_v34, 0.0  ;;  %v6640_v55 = vmax.f32 %v6512_v37, 0.0  ;;  %v6641_v15 = vmax.f32 %v6513_v14, 0.0  ;;  %v5278_v42 = vpop.permute.xlu0 %5277  ;;  %v5243_v45 = vpop.permute.xlu1 %5242 }
 0x7b4   : > { %6142 = vst [vmem:[%s8627_s21 + $0x310] sm:$0xff] %v6014_v29  ;;  %6143 = vst [vmem:[%s8627_s21 + $0x318] sm:$0xff] %v6015_v13  ;;  %v5442_v61 = vmul.f32 %v5278_v42, %v4994_v10  ;;  %v5443_v58 = vmul.f32 %v5278_v42, %v4995_v4  ;;  %v6402_v2 = vmul.f32 %v7211_v19, %v5278_v42 }
 0x7b5   : > { %7335 = vst [vmem:[%s8627_s21 + $0x710] sm:$0xff] %v6654_v7  ;;  %7336 = vst [vmem:[%s8627_s21 + $0x718] sm:$0xff] %v6655_v56  ;;  %v6403_v21 = vmul.f32 %v7212_v3, %v5278_v42  ;;  %v5428_v41 = vmul.f32 %v5243_v45, %v4980_v32  ;;  %v5429_v60 = vmul.f32 %v5243_v45, %v4981_v25  ;;  %v4988_v25 = vld [vmem:[%s8627_s21 + $0x300] sm:$0xff] }
 0x7b6   : > { %6128 = vst [vmem:[%s8627_s21 + $0x2a0] sm:$0xff] %v6000_v46  ;;  %6129 = vst [vmem:[%s8627_s21 + $0x2a8] sm:$0xff] %v6001_v54  ;;  %v6388_v47 = vmul.f32 %v7197_v52, %v5243_v45  ;;  %v6389_v18 = vmul.f32 %v7198_v31, %v5243_v45  ;;  %v5003_v52 = vld [vmem:[%s8627_s21 + $0x378] sm:$0xff]  ;;  %v7219_v31 = vld [vmem:[%s8627_s21 + $0x770] sm:$0xff] }
 0x7b7   : > { %7321 = vst [vmem:[%s8627_s21 + $0x6a0] sm:$0xff] %v6640_v55  ;;  %7322 = vst [vmem:[%s8627_s21 + $0x6a8] sm:$0xff] %v6641_v15  ;;  %v5726_v59 = vpop.permute.xlu0 %5725  ;;  %v5691_v49 = vpop.permute.xlu1 %5690 }
 0x7b8   : > { %v5890_v22 = vadd.f32 %v5726_v59, %v5442_v61  ;;  %v5891_v36 = vadd.f32 %v5726_v59, %v5443_v58  ;;  %v6530_v48 = vadd.f32 %v6402_v2, %v5726_v59  ;;  %v6531_v51 = vadd.f32 %v6403_v21, %v5726_v59  ;;  %v5002_v21 = vld [vmem:[%s8627_s21 + $0x370] sm:$0xff] }
 0x7b9   : > { %v5876_v6 = vadd.f32 %v5691_v49, %v5428_v41  ;;  %v5877_v28 = vadd.f32 %v5691_v49, %v5429_v60  ;;  %v6516_v44 = vadd.f32 %v6388_v47, %v5691_v49  ;;  %v6517_v33 = vadd.f32 %v6389_v18, %v5691_v49  ;;  %v7220_v41 = vld [vmem:[%s8627_s21 + $0x778] sm:$0xff]  ;;  %v4989_v49 = vld [vmem:[%s8627_s21 + $0x308] sm:$0xff] }
 0x7ba   : > { %v6018_v16 = vmax.f32 %v5890_v22, 0.0  ;;  %v6019_v17 = vmax.f32 %v5891_v36, 0.0  ;;  %v6658_v57 = vmax.f32 %v6530_v48, 0.0  ;;  %v6659_v63 = vmax.f32 %v6531_v51, 0.0  ;;  %v7205_v22 = vld [vmem:[%s8627_s21 + $0x700] sm:$0xff]  ;;  %v7206_v36 = vld [vmem:[%s8627_s21 + $0x708] sm:$0xff] }
 0x7bb   : > { %v6004_v62 = vmax.f32 %v5876_v6, 0.0  ;;  %v6005_v5 = vmax.f32 %v5877_v28, 0.0  ;;  %v6644_v50 = vmax.f32 %v6516_v44, 0.0  ;;  %v6645_v24 = vmax.f32 %v6517_v33, 0.0  ;;  %v5288_v30 = vpop.permute.xlu0 %5287  ;;  %v5253_v12 = vpop.permute.xlu1 %5252 }
 0x7bc   : > { %6146 = vst [vmem:[%s8627_s21 + $0x330] sm:$0xff] %v6018_v16  ;;  %6147 = vst [vmem:[%s8627_s21 + $0x338] sm:$0xff] %v6019_v17  ;;  %v5446_v1 = vmul.f32 %v5288_v30, %v4998_v0  ;;  %v5447_v38 = vmul.f32 %v5288_v30, %v4999_v43  ;;  %v6406_v23 = vmul.f32 %v7215_v27, %v5288_v30 }
 0x7bd   : > { %7339 = vst [vmem:[%s8627_s21 + $0x730] sm:$0xff] %v6658_v57  ;;  %7340 = vst [vmem:[%s8627_s21 + $0x738] sm:$0xff] %v6659_v63  ;;  %v6407_v11 = vmul.f32 %v7216_v39, %v5288_v30  ;;  %v5432_v9 = vmul.f32 %v5253_v12, %v4984_v40  ;;  %v5433_v35 = vmul.f32 %v5253_v12, %v4985_v26  ;;  %v4992_v26 = vld [vmem:[%s8627_s21 + $0x320] sm:$0xff] }
 0x7be   : > { %6132 = vst [vmem:[%s8627_s21 + $0x2c0] sm:$0xff] %v6004_v62  ;;  %6133 = vst [vmem:[%s8627_s21 + $0x2c8] sm:$0xff] %v6005_v5  ;;  %v6392_v8 = vmul.f32 %v7201_v53, %v5253_v12  ;;  %v6393_v34 = vmul.f32 %v7202_v20, %v5253_v12  ;;  %v5007_v53 = vld [vmem:[%s8627_s21 + $0x398] sm:$0xff]  ;;  %v7223_v20 = vld [vmem:[%s8627_s21 + $0x790] sm:$0xff] }
 0x7bf   : > { %7325 = vst [vmem:[%s8627_s21 + $0x6c0] sm:$0xff] %v6644_v50  ;;  %7326 = vst [vmem:[%s8627_s21 + $0x6c8] sm:$0xff] %v6645_v24  ;;  %v5736_v37 = vpop.permute.xlu0 %5735  ;;  %v5701_v14 = vpop.permute.xlu1 %5700 }
 0x7c0   : > { %v5894_v29 = vadd.f32 %v5736_v37, %v5446_v1  ;;  %v5895_v13 = vadd.f32 %v5736_v37, %v5447_v38  ;;  %v6534_v7 = vadd.f32 %v6406_v23, %v5736_v37  ;;  %v6535_v56 = vadd.f32 %v6407_v11, %v5736_v37  ;;  %v5006_v11 = vld [vmem:[%s8627_s21 + $0x390] sm:$0xff] }
 0x7c1   : > { %v5880_v46 = vadd.f32 %v5701_v14, %v5432_v9  ;;  %v5881_v54 = vadd.f32 %v5701_v14, %v5433_v35  ;;  %v6520_v55 = vadd.f32 %v6392_v8, %v5701_v14  ;;  %v6521_v15 = vadd.f32 %v6393_v34, %v5701_v14  ;;  %v7224_v9 = vld [vmem:[%s8627_s21 + $0x798] sm:$0xff]  ;;  %v4993_v14 = vld [vmem:[%s8627_s21 + $0x328] sm:$0xff] }
 0x7c2   : > { %v6022_v42 = vmax.f32 %v5894_v29, 0.0  ;;  %v6023_v45 = vmax.f32 %v5895_v13, 0.0  ;;  %v6662_v10 = vmax.f32 %v6534_v7, 0.0  ;;  %v6663_v32 = vmax.f32 %v6535_v56, 0.0  ;;  %v7209_v29 = vld [vmem:[%s8627_s21 + $0x720] sm:$0xff]  ;;  %v7210_v13 = vld [vmem:[%s8627_s21 + $0x728] sm:$0xff] }
 0x7c3   : > { %v6008_v4 = vmax.f32 %v5880_v46, 0.0  ;;  %v6009_v19 = vmax.f32 %v5881_v54, 0.0  ;;  %v6648_v3 = vmax.f32 %v6520_v55, 0.0  ;;  %v6649_v61 = vmax.f32 %v6521_v15, 0.0  ;;  %v5298_v58 = vpop.permute.xlu0 %5297  ;;  %v5263_v2 = vpop.permute.xlu1 %5262 }
 0x7c4   : > { %6150 = vst [vmem:[%s8627_s21 + $0x350] sm:$0xff] %v6022_v42  ;;  %6151 = vst [vmem:[%s8627_s21 + $0x358] sm:$0xff] %v6023_v45  ;;  %v5450_v60 = vmul.f32 %v5298_v58, %v5002_v21  ;;  %v5451_v47 = vmul.f32 %v5298_v58, %v5003_v52  ;;  %v6410_v18 = vmul.f32 %v7219_v31, %v5298_v58 }
 0x7c5   : > { %7343 = vst [vmem:[%s8627_s21 + $0x750] sm:$0xff] %v6662_v10  ;;  %7344 = vst [vmem:[%s8627_s21 + $0x758] sm:$0xff] %v6663_v32  ;;  %v6411_v59 = vmul.f32 %v7220_v41, %v5298_v58  ;;  %v5436_v48 = vmul.f32 %v5263_v2, %v4988_v25  ;;  %v5437_v51 = vmul.f32 %v5263_v2, %v4989_v49  ;;  %v4996_v49 = vld [vmem:[%s8627_s21 + $0x340] sm:$0xff] }
 0x7c6   : > { %6136 = vst [vmem:[%s8627_s21 + $0x2e0] sm:$0xff] %v6008_v4  ;;  %6137 = vst [vmem:[%s8627_s21 + $0x2e8] sm:$0xff] %v6009_v19  ;;  %v6396_v6 = vmul.f32 %v7205_v22, %v5263_v2  ;;  %v6397_v28 = vmul.f32 %v7206_v36, %v5263_v2  ;;  %v5011_v22 = vld [vmem:[%s8627_s21 + $0x3b8] sm:$0xff]  ;;  %v7227_v36 = vld [vmem:[%s8627_s21 + $0x7b0] sm:$0xff] }
 0x7c7   : > { %7329 = vst [vmem:[%s8627_s21 + $0x6e0] sm:$0xff] %v6648_v3  ;;  %7330 = vst [vmem:[%s8627_s21 + $0x6e8] sm:$0xff] %v6649_v61  ;;  %v5746_v44 = vpop.permute.xlu0 %5745  ;;  %v5711_v33 = vpop.permute.xlu1 %5710 }
 0x7c8   : > { %v5898_v16 = vadd.f32 %v5746_v44, %v5450_v60  ;;  %v5899_v17 = vadd.f32 %v5746_v44, %v5451_v47  ;;  %v6538_v57 = vadd.f32 %v6410_v18, %v5746_v44  ;;  %v6539_v63 = vadd.f32 %v6411_v59, %v5746_v44  ;;  %v5010_v59 = vld [vmem:[%s8627_s21 + $0x3b0] sm:$0xff] }
 0x7c9   : > { %v5884_v62 = vadd.f32 %v5711_v33, %v5436_v48  ;;  %v5885_v5 = vadd.f32 %v5711_v33, %v5437_v51  ;;  %v6524_v50 = vadd.f32 %v6396_v6, %v5711_v33  ;;  %v6525_v24 = vadd.f32 %v6397_v28, %v5711_v33  ;;  %v7228_v48 = vld [vmem:[%s8627_s21 + $0x7b8] sm:$0xff]  ;;  %v4997_v33 = vld [vmem:[%s8627_s21 + $0x348] sm:$0xff] }
 0x7ca   : > { %v6026_v30 = vmax.f32 %v5898_v16, 0.0  ;;  %v6027_v12 = vmax.f32 %v5899_v17, 0.0  ;;  %v6666_v0 = vmax.f32 %v6538_v57, 0.0  ;;  %v6667_v40 = vmax.f32 %v6539_v63, 0.0  ;;  %v7213_v16 = vld [vmem:[%s8627_s21 + $0x740] sm:$0xff]  ;;  %v7214_v17 = vld [vmem:[%s8627_s21 + $0x748] sm:$0xff] }
 0x7cb   : > { %v6012_v43 = vmax.f32 %v5884_v62, 0.0  ;;  %v6013_v27 = vmax.f32 %v5885_v5, 0.0  ;;  %v6652_v39 = vmax.f32 %v6524_v50, 0.0  ;;  %v6653_v1 = vmax.f32 %v6525_v24, 0.0  ;;  %v5308_v38 = vpop.permute.xlu0 %5307  ;;  %v5273_v23 = vpop.permute.xlu1 %5272 }
 0x7cc   : > { %6154 = vst [vmem:[%s8627_s21 + $0x370] sm:$0xff] %v6026_v30  ;;  %6155 = vst [vmem:[%s8627_s21 + $0x378] sm:$0xff] %v6027_v12  ;;  %v5454_v35 = vmul.f32 %v5308_v38, %v5006_v11  ;;  %v5455_v8 = vmul.f32 %v5308_v38, %v5007_v53  ;;  %v6414_v34 = vmul.f32 %v7223_v20, %v5308_v38 }
 0x7cd   : > { %7347 = vst [vmem:[%s8627_s21 + $0x770] sm:$0xff] %v6666_v0  ;;  %7348 = vst [vmem:[%s8627_s21 + $0x778] sm:$0xff] %v6667_v40  ;;  %v6415_v37 = vmul.f32 %v7224_v9, %v5308_v38  ;;  %v5440_v7 = vmul.f32 %v5273_v23, %v4992_v26  ;;  %v5441_v56 = vmul.f32 %v5273_v23, %v4993_v14  ;;  %v5000_v14 = vld [vmem:[%s8627_s21 + $0x360] sm:$0xff] }
 0x7ce   : > { %6140 = vst [vmem:[%s8627_s21 + $0x300] sm:$0xff] %v6012_v43  ;;  %6141 = vst [vmem:[%s8627_s21 + $0x308] sm:$0xff] %v6013_v27  ;;  %v6400_v46 = vmul.f32 %v7209_v29, %v5273_v23  ;;  %v6401_v54 = vmul.f32 %v7210_v13, %v5273_v23  ;;  %v5015_v29 = vld [vmem:[%s8627_s21 + $0x3d8] sm:$0xff]  ;;  %v7231_v13 = vld [vmem:[%s8627_s21 + $0x7d0] sm:$0xff] }
 0x7cf   : > { %7333 = vst [vmem:[%s8627_s21 + $0x700] sm:$0xff] %v6652_v39  ;;  %7334 = vst [vmem:[%s8627_s21 + $0x708] sm:$0xff] %v6653_v1  ;;  %v5756_v55 = vpop.permute.xlu0 %5755  ;;  %v5721_v15 = vpop.permute.xlu1 %5720 }
 0x7d0   : > { %v5902_v42 = vadd.f32 %v5756_v55, %v5454_v35  ;;  %v5903_v45 = vadd.f32 %v5756_v55, %v5455_v8  ;;  %v6542_v10 = vadd.f32 %v6414_v34, %v5756_v55  ;;  %v6543_v32 = vadd.f32 %v6415_v37, %v5756_v55  ;;  %v5014_v37 = vld [vmem:[%s8627_s21 + $0x3d0] sm:$0xff] }
 0x7d1   : > { %v5888_v4 = vadd.f32 %v5721_v15, %v5440_v7  ;;  %v5889_v19 = vadd.f32 %v5721_v15, %v5441_v56  ;;  %v6528_v3 = vadd.f32 %v6400_v46, %v5721_v15  ;;  %v6529_v61 = vadd.f32 %v6401_v54, %v5721_v15  ;;  %v7232_v7 = vld [vmem:[%s8627_s21 + $0x7d8] sm:$0xff]  ;;  %v5001_v15 = vld [vmem:[%s8627_s21 + $0x368] sm:$0xff] }
 0x7d2   : > { %v6030_v58 = vmax.f32 %v5902_v42, 0.0  ;;  %v6031_v2 = vmax.f32 %v5903_v45, 0.0  ;;  %v6670_v21 = vmax.f32 %v6542_v10, 0.0  ;;  %v6671_v25 = vmax.f32 %v6543_v32, 0.0  ;;  %v7217_v42 = vld [vmem:[%s8627_s21 + $0x760] sm:$0xff]  ;;  %v7218_v45 = vld [vmem:[%s8627_s21 + $0x768] sm:$0xff] }
 0x7d3   : > { %v6016_v52 = vmax.f32 %v5888_v4, 0.0  ;;  %v6017_v31 = vmax.f32 %v5889_v19, 0.0  ;;  %v6656_v41 = vmax.f32 %v6528_v3, 0.0  ;;  %v6657_v60 = vmax.f32 %v6529_v61, 0.0  ;;  %v5318_v47 = vpop.permute.xlu0 %5317  ;;  %v5283_v18 = vpop.permute.xlu1 %5282 }
 0x7d4   : > { %6158 = vst [vmem:[%s8627_s21 + $0x390] sm:$0xff] %v6030_v58  ;;  %6159 = vst [vmem:[%s8627_s21 + $0x398] sm:$0xff] %v6031_v2  ;;  %v5458_v51 = vmul.f32 %v5318_v47, %v5010_v59  ;;  %v5459_v6 = vmul.f32 %v5318_v47, %v5011_v22  ;;  %v6418_v28 = vmul.f32 %v7227_v36, %v5318_v47 }
 0x7d5   : > { %7351 = vst [vmem:[%s8627_s21 + $0x790] sm:$0xff] %v6670_v21  ;;  %7352 = vst [vmem:[%s8627_s21 + $0x798] sm:$0xff] %v6671_v25  ;;  %v6419_v44 = vmul.f32 %v7228_v48, %v5318_v47  ;;  %v5444_v57 = vmul.f32 %v5283_v18, %v4996_v49  ;;  %v5445_v63 = vmul.f32 %v5283_v18, %v4997_v33  ;;  %v7221_v33 = vld [vmem:[%s8627_s21 + $0x780] sm:$0xff] }
 0x7d6   : > { %6144 = vst [vmem:[%s8627_s21 + $0x320] sm:$0xff] %v6016_v52  ;;  %6145 = vst [vmem:[%s8627_s21 + $0x328] sm:$0xff] %v6017_v31  ;;  %v6404_v62 = vmul.f32 %v7213_v16, %v5283_v18  ;;  %v6405_v5 = vmul.f32 %v7214_v17, %v5283_v18  ;;  %v7222_v16 = vld [vmem:[%s8627_s21 + $0x788] sm:$0xff] }
 0x7d7   : > { %7337 = vst [vmem:[%s8627_s21 + $0x720] sm:$0xff] %v6656_v41  ;;  %7338 = vst [vmem:[%s8627_s21 + $0x728] sm:$0xff] %v6657_v60  ;;  %v5766_v50 = vpop.permute.xlu0 %5765  ;;  %v5731_v24 = vpop.permute.xlu1 %5730 }
 0x7d8   : > { %v5906_v30 = vadd.f32 %v5766_v50, %v5458_v51  ;;  %v5907_v12 = vadd.f32 %v5766_v50, %v5459_v6  ;;  %v6546_v0 = vadd.f32 %v6418_v28, %v5766_v50  ;;  %v6547_v40 = vadd.f32 %v6419_v44, %v5766_v50  ;;  %v5004_v28 = vld [vmem:[%s8627_s21 + $0x380] sm:$0xff]  ;;  %v5005_v44 = vld [vmem:[%s8627_s21 + $0x388] sm:$0xff] }
 0x7d9   : > { %v5892_v43 = vadd.f32 %v5731_v24, %v5444_v57  ;;  %v5893_v27 = vadd.f32 %v5731_v24, %v5445_v63  ;;  %v6532_v39 = vadd.f32 %v6404_v62, %v5731_v24  ;;  %v6533_v1 = vadd.f32 %v6405_v5, %v5731_v24 }
 0x7da   : > { %v6034_v38 = vmax.f32 %v5906_v30, 0.0  ;;  %v6035_v23 = vmax.f32 %v5907_v12, 0.0  ;;  %v6674_v11 = vmax.f32 %v6546_v0, 0.0  ;;  %v6675_v26 = vmax.f32 %v6547_v40, 0.0 }
 0x7db   : > { %v6020_v53 = vmax.f32 %v5892_v43, 0.0  ;;  %v6021_v20 = vmax.f32 %v5893_v27, 0.0  ;;  %v6660_v9 = vmax.f32 %v6532_v39, 0.0  ;;  %v6661_v35 = vmax.f32 %v6533_v1, 0.0  ;;  %v5328_v8 = vpop.permute.xlu0 %5327  ;;  %v5293_v34 = vpop.permute.xlu1 %5292  ;;  %v5008_v1 = vld [vmem:[%s8627_s21 + $0x3a0] sm:$0xff] }
 0x7dc   : > { %6162 = vst [vmem:[%s8627_s21 + $0x3b0] sm:$0xff] %v6034_v38  ;;  %6163 = vst [vmem:[%s8627_s21 + $0x3b8] sm:$0xff] %v6035_v23  ;;  %v5462_v56 = vmul.f32 %v5328_v8, %v5014_v37  ;;  %v5463_v46 = vmul.f32 %v5328_v8, %v5015_v29  ;;  %v6422_v54 = vmul.f32 %v7231_v13, %v5328_v8  ;;  %v5009_v38 = vld [vmem:[%s8627_s21 + $0x3a8] sm:$0xff]  ;;  %v7225_v23 = vld [vmem:[%s8627_s21 + $0x7a0] sm:$0xff] }
 0x7dd   : > { %7355 = vst [vmem:[%s8627_s21 + $0x7b0] sm:$0xff] %v6674_v11  ;;  %7356 = vst [vmem:[%s8627_s21 + $0x7b8] sm:$0xff] %v6675_v26  ;;  %v6423_v55 = vmul.f32 %v7232_v7, %v5328_v8  ;;  %v5448_v10 = vmul.f32 %v5293_v34, %v5000_v14  ;;  %v5449_v32 = vmul.f32 %v5293_v34, %v5001_v15  ;;  %v7226_v11 = vld [vmem:[%s8627_s21 + $0x7a8] sm:$0xff]  ;;  %v5012_v15 = vld [vmem:[%s8627_s21 + $0x3c0] sm:$0xff] }
 0x7de   : > { %6148 = vst [vmem:[%s8627_s21 + $0x340] sm:$0xff] %v6020_v53  ;;  %6149 = vst [vmem:[%s8627_s21 + $0x348] sm:$0xff] %v6021_v20  ;;  %v6408_v4 = vmul.f32 %v7217_v42, %v5293_v34  ;;  %v6409_v19 = vmul.f32 %v7218_v45, %v5293_v34  ;;  %v5019_v42 = vld [vmem:[%s8627_s21 + $0x3f8] sm:$0xff]  ;;  %v7235_v45 = vld [vmem:[%s8627_s21 + $0x7f0] sm:$0xff] }
 0x7df   : > { %7341 = vst [vmem:[%s8627_s21 + $0x740] sm:$0xff] %v6660_v9  ;;  %7342 = vst [vmem:[%s8627_s21 + $0x748] sm:$0xff] %v6661_v35  ;;  %v5776_v3 = vpop.permute.xlu0 %5775  ;;  %v5741_v61 = vpop.permute.xlu1 %5740 }
 0x7e0   : > { %v5910_v58 = vadd.f32 %v5776_v3, %v5462_v56  ;;  %v5911_v2 = vadd.f32 %v5776_v3, %v5463_v46  ;;  %v6550_v21 = vadd.f32 %v6422_v54, %v5776_v3  ;;  %v6551_v25 = vadd.f32 %v6423_v55, %v5776_v3  ;;  %v5018_v55 = vld [vmem:[%s8627_s21 + $0x3f0] sm:$0xff] }
 0x7e1   : > { %v5896_v52 = vadd.f32 %v5741_v61, %v5448_v10  ;;  %v5897_v31 = vadd.f32 %v5741_v61, %v5449_v32  ;;  %v6536_v41 = vadd.f32 %v6408_v4, %v5741_v61  ;;  %v6537_v60 = vadd.f32 %v6409_v19, %v5741_v61  ;;  %v7236_v10 = vld [vmem:[%s8627_s21 + $0x7f8] sm:$0xff]  ;;  %v5013_v61 = vld [vmem:[%s8627_s21 + $0x3c8] sm:$0xff] }
 0x7e2   : > { %v6038_v47 = vmax.f32 %v5910_v58, 0.0  ;;  %v6039_v18 = vmax.f32 %v5911_v2, 0.0  ;;  %v6678_v59 = vmax.f32 %v6550_v21, 0.0  ;;  %v6679_v49 = vmax.f32 %v6551_v25, 0.0  ;;  %v7229_v58 = vld [vmem:[%s8627_s21 + $0x7c0] sm:$0xff]  ;;  %v7230_v2 = vld [vmem:[%s8627_s21 + $0x7c8] sm:$0xff] }
 0x7e3   : > { %v6024_v22 = vmax.f32 %v5896_v52, 0.0  ;;  %v6025_v36 = vmax.f32 %v5897_v31, 0.0  ;;  %v6664_v48 = vmax.f32 %v6536_v41, 0.0  ;;  %v6665_v51 = vmax.f32 %v6537_v60, 0.0  ;;  %v5303_v6 = vpop.permute.xlu1 %5302 }
 0x7e4   : > { %6166 = vst [vmem:[%s8627_s21 + $0x3d0] sm:$0xff] %v6038_v47  ;;  %6167 = vst [vmem:[%s8627_s21 + $0x3d8] sm:$0xff] %v6039_v18  ;;  %v5452_v17 = vmul.f32 %v5303_v6, %v5004_v28  ;;  %v5453_v57 = vmul.f32 %v5303_v6, %v5005_v44  ;;  %v6412_v63 = vmul.f32 %v7221_v33, %v5303_v6 }
 0x7e5   : > { %7359 = vst [vmem:[%s8627_s21 + $0x7d0] sm:$0xff] %v6678_v59  ;;  %7360 = vst [vmem:[%s8627_s21 + $0x7d8] sm:$0xff] %v6679_v49  ;;  %v6413_v62 = vmul.f32 %v7222_v16, %v5303_v6 }
 0x7e6   : > { %6152 = vst [vmem:[%s8627_s21 + $0x360] sm:$0xff] %v6024_v22  ;;  %6153 = vst [vmem:[%s8627_s21 + $0x368] sm:$0xff] %v6025_v36 }
 0x7e7   : > { %7345 = vst [vmem:[%s8627_s21 + $0x760] sm:$0xff] %v6664_v48  ;;  %7346 = vst [vmem:[%s8627_s21 + $0x768] sm:$0xff] %v6665_v51  ;;  %v5751_v5 = vpop.permute.xlu1 %5750 }
 0x7e8   : > { %v5900_v50 = vadd.f32 %v5751_v5, %v5452_v17  ;;  %v5901_v24 = vadd.f32 %v5751_v5, %v5453_v57  ;;  %v6540_v30 = vadd.f32 %v6412_v63, %v5751_v5  ;;  %v6541_v12 = vadd.f32 %v6413_v62, %v5751_v5  ;;  %v5016_v5 = vld [vmem:[%s8627_s21 + $0x3e0] sm:$0xff] }
 0x7ea   : > { %v6028_v0 = vmax.f32 %v5900_v50, 0.0  ;;  %v6029_v40 = vmax.f32 %v5901_v24, 0.0  ;;  %v6668_v43 = vmax.f32 %v6540_v30, 0.0  ;;  %v6669_v27 = vmax.f32 %v6541_v12, 0.0  ;;  %v5017_v50 = vld [vmem:[%s8627_s21 + $0x3e8] sm:$0xff]  ;;  %v7233_v24 = vld [vmem:[%s8627_s21 + $0x7e0] sm:$0xff] }
 0x7eb   : > { %v5313_v39 = vpop.permute.xlu1 %5312  ;;  %v7234_v30 = vld [vmem:[%s8627_s21 + $0x7e8] sm:$0xff] }
 0x7ec   : > { %6156 = vst [vmem:[%s8627_s21 + $0x380] sm:$0xff] %v6028_v0  ;;  %6157 = vst [vmem:[%s8627_s21 + $0x388] sm:$0xff] %v6029_v40  ;;  %v5456_v26 = vmul.f32 %v5313_v39, %v5008_v1  ;;  %v5457_v53 = vmul.f32 %v5313_v39, %v5009_v38  ;;  %v6416_v20 = vmul.f32 %v7225_v23, %v5313_v39 }
 0x7ed   : > { %7349 = vst [vmem:[%s8627_s21 + $0x780] sm:$0xff] %v6668_v43  ;;  %7350 = vst [vmem:[%s8627_s21 + $0x788] sm:$0xff] %v6669_v27  ;;  %v6417_v9 = vmul.f32 %v7226_v11, %v5313_v39 }
 0x7ef   : > { %v5761_v35 = vpop.permute.xlu1 %5760  ;;  %v5338_v29 = vpop.permute.xlu0 %5337 }
 0x7f0   : > { %v5904_v8 = vadd.f32 %v5761_v35, %v5456_v26  ;;  %v5905_v34 = vadd.f32 %v5761_v35, %v5457_v53  ;;  %v6544_v37 = vadd.f32 %v6416_v20, %v5761_v35  ;;  %v6545_v14 = vadd.f32 %v6417_v9, %v5761_v35 }
 0x7f1   : > { %v5466_v32 = vmul.f32 %v5338_v29, %v5018_v55  ;;  %v5467_v4 = vmul.f32 %v5338_v29, %v5019_v42  ;;  %v6426_v19 = vmul.f32 %v7235_v45, %v5338_v29  ;;  %v6427_v3 = vmul.f32 %v7236_v10, %v5338_v29 }
 0x7f2   : > { %v6032_v13 = vmax.f32 %v5904_v8, 0.0  ;;  %v6033_v7 = vmax.f32 %v5905_v34, 0.0  ;;  %v6672_v56 = vmax.f32 %v6544_v37, 0.0  ;;  %v6673_v46 = vmax.f32 %v6545_v14, 0.0 }
 0x7f3   : > { %v5323_v54 = vpop.permute.xlu1 %5322 }
 0x7f4   : > { %6160 = vst [vmem:[%s8627_s21 + $0x3a0] sm:$0xff] %v6032_v13  ;;  %6161 = vst [vmem:[%s8627_s21 + $0x3a8] sm:$0xff] %v6033_v7  ;;  %v5460_v25 = vmul.f32 %v5323_v54, %v5012_v15  ;;  %v5461_v52 = vmul.f32 %v5323_v54, %v5013_v61  ;;  %v6420_v31 = vmul.f32 %v7229_v58, %v5323_v54 }
 0x7f5   : > { %7353 = vst [vmem:[%s8627_s21 + $0x7a0] sm:$0xff] %v6672_v56  ;;  %7354 = vst [vmem:[%s8627_s21 + $0x7a8] sm:$0xff] %v6673_v46  ;;  %v6421_v41 = vmul.f32 %v7230_v2, %v5323_v54 }
 0x7f7   : > { %v5786_v21 = vpop.permute.xlu0 %5785  ;;  %v5771_v60 = vpop.permute.xlu1 %5770 }
 0x7f8   : > { %v5914_v47 = vadd.f32 %v5786_v21, %v5466_v32  ;;  %v5915_v18 = vadd.f32 %v5786_v21, %v5467_v4  ;;  %v6554_v59 = vadd.f32 %v6426_v19, %v5786_v21  ;;  %v6555_v49 = vadd.f32 %v6427_v3, %v5786_v21 }
 0x7f9   : > { %v5908_v22 = vadd.f32 %v5771_v60, %v5460_v25  ;;  %v5909_v36 = vadd.f32 %v5771_v60, %v5461_v52  ;;  %v6548_v48 = vadd.f32 %v6420_v31, %v5771_v60  ;;  %v6549_v51 = vadd.f32 %v6421_v41, %v5771_v60 }
 0x7fa   : > { %v6042_v6 = vmax.f32 %v5914_v47, 0.0  ;;  %v6043_v28 = vmax.f32 %v5915_v18, 0.0  ;;  %v6682_v44 = vmax.f32 %v6554_v59, 0.0  ;;  %v6683_v33 = vmax.f32 %v6555_v49, 0.0 }
 0x7fb   : > { %v6036_v16 = vmax.f32 %v5908_v22, 0.0  ;;  %v6037_v17 = vmax.f32 %v5909_v36, 0.0  ;;  %v6676_v57 = vmax.f32 %v6548_v48, 0.0  ;;  %v6677_v63 = vmax.f32 %v6549_v51, 0.0  ;;  %v5333_v62 = vpop.permute.xlu1 %5332 }
 0x7fc   : > { %6170 = vst [vmem:[%s8627_s21 + $0x3f0] sm:$0xff] %v6042_v6  ;;  %6171 = vst [vmem:[%s8627_s21 + $0x3f8] sm:$0xff] %v6043_v28  ;;  %v5464_v12 = vmul.f32 %v5333_v62, %v5016_v5  ;;  %v5465_v0 = vmul.f32 %v5333_v62, %v5017_v50  ;;  %v6424_v40 = vmul.f32 %v7233_v24, %v5333_v62 }
 0x7fd   : > { %7363 = vst [vmem:[%s8627_s21 + $0x7f0] sm:$0xff] %v6682_v44  ;;  %7364 = vst [vmem:[%s8627_s21 + $0x7f8] sm:$0xff] %v6683_v33  ;;  %v6425_v43 = vmul.f32 %v7234_v30, %v5333_v62 }
 0x7fe   : > { %6164 = vst [vmem:[%s8627_s21 + $0x3c0] sm:$0xff] %v6036_v16  ;;  %6165 = vst [vmem:[%s8627_s21 + $0x3c8] sm:$0xff] %v6037_v17 }
 0x7ff   : > { %7357 = vst [vmem:[%s8627_s21 + $0x7c0] sm:$0xff] %v6676_v57  ;;  %7358 = vst [vmem:[%s8627_s21 + $0x7c8] sm:$0xff] %v6677_v63  ;;  %v5781_v27 = vpop.permute.xlu1 %5780 }
 0x800   : > { %v5912_v39 = vadd.f32 %v5781_v27, %v5464_v12  ;;  %v5913_v1 = vadd.f32 %v5781_v27, %v5465_v0  ;;  %v6552_v38 = vadd.f32 %v6424_v40, %v5781_v27  ;;  %v6553_v23 = vadd.f32 %v6425_v43, %v5781_v27 }
 0x802   : > { %v6040_v11 = vmax.f32 %v5912_v39, 0.0  ;;  %v6041_v26 = vmax.f32 %v5913_v1, 0.0  ;;  %v6680_v53 = vmax.f32 %v6552_v38, 0.0  ;;  %v6681_v20 = vmax.f32 %v6553_v23, 0.0 }
 0x804   : > { %6168 = vst [vmem:[%s8627_s21 + $0x3e0] sm:$0xff] %v6040_v11  ;;  %6169 = vst [vmem:[%s8627_s21 + $0x3e8] sm:$0xff] %v6041_v26 }
 0x805   : > { %7361 = vst [vmem:[%s8627_s21 + $0x7e0] sm:$0xff] %v6680_v53  ;;  %7362 = vst [vmem:[%s8627_s21 + $0x7e8] sm:$0xff] %v6681_v20 }
 0x806   : > { %s7374_s25 = sshll.u32 %s8254_s19, 14  ;;  %s6843_s11 = sshll.u32 %s8627_s21, 4  ;;  %s6844_s11 = int_to_ptr.vmem [resolvable:$true] %s6843_s11 }
 0x807   : > { %s6826_s9 = scalar_lea.hbm %s11413_s4, %s7374_s25  ;;  %s8201_s23 = smov 16384  }
 0x808   : > { %7893 = sst [smem:[#allocation9]] (%p8324_p12), %s8201_s23  ;;  %s8202_s12 = smov 32768  }
 0x809   : > { %7894 = sst [smem:[#allocation9 + $0x1]] (%p8324_p12), %s8202_s12  ;;  %s8203_s28 = smov 64  }
 0x80a   : > { %7895 = sst [smem:[#allocation9 + $0x2]] (%p8324_p12), %s8203_s28  ;;  %s8204_s29 = smov 256  }
 0x80b   : > { %7896 = sst [smem:[#allocation9 + $0x3]] (%p8324_p12), %s8204_s29  ;;  %s8205_s19 = smov 16  }
 0x80c   : > { %7897 = sst [smem:[#allocation9 + $0x4]] (%p8324_p12), %s8204_s29  ;;  %s8206_s21 = smov [#allocation8]  }
 0x80d   : > { %7898 = sst [smem:[#allocation9 + $0x5]] (%p8324_p12), %s8205_s19  ;;  %s8207_s10 = smov 0  }
 0x80e   : > { %7899 = dma.general (%p8324_p12), %s6844_s11, 32768, %s6826_s9, %s6813_s8, %s8206_s21, [#allocation9], %s8207_s10, 0  }
 0x80f PF: > { %s6871_s20 = sand.u32 1, %s8180_s15   ;;  %p11951_p6 = scmp.ne.s32.totalorder %s11418_s22, 0 }
 0x810   : > { %p11952_p8 = scmp.ge.s32.totalorder %s8192_s18, 2  ;;  %s6872_s6 = scalar_lea.sflag [#allocation4], %s6871_s20 }
 0x812   : > { %p7910_p10 = pnand %p11952_p8, %p11951_p6 }
 0x814   : > { %8175 = dma.done.wait (!%p7910_p10), %s6872_s6, 32768  }
 0x815   : > { %8177 = vsyncadd (!%p7910_p10), %s6872_s6, 4294934528  ;;  %p18_p13 = scmp.ge.s32.totalorder %s8289_s27, 4   ;;  %s11953_s15 = smov %s8184_s16 }
 0x816   : > { %s11954_s16 = smov %s8188_s17  ;;  %s11955_s17 = smov %s8320_s24 }
 0x817   : > { %s11956_s18 = smov %s8289_s27  ;;  %20 = sbr.rel (!%p18_p13) target bundleno = 6 (0x6), region = 99 }
 0x81e   :  { %6877 = vsyncpa [#allocation3], 1 }
 0x81f   :  { %6879 = vsyncpa [#allocation3 + $0x1], 1 }
 0x820   :  { %6880 = vsyncpa [#allocation6], 1 }
 0x821   :  { %6882 = vsyncpa [#allocation6 + $0x1], 1 }
 0x822   :  { %6883 = vsyncpa [#allocation4], 1 }
 0x823   :  { %6885 = vsyncpa [#allocation4 + $0x1], 1 }

</bundles_post_ra>
